<compile_context>
chip_gen: v7x
topology: tpu7x:2x2x1
jax: 0.10.0
libtpu: 0.0.40
codegen_flags: <defaults>
</compile_context>

<pallas_src>
import math
from functools import partial

import jax
import jax.numpy as jnp
from jax.experimental import pallas as pl
from jax.experimental.pallas import tpu as pltpu


def _layernorm(x, g, b, eps=1e-5):
    # f32 math, biased variance + eps=1e-5 to match nn.LayerNorm.
    mu = jnp.mean(x, axis=-1, keepdims=True)
    var = jnp.mean((x - mu) ** 2, axis=-1, keepdims=True)
    return (x - mu) * jax.lax.rsqrt(var + eps) * g + b


def decoder_layer_kernel(
    x_ref, enc_ref,
    sa_wqkv, sa_bqkv, sa_wo, sa_bo,
    ca_wq, ca_bq, ca_wkv, ca_bkv, ca_wo, ca_bo,
    ff_w1, ff_b1, ff_w2, ff_b2,
    n1_g, n1_b, n2_g, n2_b, n3_g, n3_b,
    out_ref,
    *, num_heads, d_k,
):
    f32, bf16 = jnp.float32, jnp.bfloat16
    Bb, S, D = x_ref.shape
    Se = enc_ref.shape[1]
    H = num_heads
    scale = 1.0 / math.sqrt(d_k)

    # Fold the batch tile into the matmul M dimension (rows = Bb*S / Bb*Se).
    x = x_ref[...].astype(f32).reshape(Bb * S, D)
    enc = enc_ref[...].astype(f32).reshape(Bb * Se, D)

    def split_heads(t2d, rows):
        # (Bb*rows, H*d_k) -> (Bb*H, rows, d_k); matches torch .view(...).transpose(1,2)
        return (t2d.reshape(Bb, rows, H, d_k)
                .transpose(0, 2, 1, 3)
                .reshape(Bb * H, rows, d_k))

    def merge_heads(t3d, rows):
        # (Bb*H, rows, d_k) -> (Bb*rows, H*d_k); one relayout, keeps Wo input lane-dense.
        return (t3d.reshape(Bb, H, rows, d_k)
                .transpose(0, 2, 1, 3)
                .reshape(Bb * rows, H * d_k))

    def attention(q2d, k2d, v2d, Sq, Sk):
        q = split_heads(q2d, Sq).astype(bf16)
        k = split_heads(k2d, Sk).astype(bf16)
        v = split_heads(v2d, Sk).astype(bf16)
        s = jnp.einsum('bqd,bkd->bqk', q, k, preferred_element_type=f32) * scale
        s = s - jnp.max(s, axis=-1, keepdims=True)
        p = jnp.exp(s)
        p = p * pl.reciprocal(jnp.sum(p, axis=-1, keepdims=True), approx=True)
        o = jnp.einsum('bqk,bkd->bqd', p.astype(bf16), v, preferred_element_type=f32)
        return merge_heads(o, Sq)                                     # (Bb*Sq, D) f32

    # --- self attention + residual + norm1 (dropout = identity) ---
    qkv = jnp.dot(x.astype(bf16), sa_wqkv[...], preferred_element_type=f32) + sa_bqkv[...]
    o = attention(qkv[:, :D], qkv[:, D:2 * D], qkv[:, 2 * D:], S, S)
    sa = jnp.dot(o.astype(bf16), sa_wo[...], preferred_element_type=f32) + sa_bo[...]
    x1 = _layernorm(x + sa, n1_g[...], n1_b[...])

    # --- encoder-decoder attention + residual + norm2 ---
    q2d = jnp.dot(x1.astype(bf16), ca_wq[...], preferred_element_type=f32) + ca_bq[...]
    kv = jnp.dot(enc.astype(bf16), ca_wkv[...], preferred_element_type=f32) + ca_bkv[...]
    o = attention(q2d, kv[:, :D], kv[:, D:], S, Se)
    ca = jnp.dot(o.astype(bf16), ca_wo[...], preferred_element_type=f32) + ca_bo[...]
    x2 = _layernorm(x1 + ca, n2_g[...], n2_b[...])

    # --- feed-forward + residual + norm3 ---
    h = jnp.dot(x2.astype(bf16), ff_w1[...], preferred_element_type=f32) + ff_b1[...]
    h = jnp.maximum(h, 0.0)
    ff = jnp.dot(h.astype(bf16), ff_w2[...], preferred_element_type=f32) + ff_b2[...]
    x3 = _layernorm(x2 + ff, n3_g[...], n3_b[...])

    out_ref[...] = x3.reshape(Bb, S, D).astype(out_ref.dtype)


def decoder_layer(x, enc_output, params, *, num_heads):
    B, S, D = x.shape
    _, Se, _ = enc_output.shape
    assert D % num_heads == 0
    H = num_heads
    d_k = D // H
    d_ff = params["ff_w1"].shape[1]
    bf16, f32 = jnp.bfloat16, jnp.float32

    # Fold as many batch elements per grid step as possible (largest divisor of B
    # with B_blk*S rows <= 512) so matmul M is maximized and grid-step overhead amortized.
    B_blk = 1
    for cand in range(B, 0, -1):
        if B % cand == 0 and cand * S <= 512:
            B_blk = cand
            break
    nb = B // B_blk

    # Fused, lane-dense weights (stored [in, out]; bf16 for MXU feeds, f32 biases/LN).
    sa_wqkv = jnp.concatenate(
        [params["sa_wq"], params["sa_wk"], params["sa_wv"]], axis=1).astype(bf16)
    sa_bqkv = jnp.concatenate(
        [params["sa_bq"], params["sa_bk"], params["sa_bv"]], axis=1).astype(f32)
    ca_wkv = jnp.concatenate([params["ca_wk"], params["ca_wv"]], axis=1).astype(bf16)
    ca_bkv = jnp.concatenate([params["ca_bk"], params["ca_bv"]], axis=1).astype(f32)

    w_args = [
        sa_wqkv, sa_bqkv, params["sa_wo"].astype(bf16), params["sa_bo"].astype(f32),
        params["ca_wq"].astype(bf16), params["ca_bq"].astype(f32),
        ca_wkv, ca_bkv, params["ca_wo"].astype(bf16), params["ca_bo"].astype(f32),
        params["ff_w1"].astype(bf16), params["ff_b1"].astype(f32),
        params["ff_w2"].astype(bf16), params["ff_b2"].astype(f32),
    ]
    for n in ("n1", "n2", "n3"):
        w_args += [params[f"{n}_g"].astype(f32), params[f"{n}_b"].astype(f32)]

    # VMEM budget per chip generation (v7x: 64 MiB physical; v5e/v6e: 128 MiB).
    weight_bytes = sum(int(a.size) * a.dtype.itemsize for a in w_args)
    act_bytes = (2 * B_blk * S * D + B_blk * Se * D) * x.dtype.itemsize
    inter_bytes = 4 * B_blk * (H * S * max(S, Se) + S * (3 * D + d_ff) + S * 4 * D)
    est = int(2 * weight_bytes + 2 * act_bytes + 2 * inter_bytes) + (8 << 20)
    try:
        cap = int(pltpu.get_tpu_info().vmem_capacity_bytes)
    except Exception:
        cap = 64 << 20
    vmem_limit = max(min(est, cap - (8 << 20)), 16 << 20)

    kernel = partial(decoder_layer_kernel, num_heads=H, d_k=d_k)

    def build_call(single_buffer_weights):
        def weight_spec(a):
            nd = a.ndim
            idx = lambda b, _nd=nd: (0,) * _nd
            if single_buffer_weights:
                # Grid-invariant weights: no second pipeline buffer (halves weight VMEM).
                return pl.BlockSpec(a.shape, idx,
                                    pipeline_mode=pl.Buffered(buffer_count=1))
            return pl.BlockSpec(a.shape, idx)

        in_specs = [
            pl.BlockSpec((B_blk, S, D), lambda b: (b, 0, 0)),    # x batch tile
            pl.BlockSpec((B_blk, Se, D), lambda b: (b, 0, 0)),   # enc_output batch tile
        ] + [weight_spec(a) for a in w_args]
        out_spec = pl.BlockSpec((B_blk, S, D), lambda b: (b, 0, 0))

        return pl.pallas_call(
            kernel,
            out_shape=jax.ShapeDtypeStruct((B, S, D), x.dtype),
            grid_spec=pltpu.PrefetchScalarGridSpec(
                num_scalar_prefetch=0,
                grid=(nb,),
                in_specs=in_specs,
                out_specs=out_spec,
            ),
            compiler_params=pltpu.CompilerParams(
                dimension_semantics=("parallel",),
                vmem_limit_bytes=vmem_limit,
            ),
        )

    try:
        return build_call(True)(x, enc_output, *w_args)
    except Exception:
        # Fallback if this JAX build rejects single-buffered pipeline_mode on pallas_call.
        return build_call(False)(x, enc_output, *w_args)


def init_params(key, d_model, d_ff):
    """Deterministic parameter init (PyTorch-style uniform fan-in bounds), f32."""
    keys = iter(jax.random.split(key, 16))

    def lin(k, fan_in, fan_out):
        kw, kb = jax.random.split(k)
        lim = 1.0 / math.sqrt(fan_in)
        w = jax.random.uniform(kw, (fan_in, fan_out), jnp.float32, -lim, lim)
        b = jax.random.uniform(kb, (1, fan_out), jnp.float32, -lim, lim)
        return w, b

    p = {}
    for prefix in ("sa", "ca"):
        for name in ("q", "k", "v", "o"):
            w, b = lin(next(keys), d_model, d_model)
            p[f"{prefix}_w{name}"] = w
            p[f"{prefix}_b{name}"] = b
    p["ff_w1"], p["ff_b1"] = lin(next(keys), d_model, d_ff)
    p["ff_w2"], p["ff_b2"] = lin(next(keys), d_ff, d_model)
    for n in ("n1", "n2", "n3"):
        p[f"{n}_g"] = jnp.ones((1, d_model), jnp.float32)
        p[f"{n}_b"] = jnp.zeros((1, d_model), jnp.float32)
    return p


if __name__ == "__main__":
    # Small but lane/sublane-dense shapes: D and d_ff multiples of 128, S multiple of 8.
    B, S, Se, D, H, Dff = 2, 8, 8, 128, 4, 256

    key = jax.random.PRNGKey(0)
    kx, ke, kp = jax.random.split(key, 3)
    x = jax.random.normal(kx, (B, S, D), jnp.float32)
    enc_output = jax.random.normal(ke, (B, Se, D), jnp.float32)
    params = init_params(kp, D, Dff)

    out = decoder_layer(x, enc_output, params, num_heads=H)
    out = jax.block_until_ready(out)
    assert out.shape == (B, S, D)
    assert bool(jnp.all(jnp.isfinite(out)))
    print("KERNEL_OK")
</pallas_src>

<mosaic_0001>
module attributes {stable_mosaic.version = 11 : i64} {
  func.func @decoder_layer_kernel(%arg0: i32, %arg1: memref<2x8x128xf32, #tpu.memory_space<vmem>>, %arg2: memref<2x8x128xf32, #tpu.memory_space<vmem>>, %arg3: memref<128x384xbf16, #tpu.memory_space<vmem>>, %arg4: memref<1x384xf32, #tpu.memory_space<vmem>>, %arg5: memref<128x128xbf16, #tpu.memory_space<vmem>>, %arg6: memref<1x128xf32, #tpu.memory_space<vmem>>, %arg7: memref<128x128xbf16, #tpu.memory_space<vmem>>, %arg8: memref<1x128xf32, #tpu.memory_space<vmem>>, %arg9: memref<128x256xbf16, #tpu.memory_space<vmem>>, %arg10: memref<1x256xf32, #tpu.memory_space<vmem>>, %arg11: memref<128x128xbf16, #tpu.memory_space<vmem>>, %arg12: memref<1x128xf32, #tpu.memory_space<vmem>>, %arg13: memref<128x256xbf16, #tpu.memory_space<vmem>>, %arg14: memref<1x256xf32, #tpu.memory_space<vmem>>, %arg15: memref<256x128xbf16, #tpu.memory_space<vmem>>, %arg16: memref<1x128xf32, #tpu.memory_space<vmem>>, %arg17: memref<1x128xf32, #tpu.memory_space<vmem>>, %arg18: memref<1x128xf32, #tpu.memory_space<vmem>>, %arg19: memref<1x128xf32, #tpu.memory_space<vmem>>, %arg20: memref<1x128xf32, #tpu.memory_space<vmem>>, %arg21: memref<1x128xf32, #tpu.memory_space<vmem>>, %arg22: memref<1x128xf32, #tpu.memory_space<vmem>>, %arg23: memref<2x8x128xf32, #tpu.memory_space<vmem>>) attributes {dimension_semantics = [#tpu.dimension_semantics<parallel>], iteration_bounds = array<i64: 1>, scalar_prefetch = 0 : i64, scratch_operands = 0 : i64, tpu.core_type = #tpu.core_type<tc>, window_params = [{transform_indices = @transform_0, window_bounds = array<i64: 2, 8, 128>}, {transform_indices = @transform_1, window_bounds = array<i64: 2, 8, 128>}, {pipeline_mode = #tpu.pipeline_mode<synchronous>, transform_indices = @transform_2, window_bounds = array<i64: 128, 384>}, {pipeline_mode = #tpu.pipeline_mode<synchronous>, transform_indices = @transform_3, window_bounds = array<i64: 1, 384>}, {pipeline_mode = #tpu.pipeline_mode<synchronous>, transform_indices = @transform_4, window_bounds = array<i64: 128, 128>}, {pipeline_mode = #tpu.pipeline_mode<synchronous>, transform_indices = @transform_5, window_bounds = array<i64: 1, 128>}, {pipeline_mode = #tpu.pipeline_mode<synchronous>, transform_indices = @transform_6, window_bounds = array<i64: 128, 128>}, {pipeline_mode = #tpu.pipeline_mode<synchronous>, transform_indices = @transform_7, window_bounds = array<i64: 1, 128>}, {pipeline_mode = #tpu.pipeline_mode<synchronous>, transform_indices = @transform_8, window_bounds = array<i64: 128, 256>}, {pipeline_mode = #tpu.pipeline_mode<synchronous>, transform_indices = @transform_9, window_bounds = array<i64: 1, 256>}, {pipeline_mode = #tpu.pipeline_mode<synchronous>, transform_indices = @transform_10, window_bounds = array<i64: 128, 128>}, {pipeline_mode = #tpu.pipeline_mode<synchronous>, transform_indices = @transform_11, window_bounds = array<i64: 1, 128>}, {pipeline_mode = #tpu.pipeline_mode<synchronous>, transform_indices = @transform_12, window_bounds = array<i64: 128, 256>}, {pipeline_mode = #tpu.pipeline_mode<synchronous>, transform_indices = @transform_13, window_bounds = array<i64: 1, 256>}, {pipeline_mode = #tpu.pipeline_mode<synchronous>, transform_indices = @transform_14, window_bounds = array<i64: 256, 128>}, {pipeline_mode = #tpu.pipeline_mode<synchronous>, transform_indices = @transform_15, window_bounds = array<i64: 1, 128>}, {pipeline_mode = #tpu.pipeline_mode<synchronous>, transform_indices = @transform_16, window_bounds = array<i64: 1, 128>}, {pipeline_mode = #tpu.pipeline_mode<synchronous>, transform_indices = @transform_17, window_bounds = array<i64: 1, 128>}, {pipeline_mode = #tpu.pipeline_mode<synchronous>, transform_indices = @transform_18, window_bounds = array<i64: 1, 128>}, {pipeline_mode = #tpu.pipeline_mode<synchronous>, transform_indices = @transform_19, window_bounds = array<i64: 1, 128>}, {pipeline_mode = #tpu.pipeline_mode<synchronous>, transform_indices = @transform_20, window_bounds = array<i64: 1, 128>}, {pipeline_mode = #tpu.pipeline_mode<synchronous>, transform_indices = @transform_21, window_bounds = array<i64: 1, 128>}, {transform_indices = @transform_22, window_bounds = array<i64: 2, 8, 128>}]} {
    %c0 = arith.constant 0 : index
    %c0_0 = arith.constant 0 : index
    %c0_1 = arith.constant 0 : index
    %0 = vector.load %arg1[%c0, %c0_0, %c0_1] : memref<2x8x128xf32, #tpu.memory_space<vmem>>, vector<2x8x128xf32>
    %1 = vector.shape_cast %0 : vector<2x8x128xf32> to vector<16x128xf32>
    %c0_2 = arith.constant 0 : index
    %c0_3 = arith.constant 0 : index
    %c0_4 = arith.constant 0 : index
    %2 = vector.load %arg2[%c0_2, %c0_3, %c0_4] : memref<2x8x128xf32, #tpu.memory_space<vmem>>, vector<2x8x128xf32>
    %3 = vector.shape_cast %2 : vector<2x8x128xf32> to vector<16x128xf32>
    %4 = arith.truncf %1 : vector<16x128xf32> to vector<16x128xbf16>
    %c0_5 = arith.constant 0 : index
    %c0_6 = arith.constant 0 : index
    %5 = vector.load %arg3[%c0_5, %c0_6] : memref<128x384xbf16, #tpu.memory_space<vmem>>, vector<128x384xbf16>
    %cst = arith.constant dense<0.000000e+00> : vector<16x384xf32>
    %6 = tpu.matmul %4, %5, %cst {dimension_numbers = #tpu.dot_dimension_numbers<[1], [0], [0], [1], [0, 0, 1, 1], [], []>} : vector<16x128xbf16>, vector<128x384xbf16>, vector<16x384xf32> -> vector<16x384xf32>
    %c0_7 = arith.constant 0 : index
    %c0_8 = arith.constant 0 : index
    %7 = vector.load %arg4[%c0_7, %c0_8] : memref<1x384xf32, #tpu.memory_space<vmem>>, vector<1x384xf32>
    %8 = vector.broadcast %7 : vector<1x384xf32> to vector<16x384xf32>
    %9 = arith.addf %6, %8 : vector<16x384xf32>
    %10 = vector.extract_strided_slice %9 {offsets = [0, 0], sizes = [16, 128], strides = [1, 1]} : vector<16x384xf32> to vector<16x128xf32>
    %11 = vector.extract_strided_slice %9 {offsets = [0, 128], sizes = [16, 128], strides = [1, 1]} : vector<16x384xf32> to vector<16x128xf32>
    %12 = vector.extract_strided_slice %9 {offsets = [0, 256], sizes = [16, 128], strides = [1, 1]} : vector<16x384xf32> to vector<16x128xf32>
    %13 = vector.shape_cast %10 : vector<16x128xf32> to vector<2x8x4x32xf32>
    %14 = tpu.transpose %13, [0, 2, 1, 3] : vector<2x8x4x32xf32> -> vector<2x4x8x32xf32>
    %15 = vector.shape_cast %14 : vector<2x4x8x32xf32> to vector<8x8x32xf32>
    %16 = arith.truncf %15 : vector<8x8x32xf32> to vector<8x8x32xbf16>
    %17 = vector.shape_cast %11 : vector<16x128xf32> to vector<2x8x4x32xf32>
    %18 = tpu.transpose %17, [0, 2, 1, 3] : vector<2x8x4x32xf32> -> vector<2x4x8x32xf32>
    %19 = vector.shape_cast %18 : vector<2x4x8x32xf32> to vector<8x8x32xf32>
    %20 = arith.truncf %19 : vector<8x8x32xf32> to vector<8x8x32xbf16>
    %21 = vector.shape_cast %12 : vector<16x128xf32> to vector<2x8x4x32xf32>
    %22 = tpu.transpose %21, [0, 2, 1, 3] : vector<2x8x4x32xf32> -> vector<2x4x8x32xf32>
    %23 = vector.shape_cast %22 : vector<2x4x8x32xf32> to vector<8x8x32xf32>
    %24 = arith.truncf %23 : vector<8x8x32xf32> to vector<8x8x32xbf16>
    "tpu.trace_start"() <{level = 10 : i32, message = "bqd,bkd->bqk"}> : () -> ()
    %cst_9 = arith.constant dense<0.000000e+00> : vector<8x8x8xf32>
    %25 = tpu.matmul %16, %20, %cst_9 {dimension_numbers = #tpu.dot_dimension_numbers<[2], [2], [1], [1], [0, 0, 0, 1, 1, 1], [0], [0]>} : vector<8x8x32xbf16>, vector<8x8x32xbf16>, vector<8x8x8xf32> -> vector<8x8x8xf32>
    "tpu.trace_stop"() : () -> ()
    %cst_10 = arith.constant 0.176776692 : f32
    %26 = vector.broadcast %cst_10 : f32 to vector<8x8x8xf32>
    %27 = arith.mulf %25, %26 : vector<8x8x8xf32>
    %cst_11 = arith.constant dense<0xFF800000> : vector<8x8xf32>
    %28 = vector.multi_reduction <maximumf>, %27, %cst_11 [2] : vector<8x8x8xf32> to vector<8x8xf32>
    %29 = vector.shape_cast %28 : vector<8x8xf32> to vector<8x8x1xf32>
    %30 = vector.broadcast %29 : vector<8x8x1xf32> to vector<8x8x8xf32>
    %31 = arith.subf %27, %30 : vector<8x8x8xf32>
    %32 = math.exp %31 : vector<8x8x8xf32>
    %cst_12 = arith.constant dense<0.000000e+00> : vector<8x8xf32>
    %33 = vector.multi_reduction <add>, %32, %cst_12 [2] : vector<8x8x8xf32> to vector<8x8xf32>
    %34 = vector.shape_cast %33 : vector<8x8xf32> to vector<8x8x1xf32>
    %35 = tpu.reciprocal %34 {approx = true} : vector<8x8x1xf32> -> vector<8x8x1xf32>
    %36 = vector.broadcast %35 : vector<8x8x1xf32> to vector<8x8x8xf32>
    %37 = arith.mulf %32, %36 : vector<8x8x8xf32>
    %38 = arith.truncf %37 : vector<8x8x8xf32> to vector<8x8x8xbf16>
    "tpu.trace_start"() <{level = 10 : i32, message = "bqk,bkd->bqd"}> : () -> ()
    %cst_13 = arith.constant dense<0.000000e+00> : vector<8x8x32xf32>
    %39 = tpu.matmul %38, %24, %cst_13 {dimension_numbers = #tpu.dot_dimension_numbers<[2], [1], [1], [2], [0, 0, 0, 1, 1, 2], [0], [0]>} : vector<8x8x8xbf16>, vector<8x8x32xbf16>, vector<8x8x32xf32> -> vector<8x8x32xf32>
    "tpu.trace_stop"() : () -> ()
    %40 = vector.shape_cast %39 : vector<8x8x32xf32> to vector<2x4x8x32xf32>
    %41 = tpu.transpose %40, [0, 2, 1, 3] : vector<2x4x8x32xf32> -> vector<2x8x4x32xf32>
    %42 = vector.shape_cast %41 : vector<2x8x4x32xf32> to vector<16x128xf32>
    %43 = arith.truncf %42 : vector<16x128xf32> to vector<16x128xbf16>
    %c0_14 = arith.constant 0 : index
    %c0_15 = arith.constant 0 : index
    %44 = vector.load %arg5[%c0_14, %c0_15] : memref<128x128xbf16, #tpu.memory_space<vmem>>, vector<128x128xbf16>
    %cst_16 = arith.constant dense<0.000000e+00> : vector<16x128xf32>
    %45 = tpu.matmul %43, %44, %cst_16 {dimension_numbers = #tpu.dot_dimension_numbers<[1], [0], [0], [1], [0, 0, 1, 1], [], []>} : vector<16x128xbf16>, vector<128x128xbf16>, vector<16x128xf32> -> vector<16x128xf32>
    %c0_17 = arith.constant 0 : index
    %c0_18 = arith.constant 0 : index
    %46 = vector.load %arg6[%c0_17, %c0_18] : memref<1x128xf32, #tpu.memory_space<vmem>>, vector<1x128xf32>
    %47 = vector.broadcast %46 : vector<1x128xf32> to vector<16x128xf32>
    %48 = arith.addf %45, %47 : vector<16x128xf32>
    %49 = arith.addf %1, %48 : vector<16x128xf32>
    %c0_19 = arith.constant 0 : index
    %c0_20 = arith.constant 0 : index
    %50 = vector.load %arg17[%c0_19, %c0_20] : memref<1x128xf32, #tpu.memory_space<vmem>>, vector<1x128xf32>
    %c0_21 = arith.constant 0 : index
    %c0_22 = arith.constant 0 : index
    %51 = vector.load %arg18[%c0_21, %c0_22] : memref<1x128xf32, #tpu.memory_space<vmem>>, vector<1x128xf32>
    %cst_23 = arith.constant dense<0.000000e+00> : vector<16xf32>
    %52 = vector.multi_reduction <add>, %49, %cst_23 [1] : vector<16x128xf32> to vector<16xf32>
    %53 = vector.shape_cast %52 : vector<16xf32> to vector<16x1xf32>
    %cst_24 = arith.constant 1.280000e+02 : f32
    %54 = vector.broadcast %cst_24 : f32 to vector<16x1xf32>
    %55 = arith.divf %53, %54 : vector<16x1xf32>
    %56 = vector.broadcast %55 : vector<16x1xf32> to vector<16x128xf32>
    %57 = arith.subf %49, %56 : vector<16x128xf32>
    %58 = arith.mulf %57, %57 : vector<16x128xf32>
    %cst_25 = arith.constant dense<0.000000e+00> : vector<16xf32>
    %59 = vector.multi_reduction <add>, %58, %cst_25 [1] : vector<16x128xf32> to vector<16xf32>
    %60 = vector.shape_cast %59 : vector<16xf32> to vector<16x1xf32>
    %cst_26 = arith.constant 1.280000e+02 : f32
    %61 = vector.broadcast %cst_26 : f32 to vector<16x1xf32>
    %62 = arith.divf %60, %61 : vector<16x1xf32>
    %63 = vector.broadcast %55 : vector<16x1xf32> to vector<16x128xf32>
    %64 = arith.subf %49, %63 : vector<16x128xf32>
    %cst_27 = arith.constant 9.99999974E-6 : f32
    %65 = vector.broadcast %cst_27 : f32 to vector<16x1xf32>
    %66 = arith.addf %62, %65 : vector<16x1xf32>
    %67 = math.rsqrt %66 : vector<16x1xf32>
    %68 = vector.broadcast %67 : vector<16x1xf32> to vector<16x128xf32>
    %69 = arith.mulf %64, %68 : vector<16x128xf32>
    %70 = vector.broadcast %50 : vector<1x128xf32> to vector<16x128xf32>
    %71 = arith.mulf %69, %70 : vector<16x128xf32>
    %72 = vector.broadcast %51 : vector<1x128xf32> to vector<16x128xf32>
    %73 = arith.addf %71, %72 : vector<16x128xf32>
    %74 = arith.truncf %73 : vector<16x128xf32> to vector<16x128xbf16>
    %c0_28 = arith.constant 0 : index
    %c0_29 = arith.constant 0 : index
    %75 = vector.load %arg7[%c0_28, %c0_29] : memref<128x128xbf16, #tpu.memory_space<vmem>>, vector<128x128xbf16>
    %cst_30 = arith.constant dense<0.000000e+00> : vector<16x128xf32>
    %76 = tpu.matmul %74, %75, %cst_30 {dimension_numbers = #tpu.dot_dimension_numbers<[1], [0], [0], [1], [0, 0, 1, 1], [], []>} : vector<16x128xbf16>, vector<128x128xbf16>, vector<16x128xf32> -> vector<16x128xf32>
    %c0_31 = arith.constant 0 : index
    %c0_32 = arith.constant 0 : index
    %77 = vector.load %arg8[%c0_31, %c0_32] : memref<1x128xf32, #tpu.memory_space<vmem>>, vector<1x128xf32>
    %78 = vector.broadcast %77 : vector<1x128xf32> to vector<16x128xf32>
    %79 = arith.addf %76, %78 : vector<16x128xf32>
    %80 = arith.truncf %3 : vector<16x128xf32> to vector<16x128xbf16>
    %c0_33 = arith.constant 0 : index
    %c0_34 = arith.constant 0 : index
    %81 = vector.load %arg9[%c0_33, %c0_34] : memref<128x256xbf16, #tpu.memory_space<vmem>>, vector<128x256xbf16>
    %cst_35 = arith.constant dense<0.000000e+00> : vector<16x256xf32>
    %82 = tpu.matmul %80, %81, %cst_35 {dimension_numbers = #tpu.dot_dimension_numbers<[1], [0], [0], [1], [0, 0, 1, 1], [], []>} : vector<16x128xbf16>, vector<128x256xbf16>, vector<16x256xf32> -> vector<16x256xf32>
    %c0_36 = arith.constant 0 : index
    %c0_37 = arith.constant 0 : index
    %83 = vector.load %arg10[%c0_36, %c0_37] : memref<1x256xf32, #tpu.memory_space<vmem>>, vector<1x256xf32>
    %84 = vector.broadcast %83 : vector<1x256xf32> to vector<16x256xf32>
    %85 = arith.addf %82, %84 : vector<16x256xf32>
    %86 = vector.extract_strided_slice %85 {offsets = [0, 0], sizes = [16, 128], strides = [1, 1]} : vector<16x256xf32> to vector<16x128xf32>
    %87 = vector.extract_strided_slice %85 {offsets = [0, 128], sizes = [16, 128], strides = [1, 1]} : vector<16x256xf32> to vector<16x128xf32>
    %88 = vector.shape_cast %79 : vector<16x128xf32> to vector<2x8x4x32xf32>
    %89 = tpu.transpose %88, [0, 2, 1, 3] : vector<2x8x4x32xf32> -> vector<2x4x8x32xf32>
    %90 = vector.shape_cast %89 : vector<2x4x8x32xf32> to vector<8x8x32xf32>
    %91 = arith.truncf %90 : vector<8x8x32xf32> to vector<8x8x32xbf16>
    %92 = vector.shape_cast %86 : vector<16x128xf32> to vector<2x8x4x32xf32>
    %93 = tpu.transpose %92, [0, 2, 1, 3] : vector<2x8x4x32xf32> -> vector<2x4x8x32xf32>
    %94 = vector.shape_cast %93 : vector<2x4x8x32xf32> to vector<8x8x32xf32>
    %95 = arith.truncf %94 : vector<8x8x32xf32> to vector<8x8x32xbf16>
    %96 = vector.shape_cast %87 : vector<16x128xf32> to vector<2x8x4x32xf32>
    %97 = tpu.transpose %96, [0, 2, 1, 3] : vector<2x8x4x32xf32> -> vector<2x4x8x32xf32>
    %98 = vector.shape_cast %97 : vector<2x4x8x32xf32> to vector<8x8x32xf32>
    %99 = arith.truncf %98 : vector<8x8x32xf32> to vector<8x8x32xbf16>
    "tpu.trace_start"() <{level = 10 : i32, message = "bqd,bkd->bqk"}> : () -> ()
    %cst_38 = arith.constant dense<0.000000e+00> : vector<8x8x8xf32>
    %100 = tpu.matmul %91, %95, %cst_38 {dimension_numbers = #tpu.dot_dimension_numbers<[2], [2], [1], [1], [0, 0, 0, 1, 1, 1], [0], [0]>} : vector<8x8x32xbf16>, vector<8x8x32xbf16>, vector<8x8x8xf32> -> vector<8x8x8xf32>
    "tpu.trace_stop"() : () -> ()
    %cst_39 = arith.constant 0.176776692 : f32
    %101 = vector.broadcast %cst_39 : f32 to vector<8x8x8xf32>
    %102 = arith.mulf %100, %101 : vector<8x8x8xf32>
    %cst_40 = arith.constant dense<0xFF800000> : vector<8x8xf32>
    %103 = vector.multi_reduction <maximumf>, %102, %cst_40 [2] : vector<8x8x8xf32> to vector<8x8xf32>
    %104 = vector.shape_cast %103 : vector<8x8xf32> to vector<8x8x1xf32>
    %105 = vector.broadcast %104 : vector<8x8x1xf32> to vector<8x8x8xf32>
    %106 = arith.subf %102, %105 : vector<8x8x8xf32>
    %107 = math.exp %106 : vector<8x8x8xf32>
    %cst_41 = arith.constant dense<0.000000e+00> : vector<8x8xf32>
    %108 = vector.multi_reduction <add>, %107, %cst_41 [2] : vector<8x8x8xf32> to vector<8x8xf32>
    %109 = vector.shape_cast %108 : vector<8x8xf32> to vector<8x8x1xf32>
    %110 = tpu.reciprocal %109 {approx = true} : vector<8x8x1xf32> -> vector<8x8x1xf32>
    %111 = vector.broadcast %110 : vector<8x8x1xf32> to vector<8x8x8xf32>
    %112 = arith.mulf %107, %111 : vector<8x8x8xf32>
    %113 = arith.truncf %112 : vector<8x8x8xf32> to vector<8x8x8xbf16>
    "tpu.trace_start"() <{level = 10 : i32, message = "bqk,bkd->bqd"}> : () -> ()
    %cst_42 = arith.constant dense<0.000000e+00> : vector<8x8x32xf32>
    %114 = tpu.matmul %113, %99, %cst_42 {dimension_numbers = #tpu.dot_dimension_numbers<[2], [1], [1], [2], [0, 0, 0, 1, 1, 2], [0], [0]>} : vector<8x8x8xbf16>, vector<8x8x32xbf16>, vector<8x8x32xf32> -> vector<8x8x32xf32>
    "tpu.trace_stop"() : () -> ()
    %115 = vector.shape_cast %114 : vector<8x8x32xf32> to vector<2x4x8x32xf32>
    %116 = tpu.transpose %115, [0, 2, 1, 3] : vector<2x4x8x32xf32> -> vector<2x8x4x32xf32>
    %117 = vector.shape_cast %116 : vector<2x8x4x32xf32> to vector<16x128xf32>
    %118 = arith.truncf %117 : vector<16x128xf32> to vector<16x128xbf16>
    %c0_43 = arith.constant 0 : index
    %c0_44 = arith.constant 0 : index
    %119 = vector.load %arg11[%c0_43, %c0_44] : memref<128x128xbf16, #tpu.memory_space<vmem>>, vector<128x128xbf16>
    %cst_45 = arith.constant dense<0.000000e+00> : vector<16x128xf32>
    %120 = tpu.matmul %118, %119, %cst_45 {dimension_numbers = #tpu.dot_dimension_numbers<[1], [0], [0], [1], [0, 0, 1, 1], [], []>} : vector<16x128xbf16>, vector<128x128xbf16>, vector<16x128xf32> -> vector<16x128xf32>
    %c0_46 = arith.constant 0 : index
    %c0_47 = arith.constant 0 : index
    %121 = vector.load %arg12[%c0_46, %c0_47] : memref<1x128xf32, #tpu.memory_space<vmem>>, vector<1x128xf32>
    %122 = vector.broadcast %121 : vector<1x128xf32> to vector<16x128xf32>
    %123 = arith.addf %120, %122 : vector<16x128xf32>
    %124 = arith.addf %73, %123 : vector<16x128xf32>
    %c0_48 = arith.constant 0 : index
    %c0_49 = arith.constant 0 : index
    %125 = vector.load %arg19[%c0_48, %c0_49] : memref<1x128xf32, #tpu.memory_space<vmem>>, vector<1x128xf32>
    %c0_50 = arith.constant 0 : index
    %c0_51 = arith.constant 0 : index
    %126 = vector.load %arg20[%c0_50, %c0_51] : memref<1x128xf32, #tpu.memory_space<vmem>>, vector<1x128xf32>
    %cst_52 = arith.constant dense<0.000000e+00> : vector<16xf32>
    %127 = vector.multi_reduction <add>, %124, %cst_52 [1] : vector<16x128xf32> to vector<16xf32>
    %128 = vector.shape_cast %127 : vector<16xf32> to vector<16x1xf32>
    %cst_53 = arith.constant 1.280000e+02 : f32
    %129 = vector.broadcast %cst_53 : f32 to vector<16x1xf32>
    %130 = arith.divf %128, %129 : vector<16x1xf32>
    %131 = vector.broadcast %130 : vector<16x1xf32> to vector<16x128xf32>
    %132 = arith.subf %124, %131 : vector<16x128xf32>
    %133 = arith.mulf %132, %132 : vector<16x128xf32>
    %cst_54 = arith.constant dense<0.000000e+00> : vector<16xf32>
    %134 = vector.multi_reduction <add>, %133, %cst_54 [1] : vector<16x128xf32> to vector<16xf32>
    %135 = vector.shape_cast %134 : vector<16xf32> to vector<16x1xf32>
    %cst_55 = arith.constant 1.280000e+02 : f32
    %136 = vector.broadcast %cst_55 : f32 to vector<16x1xf32>
    %137 = arith.divf %135, %136 : vector<16x1xf32>
    %138 = vector.broadcast %130 : vector<16x1xf32> to vector<16x128xf32>
    %139 = arith.subf %124, %138 : vector<16x128xf32>
    %cst_56 = arith.constant 9.99999974E-6 : f32
    %140 = vector.broadcast %cst_56 : f32 to vector<16x1xf32>
    %141 = arith.addf %137, %140 : vector<16x1xf32>
    %142 = math.rsqrt %141 : vector<16x1xf32>
    %143 = vector.broadcast %142 : vector<16x1xf32> to vector<16x128xf32>
    %144 = arith.mulf %139, %143 : vector<16x128xf32>
    %145 = vector.broadcast %125 : vector<1x128xf32> to vector<16x128xf32>
    %146 = arith.mulf %144, %145 : vector<16x128xf32>
    %147 = vector.broadcast %126 : vector<1x128xf32> to vector<16x128xf32>
    %148 = arith.addf %146, %147 : vector<16x128xf32>
    %149 = arith.truncf %148 : vector<16x128xf32> to vector<16x128xbf16>
    %c0_57 = arith.constant 0 : index
    %c0_58 = arith.constant 0 : index
    %150 = vector.load %arg13[%c0_57, %c0_58] : memref<128x256xbf16, #tpu.memory_space<vmem>>, vector<128x256xbf16>
    %cst_59 = arith.constant dense<0.000000e+00> : vector<16x256xf32>
    %151 = tpu.matmul %149, %150, %cst_59 {dimension_numbers = #tpu.dot_dimension_numbers<[1], [0], [0], [1], [0, 0, 1, 1], [], []>} : vector<16x128xbf16>, vector<128x256xbf16>, vector<16x256xf32> -> vector<16x256xf32>
    %c0_60 = arith.constant 0 : index
    %c0_61 = arith.constant 0 : index
    %152 = vector.load %arg14[%c0_60, %c0_61] : memref<1x256xf32, #tpu.memory_space<vmem>>, vector<1x256xf32>
    %153 = vector.broadcast %152 : vector<1x256xf32> to vector<16x256xf32>
    %154 = arith.addf %151, %153 : vector<16x256xf32>
    %cst_62 = arith.constant 0.000000e+00 : f32
    %155 = vector.broadcast %cst_62 : f32 to vector<16x256xf32>
    %156 = arith.maximumf %154, %155 : vector<16x256xf32>
    %157 = arith.truncf %156 : vector<16x256xf32> to vector<16x256xbf16>
    %c0_63 = arith.constant 0 : index
    %c0_64 = arith.constant 0 : index
    %158 = vector.load %arg15[%c0_63, %c0_64] : memref<256x128xbf16, #tpu.memory_space<vmem>>, vector<256x128xbf16>
    %cst_65 = arith.constant dense<0.000000e+00> : vector<16x128xf32>
    %159 = tpu.matmul %157, %158, %cst_65 {dimension_numbers = #tpu.dot_dimension_numbers<[1], [0], [0], [1], [0, 0, 1, 1], [], []>} : vector<16x256xbf16>, vector<256x128xbf16>, vector<16x128xf32> -> vector<16x128xf32>
    %c0_66 = arith.constant 0 : index
    %c0_67 = arith.constant 0 : index
    %160 = vector.load %arg16[%c0_66, %c0_67] : memref<1x128xf32, #tpu.memory_space<vmem>>, vector<1x128xf32>
    %161 = vector.broadcast %160 : vector<1x128xf32> to vector<16x128xf32>
    %162 = arith.addf %159, %161 : vector<16x128xf32>
    %163 = arith.addf %148, %162 : vector<16x128xf32>
    %c0_68 = arith.constant 0 : index
    %c0_69 = arith.constant 0 : index
    %164 = vector.load %arg21[%c0_68, %c0_69] : memref<1x128xf32, #tpu.memory_space<vmem>>, vector<1x128xf32>
    %c0_70 = arith.constant 0 : index
    %c0_71 = arith.constant 0 : index
    %165 = vector.load %arg22[%c0_70, %c0_71] : memref<1x128xf32, #tpu.memory_space<vmem>>, vector<1x128xf32>
    %cst_72 = arith.constant dense<0.000000e+00> : vector<16xf32>
    %166 = vector.multi_reduction <add>, %163, %cst_72 [1] : vector<16x128xf32> to vector<16xf32>
    %167 = vector.shape_cast %166 : vector<16xf32> to vector<16x1xf32>
    %cst_73 = arith.constant 1.280000e+02 : f32
    %168 = vector.broadcast %cst_73 : f32 to vector<16x1xf32>
    %169 = arith.divf %167, %168 : vector<16x1xf32>
    %170 = vector.broadcast %169 : vector<16x1xf32> to vector<16x128xf32>
    %171 = arith.subf %163, %170 : vector<16x128xf32>
    %172 = arith.mulf %171, %171 : vector<16x128xf32>
    %cst_74 = arith.constant dense<0.000000e+00> : vector<16xf32>
    %173 = vector.multi_reduction <add>, %172, %cst_74 [1] : vector<16x128xf32> to vector<16xf32>
    %174 = vector.shape_cast %173 : vector<16xf32> to vector<16x1xf32>
    %cst_75 = arith.constant 1.280000e+02 : f32
    %175 = vector.broadcast %cst_75 : f32 to vector<16x1xf32>
    %176 = arith.divf %174, %175 : vector<16x1xf32>
    %177 = vector.broadcast %169 : vector<16x1xf32> to vector<16x128xf32>
    %178 = arith.subf %163, %177 : vector<16x128xf32>
    %cst_76 = arith.constant 9.99999974E-6 : f32
    %179 = vector.broadcast %cst_76 : f32 to vector<16x1xf32>
    %180 = arith.addf %176, %179 : vector<16x1xf32>
    %181 = math.rsqrt %180 : vector<16x1xf32>
    %182 = vector.broadcast %181 : vector<16x1xf32> to vector<16x128xf32>
    %183 = arith.mulf %178, %182 : vector<16x128xf32>
    %184 = vector.broadcast %164 : vector<1x128xf32> to vector<16x128xf32>
    %185 = arith.mulf %183, %184 : vector<16x128xf32>
    %186 = vector.broadcast %165 : vector<1x128xf32> to vector<16x128xf32>
    %187 = arith.addf %185, %186 : vector<16x128xf32>
    %188 = vector.shape_cast %187 : vector<16x128xf32> to vector<2x8x128xf32>
    %c0_77 = arith.constant 0 : index
    %c0_78 = arith.constant 0 : index
    %c0_79 = arith.constant 0 : index
    %189 = vector.load %arg23[%c0_77, %c0_78, %c0_79] : memref<2x8x128xf32, #tpu.memory_space<vmem>>, vector<2x8x128xf32>
    tpu.vector_store %arg23[%c0_77, %c0_78, %c0_79], %188 {strides = array<i32>} : memref<2x8x128xf32, #tpu.memory_space<vmem>>, vector<2x8x128xf32>,
    return
  }
  func.func @transform_0(%arg0: i32) -> (i32, i32, i32) {
    %c0_i32 = arith.constant 0 : i32
    %c0_i32_0 = arith.constant 0 : i32
    %c0_i32_1 = arith.constant 0 : i32
    return %arg0, %c0_i32, %c0_i32_0 : i32, i32, i32
  }
  func.func @transform_1(%arg0: i32) -> (i32, i32, i32) {
    %c0_i32 = arith.constant 0 : i32
    %c0_i32_0 = arith.constant 0 : i32
    %c0_i32_1 = arith.constant 0 : i32
    return %arg0, %c0_i32, %c0_i32_0 : i32, i32, i32
  }
  func.func @transform_2(%arg0: i32) -> (i32, i32) {
    %c0_i32 = arith.constant 0 : i32
    %c0_i32_0 = arith.constant 0 : i32
    %c0_i32_1 = arith.constant 0 : i32
    return %c0_i32, %c0_i32_0 : i32, i32
  }
  func.func @transform_3(%arg0: i32) -> (i32, i32) {
    %c0_i32 = arith.constant 0 : i32
    %c0_i32_0 = arith.constant 0 : i32
    %c0_i32_1 = arith.constant 0 : i32
    return %c0_i32, %c0_i32_0 : i32, i32
  }
  func.func @transform_4(%arg0: i32) -> (i32, i32) {
    %c0_i32 = arith.constant 0 : i32
    %c0_i32_0 = arith.constant 0 : i32
    %c0_i32_1 = arith.constant 0 : i32
    return %c0_i32, %c0_i32_0 : i32, i32
  }
  func.func @transform_5(%arg0: i32) -> (i32, i32) {
    %c0_i32 = arith.constant 0 : i32
    %c0_i32_0 = arith.constant 0 : i32
    %c0_i32_1 = arith.constant 0 : i32
    return %c0_i32, %c0_i32_0 : i32, i32
  }
  func.func @transform_6(%arg0: i32) -> (i32, i32) {
    %c0_i32 = arith.constant 0 : i32
    %c0_i32_0 = arith.constant 0 : i32
    %c0_i32_1 = arith.constant 0 : i32
    return %c0_i32, %c0_i32_0 : i32, i32
  }
  func.func @transform_7(%arg0: i32) -> (i32, i32) {
    %c0_i32 = arith.constant 0 : i32
    %c0_i32_0 = arith.constant 0 : i32
    %c0_i32_1 = arith.constant 0 : i32
    return %c0_i32, %c0_i32_0 : i32, i32
  }
  func.func @transform_8(%arg0: i32) -> (i32, i32) {
    %c0_i32 = arith.constant 0 : i32
    %c0_i32_0 = arith.constant 0 : i32
    %c0_i32_1 = arith.constant 0 : i32
    return %c0_i32, %c0_i32_0 : i32, i32
  }
  func.func @transform_9(%arg0: i32) -> (i32, i32) {
    %c0_i32 = arith.constant 0 : i32
    %c0_i32_0 = arith.constant 0 : i32
    %c0_i32_1 = arith.constant 0 : i32
    return %c0_i32, %c0_i32_0 : i32, i32
  }
  func.func @transform_10(%arg0: i32) -> (i32, i32) {
    %c0_i32 = arith.constant 0 : i32
    %c0_i32_0 = arith.constant 0 : i32
    %c0_i32_1 = arith.constant 0 : i32
    return %c0_i32, %c0_i32_0 : i32, i32
  }
  func.func @transform_11(%arg0: i32) -> (i32, i32) {
    %c0_i32 = arith.constant 0 : i32
    %c0_i32_0 = arith.constant 0 : i32
    %c0_i32_1 = arith.constant 0 : i32
    return %c0_i32, %c0_i32_0 : i32, i32
  }
  func.func @transform_12(%arg0: i32) -> (i32, i32) {
    %c0_i32 = arith.constant 0 : i32
    %c0_i32_0 = arith.constant 0 : i32
    %c0_i32_1 = arith.constant 0 : i32
    return %c0_i32, %c0_i32_0 : i32, i32
  }
  func.func @transform_13(%arg0: i32) -> (i32, i32) {
    %c0_i32 = arith.constant 0 : i32
    %c0_i32_0 = arith.constant 0 : i32
    %c0_i32_1 = arith.constant 0 : i32
    return %c0_i32, %c0_i32_0 : i32, i32
  }
  func.func @transform_14(%arg0: i32) -> (i32, i32) {
    %c0_i32 = arith.constant 0 : i32
    %c0_i32_0 = arith.constant 0 : i32
    %c0_i32_1 = arith.constant 0 : i32
    return %c0_i32, %c0_i32_0 : i32, i32
  }
  func.func @transform_15(%arg0: i32) -> (i32, i32) {
    %c0_i32 = arith.constant 0 : i32
    %c0_i32_0 = arith.constant 0 : i32
    %c0_i32_1 = arith.constant 0 : i32
    return %c0_i32, %c0_i32_0 : i32, i32
  }
  func.func @transform_16(%arg0: i32) -> (i32, i32) {
    %c0_i32 = arith.constant 0 : i32
    %c0_i32_0 = arith.constant 0 : i32
    %c0_i32_1 = arith.constant 0 : i32
    return %c0_i32, %c0_i32_0 : i32, i32
  }
  func.func @transform_17(%arg0: i32) -> (i32, i32) {
    %c0_i32 = arith.constant 0 : i32
    %c0_i32_0 = arith.constant 0 : i32
    %c0_i32_1 = arith.constant 0 : i32
    return %c0_i32, %c0_i32_0 : i32, i32
  }
  func.func @transform_18(%arg0: i32) -> (i32, i32) {
    %c0_i32 = arith.constant 0 : i32
    %c0_i32_0 = arith.constant 0 : i32
    %c0_i32_1 = arith.constant 0 : i32
    return %c0_i32, %c0_i32_0 : i32, i32
  }
  func.func @transform_19(%arg0: i32) -> (i32, i32) {
    %c0_i32 = arith.constant 0 : i32
    %c0_i32_0 = arith.constant 0 : i32
    %c0_i32_1 = arith.constant 0 : i32
    return %c0_i32, %c0_i32_0 : i32, i32
  }
  func.func @transform_20(%arg0: i32) -> (i32, i32) {
    %c0_i32 = arith.constant 0 : i32
    %c0_i32_0 = arith.constant 0 : i32
    %c0_i32_1 = arith.constant 0 : i32
    return %c0_i32, %c0_i32_0 : i32, i32
  }
  func.func @transform_21(%arg0: i32) -> (i32, i32) {
    %c0_i32 = arith.constant 0 : i32
    %c0_i32_0 = arith.constant 0 : i32
    %c0_i32_1 = arith.constant 0 : i32
    return %c0_i32, %c0_i32_0 : i32, i32
  }
  func.func @transform_22(%arg0: i32) -> (i32, i32, i32) {
    %c0_i32 = arith.constant 0 : i32
    %c0_i32_0 = arith.constant 0 : i32
    %c0_i32_1 = arith.constant 0 : i32
    return %arg0, %c0_i32, %c0_i32_0 : i32, i32, i32
  }
}

module attributes {stable_mosaic.version = 11 : i64} {
  func.func @decoder_layer_kernel(%arg0: i32, %arg1: memref<2x8x128xf32, #tpu.memory_space<vmem>>, %arg2: memref<2x8x128xf32, #tpu.memory_space<vmem>>, %arg3: memref<128x384xbf16, #tpu.memory_space<vmem>>, %arg4: memref<1x384xf32, #tpu.memory_space<vmem>>, %arg5: memref<128x128xbf16, #tpu.memory_space<vmem>>, %arg6: memref<1x128xf32, #tpu.memory_space<vmem>>, %arg7: memref<128x128xbf16, #tpu.memory_space<vmem>>, %arg8: memref<1x128xf32, #tpu.memory_space<vmem>>, %arg9: memref<128x256xbf16, #tpu.memory_space<vmem>>, %arg10: memref<1x256xf32, #tpu.memory_space<vmem>>, %arg11: memref<128x128xbf16, #tpu.memory_space<vmem>>, %arg12: memref<1x128xf32, #tpu.memory_space<vmem>>, %arg13: memref<128x256xbf16, #tpu.memory_space<vmem>>, %arg14: memref<1x256xf32, #tpu.memory_space<vmem>>, %arg15: memref<256x128xbf16, #tpu.memory_space<vmem>>, %arg16: memref<1x128xf32, #tpu.memory_space<vmem>>, %arg17: memref<1x128xf32, #tpu.memory_space<vmem>>, %arg18: memref<1x128xf32, #tpu.memory_space<vmem>>, %arg19: memref<1x128xf32, #tpu.memory_space<vmem>>, %arg20: memref<1x128xf32, #tpu.memory_space<vmem>>, %arg21: memref<1x128xf32, #tpu.memory_space<vmem>>, %arg22: memref<1x128xf32, #tpu.memory_space<vmem>>, %arg23: memref<2x8x128xf32, #tpu.memory_space<vmem>>) attributes {dimension_semantics = [#tpu.dimension_semantics<parallel>], iteration_bounds = array<i64: 1>, scalar_prefetch = 0 : i64, scratch_operands = 0 : i64, tpu.core_type = #tpu.core_type<tc>, window_params = [{transform_indices = @transform_0, window_bounds = array<i64: 2, 8, 128>}, {transform_indices = @transform_1, window_bounds = array<i64: 2, 8, 128>}, {pipeline_mode = #tpu.pipeline_mode<synchronous>, transform_indices = @transform_2, window_bounds = array<i64: 128, 384>}, {pipeline_mode = #tpu.pipeline_mode<synchronous>, transform_indices = @transform_3, window_bounds = array<i64: 1, 384>}, {pipeline_mode = #tpu.pipeline_mode<synchronous>, transform_indices = @transform_4, window_bounds = array<i64: 128, 128>}, {pipeline_mode = #tpu.pipeline_mode<synchronous>, transform_indices = @transform_5, window_bounds = array<i64: 1, 128>}, {pipeline_mode = #tpu.pipeline_mode<synchronous>, transform_indices = @transform_6, window_bounds = array<i64: 128, 128>}, {pipeline_mode = #tpu.pipeline_mode<synchronous>, transform_indices = @transform_7, window_bounds = array<i64: 1, 128>}, {pipeline_mode = #tpu.pipeline_mode<synchronous>, transform_indices = @transform_8, window_bounds = array<i64: 128, 256>}, {pipeline_mode = #tpu.pipeline_mode<synchronous>, transform_indices = @transform_9, window_bounds = array<i64: 1, 256>}, {pipeline_mode = #tpu.pipeline_mode<synchronous>, transform_indices = @transform_10, window_bounds = array<i64: 128, 128>}, {pipeline_mode = #tpu.pipeline_mode<synchronous>, transform_indices = @transform_11, window_bounds = array<i64: 1, 128>}, {pipeline_mode = #tpu.pipeline_mode<synchronous>, transform_indices = @transform_12, window_bounds = array<i64: 128, 256>}, {pipeline_mode = #tpu.pipeline_mode<synchronous>, transform_indices = @transform_13, window_bounds = array<i64: 1, 256>}, {pipeline_mode = #tpu.pipeline_mode<synchronous>, transform_indices = @transform_14, window_bounds = array<i64: 256, 128>}, {pipeline_mode = #tpu.pipeline_mode<synchronous>, transform_indices = @transform_15, window_bounds = array<i64: 1, 128>}, {pipeline_mode = #tpu.pipeline_mode<synchronous>, transform_indices = @transform_16, window_bounds = array<i64: 1, 128>}, {pipeline_mode = #tpu.pipeline_mode<synchronous>, transform_indices = @transform_17, window_bounds = array<i64: 1, 128>}, {pipeline_mode = #tpu.pipeline_mode<synchronous>, transform_indices = @transform_18, window_bounds = array<i64: 1, 128>}, {pipeline_mode = #tpu.pipeline_mode<synchronous>, transform_indices = @transform_19, window_bounds = array<i64: 1, 128>}, {pipeline_mode = #tpu.pipeline_mode<synchronous>, transform_indices = @transform_20, window_bounds = array<i64: 1, 128>}, {pipeline_mode = #tpu.pipeline_mode<synchronous>, transform_indices = @transform_21, window_bounds = array<i64: 1, 128>}, {transform_indices = @transform_22, window_bounds = array<i64: 2, 8, 128>}]} {
    %c0 = arith.constant 0 : index
    %c0_0 = arith.constant 0 : index
    %c0_1 = arith.constant 0 : index
    %0 = vector.load %arg1[%c0, %c0_0, %c0_1] : memref<2x8x128xf32, #tpu.memory_space<vmem>>, vector<2x8x128xf32>
    %1 = vector.shape_cast %0 : vector<2x8x128xf32> to vector<16x128xf32>
    %c0_2 = arith.constant 0 : index
    %c0_3 = arith.constant 0 : index
    %c0_4 = arith.constant 0 : index
    %2 = vector.load %arg2[%c0_2, %c0_3, %c0_4] : memref<2x8x128xf32, #tpu.memory_space<vmem>>, vector<2x8x128xf32>
    %3 = vector.shape_cast %2 : vector<2x8x128xf32> to vector<16x128xf32>
    %4 = arith.truncf %1 : vector<16x128xf32> to vector<16x128xbf16>
    %c0_5 = arith.constant 0 : index
    %c0_6 = arith.constant 0 : index
    %5 = vector.load %arg3[%c0_5, %c0_6] : memref<128x384xbf16, #tpu.memory_space<vmem>>, vector<128x384xbf16>
    %cst = arith.constant dense<0.000000e+00> : vector<16x384xf32>
    %6 = tpu.matmul %4, %5, %cst {dimension_numbers = #tpu.dot_dimension_numbers<[1], [0], [0], [1], [0, 0, 1, 1], [], []>} : vector<16x128xbf16>, vector<128x384xbf16>, vector<16x384xf32> -> vector<16x384xf32>
    %c0_7 = arith.constant 0 : index
    %c0_8 = arith.constant 0 : index
    %7 = vector.load %arg4[%c0_7, %c0_8] : memref<1x384xf32, #tpu.memory_space<vmem>>, vector<1x384xf32>
    %8 = vector.broadcast %7 : vector<1x384xf32> to vector<16x384xf32>
    %9 = arith.addf %6, %8 : vector<16x384xf32>
    %10 = vector.extract_strided_slice %9 {offsets = [0, 0], sizes = [16, 128], strides = [1, 1]} : vector<16x384xf32> to vector<16x128xf32>
    %11 = vector.extract_strided_slice %9 {offsets = [0, 128], sizes = [16, 128], strides = [1, 1]} : vector<16x384xf32> to vector<16x128xf32>
    %12 = vector.extract_strided_slice %9 {offsets = [0, 256], sizes = [16, 128], strides = [1, 1]} : vector<16x384xf32> to vector<16x128xf32>
    %13 = vector.shape_cast %10 : vector<16x128xf32> to vector<2x8x4x32xf32>
    %14 = tpu.transpose %13, [0, 2, 1, 3] : vector<2x8x4x32xf32> -> vector<2x4x8x32xf32>
    %15 = vector.shape_cast %14 : vector<2x4x8x32xf32> to vector<8x8x32xf32>
    %16 = arith.truncf %15 : vector<8x8x32xf32> to vector<8x8x32xbf16>
    %17 = vector.shape_cast %11 : vector<16x128xf32> to vector<2x8x4x32xf32>
    %18 = tpu.transpose %17, [0, 2, 1, 3] : vector<2x8x4x32xf32> -> vector<2x4x8x32xf32>
    %19 = vector.shape_cast %18 : vector<2x4x8x32xf32> to vector<8x8x32xf32>
    %20 = arith.truncf %19 : vector<8x8x32xf32> to vector<8x8x32xbf16>
    %21 = vector.shape_cast %12 : vector<16x128xf32> to vector<2x8x4x32xf32>
    %22 = tpu.transpose %21, [0, 2, 1, 3] : vector<2x8x4x32xf32> -> vector<2x4x8x32xf32>
    %23 = vector.shape_cast %22 : vector<2x4x8x32xf32> to vector<8x8x32xf32>
    %24 = arith.truncf %23 : vector<8x8x32xf32> to vector<8x8x32xbf16>
    "tpu.trace_start"() <{level = 10 : i32, message = "bqd,bkd->bqk"}> : () -> ()
    %cst_9 = arith.constant dense<0.000000e+00> : vector<8x8x8xf32>
    %25 = tpu.matmul %16, %20, %cst_9 {dimension_numbers = #tpu.dot_dimension_numbers<[2], [2], [1], [1], [0, 0, 0, 1, 1, 1], [0], [0]>} : vector<8x8x32xbf16>, vector<8x8x32xbf16>, vector<8x8x8xf32> -> vector<8x8x8xf32>
    "tpu.trace_stop"() : () -> ()
    %cst_10 = arith.constant 0.176776692 : f32
    %26 = vector.broadcast %cst_10 : f32 to vector<8x8x8xf32>
    %27 = arith.mulf %25, %26 : vector<8x8x8xf32>
    %cst_11 = arith.constant dense<0xFF800000> : vector<8x8xf32>
    %28 = vector.multi_reduction <maximumf>, %27, %cst_11 [2] : vector<8x8x8xf32> to vector<8x8xf32>
    %29 = vector.shape_cast %28 : vector<8x8xf32> to vector<8x8x1xf32>
    %30 = vector.broadcast %29 : vector<8x8x1xf32> to vector<8x8x8xf32>
    %31 = arith.subf %27, %30 : vector<8x8x8xf32>
    %32 = math.exp %31 : vector<8x8x8xf32>
    %cst_12 = arith.constant dense<0.000000e+00> : vector<8x8xf32>
    %33 = vector.multi_reduction <add>, %32, %cst_12 [2] : vector<8x8x8xf32> to vector<8x8xf32>
    %34 = vector.shape_cast %33 : vector<8x8xf32> to vector<8x8x1xf32>
    %35 = tpu.reciprocal %34 {approx = true} : vector<8x8x1xf32> -> vector<8x8x1xf32>
    %36 = vector.broadcast %35 : vector<8x8x1xf32> to vector<8x8x8xf32>
    %37 = arith.mulf %32, %36 : vector<8x8x8xf32>
    %38 = arith.truncf %37 : vector<8x8x8xf32> to vector<8x8x8xbf16>
    "tpu.trace_start"() <{level = 10 : i32, message = "bqk,bkd->bqd"}> : () -> ()
    %cst_13 = arith.constant dense<0.000000e+00> : vector<8x8x32xf32>
    %39 = tpu.matmul %38, %24, %cst_13 {dimension_numbers = #tpu.dot_dimension_numbers<[2], [1], [1], [2], [0, 0, 0, 1, 1, 2], [0], [0]>} : vector<8x8x8xbf16>, vector<8x8x32xbf16>, vector<8x8x32xf32> -> vector<8x8x32xf32>
    "tpu.trace_stop"() : () -> ()
    %40 = vector.shape_cast %39 : vector<8x8x32xf32> to vector<2x4x8x32xf32>
    %41 = tpu.transpose %40, [0, 2, 1, 3] : vector<2x4x8x32xf32> -> vector<2x8x4x32xf32>
    %42 = vector.shape_cast %41 : vector<2x8x4x32xf32> to vector<16x128xf32>
    %43 = arith.truncf %42 : vector<16x128xf32> to vector<16x128xbf16>
    %c0_14 = arith.constant 0 : index
    %c0_15 = arith.constant 0 : index
    %44 = vector.load %arg5[%c0_14, %c0_15] : memref<128x128xbf16, #tpu.memory_space<vmem>>, vector<128x128xbf16>
    %cst_16 = arith.constant dense<0.000000e+00> : vector<16x128xf32>
    %45 = tpu.matmul %43, %44, %cst_16 {dimension_numbers = #tpu.dot_dimension_numbers<[1], [0], [0], [1], [0, 0, 1, 1], [], []>} : vector<16x128xbf16>, vector<128x128xbf16>, vector<16x128xf32> -> vector<16x128xf32>
    %c0_17 = arith.constant 0 : index
    %c0_18 = arith.constant 0 : index
    %46 = vector.load %arg6[%c0_17, %c0_18] : memref<1x128xf32, #tpu.memory_space<vmem>>, vector<1x128xf32>
    %47 = vector.broadcast %46 : vector<1x128xf32> to vector<16x128xf32>
    %48 = arith.addf %45, %47 : vector<16x128xf32>
    %49 = arith.addf %1, %48 : vector<16x128xf32>
    %c0_19 = arith.constant 0 : index
    %c0_20 = arith.constant 0 : index
    %50 = vector.load %arg17[%c0_19, %c0_20] : memref<1x128xf32, #tpu.memory_space<vmem>>, vector<1x128xf32>
    %c0_21 = arith.constant 0 : index
    %c0_22 = arith.constant 0 : index
    %51 = vector.load %arg18[%c0_21, %c0_22] : memref<1x128xf32, #tpu.memory_space<vmem>>, vector<1x128xf32>
    %cst_23 = arith.constant dense<0.000000e+00> : vector<16xf32>
    %52 = vector.multi_reduction <add>, %49, %cst_23 [1] : vector<16x128xf32> to vector<16xf32>
    %53 = vector.shape_cast %52 : vector<16xf32> to vector<16x1xf32>
    %cst_24 = arith.constant 1.280000e+02 : f32
    %54 = vector.broadcast %cst_24 : f32 to vector<16x1xf32>
    %55 = arith.divf %53, %54 : vector<16x1xf32>
    %56 = vector.broadcast %55 : vector<16x1xf32> to vector<16x128xf32>
    %57 = arith.subf %49, %56 : vector<16x128xf32>
    %58 = arith.mulf %57, %57 : vector<16x128xf32>
    %cst_25 = arith.constant dense<0.000000e+00> : vector<16xf32>
    %59 = vector.multi_reduction <add>, %58, %cst_25 [1] : vector<16x128xf32> to vector<16xf32>
    %60 = vector.shape_cast %59 : vector<16xf32> to vector<16x1xf32>
    %cst_26 = arith.constant 1.280000e+02 : f32
    %61 = vector.broadcast %cst_26 : f32 to vector<16x1xf32>
    %62 = arith.divf %60, %61 : vector<16x1xf32>
    %63 = vector.broadcast %55 : vector<16x1xf32> to vector<16x128xf32>
    %64 = arith.subf %49, %63 : vector<16x128xf32>
    %cst_27 = arith.constant 9.99999974E-6 : f32
    %65 = vector.broadcast %cst_27 : f32 to vector<16x1xf32>
    %66 = arith.addf %62, %65 : vector<16x1xf32>
    %67 = math.rsqrt %66 : vector<16x1xf32>
    %68 = vector.broadcast %67 : vector<16x1xf32> to vector<16x128xf32>
    %69 = arith.mulf %64, %68 : vector<16x128xf32>
    %70 = vector.broadcast %50 : vector<1x128xf32> to vector<16x128xf32>
    %71 = arith.mulf %69, %70 : vector<16x128xf32>
    %72 = vector.broadcast %51 : vector<1x128xf32> to vector<16x128xf32>
    %73 = arith.addf %71, %72 : vector<16x128xf32>
    %74 = arith.truncf %73 : vector<16x128xf32> to vector<16x128xbf16>
    %c0_28 = arith.constant 0 : index
    %c0_29 = arith.constant 0 : index
    %75 = vector.load %arg7[%c0_28, %c0_29] : memref<128x128xbf16, #tpu.memory_space<vmem>>, vector<128x128xbf16>
    %cst_30 = arith.constant dense<0.000000e+00> : vector<16x128xf32>
    %76 = tpu.matmul %74, %75, %cst_30 {dimension_numbers = #tpu.dot_dimension_numbers<[1], [0], [0], [1], [0, 0, 1, 1], [], []>} : vector<16x128xbf16>, vector<128x128xbf16>, vector<16x128xf32> -> vector<16x128xf32>
    %c0_31 = arith.constant 0 : index
    %c0_32 = arith.constant 0 : index
    %77 = vector.load %arg8[%c0_31, %c0_32] : memref<1x128xf32, #tpu.memory_space<vmem>>, vector<1x128xf32>
    %78 = vector.broadcast %77 : vector<1x128xf32> to vector<16x128xf32>
    %79 = arith.addf %76, %78 : vector<16x128xf32>
    %80 = arith.truncf %3 : vector<16x128xf32> to vector<16x128xbf16>
    %c0_33 = arith.constant 0 : index
    %c0_34 = arith.constant 0 : index
    %81 = vector.load %arg9[%c0_33, %c0_34] : memref<128x256xbf16, #tpu.memory_space<vmem>>, vector<128x256xbf16>
    %cst_35 = arith.constant dense<0.000000e+00> : vector<16x256xf32>
    %82 = tpu.matmul %80, %81, %cst_35 {dimension_numbers = #tpu.dot_dimension_numbers<[1], [0], [0], [1], [0, 0, 1, 1], [], []>} : vector<16x128xbf16>, vector<128x256xbf16>, vector<16x256xf32> -> vector<16x256xf32>
    %c0_36 = arith.constant 0 : index
    %c0_37 = arith.constant 0 : index
    %83 = vector.load %arg10[%c0_36, %c0_37] : memref<1x256xf32, #tpu.memory_space<vmem>>, vector<1x256xf32>
    %84 = vector.broadcast %83 : vector<1x256xf32> to vector<16x256xf32>
    %85 = arith.addf %82, %84 : vector<16x256xf32>
    %86 = vector.extract_strided_slice %85 {offsets = [0, 0], sizes = [16, 128], strides = [1, 1]} : vector<16x256xf32> to vector<16x128xf32>
    %87 = vector.extract_strided_slice %85 {offsets = [0, 128], sizes = [16, 128], strides = [1, 1]} : vector<16x256xf32> to vector<16x128xf32>
    %88 = vector.shape_cast %79 : vector<16x128xf32> to vector<2x8x4x32xf32>
    %89 = tpu.transpose %88, [0, 2, 1, 3] : vector<2x8x4x32xf32> -> vector<2x4x8x32xf32>
    %90 = vector.shape_cast %89 : vector<2x4x8x32xf32> to vector<8x8x32xf32>
    %91 = arith.truncf %90 : vector<8x8x32xf32> to vector<8x8x32xbf16>
    %92 = vector.shape_cast %86 : vector<16x128xf32> to vector<2x8x4x32xf32>
    %93 = tpu.transpose %92, [0, 2, 1, 3] : vector<2x8x4x32xf32> -> vector<2x4x8x32xf32>
    %94 = vector.shape_cast %93 : vector<2x4x8x32xf32> to vector<8x8x32xf32>
    %95 = arith.truncf %94 : vector<8x8x32xf32> to vector<8x8x32xbf16>
    %96 = vector.shape_cast %87 : vector<16x128xf32> to vector<2x8x4x32xf32>
    %97 = tpu.transpose %96, [0, 2, 1, 3] : vector<2x8x4x32xf32> -> vector<2x4x8x32xf32>
    %98 = vector.shape_cast %97 : vector<2x4x8x32xf32> to vector<8x8x32xf32>
    %99 = arith.truncf %98 : vector<8x8x32xf32> to vector<8x8x32xbf16>
    "tpu.trace_start"() <{level = 10 : i32, message = "bqd,bkd->bqk"}> : () -> ()
    %cst_38 = arith.constant dense<0.000000e+00> : vector<8x8x8xf32>
    %100 = tpu.matmul %91, %95, %cst_38 {dimension_numbers = #tpu.dot_dimension_numbers<[2], [2], [1], [1], [0, 0, 0, 1, 1, 1], [0], [0]>} : vector<8x8x32xbf16>, vector<8x8x32xbf16>, vector<8x8x8xf32> -> vector<8x8x8xf32>
    "tpu.trace_stop"() : () -> ()
    %cst_39 = arith.constant 0.176776692 : f32
    %101 = vector.broadcast %cst_39 : f32 to vector<8x8x8xf32>
    %102 = arith.mulf %100, %101 : vector<8x8x8xf32>
    %cst_40 = arith.constant dense<0xFF800000> : vector<8x8xf32>
    %103 = vector.multi_reduction <maximumf>, %102, %cst_40 [2] : vector<8x8x8xf32> to vector<8x8xf32>
    %104 = vector.shape_cast %103 : vector<8x8xf32> to vector<8x8x1xf32>
    %105 = vector.broadcast %104 : vector<8x8x1xf32> to vector<8x8x8xf32>
    %106 = arith.subf %102, %105 : vector<8x8x8xf32>
    %107 = math.exp %106 : vector<8x8x8xf32>
    %cst_41 = arith.constant dense<0.000000e+00> : vector<8x8xf32>
    %108 = vector.multi_reduction <add>, %107, %cst_41 [2] : vector<8x8x8xf32> to vector<8x8xf32>
    %109 = vector.shape_cast %108 : vector<8x8xf32> to vector<8x8x1xf32>
    %110 = tpu.reciprocal %109 {approx = true} : vector<8x8x1xf32> -> vector<8x8x1xf32>
    %111 = vector.broadcast %110 : vector<8x8x1xf32> to vector<8x8x8xf32>
    %112 = arith.mulf %107, %111 : vector<8x8x8xf32>
    %113 = arith.truncf %112 : vector<8x8x8xf32> to vector<8x8x8xbf16>
    "tpu.trace_start"() <{level = 10 : i32, message = "bqk,bkd->bqd"}> : () -> ()
    %cst_42 = arith.constant dense<0.000000e+00> : vector<8x8x32xf32>
    %114 = tpu.matmul %113, %99, %cst_42 {dimension_numbers = #tpu.dot_dimension_numbers<[2], [1], [1], [2], [0, 0, 0, 1, 1, 2], [0], [0]>} : vector<8x8x8xbf16>, vector<8x8x32xbf16>, vector<8x8x32xf32> -> vector<8x8x32xf32>
    "tpu.trace_stop"() : () -> ()
    %115 = vector.shape_cast %114 : vector<8x8x32xf32> to vector<2x4x8x32xf32>
    %116 = tpu.transpose %115, [0, 2, 1, 3] : vector<2x4x8x32xf32> -> vector<2x8x4x32xf32>
    %117 = vector.shape_cast %116 : vector<2x8x4x32xf32> to vector<16x128xf32>
    %118 = arith.truncf %117 : vector<16x128xf32> to vector<16x128xbf16>
    %c0_43 = arith.constant 0 : index
    %c0_44 = arith.constant 0 : index
    %119 = vector.load %arg11[%c0_43, %c0_44] : memref<128x128xbf16, #tpu.memory_space<vmem>>, vector<128x128xbf16>
    %cst_45 = arith.constant dense<0.000000e+00> : vector<16x128xf32>
    %120 = tpu.matmul %118, %119, %cst_45 {dimension_numbers = #tpu.dot_dimension_numbers<[1], [0], [0], [1], [0, 0, 1, 1], [], []>} : vector<16x128xbf16>, vector<128x128xbf16>, vector<16x128xf32> -> vector<16x128xf32>
    %c0_46 = arith.constant 0 : index
    %c0_47 = arith.constant 0 : index
    %121 = vector.load %arg12[%c0_46, %c0_47] : memref<1x128xf32, #tpu.memory_space<vmem>>, vector<1x128xf32>
    %122 = vector.broadcast %121 : vector<1x128xf32> to vector<16x128xf32>
    %123 = arith.addf %120, %122 : vector<16x128xf32>
    %124 = arith.addf %73, %123 : vector<16x128xf32>
    %c0_48 = arith.constant 0 : index
    %c0_49 = arith.constant 0 : index
    %125 = vector.load %arg19[%c0_48, %c0_49] : memref<1x128xf32, #tpu.memory_space<vmem>>, vector<1x128xf32>
    %c0_50 = arith.constant 0 : index
    %c0_51 = arith.constant 0 : index
    %126 = vector.load %arg20[%c0_50, %c0_51] : memref<1x128xf32, #tpu.memory_space<vmem>>, vector<1x128xf32>
    %cst_52 = arith.constant dense<0.000000e+00> : vector<16xf32>
    %127 = vector.multi_reduction <add>, %124, %cst_52 [1] : vector<16x128xf32> to vector<16xf32>
    %128 = vector.shape_cast %127 : vector<16xf32> to vector<16x1xf32>
    %cst_53 = arith.constant 1.280000e+02 : f32
    %129 = vector.broadcast %cst_53 : f32 to vector<16x1xf32>
    %130 = arith.divf %128, %129 : vector<16x1xf32>
    %131 = vector.broadcast %130 : vector<16x1xf32> to vector<16x128xf32>
    %132 = arith.subf %124, %131 : vector<16x128xf32>
    %133 = arith.mulf %132, %132 : vector<16x128xf32>
    %cst_54 = arith.constant dense<0.000000e+00> : vector<16xf32>
    %134 = vector.multi_reduction <add>, %133, %cst_54 [1] : vector<16x128xf32> to vector<16xf32>
    %135 = vector.shape_cast %134 : vector<16xf32> to vector<16x1xf32>
    %cst_55 = arith.constant 1.280000e+02 : f32
    %136 = vector.broadcast %cst_55 : f32 to vector<16x1xf32>
    %137 = arith.divf %135, %136 : vector<16x1xf32>
    %138 = vector.broadcast %130 : vector<16x1xf32> to vector<16x128xf32>
    %139 = arith.subf %124, %138 : vector<16x128xf32>
    %cst_56 = arith.constant 9.99999974E-6 : f32
    %140 = vector.broadcast %cst_56 : f32 to vector<16x1xf32>
    %141 = arith.addf %137, %140 : vector<16x1xf32>
    %142 = math.rsqrt %141 : vector<16x1xf32>
    %143 = vector.broadcast %142 : vector<16x1xf32> to vector<16x128xf32>
    %144 = arith.mulf %139, %143 : vector<16x128xf32>
    %145 = vector.broadcast %125 : vector<1x128xf32> to vector<16x128xf32>
    %146 = arith.mulf %144, %145 : vector<16x128xf32>
    %147 = vector.broadcast %126 : vector<1x128xf32> to vector<16x128xf32>
    %148 = arith.addf %146, %147 : vector<16x128xf32>
    %149 = arith.truncf %148 : vector<16x128xf32> to vector<16x128xbf16>
    %c0_57 = arith.constant 0 : index
    %c0_58 = arith.constant 0 : index
    %150 = vector.load %arg13[%c0_57, %c0_58] : memref<128x256xbf16, #tpu.memory_space<vmem>>, vector<128x256xbf16>
    %cst_59 = arith.constant dense<0.000000e+00> : vector<16x256xf32>
    %151 = tpu.matmul %149, %150, %cst_59 {dimension_numbers = #tpu.dot_dimension_numbers<[1], [0], [0], [1], [0, 0, 1, 1], [], []>} : vector<16x128xbf16>, vector<128x256xbf16>, vector<16x256xf32> -> vector<16x256xf32>
    %c0_60 = arith.constant 0 : index
    %c0_61 = arith.constant 0 : index
    %152 = vector.load %arg14[%c0_60, %c0_61] : memref<1x256xf32, #tpu.memory_space<vmem>>, vector<1x256xf32>
    %153 = vector.broadcast %152 : vector<1x256xf32> to vector<16x256xf32>
    %154 = arith.addf %151, %153 : vector<16x256xf32>
    %cst_62 = arith.constant 0.000000e+00 : f32
    %155 = vector.broadcast %cst_62 : f32 to vector<16x256xf32>
    %156 = arith.maximumf %154, %155 : vector<16x256xf32>
    %157 = arith.truncf %156 : vector<16x256xf32> to vector<16x256xbf16>
    %c0_63 = arith.constant 0 : index
    %c0_64 = arith.constant 0 : index
    %158 = vector.load %arg15[%c0_63, %c0_64] : memref<256x128xbf16, #tpu.memory_space<vmem>>, vector<256x128xbf16>
    %cst_65 = arith.constant dense<0.000000e+00> : vector<16x128xf32>
    %159 = tpu.matmul %157, %158, %cst_65 {dimension_numbers = #tpu.dot_dimension_numbers<[1], [0], [0], [1], [0, 0, 1, 1], [], []>} : vector<16x256xbf16>, vector<256x128xbf16>, vector<16x128xf32> -> vector<16x128xf32>
    %c0_66 = arith.constant 0 : index
    %c0_67 = arith.constant 0 : index
    %160 = vector.load %arg16[%c0_66, %c0_67] : memref<1x128xf32, #tpu.memory_space<vmem>>, vector<1x128xf32>
    %161 = vector.broadcast %160 : vector<1x128xf32> to vector<16x128xf32>
    %162 = arith.addf %159, %161 : vector<16x128xf32>
    %163 = arith.addf %148, %162 : vector<16x128xf32>
    %c0_68 = arith.constant 0 : index
    %c0_69 = arith.constant 0 : index
    %164 = vector.load %arg21[%c0_68, %c0_69] : memref<1x128xf32, #tpu.memory_space<vmem>>, vector<1x128xf32>
    %c0_70 = arith.constant 0 : index
    %c0_71 = arith.constant 0 : index
    %165 = vector.load %arg22[%c0_70, %c0_71] : memref<1x128xf32, #tpu.memory_space<vmem>>, vector<1x128xf32>
    %cst_72 = arith.constant dense<0.000000e+00> : vector<16xf32>
    %166 = vector.multi_reduction <add>, %163, %cst_72 [1] : vector<16x128xf32> to vector<16xf32>
    %167 = vector.shape_cast %166 : vector<16xf32> to vector<16x1xf32>
    %cst_73 = arith.constant 1.280000e+02 : f32
    %168 = vector.broadcast %cst_73 : f32 to vector<16x1xf32>
    %169 = arith.divf %167, %168 : vector<16x1xf32>
    %170 = vector.broadcast %169 : vector<16x1xf32> to vector<16x128xf32>
    %171 = arith.subf %163, %170 : vector<16x128xf32>
    %172 = arith.mulf %171, %171 : vector<16x128xf32>
    %cst_74 = arith.constant dense<0.000000e+00> : vector<16xf32>
    %173 = vector.multi_reduction <add>, %172, %cst_74 [1] : vector<16x128xf32> to vector<16xf32>
    %174 = vector.shape_cast %173 : vector<16xf32> to vector<16x1xf32>
    %cst_75 = arith.constant 1.280000e+02 : f32
    %175 = vector.broadcast %cst_75 : f32 to vector<16x1xf32>
    %176 = arith.divf %174, %175 : vector<16x1xf32>
    %177 = vector.broadcast %169 : vector<16x1xf32> to vector<16x128xf32>
    %178 = arith.subf %163, %177 : vector<16x128xf32>
    %cst_76 = arith.constant 9.99999974E-6 : f32
    %179 = vector.broadcast %cst_76 : f32 to vector<16x1xf32>
    %180 = arith.addf %176, %179 : vector<16x1xf32>
    %181 = math.rsqrt %180 : vector<16x1xf32>
    %182 = vector.broadcast %181 : vector<16x1xf32> to vector<16x128xf32>
    %183 = arith.mulf %178, %182 : vector<16x128xf32>
    %184 = vector.broadcast %164 : vector<1x128xf32> to vector<16x128xf32>
    %185 = arith.mulf %183, %184 : vector<16x128xf32>
    %186 = vector.broadcast %165 : vector<1x128xf32> to vector<16x128xf32>
    %187 = arith.addf %185, %186 : vector<16x128xf32>
    %188 = vector.shape_cast %187 : vector<16x128xf32> to vector<2x8x128xf32>
    %c0_77 = arith.constant 0 : index
    %c0_78 = arith.constant 0 : index
    %c0_79 = arith.constant 0 : index
    %189 = vector.load %arg23[%c0_77, %c0_78, %c0_79] : memref<2x8x128xf32, #tpu.memory_space<vmem>>, vector<2x8x128xf32>
    tpu.vector_store %arg23[%c0_77, %c0_78, %c0_79], %188 {strides = array<i32>} : memref<2x8x128xf32, #tpu.memory_space<vmem>>, vector<2x8x128xf32>,
    return
  }
  func.func @transform_0(%arg0: i32) -> (i32, i32, i32) {
    %c0_i32 = arith.constant 0 : i32
    %c0_i32_0 = arith.constant 0 : i32
    %c0_i32_1 = arith.constant 0 : i32
    return %arg0, %c0_i32, %c0_i32_0 : i32, i32, i32
  }
  func.func @transform_1(%arg0: i32) -> (i32, i32, i32) {
    %c0_i32 = arith.constant 0 : i32
    %c0_i32_0 = arith.constant 0 : i32
    %c0_i32_1 = arith.constant 0 : i32
    return %arg0, %c0_i32, %c0_i32_0 : i32, i32, i32
  }
  func.func @transform_2(%arg0: i32) -> (i32, i32) {
    %c0_i32 = arith.constant 0 : i32
    %c0_i32_0 = arith.constant 0 : i32
    %c0_i32_1 = arith.constant 0 : i32
    return %c0_i32, %c0_i32_0 : i32, i32
  }
  func.func @transform_3(%arg0: i32) -> (i32, i32) {
    %c0_i32 = arith.constant 0 : i32
    %c0_i32_0 = arith.constant 0 : i32
    %c0_i32_1 = arith.constant 0 : i32
    return %c0_i32, %c0_i32_0 : i32, i32
  }
  func.func @transform_4(%arg0: i32) -> (i32, i32) {
    %c0_i32 = arith.constant 0 : i32
    %c0_i32_0 = arith.constant 0 : i32
    %c0_i32_1 = arith.constant 0 : i32
    return %c0_i32, %c0_i32_0 : i32, i32
  }
  func.func @transform_5(%arg0: i32) -> (i32, i32) {
    %c0_i32 = arith.constant 0 : i32
    %c0_i32_0 = arith.constant 0 : i32
    %c0_i32_1 = arith.constant 0 : i32
    return %c0_i32, %c0_i32_0 : i32, i32
  }
  func.func @transform_6(%arg0: i32) -> (i32, i32) {
    %c0_i32 = arith.constant 0 : i32
    %c0_i32_0 = arith.constant 0 : i32
    %c0_i32_1 = arith.constant 0 : i32
    return %c0_i32, %c0_i32_0 : i32, i32
  }
  func.func @transform_7(%arg0: i32) -> (i32, i32) {
    %c0_i32 = arith.constant 0 : i32
    %c0_i32_0 = arith.constant 0 : i32
    %c0_i32_1 = arith.constant 0 : i32
    return %c0_i32, %c0_i32_0 : i32, i32
  }
  func.func @transform_8(%arg0: i32) -> (i32, i32) {
    %c0_i32 = arith.constant 0 : i32
    %c0_i32_0 = arith.constant 0 : i32
    %c0_i32_1 = arith.constant 0 : i32
    return %c0_i32, %c0_i32_0 : i32, i32
  }
  func.func @transform_9(%arg0: i32) -> (i32, i32) {
    %c0_i32 = arith.constant 0 : i32
    %c0_i32_0 = arith.constant 0 : i32
    %c0_i32_1 = arith.constant 0 : i32
    return %c0_i32, %c0_i32_0 : i32, i32
  }
  func.func @transform_10(%arg0: i32) -> (i32, i32) {
    %c0_i32 = arith.constant 0 : i32
    %c0_i32_0 = arith.constant 0 : i32
    %c0_i32_1 = arith.constant 0 : i32
    return %c0_i32, %c0_i32_0 : i32, i32
  }
  func.func @transform_11(%arg0: i32) -> (i32, i32) {
    %c0_i32 = arith.constant 0 : i32
    %c0_i32_0 = arith.constant 0 : i32
    %c0_i32_1 = arith.constant 0 : i32
    return %c0_i32, %c0_i32_0 : i32, i32
  }
  func.func @transform_12(%arg0: i32) -> (i32, i32) {
    %c0_i32 = arith.constant 0 : i32
    %c0_i32_0 = arith.constant 0 : i32
    %c0_i32_1 = arith.constant 0 : i32
    return %c0_i32, %c0_i32_0 : i32, i32
  }
  func.func @transform_13(%arg0: i32) -> (i32, i32) {
    %c0_i32 = arith.constant 0 : i32
    %c0_i32_0 = arith.constant 0 : i32
    %c0_i32_1 = arith.constant 0 : i32
    return %c0_i32, %c0_i32_0 : i32, i32
  }
  func.func @transform_14(%arg0: i32) -> (i32, i32) {
    %c0_i32 = arith.constant 0 : i32
    %c0_i32_0 = arith.constant 0 : i32
    %c0_i32_1 = arith.constant 0 : i32
    return %c0_i32, %c0_i32_0 : i32, i32
  }
  func.func @transform_15(%arg0: i32) -> (i32, i32) {
    %c0_i32 = arith.constant 0 : i32
    %c0_i32_0 = arith.constant 0 : i32
    %c0_i32_1 = arith.constant 0 : i32
    return %c0_i32, %c0_i32_0 : i32, i32
  }
  func.func @transform_16(%arg0: i32) -> (i32, i32) {
    %c0_i32 = arith.constant 0 : i32
    %c0_i32_0 = arith.constant 0 : i32
    %c0_i32_1 = arith.constant 0 : i32
    return %c0_i32, %c0_i32_0 : i32, i32
  }
  func.func @transform_17(%arg0: i32) -> (i32, i32) {
    %c0_i32 = arith.constant 0 : i32
    %c0_i32_0 = arith.constant 0 : i32
    %c0_i32_1 = arith.constant 0 : i32
    return %c0_i32, %c0_i32_0 : i32, i32
  }
  func.func @transform_18(%arg0: i32) -> (i32, i32) {
    %c0_i32 = arith.constant 0 : i32
    %c0_i32_0 = arith.constant 0 : i32
    %c0_i32_1 = arith.constant 0 : i32
    return %c0_i32, %c0_i32_0 : i32, i32
  }
  func.func @transform_19(%arg0: i32) -> (i32, i32) {
    %c0_i32 = arith.constant 0 : i32
    %c0_i32_0 = arith.constant 0 : i32
    %c0_i32_1 = arith.constant 0 : i32
    return %c0_i32, %c0_i32_0 : i32, i32
  }
  func.func @transform_20(%arg0: i32) -> (i32, i32) {
    %c0_i32 = arith.constant 0 : i32
    %c0_i32_0 = arith.constant 0 : i32
    %c0_i32_1 = arith.constant 0 : i32
    return %c0_i32, %c0_i32_0 : i32, i32
  }
  func.func @transform_21(%arg0: i32) -> (i32, i32) {
    %c0_i32 = arith.constant 0 : i32
    %c0_i32_0 = arith.constant 0 : i32
    %c0_i32_1 = arith.constant 0 : i32
    return %c0_i32, %c0_i32_0 : i32, i32
  }
  func.func @transform_22(%arg0: i32) -> (i32, i32, i32) {
    %c0_i32 = arith.constant 0 : i32
    %c0_i32_0 = arith.constant 0 : i32
    %c0_i32_1 = arith.constant 0 : i32
    return %arg0, %c0_i32, %c0_i32_0 : i32, i32, i32
  }
}

</mosaic_0001>

<bundles_post_ra>
// kernel: tpu_custom_call.1
= control target key start
LH: loop header
LB: loop body
LE: loop exit
PB: predicated region body
PF: predicated region fallthrough
CT: control target
= control target key end

     0   :  { %s7779_s0 = inlined_call_operand.hbm [shape: f32[2,8,128], index: 0, kind: input, shape index: {}]   ;;  %s7780_s1 = inlined_call_operand.hbm [shape: f32[2,8,128], index: 1, kind: input, shape index: {}]   ;;  %s7781_s2 = inlined_call_operand.hbm [shape: bf16[128,384], index: 2, kind: input, shape index: {}]   ;;  %s7782_s3 = inlined_call_operand.vmem [shape: f32[1,384], index: 3, kind: input, shape index: {}]   ;;  %s7783_s4 = inlined_call_operand.hbm [shape: bf16[128,128], index: 4, kind: input, shape index: {}]   ;;  %s7784_s5 = inlined_call_operand.vmem [shape: f32[1,128], index: 5, kind: input, shape index: {}]   ;;  %s7785_s6 = inlined_call_operand.hbm [shape: bf16[128,128], index: 6, kind: input, shape index: {}]   ;;  %s7786_s7 = inlined_call_operand.vmem [shape: f32[1,128], index: 7, kind: input, shape index: {}]   ;;  %s7787_s8 = inlined_call_operand.hbm [shape: bf16[128,256], index: 8, kind: input, shape index: {}]   ;;  %s7788_s9 = inlined_call_operand.vmem [shape: f32[1,256], index: 9, kind: input, shape index: {}]   ;;  %s7789_s10 = inlined_call_operand.hbm [shape: bf16[128,128], index: 10, kind: input, shape index: {}]   ;;  %s7790_s11 = inlined_call_operand.vmem [shape: f32[1,128], index: 11, kind: input, shape index: {}]   ;;  %s7791_s12 = inlined_call_operand.hbm [shape: bf16[128,256], index: 12, kind: input, shape index: {}]   ;;  %s7792_s13 = inlined_call_operand.vmem [shape: f32[1,256], index: 13, kind: input, shape index: {}]   ;;  %s7793_s14 = inlined_call_operand.hbm [shape: bf16[256,128], index: 14, kind: input, shape index: {}]   ;;  %s7794_s15 = inlined_call_operand.vmem [shape: f32[1,128], index: 15, kind: input, shape index: {}]   ;;  %s7795_s16 = inlined_call_operand.vmem [shape: f32[1,128], index: 16, kind: input, shape index: {}]   ;;  %s7796_s17 = inlined_call_operand.vmem [shape: f32[1,128], index: 17, kind: input, shape index: {}]   ;;  %s7797_s18 = inlined_call_operand.vmem [shape: f32[1,128], index: 18, kind: input, shape index: {}]   ;;  %s7798_s19 = inlined_call_operand.vmem [shape: f32[1,128], index: 19, kind: input, shape index: {}]   ;;  %s7799_s20 = inlined_call_operand.vmem [shape: f32[1,128], index: 20, kind: input, shape index: {}]   ;;  %s7800_s21 = inlined_call_operand.vmem [shape: f32[1,128], index: 21, kind: input, shape index: {}]   ;;  %s7801_s22 = inlined_call_operand.hbm [shape: f32[2,8,128], index: 22, kind: output, shape index: {}]  }
   0x1   :  { %7817 = sst [smem:[#allocation24_spill]] %s7779_s0 }
   0x2   :  { %7818 = sst [smem:[#allocation25_spill]] %s7780_s1 }
   0x3   :  { %7819 = sst [smem:[#allocation26_spill]] %s7781_s2 }
   0x4   :  { %7820 = sst [smem:[#allocation27_spill]] %s7782_s3 }
   0x5   :  { %7821 = sst [smem:[#allocation28_spill]] %s7783_s4 }
   0x6   :  { %7822 = sst [smem:[#allocation29_spill]] %s7784_s5 }
   0x7   :  { %7823 = sst [smem:[#allocation30_spill]] %s7785_s6 }
   0x8   :  { %7824 = sst [smem:[#allocation31_spill]] %s7800_s21 }
   0x9   :  { %7825 = sst [smem:[#allocation32_spill]] %s7801_s22 }
   0xa   :  { %27 = vsyncpa [#allocation3], 0 }
   0xb   :  { %28 = vsyncpa [#allocation6], 0 }
   0xc   :  { %29 = vsyncpa [#allocation9], 0 }
   0xd   :  { %30 = vsyncpa [#allocation12], 0 }
   0xe   :  { %31 = vsyncpa [#allocation15], 0 }
   0xf   :  { %32 = vsyncpa [#allocation4], 0  ;;  %s6572_s3 = smov [#allocation5]   ;;  %s6573_s29 = smov [#allocation8]  }
  0x10   :  { %s50_s28 = sshll.u32 %s6572_s3, 4  ;;  %s76_s30 = sshll.u32 %s6573_s29, 4  ;;  %s51_s28 = int_to_ptr.vmem [resolvable:$true] %s50_s28  ;;  %s6710_s30 = int_to_ptr.vmem [resolvable:$true] %s76_s30 }
  0x11   :  { %s7826_s23 = sld [smem:[#allocation25_spill]] }
  0x17   :  { %s6340_s1 = scalar_lea.hbm %s7826_s23, 256 }
  0x18   :  { %p6341_p0 = scmp.ne.s32.totalorder %s7826_s23, %s6340_s1  ;;  %p6344_p1 = scmp.lt.u32.totalorder %s6340_s1, %s7826_s23 }
  0x1a   :  { %p6346_p2 = pnand %p6344_p1, %p6341_p0 }
  0x1c   :  { %6349 = shalt.err (!%p6346_p2)
}
  0x1d   :  { %s6350_s26 = scalar_lea.vmem %s51_s28, 256  ;;  %p6355_p4 = scmp.lt.s32.totalorder %s51_s28, %s51_s28 }
  0x1e   :  { %p6351_p3 = scmp.ne.s32.totalorder %s51_s28, %s6350_s26  ;;  %p6356_p5 = scmp.lt.s32.totalorder %s6350_s26, %s6350_s26 }
  0x20   :  { %p6357_p6 = por %p6356_p5, %p6355_p4 }
  0x22   :  { %p6358_p7 = pnand %p6357_p6, %p6351_p3 }
  0x24   :  { %6361 = shalt.err (!%p6358_p7)
}
  0x25   :  { %s7808_s2 = smov 128   ;;  %s7810_s27 = smov 8  }
  0x26   :  { %56 = dma.hbm_to_vmem [thread:$0]  %s7826_s23, 256, %s51_s28, [#allocation6], %s7808_s2, %s7808_s2, %s7810_s27  }
  0x27   :  { %s7827_s1 = sld [smem:[#allocation28_spill]] }
  0x2d   :  { %s6362_s5 = scalar_lea.hbm %s7827_s1, 1024 }
  0x2e   :  { %p6363_p8 = scmp.ne.s32.totalorder %s7827_s1, %s6362_s5  ;;  %p6366_p9 = scmp.lt.u32.totalorder %s6362_s5, %s7827_s1 }
  0x30   :  { %p6368_p10 = pnand %p6366_p9, %p6363_p8 }
  0x32   :  { %6371 = shalt.err (!%p6368_p10)
}
  0x33   :  { %s6372_s22 = scalar_lea.vmem %s6710_s30, 1024  ;;  %p6377_p12 = scmp.lt.s32.totalorder %s6710_s30, %s6710_s30 }
  0x34   :  { %p6373_p11 = scmp.ne.s32.totalorder %s6710_s30, %s6372_s22  ;;  %p6378_p13 = scmp.lt.s32.totalorder %s6372_s22, %s6372_s22 }
  0x36   :  { %p6379_p0 = por %p6378_p13, %p6377_p12 }
  0x38   :  { %p6380_p1 = pnand %p6379_p0, %p6373_p11 }
  0x3a   :  { %6383 = shalt.err (!%p6380_p1)
}
  0x3b   :  { %s7812_s28 = smov 64   ;;  %s7814_s23 = smov 4  }
  0x3c   :  { %82 = dma.hbm_to_vmem [thread:$0]  %s7827_s1, 1024, %s6710_s30, [#allocation9], %s7812_s28, %s7812_s28, %s7814_s23  }
  0x3d   :  { %s6578_s4 = smov [#allocation11]   ;;  %s6579_s5 = smov [#allocation14]  }
  0x3e   :  { %s104_s0 = sshll.u32 %s6578_s4, 4  ;;  %s132_s24 = sshll.u32 %s6579_s5, 4  ;;  %s105_s0 = int_to_ptr.vmem [resolvable:$true] %s104_s0  ;;  %s6747_s24 = int_to_ptr.vmem [resolvable:$true] %s132_s24 }
  0x3f   :  { %s6384_s25 = scalar_lea.hbm %s7787_s8, 2048 }
  0x40   :  { %p6385_p2 = scmp.ne.s32.totalorder %s7787_s8, %s6384_s25  ;;  %p6388_p3 = scmp.lt.u32.totalorder %s6384_s25, %s7787_s8 }
  0x42   :  { %p6390_p4 = pnand %p6388_p3, %p6385_p2 }
  0x44   :  { %6393 = shalt.err (!%p6390_p4)
}
  0x45   :  { %s6394_s30 = scalar_lea.vmem %s105_s0, 2048  ;;  %p6399_p6 = scmp.lt.s32.totalorder %s105_s0, %s105_s0 }
  0x46   :  { %p6395_p5 = scmp.ne.s32.totalorder %s105_s0, %s6394_s30  ;;  %p6400_p7 = scmp.lt.s32.totalorder %s6394_s30, %s6394_s30 }
  0x48   :  { %p6401_p8 = por %p6400_p7, %p6399_p6 }
  0x4a   :  { %p6402_p9 = pnand %p6401_p8, %p6395_p5 }
  0x4c   :  { %6405 = shalt.err (!%p6402_p9)
}
  0x4d   :  { %s7828_s1 = smov 8   ;;  %s7829_s3 = smov 128  }
  0x4e   :  { %110 = dma.hbm_to_vmem [thread:$0]  %s7787_s8, 2048, %s105_s0, [#allocation12], %s7829_s3, %s7829_s3, %s7828_s1  }
  0x4f   :  { %s6406_s21 = scalar_lea.hbm %s7791_s12, 2048 }
  0x50   :  { %p6407_p10 = scmp.ne.s32.totalorder %s7791_s12, %s6406_s21  ;;  %p6410_p11 = scmp.lt.u32.totalorder %s6406_s21, %s7791_s12 }
  0x52   :  { %p6412_p12 = pnand %p6410_p11, %p6407_p10 }
  0x54   :  { %6415 = shalt.err (!%p6412_p12)
}
  0x55   :  { %s6416_s26 = scalar_lea.vmem %s6747_s24, 2048  ;;  %p6421_p0 = scmp.lt.s32.totalorder %s6747_s24, %s6747_s24 }
  0x56   :  { %p6417_p13 = scmp.ne.s32.totalorder %s6747_s24, %s6416_s26  ;;  %p6422_p1 = scmp.lt.s32.totalorder %s6416_s26, %s6416_s26 }
  0x58   :  { %p6423_p2 = por %p6422_p1, %p6421_p0 }
  0x5a   :  { %p6424_p3 = pnand %p6423_p2, %p6417_p13 }
  0x5c   :  { %6427 = shalt.err (!%p6424_p3)
}
  0x5d   :  { %138 = dma.hbm_to_vmem [thread:$0]  %s7791_s12, 2048, %s6747_s24, [#allocation15], %s7829_s3, %s7829_s3, %s7828_s1  }
  0x5e   :  { %s6580_s30 = smov [#allocation2]   ;;  %s6581_s4 = smov [#allocation7]  }
  0x5f   :  { %s38_s29 = sshll.u32 %s6580_s30, 4  ;;  %s62_s2 = sshll.u32 %s6581_s4, 4  ;;  %s39_s29 = int_to_ptr.vmem [resolvable:$true] %s38_s29  ;;  %s6784_s2 = int_to_ptr.vmem [resolvable:$true] %s62_s2 }
  0x60   :  { %s7830_s27 = sld [smem:[#allocation24_spill]] }
  0x66   :  { %s6428_s22 = scalar_lea.hbm %s7830_s27, 256 }
  0x67   :  { %p6429_p4 = scmp.ne.s32.totalorder %s7830_s27, %s6428_s22  ;;  %p6432_p5 = scmp.lt.u32.totalorder %s6428_s22, %s7830_s27 }
  0x69   :  { %p6434_p6 = pnand %p6432_p5, %p6429_p4 }
  0x6b   :  { %6437 = shalt.err (!%p6434_p6)
}
  0x6c   :  { %s6438_s12 = scalar_lea.vmem %s39_s29, 256  ;;  %p6443_p8 = scmp.lt.s32.totalorder %s39_s29, %s39_s29 }
  0x6d   :  { %p6439_p7 = scmp.ne.s32.totalorder %s39_s29, %s6438_s12  ;;  %p6444_p9 = scmp.lt.s32.totalorder %s6438_s12, %s6438_s12 }
  0x6f   :  { %p6445_p10 = por %p6444_p9, %p6443_p8 }
  0x71   :  { %p6446_p11 = pnand %p6445_p10, %p6439_p7 }
  0x73   :  { %6449 = shalt.err (!%p6446_p11)
}
  0x74   :  { %44 = dma.hbm_to_vmem [thread:$0]  %s7830_s27, 256, %s39_s29, [#allocation3], %s7829_s3, %s7829_s3, %s7828_s1  }
  0x75   :  { %s7831_s28 = sld [smem:[#allocation26_spill]] }
  0x7b   :  { %s6450_s4 = scalar_lea.hbm %s7831_s28, 3072 }
  0x7c   :  { %p6451_p12 = scmp.ne.s32.totalorder %s7831_s28, %s6450_s4  ;;  %p6454_p13 = scmp.lt.u32.totalorder %s6450_s4, %s7831_s28 }
  0x7e   :  { %p6456_p0 = pnand %p6454_p13, %p6451_p12 }
  0x80   :  { %6459 = shalt.err (!%p6456_p0)
}
  0x81   :  { %s6460_s25 = scalar_lea.vmem %s6784_s2, 3072  ;;  %p6465_p2 = scmp.lt.s32.totalorder %s6784_s2, %s6784_s2 }
  0x82   :  { %p6461_p1 = scmp.ne.s32.totalorder %s6784_s2, %s6460_s25  ;;  %p6466_p3 = scmp.lt.s32.totalorder %s6460_s25, %s6460_s25 }
  0x84   :  { %p6467_p4 = por %p6466_p3, %p6465_p2 }
  0x86   :  { %p6468_p5 = pnand %p6467_p4, %p6461_p1 }
  0x88   :  { %6471 = shalt.err (!%p6468_p5)
}
  0x89   :  { %s6582_s29 = smov 192   ;;  %s6583_s27 = smov 12  }
  0x8a   :  { %68 = dma.hbm_to_vmem [thread:$0]  %s7831_s28, 3072, %s6784_s2, [#allocation6], %s6582_s29, %s6582_s29, %s6583_s27  }
  0x8b   :  { %s6584_s24 = smov [#allocation10]   ;;  %s6585_s0 = smov [#allocation13]  }
  0x8c   :  { %s90_s8 = sshll.u32 %s6584_s24, 4  ;;  %s118_s30 = sshll.u32 %s6585_s0, 4  ;;  %s91_s8 = int_to_ptr.vmem [resolvable:$true] %s90_s8  ;;  %s6818_s30 = int_to_ptr.vmem [resolvable:$true] %s118_s30 }
  0x8d   :  { %s7832_s21 = sld [smem:[#allocation30_spill]] }
  0x93   :  { %s6472_s22 = scalar_lea.hbm %s7832_s21, 1024 }
  0x94   :  { %p6473_p6 = scmp.ne.s32.totalorder %s7832_s21, %s6472_s22  ;;  %p6476_p7 = scmp.lt.u32.totalorder %s6472_s22, %s7832_s21 }
  0x96   :  { %p6478_p8 = pnand %p6476_p7, %p6473_p6 }
  0x98   :  { %6481 = shalt.err (!%p6478_p8)
}
  0x99   :  { %s6482_s2 = scalar_lea.vmem %s91_s8, 1024  ;;  %p6487_p10 = scmp.lt.s32.totalorder %s91_s8, %s91_s8 }
  0x9a   :  { %p6483_p9 = scmp.ne.s32.totalorder %s91_s8, %s6482_s2  ;;  %p6488_p11 = scmp.lt.s32.totalorder %s6482_s2, %s6482_s2 }
  0x9c   :  { %p6489_p12 = por %p6488_p11, %p6487_p10 }
  0x9e   :  { %p6490_p13 = pnand %p6489_p12, %p6483_p9 }
  0xa0   :  { %6493 = shalt.err (!%p6490_p13)
}
  0xa1   :  { %s7833_s28 = smov 4   ;;  %s7834_s29 = smov 64  }
  0xa2   :  { %96 = dma.hbm_to_vmem [thread:$0]  %s7832_s21, 1024, %s91_s8, [#allocation9], %s7834_s29, %s7834_s29, %s7833_s28  }
  0xa3   :  { %s6494_s23 = scalar_lea.hbm %s7789_s10, 1024 }
  0xa4   :  { %p6495_p0 = scmp.ne.s32.totalorder %s7789_s10, %s6494_s23  ;;  %p6498_p1 = scmp.lt.u32.totalorder %s6494_s23, %s7789_s10 }
  0xa6   :  { %p6500_p2 = pnand %p6498_p1, %p6495_p0 }
  0xa8   :  { %6503 = shalt.err (!%p6500_p2)
}
  0xa9   :  { %s6504_s22 = scalar_lea.vmem %s6818_s30, 1024  ;;  %p6509_p4 = scmp.lt.s32.totalorder %s6818_s30, %s6818_s30 }
  0xaa   :  { %p6505_p3 = scmp.ne.s32.totalorder %s6818_s30, %s6504_s22  ;;  %p6510_p5 = scmp.lt.s32.totalorder %s6504_s22, %s6504_s22 }
  0xac   :  { %p6511_p6 = por %p6510_p5, %p6509_p4 }
  0xae   :  { %p6512_p7 = pnand %p6511_p6, %p6505_p3 }
  0xb0   :  { %6515 = shalt.err (!%p6512_p7)
}
  0xb1   :  { %124 = dma.hbm_to_vmem [thread:$0]  %s7789_s10, 1024, %s6818_s30, [#allocation12], %s7834_s29, %s7834_s29, %s7833_s28  }
  0xb2   :  { %s6586_s6 = smov [#allocation16]   ;;  %s6516_s26 = scalar_lea.hbm %s7793_s14, 2048 }
  0xb3   :  { %s146_s25 = sshll.u32 %s6586_s6, 4  ;;  %p6517_p8 = scmp.ne.s32.totalorder %s7793_s14, %s6516_s26  ;;  %s147_s25 = int_to_ptr.vmem [resolvable:$true] %s146_s25 }
  0xb4   :  { %p6520_p9 = scmp.lt.u32.totalorder %s6516_s26, %s7793_s14 }
  0xb6   :  { %p6522_p10 = pnand %p6520_p9, %p6517_p8 }
  0xb8   :  { %6525 = shalt.err (!%p6522_p10)
}
  0xb9   :  { %s6526_s0 = scalar_lea.vmem %s147_s25, 2048  ;;  %p6531_p12 = scmp.lt.s32.totalorder %s147_s25, %s147_s25 }
  0xba   :  { %p6527_p11 = scmp.ne.s32.totalorder %s147_s25, %s6526_s0  ;;  %p6532_p13 = scmp.lt.s32.totalorder %s6526_s0, %s6526_s0 }
  0xbc   :  { %p6533_p0 = por %p6532_p13, %p6531_p12 }
  0xbe   :  { %p6534_p1 = pnand %p6533_p0, %p6527_p11 }
  0xc0   :  { %6537 = shalt.err (!%p6534_p1)
}
  0xc1   :  { %152 = dma.hbm_to_vmem [thread:$0]  %s7793_s14, 2048, %s147_s25, [#allocation15], %s7834_s29, %s7834_s29, %s7833_s28  }
  0xc2   :  { %6560 = dma.done.wait [#allocation3], 256  }
  0xc3   :  { %6561 = vsyncadd [#allocation3], 4294967040 }
  0xc4   :  { %6562 = dma.done.wait [#allocation6], 3328  }
  0xc5   :  { %6563 = vsyncadd [#allocation6], 4294963968 }
  0xc6   :  { %6564 = dma.done.wait [#allocation9], 2048  }
  0xc7   :  { %6565 = vsyncadd [#allocation9], 4294965248 }
  0xc8   :  { %6566 = dma.done.wait [#allocation12], 3072  }
  0xc9   :  { %6567 = vsyncadd [#allocation12], 4294964224 }
  0xca   :  { %6568 = dma.done.wait [#allocation15], 4096  }
  0xcb   :  { %6569 = vsyncadd [#allocation15], 4294963200  ;;  %v6587_v0 = vmov 0   ;;  %v6142_v1 = vld [vmem:[#allocation7 + $0x4] ss:$12 sps:$4 sm:$0xff]   ;;  %v196_v18 = vld [vmem:[#allocation2 + $0x8] sm:$0xff]  ;;  %v234_v27 = vlaneseq }
  0xcc   :  { %409 = vmatprep.mubr.bf16.mxu0 %v6587_v0  ;;  %v6144_v2 = vld [vmem:[#allocation7] ss:$12 sps:$4 sm:$0xff]   ;;  %377 = vmatprep.subr.bf16.mxu0 %v6142_v1  ;;  %v6145_v3 = vld [vmem:[#allocation7 + $0x1c] ss:$12 sps:$4 sm:$0xff]   ;;  %v6147_v4 = vld [vmem:[#allocation7 + $0x18] ss:$12 sps:$4 sm:$0xff]  }
  0xcd   :  { %378 = vmatpush1.bf16.msra.mxu0 %v6144_v2  ;;  %v6148_v5 = vld [vmem:[#allocation7 + $0x34] ss:$12 sps:$4 sm:$0xff]   ;;  %v6150_v6 = vld [vmem:[#allocation7 + $0x30] ss:$12 sps:$4 sm:$0xff]   ;;  %v6151_v7 = vld [vmem:[#allocation7 + $0x4c] ss:$12 sps:$4 sm:$0xff]  }
  0xce   :  { %379 = vmatprep.subr.bf16.mxu0 %v6145_v3  ;;  %v6153_v8 = vld [vmem:[#allocation7 + $0x48] ss:$12 sps:$4 sm:$0xff]   ;;  %v6154_v9 = vld [vmem:[#allocation7 + $0x64] ss:$12 sps:$4 sm:$0xff]   ;;  %v6156_v10 = vld [vmem:[#allocation7 + $0x60] ss:$12 sps:$4 sm:$0xff]  }
  0xcf   :  { %v6157_v11 = vld [vmem:[#allocation7 + $0x7c] ss:$12 sps:$4 sm:$0xff]   ;;  %v6159_v12 = vld [vmem:[#allocation7 + $0x78] ss:$12 sps:$4 sm:$0xff]   ;;  %v6160_v13 = vld [vmem:[#allocation7 + $0x94] ss:$12 sps:$4 sm:$0xff]  }
  0xd0   :  { %v6162_v14 = vld [vmem:[#allocation7 + $0x90] ss:$12 sps:$4 sm:$0xff]   ;;  %v6163_v15 = vld [vmem:[#allocation7 + $0xac] ss:$12 sps:$4 sm:$0xff]   ;;  %v6165_v16 = vld [vmem:[#allocation7 + $0xa8] ss:$12 sps:$4 sm:$0xff]  }
  0xd1   :  { %380 = vmatpush1.bf16.msra.mxu0 %v6147_v4  ;;  %v195_v17 = vld [vmem:[#allocation2] sm:$0xff]  ;;  %v6166_v20 = vld [vmem:[#allocation7 + $0x8] ss:$12 sps:$4 sm:$0xff]   ;;  %v6588_v21 = vmov 0.0   ;;  %v6169_v24 = vld [vmem:[#allocation7 + $0x50] ss:$12 sps:$4 sm:$0xff]  }
  0xd2   :  { %381 = vmatprep.subr.bf16.mxu0 %v6148_v5  ;;  %v199_v19 = vpack.c.bf16 %v196_v18, %v195_v17  ;;  %5817 = vmatprep.subr.bf16.mxu1 %v6588_v21  ;;  %v6167_v22 = vld [vmem:[#allocation7 + $0x20] ss:$12 sps:$4 sm:$0xff]   ;;  %v6168_v23 = vld [vmem:[#allocation7 + $0x38] ss:$12 sps:$4 sm:$0xff]   ;;  %v6170_v25 = vld [vmem:[#allocation7 + $0x68] ss:$12 sps:$4 sm:$0xff]  }
  0xd3   :  { %5818 = vmatpush3.bf16.msra.mxu1 %v6166_v20  ;;  %v6171_v26 = vld [vmem:[#allocation7 + $0x80] ss:$12 sps:$4 sm:$0xff]   ;;  %v6879_v28 = vshrl.u32 %v234_v27, 7  ;;  %v6172_v29 = vld [vmem:[#allocation7 + $0x98] ss:$12 sps:$4 sm:$0xff]   ;;  %s7835_s4 = sld [smem:[#allocation27_spill]] }
  0xd4   :  { %5819 = vmatprep.subr.bf16.mxu1 %v6588_v21  ;;  %v6173_v32 = vld [vmem:[#allocation7 + $0xb0] ss:$12 sps:$4 sm:$0xff]   ;;  %vm6589_vm0 = vmmov 0   ;;  %s6590_s5 = smov 32   ;;  %s6591_s22 = smov 96   ;;  %vm1361_vm1 = vcmask 261120  }
  0xd5   :  { %382 = vmatpush1.bf16.msra.mxu0 %v6150_v6  ;;  %v6882_v30 = vsub.s32 1, %v6879_v28  ;;  %v6891_v33 = vsub.s32 0, %v6879_v28  ;;  %5833 = vmatprep.mubr.msk.bf16.mxu1 %vm6589_vm0, %v6588_v21  ;;  %v6592_v44 = vmov 1983009808   ;;  %v6593_v46 = vmov 1934713408  }
  0xd6   :  { %383 = vmatprep.subr.bf16.mxu0 %v6151_v7  ;;  %v484_v45 = vunpack.c.l.s4 %v6592_v44  ;;  %v516_v47 = vunpack.c.l.s4 %v6593_v46  ;;  %vm1738_vm2 = vcmask 64512   ;;  %vm1838_vm3 = vcmask 1043456   ;;  %s7836_s6 = sld [smem:[#allocation29_spill]]  ;;  %s7837_s28 = sld [smem:[#allocation31_spill]] }
  0xd7   :  { %5820 = vmatpush3.bf16.msra.mxu1 %v6167_v22  ;;  %vm2502_vm4 = vcmask 523264   ;;  %vm2505_vm5 = vcmask 785408  }
  0xd8   :  { %5821 = vmatprep.subr.bf16.mxu1 %v6588_v21  ;;  %v485_v48 = vunpack.c.0.s8 %v484_v45  ;;  %v517_v51 = vunpack.c.0.s8 %v516_v47 }
  0xd9   :  { %384 = vmatpush1.bf16.msra.mxu0 %v6153_v8  ;;  %v6888_v31 = vld [vmem:[%s7835_s4] sm:$0x7]  ;;  %s6594_s4 = smov [#allocation17]  }
  0xda   :  { %385 = vmatprep.subr.bf16.mxu0 %v6154_v9  ;;  %v241_v34 = vrot.slane %v6888_v31, %v6882_v30  ;;  %v237_v37 = vrot.slane %v6888_v31, %v6891_v33  ;;  %v6927_v52 = vsub.s32 %v485_v48, %v6879_v28  ;;  %v6930_v59 = vsub.s32 %v517_v51, %v6879_v28 }
  0xdb   :  { %5822 = vmatpush3.bf16.msra.mxu1 %v6168_v23 }
  0xdc   :  { %5823 = vmatprep.subr.bf16.mxu1 %v6588_v21 }
  0xdd   :  { %386 = vmatpush1.bf16.msra.mxu0 %v6156_v10 }
  0xde   :  { %387 = vmatprep.subr.bf16.mxu0 %v6157_v11 }
  0xdf   :  { %5824 = vmatpush3.bf16.msra.mxu1 %v6169_v24 }
  0xe0   :  { %5825 = vmatprep.subr.bf16.mxu1 %v6588_v21 }
  0xe1   :  { %388 = vmatpush1.bf16.msra.mxu0 %v6159_v12 }
  0xe2   :  { %389 = vmatprep.subr.bf16.mxu0 %v6160_v13 }
  0xe3   :  { %5826 = vmatpush3.bf16.msra.mxu1 %v6170_v25 }
  0xe4   :  { %5827 = vmatprep.subr.bf16.mxu1 %v6588_v21 }
  0xe5   :  { %390 = vmatpush1.bf16.msra.mxu0 %v6162_v14 }
  0xe6   :  { %391 = vmatprep.subr.bf16.mxu0 %v6163_v15 }
  0xe7   :  { %5828 = vmatpush3.bf16.msra.mxu1 %v6171_v26 }
  0xe8   :  { %5829 = vmatprep.subr.bf16.mxu1 %v6588_v21 }
  0xe9   :  { %392 = vmatpush1.bf16.msra.mxu0 %v6165_v16 }
  0xea   :  { %5861 = vmatprep.subr.bf16.mxu0 %v6588_v21 }
  0xeb   :  { %5830 = vmatpush3.bf16.msra.mxu1 %v6172_v29 }
  0xec   :  { %410 = vmatmul.mubr.bf16.vlgmr.msra.gmra.mrb[0].mxu0 %v199_v19  ;;  %5831 = vmatprep.subr.bf16.mxu1 %v6588_v21 }
  0xed   :  { %5863 = vmatprep.mubr.msk.bf16.mxu0 %vm6589_vm0, %v6588_v21 }
  0xef   :  { %5832 = vmatpush3.bf16.msra.mxu1 %v6173_v32 }
  0xf0   :  { %5837 = vmatprep.subr.bf16.mxu1 %v6588_v21 }
  0xf2   :  { %5834 = vmatmul.mubr.bf16.vlgmr.msra.gmra.mrb[0].mxu1 %v199_v19 }
  0xf3   :  { %5839 = vmatprep.mubr.msk.bf16.mxu1 %vm6589_vm0, %v6588_v21 }
 0x1bf   :  { %v411_v35 = vpop.f32.mrb[0].mxu0 }
 0x1c0   :  { %v413_v36 = vpop.f32.mrb[1].mxu0  ;;  %v412_v41 = vadd.f32 %v411_v35, %v237_v37 }
 0x1c1   :  { %v414_v38 = vadd.f32 %v413_v36, %v241_v34  ;;  %v415_v39 = vpop.f32.mrb[2].mxu0 }
 0x1c2   :  { %v417_v40 = vpop.f32.mrb[3].mxu0  ;;  %v6916_v43 = vadd.f32 %v415_v39, %v237_v37 }
 0x1c3   :  { %775 = vrot.lane.b32.xlu1 %v414_v38, %s6590_s5  ;;  %763 = vrot.lane.b32.xlu0 %v414_v38, %s6591_s22  ;;  %v6910_v42 = vadd.f32 %v417_v40, %v241_v34 }
 0x1c7   :  { %769 = vrot.lane.b32.xlu0 %v414_v38, %s7834_s29  ;;  %463 = vrot.lane.b32.xlu1 %v412_v41, %s6591_s22 }
 0x1cb   :  { %469 = vrot.lane.b32.xlu0 %v412_v41, %s7834_s29  ;;  %475 = vrot.lane.b32.xlu1 %v412_v41, %s6590_s5 }
 0x1cf   :  { %765 = vrot.lane.b32.xlu0 %v6910_v42, %s6591_s22  ;;  %771 = vrot.lane.b32.xlu1 %v6910_v42, %s7834_s29 }
 0x1d3   :  { %777 = vrot.lane.b32.xlu0 %v6910_v42, %s6590_s5  ;;  %465 = vrot.lane.b32.xlu1 %v6916_v43, %s6591_s22 }
 0x1d7   :  { %471 = vrot.lane.b32.xlu0 %v6916_v43, %s7834_s29  ;;  %477 = vrot.lane.b32.xlu1 %v6916_v43, %s6590_s5 }
 0x235   :  { %v776_v49 = vpop.permute.xlu1 %775  ;;  %v764_v50 = vpop.permute.xlu0 %763 }
 0x236   :  { %v797_v53 = vcombine.low %v764_v50, %v776_v49  ;;  %v798_v54 = vcombine.high %v764_v50, %v776_v49 }
 0x238   :  { %v805_v60 = vrot.slane %v797_v53, %v6927_v52  ;;  %v812_v61 = vrot.slane %v798_v54, %v6927_v52 }
 0x239   :  { %v770_v55 = vpop.permute.xlu0 %769  ;;  %v464_v56 = vpop.permute.xlu1 %463 }
 0x23a   :  { %v781_v57 = vcombine.low %v414_v38, %v770_v55  ;;  %v782_v58 = vcombine.high %v414_v38, %v770_v55 }
 0x23c   :  { %v789_v62 = vrot.slane %v781_v57, %v6927_v52  ;;  %v796_v63 = vrot.slane %v782_v58, %v6927_v52 }
 0x23d   :  { %v470_v1 = vpop.permute.xlu0 %469  ;;  %v476_v2 = vpop.permute.xlu1 %475 }
 0x23e   :  { %v813_v3 = vcombine.low %v789_v62, %v805_v60  ;;  %v814_v4 = vcombine.high %v789_v62, %v805_v60  ;;  %v829_v5 = vcombine.low %v796_v63, %v812_v61  ;;  %v830_v6 = vcombine.high %v796_v63, %v812_v61 }
 0x23f   :  { %v481_v7 = vcombine.low %v412_v41, %v470_v1  ;;  %v482_v8 = vcombine.high %v412_v41, %v470_v1  ;;  %v497_v9 = vcombine.low %v464_v56, %v476_v2  ;;  %v498_v10 = vcombine.high %v464_v56, %v476_v2 }
 0x240   :  { %v821_v11 = vrot.slane %v813_v3, %v6930_v59  ;;  %v828_v12 = vrot.slane %v814_v4, %v6930_v59  ;;  %v837_v13 = vrot.slane %v829_v5, %v6930_v59  ;;  %v844_v14 = vrot.slane %v830_v6, %v6930_v59 }
 0x241   :  { %v489_v15 = vrot.slane %v481_v7, %v6927_v52  ;;  %v496_v16 = vrot.slane %v482_v8, %v6927_v52  ;;  %v505_v17 = vrot.slane %v497_v9, %v6927_v52  ;;  %v512_v18 = vrot.slane %v498_v10, %v6927_v52  ;;  %v766_v19 = vpop.permute.xlu0 %765  ;;  %v772_v20 = vpop.permute.xlu1 %771 }
 0x242   :  { %v917_v26 = vcombine.low %v821_v11, %v828_v12  ;;  %v5553_v27 = vcombine.high %v821_v11, %v828_v12  ;;  %v933_v29 = vcombine.low %v837_v13, %v844_v14  ;;  %v849_v39 = vcombine.low %v6910_v42, %v772_v20 }
 0x243   :  { %v513_v22 = vcombine.low %v489_v15, %v505_v17  ;;  %v514_v23 = vcombine.high %v489_v15, %v505_v17  ;;  %v529_v24 = vcombine.low %v496_v16, %v512_v18  ;;  %v530_v25 = vcombine.high %v496_v16, %v512_v18 }
 0x244   :  { %v850_v40 = vcombine.high %v6910_v42, %v772_v20  ;;  %v5554_v45 = vcombine.high %v837_v13, %v844_v14  ;;  %v857_v49 = vrot.slane %v849_v39, %v6927_v52  ;;  %v6955_v54 = vrot.slane %v917_v26, %v6927_v52 }
 0x245   :  { %v521_v32 = vrot.slane %v513_v22, %v6930_v59  ;;  %v528_v34 = vrot.slane %v514_v23, %v6930_v59  ;;  %v537_v35 = vrot.slane %v529_v24, %v6930_v59  ;;  %v544_v36 = vrot.slane %v530_v25, %v6930_v59  ;;  %v778_v37 = vpop.permute.xlu0 %777  ;;  %v466_v38 = vpop.permute.xlu1 %465 }
 0x246   :  { %v865_v41 = vcombine.low %v766_v19, %v778_v37  ;;  %v866_v44 = vcombine.high %v766_v19, %v778_v37  ;;  %v864_v50 = vrot.slane %v850_v40, %v6927_v52  ;;  %v6958_v55 = vrot.slane %v5553_v27, %v6927_v52 }
 0x247   :  { %v617_v46 = vcombine.low %v521_v32, %v528_v34  ;;  %v5549_v47 = vcombine.high %v521_v32, %v528_v34  ;;  %v633_v48 = vcombine.low %v537_v35, %v544_v36  ;;  %v6961_v42 = vrot.slane %v933_v29, %v6927_v52 }
 0x248   :  { %v873_v51 = vrot.slane %v865_v41, %v6927_v52  ;;  %v880_v53 = vrot.slane %v866_v44, %v6927_v52  ;;  %v5550_v56 = vcombine.high %v537_v35, %v544_v36  ;;  %v6964_v1 = vrot.slane %v5554_v45, %v6927_v52 }
 0x249   :  { %v472_v62 = vpop.permute.xlu0 %471  ;;  %v478_v63 = vpop.permute.xlu1 %477  ;;  %v6967_v2 = vrot.slane %v617_v46, %v6927_v52  ;;  %v6970_v3 = vrot.slane %v5549_v47, %v6927_v52  ;;  %v6973_v4 = vrot.slane %v633_v48, %v6927_v52  ;;  %v949_v35 = vcombine.low %v6955_v54, %v6958_v55 }
 0x24a   :  { %v881_v57 = vcombine.low %v857_v49, %v873_v51  ;;  %v882_v58 = vcombine.high %v857_v49, %v873_v51  ;;  %v897_v60 = vcombine.low %v864_v50, %v880_v53  ;;  %v898_v61 = vcombine.high %v864_v50, %v880_v53 }
 0x24b   :  { %v549_v9 = vcombine.low %v6916_v43, %v472_v62  ;;  %v550_v10 = vcombine.high %v6916_v43, %v472_v62  ;;  %v565_v11 = vcombine.low %v466_v38, %v478_v63  ;;  %v566_v12 = vcombine.high %v466_v38, %v478_v63 }
 0x24c   :  { %v889_v5 = vrot.slane %v881_v57, %v6930_v59  ;;  %v896_v6 = vrot.slane %v882_v58, %v6930_v59  ;;  %v905_v7 = vrot.slane %v897_v60, %v6930_v59  ;;  %v912_v8 = vrot.slane %v898_v61, %v6930_v59 }
 0x24d   :  { %v6982_v13 = vrot.slane %v5550_v56, %v6927_v52  ;;  %v557_v17 = vrot.slane %v549_v9, %v6927_v52  ;;  %v564_v18 = vrot.slane %v550_v10, %v6927_v52  ;;  %v573_v19 = vrot.slane %v565_v11, %v6927_v52 }
 0x24e   :  { %v985_v14 = vcombine.low %v889_v5, %v896_v6  ;;  %v5555_v15 = vcombine.high %v889_v5, %v896_v6  ;;  %v1001_v16 = vcombine.low %v905_v7, %v912_v8  ;;  %v580_v20 = vrot.slane %v566_v12, %v6927_v52 }
 0x24f   :  { %v649_v22 = vcombine.low %v6967_v2, %v6970_v3  ;;  %v5556_v24 = vcombine.high %v905_v7, %v912_v8  ;;  %v581_v25 = vcombine.low %v557_v17, %v573_v19  ;;  %v582_v26 = vcombine.high %v557_v17, %v573_v19 }
 0x250   :  { %v992_v43 = vrot.slane %v985_v14, %v6927_v52  ;;  %v1000_v23 = vrot.slane %v5555_v15, %v6927_v52  ;;  %v597_v27 = vcombine.low %v564_v18, %v580_v20  ;;  %v598_v29 = vcombine.high %v564_v18, %v580_v20 }
 0x251   :  { %v665_v32 = vcombine.low %v6973_v4, %v6982_v13  ;;  %v1008_v34 = vrot.slane %v1001_v16, %v6927_v52  ;;  %v965_v36 = vcombine.low %v6961_v42, %v6964_v1  ;;  %v589_v37 = vrot.slane %v581_v25, %v6930_v59 }
 0x252   :  { %v596_v38 = vrot.slane %v582_v26, %v6930_v59  ;;  %v605_v39 = vrot.slane %v597_v27, %v6930_v59  ;;  %v612_v40 = vrot.slane %v598_v29, %v6930_v59  ;;  %v1016_v41 = vrot.slane %v5556_v24, %v6927_v52 }
 0x253   :  { %v957_v44 = vrot.slane %v949_v35, %v6930_v59  ;;  %v973_v45 = vrot.slane %v965_v36, %v6930_v59  ;;  %v1017_v46 = vcombine.low %v992_v43, %v1000_v23  ;;  %v657_v53 = vrot.slane %v649_v22, %v6930_v59 }
 0x254   :  { %v685_v47 = vcombine.low %v589_v37, %v596_v38  ;;  %v5551_v48 = vcombine.high %v589_v37, %v596_v38  ;;  %v701_v49 = vcombine.low %v605_v39, %v612_v40  ;;  %v5552_v50 = vcombine.high %v605_v39, %v612_v40 }
 0x255   :  { %v981_v51 = vcombine.low %v957_v44, %v973_v45  ;;  %v673_v62 = vrot.slane %v665_v32, %v6930_v59  ;;  %v7013_v63 = vrot.slane %v1017_v46, %v6930_v59  ;;  %v1033_v5 = vcombine.low %v1008_v34, %v1016_v41 }
 0x256   :  { %v692_v56 = vrot.slane %v685_v47, %v6927_v52  ;;  %v700_v57 = vrot.slane %v5551_v48, %v6927_v52  ;;  %v708_v58 = vrot.slane %v701_v49, %v6927_v52  ;;  %v716_v60 = vrot.slane %v5552_v50, %v6927_v52 }
 0x257   :  { %v1053_v61 = vpack.c.bf16 %v981_v51, %v981_v51  ;;  %v982_v8 = vcombine.high %v957_v44, %v973_v45  ;;  %v1041_v10 = vrot.slane %v1033_v5, %v6930_v59  ;;  %v950_v11 = vcombine.high %v6955_v54, %v6958_v55 }
 0x258   :  { %v717_v6 = vcombine.low %v692_v56, %v700_v57  ;;  %v733_v7 = vcombine.low %v708_v58, %v716_v60  ;;  %v966_v12 = vcombine.high %v6961_v42, %v6964_v1  ;;  %v681_v14 = vcombine.low %v657_v53, %v673_v62 }
 0x259   :  { %v1366_v9 = vsel %vm1361_vm1, %v1053_v61, 0  ;;  %v1049_v15 = vcombine.low %v7013_v63, %v1041_v10  ;;  %v1018_v16 = vcombine.high %v992_v43, %v1000_v23  ;;  %v1034_v17 = vcombine.high %v1008_v34, %v1016_v41 }
 0x25a   :  { %5838 = vmatpush3.bf16.xpose.msra.mxu1 %v1366_v9  ;;  %v1054_v18 = vpack.c.bf16 %v982_v8, %v982_v8  ;;  %v964_v19 = vrot.slane %v950_v11, %v6930_v59  ;;  %v7025_v20 = vrot.slane %v717_v6, %v6930_v59  ;;  %v741_v22 = vrot.slane %v733_v7, %v6930_v59  ;;  %v454_v11 = vpop.f32.mrb[0].mxu1 }
 0x25b   :  { %5843 = vmatprep.subr.bf16.mxu1 %v6588_v21  ;;  %v1057_v24 = vpack.c.bf16 %v1049_v15, %v1049_v15  ;;  %v980_v54 = vrot.slane %v966_v12, %v6930_v59  ;;  %v1032_v55 = vrot.slane %v1018_v16, %v6930_v59  ;;  %v1048_v42 = vrot.slane %v1034_v17, %v6930_v59 }
 0x25c   :  { %v753_v1 = vpack.c.bf16 %v681_v14, %v681_v14  ;;  %v718_v23 = vcombine.high %v692_v56, %v700_v57  ;;  %v734_v26 = vcombine.high %v708_v58, %v716_v60  ;;  %v1412_v27 = vsel %vm1361_vm1, %v1054_v18, 0  ;;  %v5835_v14 = vpop.f32.mrb[1].mxu1 }
 0x25d   :  { %v1550_v25 = vsel %vm1361_vm1, %v1057_v24, 0  ;;  %v1051_v43 = vcombine.low %v1032_v55, %v1048_v42  ;;  %v983_v29 = vcombine.low %v964_v19, %v980_v54  ;;  %v749_v32 = vcombine.low %v7025_v20, %v741_v22  ;;  %v457_v15 = vpop.f32.mrb[2].mxu1 }
 0x25e   :  { %5862 = vmatpush3.bf16.xpose.msra.mxu0 %v1550_v25  ;;  %v650_v34 = vcombine.high %v6967_v2, %v6970_v3  ;;  %v666_v35 = vcombine.high %v6973_v4, %v6982_v13  ;;  %v682_v36 = vcombine.high %v657_v53, %v673_v62  ;;  %v732_v40 = vrot.slane %v718_v23, %v6930_v59  ;;  %v5836_v17 = vpop.f32.mrb[3].mxu1 }
 0x25f   :  { %5873 = vmatprep.subr.bf16.mxu0 %v6588_v21  ;;  %v1059_v37 = vpack.c.bf16 %v1051_v43, %v1051_v43  ;;  %v1055_v38 = vpack.c.bf16 %v983_v29, %v983_v29  ;;  %v757_v39 = vpack.c.bf16 %v749_v32, %v749_v32  ;;  %v748_v41 = vrot.slane %v734_v26, %v6930_v59 }
 0x260   :  { %v754_v44 = vpack.c.bf16 %v682_v36, %v682_v36  ;;  %v664_v2 = vrot.slane %v650_v34, %v6930_v59  ;;  %v680_v3 = vrot.slane %v666_v35, %v6930_v59  ;;  %v984_v13 = vcombine.high %v964_v19, %v980_v54 }
 0x261   :  { %5840 = vmatmul.mubr.msk.bf16.vlgmr.msra.gmra.mrb[4].mxu1 %vm1361_vm1, %v753_v1  ;;  %v1642_v45 = vsel %vm1361_vm1, %v1059_v37, 0  ;;  %v1458_v4 = vsel %vm1361_vm1, %v1055_v38, 0  ;;  %v751_v46 = vcombine.low %v732_v40, %v748_v41  ;;  %v1050_v53 = vcombine.high %v7013_v63, %v1041_v10 }
 0x262   :  { %5844 = vmatpush3.bf16.xpose.msra.mxu1 %v1412_v27  ;;  %5845 = vmatprep.mubr.msk.bf16.mxu1 %vm6589_vm0, %v6588_v21  ;;  %v683_v47 = vcombine.low %v664_v2, %v680_v3  ;;  %v1056_v48 = vpack.c.bf16 %v984_v13, %v984_v13  ;;  %v684_v56 = vcombine.high %v664_v2, %v680_v3  ;;  %v244_v9 = vsub.s32 2, %v6879_v28 }
 0x263   :  { %5849 = vmatprep.subr.bf16.mxu1 %v6588_v21  ;;  %v759_v49 = vpack.c.bf16 %v751_v46, %v751_v46  ;;  %v1058_v57 = vpack.c.bf16 %v1050_v53, %v1050_v53  ;;  %v1052_v61 = vcombine.high %v1032_v55, %v1048_v42  ;;  %v750_v62 = vcombine.high %v7025_v20, %v741_v22 }
 0x264   :  { %v755_v50 = vpack.c.bf16 %v683_v47, %v683_v47  ;;  %v1504_v51 = vsel %vm1361_vm1, %v1056_v48, 0  ;;  %v756_v58 = vpack.c.bf16 %v684_v56, %v684_v56  ;;  %v752_v7 = vcombine.high %v732_v40, %v748_v41 }
 0x265   :  { %5864 = vmatmul.mubr.msk.bf16.vlgmr.msra.gmra.mrb[4].mxu0 %vm1361_vm1, %v757_v39  ;;  %v1596_v60 = vsel %vm1361_vm1, %v1058_v57, 0  ;;  %v1060_v63 = vpack.c.bf16 %v1052_v61, %v1052_v61  ;;  %v758_v5 = vpack.c.bf16 %v750_v62, %v750_v62  ;;  %v245_v10 = vrot.slane %v6888_v31, %v244_v9 }
 0x266   :  { %5874 = vmatpush3.bf16.xpose.msra.mxu0 %v1642_v45  ;;  %5875 = vmatprep.mubr.msk.bf16.mxu0 %vm6589_vm0, %v6588_v21  ;;  %v760_v8 = vpack.c.bf16 %v752_v7, %v752_v7 }
 0x267   :  { %5885 = vmatprep.subr.bf16.mxu0 %v6588_v21  ;;  %v1688_v6 = vsel %vm1361_vm1, %v1060_v63, 0  ;;  %v7082_v12 = vadd.f32 %v454_v11, %v245_v10  ;;  %v7086_v16 = vadd.f32 %v457_v15, %v245_v10 }
 0x269   :  { %5846 = vmatmul.mubr.msk.bf16.vlgmr.msra.gmra.mrb[8].mxu1 %vm1361_vm1, %v754_v44  ;;  %1063 = vrot.lane.b32.xlu1 %v7082_v12, %s6591_s22 }
 0x26a   :  { %5850 = vmatpush3.bf16.xpose.msra.mxu1 %v1458_v4  ;;  %5851 = vmatprep.mubr.msk.bf16.mxu1 %vm6589_vm0, %v6588_v21 }
 0x26b   :  { %5855 = vmatprep.subr.bf16.mxu1 %v6588_v21 }
 0x26d   :  { %5876 = vmatmul.mubr.msk.bf16.vlgmr.msra.gmra.mrb[8].mxu0 %vm1361_vm1, %v759_v49 }
 0x26e   :  { %5887 = vmatprep.mubr.msk.bf16.mxu0 %vm6589_vm0, %v6588_v21 }
 0x271   :  { %5852 = vmatmul.mubr.msk.bf16.vlgmr.msra.gmra.mrb[12].mxu1 %vm1361_vm1, %v755_v50 }
 0x272   :  { %5856 = vmatpush3.bf16.xpose.msra.mxu1 %v1504_v51  ;;  %5857 = vmatprep.mubr.msk.bf16.mxu1 %vm6589_vm0, %v6588_v21 }
 0x273   :  { %5867 = vmatprep.subr.bf16.mxu1 %v6588_v21 }
 0x279   :  { %5858 = vmatmul.mubr.msk.bf16.vlgmr.msra.gmra.mrb[16].mxu1 %vm1361_vm1, %v756_v58 }
 0x27a   :  { %5868 = vmatpush3.bf16.xpose.msra.mxu1 %v1596_v60  ;;  %5869 = vmatprep.mubr.msk.bf16.mxu1 %vm6589_vm0, %v6588_v21 }
 0x27b   :  { %5879 = vmatprep.subr.bf16.mxu1 %v6588_v21 }
 0x281   :  { %5870 = vmatmul.mubr.msk.bf16.vlgmr.msra.gmra.mrb[20].mxu1 %vm1361_vm1, %v758_v5 }
 0x282   :  { %5880 = vmatpush3.bf16.xpose.msra.mxu1 %v1688_v6  ;;  %5881 = vmatprep.mubr.msk.bf16.mxu1 %vm6589_vm0, %v6588_v21 }
 0x283   :  { %5891 = vmatprep.subr.bf16.mxu1 %v6588_v21 }
 0x289   :  { %5882 = vmatmul.mubr.msk.bf16.vlgmr.msra.gmra.mrb[24].mxu1 %vm1361_vm1, %v760_v8 }
 0x28a   :  { %5893 = vmatprep.mubr.msk.bf16.mxu1 %vm6589_vm0, %v6588_v21 }
 0x2db   :  { %v1064_v9 = vpop.permute.xlu1 %1063 }
 0x334   :  { %v1402_v18 = vpop.f32.mrb[4].mxu1 }
 0x335   :  { %v1730_v19 = vmul.f32 0.17677669, %v1402_v18  ;;  %v5841_v20 = vpop.f32.mrb[5].mxu1 }
 0x336   :  { %v1405_v22 = vpop.f32.mrb[6].mxu1 }
 0x337   :  { %v5842_v24 = vpop.f32.mrb[7].mxu1  ;;  %v1739_v28 = vsel %vm1738_vm2, %v1730_v19, -inf }
 0x338   :  { %1740 = vmax.xlane.f32.xlu0 %v1739_v28  ;;  %v1586_v31 = vpop.f32.mrb[4].mxu0 }
 0x339   :  { %v1734_v54 = vmul.f32 0.17677669, %v1586_v31  ;;  %v5865_v55 = vpop.f32.mrb[5].mxu0 }
 0x33a   :  { %v1589_v1 = vpop.f32.mrb[6].mxu0 }
 0x33b   :  { %v5866_v23 = vpop.f32.mrb[7].mxu0  ;;  %v1751_v26 = vsel %vm1738_vm2, %v1734_v54, -inf }
 0x33c   :  { %v1448_v42 = vpop.f32.mrb[8].mxu1  ;;  %1752 = vmax.xlane.f32.xlu1 %v1751_v26 }
 0x33d   :  { %v1731_v25 = vmul.f32 0.17677669, %v1448_v42  ;;  %v5847_v43 = vpop.f32.mrb[9].mxu1 }
 0x33e   :  { %v1451_v27 = vpop.f32.mrb[10].mxu1 }
 0x33f   :  { %v5848_v29 = vpop.f32.mrb[11].mxu1  ;;  %v1742_v32 = vsel %vm1738_vm2, %v1731_v25, -inf }
 0x340   :  { %1743 = vmax.xlane.f32.xlu1 %v1742_v32  ;;  %v1678_v34 = vpop.f32.mrb[8].mxu0 }
 0x341   :  { %v7091_v35 = vmul.f32 0.17677669, %v1678_v34  ;;  %v5877_v36 = vpop.f32.mrb[9].mxu0 }
 0x342   :  { %v1681_v38 = vpop.f32.mrb[10].mxu0 }
 0x343   :  { %v5878_v41 = vpop.f32.mrb[11].mxu0  ;;  %v1757_v44 = vsel %vm1738_vm2, %v7091_v35, -inf }
 0x344   :  { %v1494_v37 = vpop.f32.mrb[12].mxu1  ;;  %1758 = vmax.xlane.f32.xlu1 %v1757_v44 }
 0x345   :  { %v1732_v39 = vmul.f32 0.17677669, %v1494_v37  ;;  %v5853_v40 = vpop.f32.mrb[13].mxu1 }
 0x346   :  { %v1497_v45 = vpop.f32.mrb[14].mxu1 }
 0x347   :  { %v5854_v2 = vpop.f32.mrb[15].mxu1  ;;  %v1745_v3 = vsel %vm1738_vm2, %v1732_v39, -inf }
 0x348   :  { %1746 = vmax.xlane.f32.xlu0 %v1745_v3 }
 0x34c   :  { %v1540_v4 = vpop.f32.mrb[16].mxu1 }
 0x34d   :  { %v1733_v13 = vmul.f32 0.17677669, %v1540_v4  ;;  %v5859_v46 = vpop.f32.mrb[17].mxu1 }
 0x34e   :  { %v1543_v47 = vpop.f32.mrb[18].mxu1 }
 0x34f   :  { %v5860_v48 = vpop.f32.mrb[19].mxu1  ;;  %v1748_v49 = vsel %vm1738_vm2, %v1733_v13, -inf }
 0x350   :  { %1749 = vmax.xlane.f32.xlu0 %v1748_v49 }
 0x354   :  { %v1632_v50 = vpop.f32.mrb[20].mxu1 }
 0x355   :  { %v7097_v51 = vmul.f32 0.17677669, %v1632_v50  ;;  %v5871_v53 = vpop.f32.mrb[21].mxu1  ;;  %1075 = vrot.lane.b32.xlu1 %v7082_v12, %s6590_s5 }
 0x356   :  { %v1635_v56 = vpop.f32.mrb[22].mxu1 }
 0x357   :  { %v5872_v57 = vpop.f32.mrb[23].mxu1  ;;  %v1754_v58 = vsel %vm1738_vm2, %v7097_v51, -inf }
 0x358   :  { %1755 = vmax.xlane.f32.xlu0 %v1754_v58 }
 0x35c   :  { %v1724_v60 = vpop.f32.mrb[24].mxu1 }
 0x35d   :  { %v7103_v61 = vmul.f32 0.17677669, %v1724_v60  ;;  %v5883_v62 = vpop.f32.mrb[25].mxu1 }
 0x35e   :  { %v1727_v63 = vpop.f32.mrb[26].mxu1 }
 0x35f   :  { %v5884_v5 = vpop.f32.mrb[27].mxu1  ;;  %v1760_v6 = vsel %vm1738_vm2, %v7103_v61, -inf }
 0x360   :  { %1761 = vmax.xlane.f32.xlu0 %v1760_v6 }
 0x376   :  { %1069 = vrot.lane.b32.xlu0 %v7082_v12, %s7834_s29 }
 0x3c5   :  { %v1741_v7 = vpop.xlane.xlu0 %1740 }
 0x3c6   :  { %v1763_v8 = vsub.f32 %v1730_v19, %v1741_v7 }
 0x3c8   :  { %v1771_v10 = vmul.f32 1.442695, %v1763_v8 }
 0x3c9   :  { %v1753_v11 = vpop.xlane.xlu1 %1752 }
 0x3ca   :  { %6262 = vpow2.f32 %v1771_v10  ;;  %v1767_v14 = vsub.f32 %v1734_v54, %v1753_v11 }
 0x3cc   :  { %v1779_v15 = vmul.f32 1.442695, %v1767_v14 }
 0x3cd   :  { %v1744_v17 = vpop.xlane.xlu1 %1743 }
 0x3ce   :  { %6264 = vpow2.f32 %v1779_v15  ;;  %v1764_v18 = vsub.f32 %v1731_v25, %v1744_v17 }
 0x3d0   :  { %v1773_v20 = vmul.f32 1.442695, %v1764_v18 }
 0x3d1   :  { %v1759_v29 = vpop.xlane.xlu1 %1758 }
 0x3d2   :  { %6266 = vpow2.f32 %v1773_v20 }
 0x3d4   :  { %v7109_v22 = vpop.eup %6262 }
 0x3d5   :  { %v1747_v24 = vpop.xlane.xlu0 %1746  ;;  %v1787_v28 = vsel %vm1738_vm2, %v7109_v22, 0.0  ;;  %v1076_v36 = vpop.permute.xlu1 %1075 }
 0x3d6   :  { %v1765_v31 = vsub.f32 %v1732_v39, %v1747_v24  ;;  %1788 = vadd.xlane.f32.xlu1 %v1787_v28  ;;  %v1097_v39 = vcombine.low %v1064_v9, %v1076_v36  ;;  %v1098_v40 = vcombine.high %v1064_v9, %v1076_v36 }
 0x3d8   :  { %v1775_v19 = vmul.f32 1.442695, %v1765_v31  ;;  %v7113_v55 = vpop.eup %6264  ;;  %v1105_v2 = vrot.slane %v1097_v39, %v6927_v52  ;;  %v1112_v3 = vrot.slane %v1098_v40, %v6927_v52 }
 0x3d9   :  { %v1799_v54 = vsel %vm1738_vm2, %v7113_v55, 0.0 }
 0x3da   :  { %6268 = vpow2.f32 %v1775_v19  ;;  %1800 = vadd.xlane.f32.xlu0 %v1799_v54 }
 0x3dc   :  { %v7117_v1 = vpop.eup %6266 }
 0x3dd   :  { %v1750_v42 = vpop.xlane.xlu0 %1749  ;;  %v1790_v43 = vsel %vm1738_vm2, %v7117_v1, 0.0 }
 0x3de   :  { %v1766_v25 = vsub.f32 %v1733_v13, %v1750_v42  ;;  %1791 = vadd.xlane.f32.xlu0 %v1790_v43 }
 0x3e0   :  { %v1777_v23 = vmul.f32 1.442695, %v1766_v25 }
 0x3e2   :  { %6270 = vpow2.f32 %v1777_v23 }
 0x3e4   :  { %v7121_v26 = vpop.eup %6268 }
 0x3e5   :  { %v1793_v27 = vsel %vm1738_vm2, %v7121_v26, 0.0  ;;  %v1756_v32 = vpop.xlane.xlu0 %1755 }
 0x3e6   :  { %1794 = vadd.xlane.f32.xlu1 %v1793_v27  ;;  %v1768_v42 = vsub.f32 %v7097_v51, %v1756_v32  ;;  %v1769_v27 = vsub.f32 %v7091_v35, %v1759_v29 }
 0x3e8   :  { %v1781_v23 = vmul.f32 1.442695, %v1768_v42  ;;  %v1783_v36 = vmul.f32 1.442695, %v1769_v27 }
 0x3ea   :  { %6272 = vpow2.f32 %v1781_v23 }
 0x3eb   :  { %6274 = vpow2.f32 %v1783_v36 }
 0x3ec   :  { %v7125_v34 = vpop.eup %6270 }
 0x3ed   :  { %v7127_v37 = vpop.xlane.xlu0 %1761  ;;  %v1796_v38 = vsel %vm1738_vm2, %v7125_v34, 0.0 }
 0x3ee   :  { %1797 = vadd.xlane.f32.xlu0 %v1796_v38  ;;  %v1770_v35 = vsub.f32 %v7103_v61, %v7127_v37 }
 0x3f0   :  { %v1785_v29 = vmul.f32 1.442695, %v1770_v35 }
 0x3f1   :  { %v1070_v41 = vpop.permute.xlu0 %1069 }
 0x3f2   :  { %v1081_v44 = vcombine.low %v7082_v12, %v1070_v41  ;;  %v1082_v45 = vcombine.high %v7082_v12, %v1070_v41  ;;  %6276 = vpow2.f32 %v1785_v29 }
 0x3f4   :  { %v1089_v4 = vrot.slane %v1081_v44, %v6927_v52  ;;  %v1096_v13 = vrot.slane %v1082_v45, %v6927_v52  ;;  %v7159_v38 = vpop.eup %6272 }
 0x3f5   :  { %v1802_v51 = vsel %vm1738_vm2, %v7159_v38, 0.0  ;;  %v7163_v32 = vpop.eup %6274 }
 0x3f6   :  { %v1113_v46 = vcombine.low %v1089_v4, %v1105_v2  ;;  %v1114_v47 = vcombine.high %v1089_v4, %v1105_v2  ;;  %v1129_v48 = vcombine.low %v1096_v13, %v1112_v3  ;;  %v1130_v49 = vcombine.high %v1096_v13, %v1112_v3 }
 0x3f7   :  { %1071 = vrot.lane.b32.xlu1 %v7086_v16, %s7834_s29  ;;  %v1805_v39 = vsel %vm1738_vm2, %v7163_v32, 0.0 }
 0x3f8   :  { %v1121_v50 = vrot.slane %v1113_v46, %v6930_v59  ;;  %v1128_v53 = vrot.slane %v1114_v47, %v6930_v59  ;;  %v1137_v12 = vrot.slane %v1129_v48, %v6930_v59  ;;  %v1144_v56 = vrot.slane %v1130_v49, %v6930_v59 }
 0x3fa   :  { %v1217_v57 = vcombine.low %v1121_v50, %v1128_v53  ;;  %v5557_v58 = vcombine.high %v1121_v50, %v1128_v53  ;;  %v1233_v60 = vcombine.low %v1137_v12, %v1144_v56  ;;  %v5558_v62 = vcombine.high %v1137_v12, %v1144_v56 }
 0x3fc   :  { %v1224_v63 = vrot.slane %v1217_v57, %v6927_v52  ;;  %v1232_v5 = vrot.slane %v5557_v58, %v6927_v52  ;;  %v1240_v6 = vrot.slane %v1233_v60, %v6927_v52  ;;  %v1248_v7 = vrot.slane %v5558_v62, %v6927_v52  ;;  %v7171_v40 = vpop.eup %6276 }
 0x3fd   :  { %v1808_v41 = vsel %vm1738_vm2, %v7171_v40, 0.0 }
 0x3fe   :  { %v1249_v8 = vcombine.low %v1224_v63, %v1232_v5  ;;  %v1265_v9 = vcombine.low %v1240_v6, %v1248_v7  ;;  %v1250_v10 = vcombine.high %v1224_v63, %v1232_v5  ;;  %v1266_v11 = vcombine.high %v1240_v6, %v1248_v7 }
 0x400   :  { %v1257_v14 = vrot.slane %v1249_v8, %v6930_v59  ;;  %v1273_v15 = vrot.slane %v1265_v9, %v6930_v59  ;;  %v1264_v17 = vrot.slane %v1250_v10, %v6930_v59  ;;  %v1280_v18 = vrot.slane %v1266_v11, %v6930_v59 }
 0x402   :  { %v1281_v20 = vcombine.low %v1257_v14, %v1273_v15  ;;  %v1282_v24 = vcombine.high %v1257_v14, %v1273_v15  ;;  %v1283_v28 = vcombine.low %v1264_v17, %v1280_v18  ;;  %v1284_v31 = vcombine.high %v1264_v17, %v1280_v18 }
 0x404   :  { %1065 = vrot.lane.b32.xlu0 %v7086_v16, %s6591_s22  ;;  %v1353_v19 = vpack.c.bf16 %v1281_v20, %v1281_v20  ;;  %v1354_v54 = vpack.c.bf16 %v1282_v24, %v1282_v24  ;;  %v1355_v13 = vpack.c.bf16 %v1283_v28, %v1283_v28  ;;  %v1356_v49 = vpack.c.bf16 %v1284_v31, %v1284_v31 }
 0x406   :  { %v1840_v25 = vsel %vm1838_vm3, %v1353_v19, 0  ;;  %v1886_v43 = vsel %vm1838_vm3, %v1354_v54, 0  ;;  %v1932_v61 = vsel %vm1838_vm3, %v1355_v13, 0  ;;  %v1978_v53 = vsel %vm1838_vm3, %v1356_v49, 0 }
 0x407   :  { %5886 = vmatpush3.bf16.msra.mxu0 %v1840_v25  ;;  %5892 = vmatpush3.bf16.msra.mxu1 %v1886_v43 }
 0x408   :  { %5897 = vmatprep.subr.bf16.mxu0 %v6588_v21  ;;  %5903 = vmatprep.subr.bf16.mxu1 %v6588_v21 }
 0x41b   :  { %1803 = vadd.xlane.f32.xlu1 %v1802_v51 }
 0x423   :  { %1806 = vadd.xlane.f32.xlu0 %v1805_v39 }
 0x42c   :  { %1077 = vrot.lane.b32.xlu1 %v7086_v16, %s6590_s5 }
 0x450   :  { %1809 = vadd.xlane.f32.xlu1 %v1808_v41 }
 0x463   :  { %v1789_v44 = vpop.xlane.xlu1 %1788 }
 0x464   :  { %6278 = vrcp.f32 %v1789_v44 }
 0x467   :  { %v1801_v45 = vpop.xlane.xlu0 %1800 }
 0x46b   :  { %v1792_v2 = vpop.xlane.xlu0 %1791 }
 0x46c   :  { %6280 = vrcp.f32 %v1792_v2 }
 0x46e   :  { %v6279_v3 = vpop.eup %6278 }
 0x46f   :  { %v1819_v4 = vmul.f32 %v6279_v3, %v7109_v22 }
 0x471   :  { %v1827_v46 = vpack.c.bf16 %v1819_v4, %v1819_v4 }
 0x473   :  { %5888 = vmatmul.mubr.msk.bf16.vlgmr.msra.gmra.mrb[12].mxu0 %vm1738_vm2, %v1827_v46  ;;  %v1795_v37 = vpop.xlane.xlu1 %1794 }
 0x474   :  { %5898 = vmatpush3.bf16.msra.mxu0 %v1932_v61  ;;  %6282 = vrcp.f32 %v1795_v37  ;;  %5899 = vmatprep.mubr.msk.bf16.mxu0 %vm6589_vm0, %v6588_v21 }
 0x475   :  { %5909 = vmatprep.subr.bf16.mxu0 %v6588_v21 }
 0x476   :  { %v6281_v47 = vpop.eup %6280 }
 0x477   :  { %v1820_v48 = vmul.f32 %v6281_v47, %v7117_v1  ;;  %v1072_v62 = vpop.permute.xlu1 %1071 }
 0x478   :  { %v1150_v5 = vcombine.high %v7086_v16, %v1072_v62 }
 0x479   :  { %v1828_v22 = vpack.c.bf16 %v1820_v48, %v1820_v48 }
 0x47b   :  { %v1798_v50 = vpop.xlane.xlu0 %1797  ;;  %5894 = vmatmul.mubr.msk.bf16.vlgmr.msra.gmra.mrb[28].mxu1 %vm1738_vm2, %v1828_v22 }
 0x47c   :  { %6284 = vrcp.f32 %v1798_v50  ;;  %5904 = vmatpush3.bf16.msra.mxu1 %v1978_v53  ;;  %5905 = vmatprep.mubr.msk.bf16.mxu1 %vm6589_vm0, %v6588_v21 }
 0x47d   :  { %5915 = vmatprep.subr.bf16.mxu1 %v6588_v21  ;;  %6286 = vrcp.f32 %v1801_v45 }
 0x47e   :  { %v6283_v12 = vpop.eup %6282 }
 0x47f   :  { %v1821_v56 = vmul.f32 %v6283_v12, %v7121_v26  ;;  %v1149_v26 = vcombine.low %v7086_v16, %v1072_v62  ;;  %v1066_v6 = vpop.permute.xlu0 %1065 }
 0x481   :  { %v1829_v57 = vpack.c.bf16 %v1821_v56, %v1821_v56  ;;  %v1157_v10 = vrot.slane %v1149_v26, %v6927_v52 }
 0x483   :  { %5900 = vmatmul.mubr.msk.bf16.vlgmr.msra.gmra.mrb[16].mxu0 %vm1738_vm2, %v1829_v57 }
 0x484   :  { %5911 = vmatprep.mubr.msk.bf16.mxu0 %vm6589_vm0, %v6588_v21 }
 0x486   :  { %v6285_v1 = vpop.eup %6284 }
 0x487   :  { %v1822_v58 = vmul.f32 %v6285_v1, %v7125_v34  ;;  %v1164_v34 = vrot.slane %v1150_v5, %v6927_v52  ;;  %v6287_v44 = vpop.eup %6286 }
 0x488   :  { %v1823_v48 = vmul.f32 %v6287_v44, %v7113_v55 }
 0x489   :  { %v1830_v60 = vpack.c.bf16 %v1822_v58, %v1822_v58 }
 0x48a   :  { %v1831_v1 = vpack.c.bf16 %v1823_v48, %v1823_v48 }
 0x48b   :  { %5906 = vmatmul.mubr.msk.bf16.vlgmr.msra.gmra.mrb[32].mxu1 %vm1738_vm2, %v1830_v60 }
 0x48c   :  { %5917 = vmatprep.mubr.msk.bf16.mxu1 %vm6589_vm0, %v6588_v21 }
 0x4a8   :  { %v1804_v63 = vpop.xlane.xlu1 %1803 }
 0x4a9   :  { %6288 = vrcp.f32 %v1804_v63 }
 0x4ac   :  { %v1078_v7 = vpop.permute.xlu1 %1077 }
 0x4ad   :  { %v1165_v8 = vcombine.low %v1066_v6, %v1078_v7  ;;  %v1166_v9 = vcombine.high %v1066_v6, %v1078_v7 }
 0x4af   :  { %v1173_v11 = vrot.slane %v1165_v8, %v6927_v52  ;;  %v1180_v14 = vrot.slane %v1166_v9, %v6927_v52 }
 0x4b0   :  { %v1807_v51 = vpop.xlane.xlu0 %1806 }
 0x4b1   :  { %v1181_v15 = vcombine.low %v1157_v10, %v1173_v11  ;;  %v1182_v17 = vcombine.high %v1157_v10, %v1173_v11  ;;  %v1197_v18 = vcombine.low %v1164_v34, %v1180_v14  ;;  %v1198_v20 = vcombine.high %v1164_v34, %v1180_v14 }
 0x4b2   :  { %6290 = vrcp.f32 %v1807_v51 }
 0x4b3   :  { %v1189_v16 = vrot.slane %v1181_v15, %v6930_v59  ;;  %v1196_v24 = vrot.slane %v1182_v17, %v6930_v59  ;;  %v1205_v28 = vrot.slane %v1197_v18, %v6930_v59  ;;  %v1212_v31 = vrot.slane %v1198_v20, %v6930_v59  ;;  %v6289_v13 = vpop.eup %6288 }
 0x4b4   :  { %v1824_v49 = vmul.f32 %v6289_v13, %v7159_v38 }
 0x4b5   :  { %v1285_v19 = vcombine.low %v1189_v16, %v1196_v24  ;;  %v5559_v54 = vcombine.high %v1189_v16, %v1196_v24  ;;  %v1301_v42 = vcombine.low %v1205_v28, %v1212_v31  ;;  %v5560_v25 = vcombine.high %v1205_v28, %v1212_v31  ;;  %v6174_v28 = vld [vmem:[#allocation8] sm:$0xff]   ;;  %v6175_v31 = vld [vmem:[#allocation8 + $0x8] sm:$0xff]  }
 0x4b6   :  { %v1832_v58 = vpack.c.bf16 %v1824_v49, %v1824_v49  ;;  %v6178_v49 = vld [vmem:[#allocation8 + $0x20] sm:$0xff]  }
 0x4b7   :  { %v1292_v43 = vrot.slane %v1285_v19, %v6927_v52  ;;  %v1300_v23 = vrot.slane %v5559_v54, %v6927_v52  ;;  %v1308_v27 = vrot.slane %v1301_v42, %v6927_v52  ;;  %v1316_v36 = vrot.slane %v5560_v25, %v6927_v52 }
 0x4b9   :  { %v1317_v39 = vcombine.low %v1292_v43, %v1300_v23  ;;  %v1333_v35 = vcombine.low %v1308_v27, %v1316_v36  ;;  %v1318_v29 = vcombine.high %v1292_v43, %v1300_v23  ;;  %v1334_v41 = vcombine.high %v1308_v27, %v1316_v36  ;;  %v6176_v43 = vld [vmem:[#allocation8 + $0x10] sm:$0xff]  }
 0x4bb   :  { %v1325_v45 = vrot.slane %v1317_v39, %v6930_v59  ;;  %v1341_v2 = vrot.slane %v1333_v35, %v6930_v59  ;;  %v1332_v3 = vrot.slane %v1318_v29, %v6930_v59  ;;  %v1348_v4 = vrot.slane %v1334_v41, %v6930_v59 }
 0x4bc   :  { %v6291_v60 = vpop.eup %6290 }
 0x4bd   :  { %v1349_v46 = vcombine.low %v1325_v45, %v1341_v2  ;;  %v1350_v61 = vcombine.high %v1325_v45, %v1341_v2  ;;  %v1351_v37 = vcombine.low %v1332_v3, %v1348_v4  ;;  %v1352_v47 = vcombine.high %v1332_v3, %v1348_v4  ;;  %v6177_v2 = vld [vmem:[#allocation8 + $0x18] sm:$0xff]  }
 0x4be   :  { %v1825_v62 = vmul.f32 %v6291_v60, %v7163_v32  ;;  %v6179_v60 = vld [vmem:[#allocation8 + $0x28] sm:$0xff]  }
 0x4bf   :  { %v1357_v50 = vpack.c.bf16 %v1349_v46, %v1349_v46  ;;  %v1358_v22 = vpack.c.bf16 %v1350_v61, %v1350_v61  ;;  %v1359_v56 = vpack.c.bf16 %v1351_v37, %v1351_v37  ;;  %v1360_v57 = vpack.c.bf16 %v1352_v47, %v1352_v47 }
 0x4c0   :  { %v1833_v63 = vpack.c.bf16 %v1825_v62, %v1825_v62 }
 0x4c1   :  { %v2024_v53 = vsel %vm1838_vm3, %v1357_v50, 0  ;;  %v2070_v12 = vsel %vm1838_vm3, %v1358_v22, 0  ;;  %v2116_v55 = vsel %vm1838_vm3, %v1359_v56, 0  ;;  %v2162_v38 = vsel %vm1838_vm3, %v1360_v57, 0 }
 0x4c2   :  { %5910 = vmatpush3.bf16.msra.mxu0 %v2024_v53  ;;  %5916 = vmatpush3.bf16.msra.mxu1 %v2070_v12 }
 0x4c3   :  { %5921 = vmatprep.subr.bf16.mxu0 %v6588_v21  ;;  %5927 = vmatprep.subr.bf16.mxu1 %v6588_v21 }
 0x4c5   :  { %5912 = vmatmul.mubr.msk.bf16.vlgmr.msra.gmra.mrb[20].mxu0 %vm1738_vm2, %v1831_v1  ;;  %5918 = vmatmul.mubr.msk.bf16.vlgmr.msra.gmra.mrb[36].mxu1 %vm1738_vm2, %v1832_v58 }
 0x4c6   :  { %5922 = vmatpush3.bf16.msra.mxu0 %v2116_v55  ;;  %5928 = vmatpush3.bf16.msra.mxu1 %v2162_v38 }
 0x4c7   :  { %5923 = vmatprep.mubr.msk.bf16.mxu0 %vm6589_vm0, %v6588_v21  ;;  %5929 = vmatprep.mubr.msk.bf16.mxu1 %vm6589_vm0, %v6588_v21 }
 0x4c8   :  { %5933 = vmatprep.subr.bf16.mxu0 %v6588_v21  ;;  %5953 = vmatprep.subr.bf16.mxu1 %v6588_v21 }
 0x4cd   :  { %5924 = vmatmul.mubr.msk.bf16.vlgmr.msra.gmra.mrb[24].mxu0 %vm1738_vm2, %v1833_v63 }
 0x4ce   :  { %5949 = vmatprep.mubr.msk.bf16.mxu0 %vm6589_vm0, %v6588_v21  ;;  %5934 = vmatpush3.bf16.msra.mxu0 %v6174_v28 }
 0x4cf   :  { %5935 = vmatprep.subr.bf16.mxu0 %v6588_v21 }
 0x4d2   :  { %5936 = vmatpush3.bf16.msra.mxu0 %v6175_v31 }
 0x4d3   :  { %5937 = vmatprep.subr.bf16.mxu0 %v6588_v21 }
 0x4d6   :  { %5938 = vmatpush3.bf16.msra.mxu0 %v6176_v43 }
 0x4d7   :  { %5939 = vmatprep.subr.bf16.mxu0 %v6588_v21 }
 0x4da   :  { %5940 = vmatpush3.bf16.msra.mxu0 %v6177_v2 }
 0x4db   :  { %5941 = vmatprep.subr.bf16.mxu0 %v6588_v21 }
 0x4dd   :  { %v1810_v26 = vpop.xlane.xlu1 %1809 }
 0x4de   :  { %6292 = vrcp.f32 %v1810_v26  ;;  %5942 = vmatpush3.bf16.msra.mxu0 %v6178_v49 }
 0x4df   :  { %5943 = vmatprep.subr.bf16.mxu0 %v6588_v21 }
 0x4e2   :  { %5944 = vmatpush3.bf16.msra.mxu0 %v6179_v60  ;;  %v6181_v60 = vld [vmem:[#allocation8 + $0x38] sm:$0xff]  }
 0x4e3   :  { %5945 = vmatprep.subr.bf16.mxu0 %v6588_v21 }
 0x4e8   :  { %v6293_v5 = vpop.eup %6292 }
 0x4e9   :  { %v1826_v32 = vmul.f32 %v6293_v5, %v7171_v40 }
 0x4eb   :  { %v1834_v6 = vpack.c.bf16 %v1826_v32, %v1826_v32 }
 0x4ed   :  { %5930 = vmatmul.mubr.msk.bf16.vlgmr.msra.gmra.mrb[40].mxu1 %vm1738_vm2, %v1834_v6 }
 0x4ee   :  { %5969 = vmatprep.mubr.msk.bf16.mxu1 %vm6589_vm0, %v6588_v21 }
 0x546   :  { %v1876_v7 = vpop.f32.mrb[12].mxu0 }
 0x547   :  { %v5889_v8 = vpop.f32.mrb[13].mxu0 }
 0x548   :  { %v1879_v9 = vpop.f32.mrb[14].mxu0 }
 0x549   :  { %v5890_v10 = vpop.f32.mrb[15].mxu0 }
 0x54e   :  { %v1922_v34 = vpop.f32.mrb[28].mxu1 }
 0x54f   :  { %v5895_v11 = vpop.f32.mrb[29].mxu1 }
 0x550   :  { %v1925_v14 = vpop.f32.mrb[30].mxu1 }
 0x551   :  { %v5896_v15 = vpop.f32.mrb[31].mxu1 }
 0x556   :  { %v1968_v17 = vpop.f32.mrb[16].mxu0 }
 0x557   :  { %v2204_v18 = vcombine.low %v1876_v7, %v1968_v17  ;;  %v2205_v20 = vcombine.high %v1876_v7, %v1968_v17  ;;  %v5901_v16 = vpop.f32.mrb[17].mxu0 }
 0x558   :  { %v1971_v24 = vpop.f32.mrb[18].mxu0 }
 0x559   :  { %v5902_v40 = vpop.f32.mrb[19].mxu0  ;;  %v2212_v27 = vrot.slane %v2204_v18, %v6927_v52  ;;  %v2219_v36 = vrot.slane %v2205_v20, %v6927_v52 }
 0x55e   :  { %v2014_v19 = vpop.f32.mrb[32].mxu1 }
 0x55f   :  { %v2220_v54 = vcombine.low %v1922_v34, %v2014_v19  ;;  %v2221_v42 = vcombine.high %v1922_v34, %v2014_v19  ;;  %v5907_v25 = vpop.f32.mrb[33].mxu1 }
 0x560   :  { %v2017_v23 = vpop.f32.mrb[34].mxu1 }
 0x561   :  { %v2228_v51 = vrot.slane %v2220_v54, %v6927_v52  ;;  %v2235_v39 = vrot.slane %v2221_v42, %v6927_v52  ;;  %v5908_v35 = vpop.f32.mrb[35].mxu1 }
 0x563   :  { %v2236_v29 = vcombine.low %v2212_v27, %v2228_v51  ;;  %v2237_v41 = vcombine.high %v2212_v27, %v2228_v51  ;;  %v2252_v44 = vcombine.low %v2219_v36, %v2235_v39  ;;  %v2253_v45 = vcombine.high %v2219_v36, %v2235_v39 }
 0x565   :  { %v2244_v3 = vrot.slane %v2236_v29, %v6930_v59  ;;  %v2251_v4 = vrot.slane %v2237_v41, %v6930_v59  ;;  %v2260_v13 = vrot.slane %v2252_v44, %v6930_v59  ;;  %v2267_v46 = vrot.slane %v2253_v45, %v6930_v59 }
 0x567   :  { %v2340_v61 = vcombine.low %v2244_v3, %v2251_v4  ;;  %v5577_v37 = vcombine.high %v2244_v3, %v2251_v4  ;;  %v2356_v47 = vcombine.low %v2260_v13, %v2267_v46  ;;  %v5578_v48 = vcombine.high %v2260_v13, %v2267_v46 }
 0x569   :  { %v2347_v50 = vrot.slane %v2340_v61, %v6927_v52  ;;  %v2355_v22 = vrot.slane %v5577_v37, %v6927_v52  ;;  %v2363_v53 = vrot.slane %v2356_v47, %v6927_v52  ;;  %v2371_v12 = vrot.slane %v5578_v48, %v6927_v52  ;;  %v6180_v61 = vld [vmem:[#allocation8 + $0x30] sm:$0xff]  }
 0x56a   :  { %5946 = vmatpush3.bf16.msra.mxu0 %v6180_v61  ;;  %v6196_v61 = vld [vmem:[#allocation11 + $0x44] ss:$8 sps:$4 sm:$0xff]  }
 0x56b   :  { %v2373_v56 = vcombine.high %v2347_v50, %v2355_v22  ;;  %v2389_v57 = vcombine.high %v2363_v53, %v2371_v12  ;;  %v2372_v1 = vcombine.low %v2347_v50, %v2355_v22  ;;  %v2388_v58 = vcombine.low %v2363_v53, %v2371_v12  ;;  %5947 = vmatprep.subr.bf16.mxu0 %v6588_v21 }
 0x56d   :  { %v7255_v55 = vrot.slane %v2373_v56, %v6930_v59  ;;  %v7258_v38 = vrot.slane %v2389_v57, %v6930_v59  ;;  %v7261_v62 = vrot.slane %v2372_v1, %v6930_v59  ;;  %v7264_v63 = vrot.slane %v2388_v58, %v6930_v59 }
 0x56e   :  { %5948 = vmatpush3.bf16.msra.mxu0 %v6181_v60 }
 0x56f   :  { %v2406_v26 = vcombine.low %v7255_v55, %v7258_v38  ;;  %v2404_v5 = vcombine.low %v7261_v62, %v7264_v63  ;;  %v2405_v32 = vcombine.high %v7261_v62, %v7264_v63  ;;  %v2407_v6 = vcombine.high %v7255_v55, %v7258_v38  ;;  %v5581_v62 = vld [vmem:[%s7836_s6] ss:$0 sm:$0xff] }
 0x598   :  { %v2060_v7 = vpop.f32.mrb[20].mxu0  ;;  %v2106_v8 = vpop.f32.mrb[36].mxu1 }
 0x599   :  { %v5913_v9 = vpop.f32.mrb[21].mxu0  ;;  %v5919_v10 = vpop.f32.mrb[37].mxu1 }
 0x59a   :  { %v2063_v34 = vpop.f32.mrb[22].mxu0  ;;  %v2109_v11 = vpop.f32.mrb[38].mxu1 }
 0x59b   :  { %v5914_v14 = vpop.f32.mrb[23].mxu0  ;;  %v5920_v15 = vpop.f32.mrb[39].mxu1 }
 0x5a0   :  { %v2152_v17 = vpop.f32.mrb[24].mxu0 }
 0x5a1   :  { %v2272_v18 = vcombine.low %v2060_v7, %v2152_v17  ;;  %v2273_v20 = vcombine.high %v2060_v7, %v2152_v17  ;;  %v5925_v16 = vpop.f32.mrb[25].mxu0 }
 0x5a2   :  { %v2155_v24 = vpop.f32.mrb[26].mxu0 }
 0x5a3   :  { %v5926_v40 = vpop.f32.mrb[27].mxu0  ;;  %v2280_v25 = vrot.slane %v2272_v18, %v6927_v52  ;;  %v2287_v43 = vrot.slane %v2273_v20, %v6927_v52 }
 0x5c0   :  { %v2198_v28 = vpop.f32.mrb[40].mxu1 }
 0x5c1   :  { %v2288_v31 = vcombine.low %v2106_v8, %v2198_v28  ;;  %v2289_v19 = vcombine.high %v2106_v8, %v2198_v28  ;;  %v5931_v54 = vpop.f32.mrb[41].mxu1 }
 0x5c2   :  { %v2201_v42 = vpop.f32.mrb[42].mxu1 }
 0x5c3   :  { %v2296_v23 = vrot.slane %v2288_v31, %v6927_v52  ;;  %v2303_v27 = vrot.slane %v2289_v19, %v6927_v52  ;;  %v5932_v36 = vpop.f32.mrb[43].mxu1 }
 0x5c5   :  { %v2304_v51 = vcombine.low %v2280_v25, %v2296_v23  ;;  %v2305_v39 = vcombine.high %v2280_v25, %v2296_v23  ;;  %v2320_v35 = vcombine.low %v2287_v43, %v2303_v27  ;;  %v2321_v29 = vcombine.high %v2287_v43, %v2303_v27  ;;  %v6338_v27 = vld [vmem:[#allocation2] sm:$0xff] }
 0x5c7   :  { %v2312_v41 = vrot.slane %v2304_v51, %v6930_v59  ;;  %v2319_v44 = vrot.slane %v2305_v39, %v6930_v59  ;;  %v2328_v45 = vrot.slane %v2320_v35, %v6930_v59  ;;  %v2335_v2 = vrot.slane %v2321_v29, %v6930_v59  ;;  %v6339_v51 = vld [vmem:[#allocation2 + $0x8] sm:$0xff] }
 0x5c8   :  { %v6182_v35 = vld [vmem:[#allocation11] ss:$8 sps:$4 sm:$0xff]   ;;  %v6184_v29 = vld [vmem:[#allocation11 + $0x4] ss:$8 sps:$4 sm:$0xff]  }
 0x5c9   :  { %v2408_v3 = vcombine.low %v2312_v41, %v2319_v44  ;;  %v5579_v4 = vcombine.high %v2312_v41, %v2319_v44  ;;  %v2424_v13 = vcombine.low %v2328_v45, %v2335_v2  ;;  %v5580_v46 = vcombine.high %v2328_v45, %v2335_v2  ;;  %v6187_v41 = vld [vmem:[#allocation11 + $0x14] ss:$8 sps:$4 sm:$0xff]   ;;  %2886 = vmatprep.subr.bf16.mxu0 %v6184_v29  ;;  %v6185_v44 = vld [vmem:[#allocation11 + $0x10] ss:$8 sps:$4 sm:$0xff]   ;;  %v6190_v45 = vld [vmem:[#allocation11 + $0x24] ss:$8 sps:$4 sm:$0xff]  }
 0x5ca   :  { %v6206_v2 = vld [vmem:[#allocation10] sm:$0xff]  }
 0x5cb   :  { %v2415_v37 = vrot.slane %v2408_v3, %v6927_v52  ;;  %v2423_v47 = vrot.slane %v5579_v4, %v6927_v52  ;;  %v2431_v48 = vrot.slane %v2424_v13, %v6927_v52  ;;  %v2439_v49 = vrot.slane %v5580_v46, %v6927_v52  ;;  %v6188_v3 = vld [vmem:[#allocation11 + $0x20] ss:$8 sps:$4 sm:$0xff]   ;;  %v6193_v4 = vld [vmem:[#allocation11 + $0x34] ss:$8 sps:$4 sm:$0xff]   ;;  %5954 = vmatpush3.bf16.msra.mxu1 %v6206_v2  ;;  %v6191_v46 = vld [vmem:[#allocation11 + $0x30] ss:$8 sps:$4 sm:$0xff]  }
 0x5cc   :  { %v6207_v13 = vld [vmem:[#allocation10 + $0x8] sm:$0xff]   ;;  %5955 = vmatprep.subr.bf16.mxu1 %v6588_v21 }
 0x5cd   :  { %v2441_v50 = vcombine.high %v2415_v37, %v2423_v47  ;;  %v2457_v22 = vcombine.high %v2431_v48, %v2439_v49  ;;  %v2440_v53 = vcombine.low %v2415_v37, %v2423_v47  ;;  %v2456_v12 = vcombine.low %v2431_v48, %v2439_v49  ;;  %v6194_v37 = vld [vmem:[#allocation11 + $0x40] ss:$8 sps:$4 sm:$0xff]   ;;  %v6199_v47 = vld [vmem:[#allocation11 + $0x54] ss:$8 sps:$4 sm:$0xff]   ;;  %v6197_v48 = vld [vmem:[#allocation11 + $0x50] ss:$8 sps:$4 sm:$0xff]  }
 0x5ce   :  { %v6202_v49 = vld [vmem:[#allocation11 + $0x64] ss:$8 sps:$4 sm:$0xff]  }
 0x5cf   :  { %v2455_v56 = vrot.slane %v2441_v50, %v6930_v59  ;;  %v2471_v57 = vrot.slane %v2457_v22, %v6930_v59  ;;  %v2448_v1 = vrot.slane %v2440_v53, %v6930_v59  ;;  %v2464_v58 = vrot.slane %v2456_v12, %v6930_v59  ;;  %5956 = vmatpush3.bf16.msra.mxu1 %v6207_v13  ;;  %v6200_v50 = vld [vmem:[#allocation11 + $0x60] ss:$8 sps:$4 sm:$0xff]   ;;  %v6205_v22 = vld [vmem:[#allocation11 + $0x74] ss:$8 sps:$4 sm:$0xff]   ;;  %v6203_v53 = vld [vmem:[#allocation11 + $0x70] ss:$8 sps:$4 sm:$0xff]  }
 0x5d0   :  { %5957 = vmatprep.subr.bf16.mxu1 %v6588_v21  ;;  %v197_v12 = vld [vmem:[#allocation5] sm:$0xff] }
 0x5d1   :  { %v2474_v7 = vcombine.low %v2455_v56, %v2471_v57  ;;  %v2473_v8 = vcombine.high %v2448_v1, %v2464_v58  ;;  %v2472_v9 = vcombine.low %v2448_v1, %v2464_v58  ;;  %v2475_v10 = vcombine.high %v2455_v56, %v2471_v57  ;;  %v198_v56 = vld [vmem:[#allocation5 + $0x8] sm:$0xff] }
 0x5d2   :  { %v2777_v57 = vpack.c.bf16 %v198_v56, %v197_v12 }
 0x5d3   :  { %v6117_v34 = vpack.i.bf16 %v2474_v7, %v2406_v26  ;;  %v6112_v11 = vpack.i.bf16 %v2473_v8, %v2405_v32  ;;  %v6122_v14 = vpack.i.bf16 %v2475_v10, %v2407_v6 }
 0x5d5   :  { %6118 = vrot.lane.b32.xlu1 %v6117_v34, %s7834_s29  ;;  %6113 = vrot.lane.b32.xlu0 %v6112_v11, %s6590_s5  ;;  %v6208_v11 = vld [vmem:[#allocation10 + $0x10] sm:$0xff]  }
 0x5d6   :  { %5958 = vmatpush3.bf16.msra.mxu1 %v6208_v11 }
 0x5d7   :  { %5959 = vmatprep.subr.bf16.mxu1 %v6588_v21 }
 0x5d9   :  { %6123 = vrot.lane.b32.xlu0 %v6122_v14, %s6591_s22  ;;  %v6209_v14 = vld [vmem:[#allocation10 + $0x18] sm:$0xff]  }
 0x5da   :  { %5960 = vmatpush3.bf16.msra.mxu1 %v6209_v14 }
 0x5db   :  { %5961 = vmatprep.subr.bf16.mxu1 %v6588_v21 }
 0x647   :  { %v6119_v15 = vpop.permute.xlu1 %6118  ;;  %v6114_v17 = vpop.permute.xlu0 %6113 }
 0x648   :  { %v6116_v18 = vunpack.i.h.bf16 %v6114_v17  ;;  %v6115_v20 = vunpack.i.l.bf16 %v6114_v17  ;;  %v6121_v16 = vunpack.i.h.bf16 %v6119_v15  ;;  %v6120_v24 = vunpack.i.l.bf16 %v6119_v15  ;;  %v6210_v15 = vld [vmem:[#allocation10 + $0x20] sm:$0xff]   ;;  %v6211_v17 = vld [vmem:[#allocation10 + $0x28] sm:$0xff]  }
 0x649   :  { %5962 = vmatpush3.bf16.msra.mxu1 %v6210_v15 }
 0x64a   :  { %v2500_v55 = vsel %vm1361_vm1, %v2404_v5, %v6115_v20  ;;  %v2501_v38 = vsel %vm1361_vm1, %v2472_v9, %v6116_v18  ;;  %5963 = vmatprep.subr.bf16.mxu1 %v6588_v21  ;;  %v6212_v18 = vld [vmem:[#allocation10 + $0x30] sm:$0xff]   ;;  %v6213_v20 = vld [vmem:[#allocation10 + $0x38] sm:$0xff]  }
 0x64b   :  { %v6124_v26 = vpop.permute.xlu0 %6123  ;;  %v2503_v40 = vsel %vm2502_vm4, %v2500_v55, %v6120_v24  ;;  %v2504_v28 = vsel %vm2502_vm4, %v2501_v38, %v6121_v16  ;;  %v2794_v16 = vld [vmem:[%s7788_s9] sm:$0x3] }
 0x64c   :  { %v6126_v32 = vunpack.i.h.bf16 %v6124_v26  ;;  %v6125_v6 = vunpack.i.l.bf16 %v6124_v26  ;;  %v2799_v24 = vrot.slane %v2794_v16, %v6891_v33  ;;  %v2803_v55 = vrot.slane %v2794_v16, %v6882_v30 }
 0x64d   :  { %5964 = vmatpush3.bf16.msra.mxu1 %v6211_v17 }
 0x64e   :  { %v2506_v31 = vsel %vm2505_vm5, %v2503_v40, %v6125_v6  ;;  %v2507_v19 = vsel %vm2505_vm5, %v2504_v28, %v6126_v32  ;;  %5965 = vmatprep.subr.bf16.mxu1 %v6588_v21 }
 0x64f   :  { %v2508_v54 = vpack.c.bf16 %v2507_v19, %v2506_v31 }
 0x651   :  { %5950 = vmatmul.mubr.bf16.vlgmr.msra.gmra.mrb[28].mxu0 %v2508_v54  ;;  %5966 = vmatpush3.bf16.msra.mxu1 %v6212_v18 }
 0x652   :  { %2918 = vmatprep.mubr.bf16.mxu0 %v6587_v0  ;;  %2887 = vmatpush1.bf16.msra.mxu0 %v6182_v35  ;;  %v5591_v35 = vld [vmem:[%s7796_s17] ss:$0 sm:$0xff] }
 0x653   :  { %2888 = vmatprep.subr.bf16.mxu0 %v6187_v41  ;;  %5967 = vmatprep.subr.bf16.mxu1 %v6588_v21 }
 0x655   :  { %5968 = vmatpush3.bf16.msra.mxu1 %v6213_v20 }
 0x656   :  { %2889 = vmatpush1.bf16.msra.mxu0 %v6185_v44  ;;  %5973 = vmatprep.subr.bf16.mxu1 %v6588_v21 }
 0x657   :  { %2890 = vmatprep.subr.bf16.mxu0 %v6190_v45 }
 0x65a   :  { %2891 = vmatpush1.bf16.msra.mxu0 %v6188_v3 }
 0x65b   :  { %2892 = vmatprep.subr.bf16.mxu0 %v6193_v4 }
 0x65e   :  { %2893 = vmatpush1.bf16.msra.mxu0 %v6191_v46 }
 0x65f   :  { %2894 = vmatprep.subr.bf16.mxu0 %v6196_v61 }
 0x662   :  { %2895 = vmatpush1.bf16.msra.mxu0 %v6194_v37 }
 0x663   :  { %2896 = vmatprep.subr.bf16.mxu0 %v6199_v47 }
 0x666   :  { %2897 = vmatpush1.bf16.msra.mxu0 %v6197_v48 }
 0x667   :  { %2898 = vmatprep.subr.bf16.mxu0 %v6202_v49 }
 0x66a   :  { %2899 = vmatpush1.bf16.msra.mxu0 %v6200_v50 }
 0x66b   :  { %2900 = vmatprep.subr.bf16.mxu0 %v6205_v22 }
 0x66e   :  { %2901 = vmatpush1.bf16.msra.mxu0 %v6203_v53 }
 0x66f   :  { %5997 = vmatprep.subr.bf16.mxu0 %v6588_v21 }
 0x671   :  { %2919 = vmatmul.mubr.bf16.vlgmr.msra.gmra.mrb[32].mxu0 %v2777_v57 }
 0x672   :  { %5999 = vmatprep.mubr.msk.bf16.mxu0 %vm6589_vm0, %v6588_v21 }
 0x724   :  { %v2614_v63 = vpop.f32.mrb[28].mxu0 }
 0x725   :  { %v2615_v5 = vadd.f32 %v5581_v62, %v2614_v63  ;;  %v5951_v42 = vpop.f32.mrb[29].mxu0 }
 0x726   :  { %v2617_v25 = vpop.f32.mrb[30].mxu0 }
 0x727   :  { %v2618_v43 = vadd.f32 %v5581_v62, %v2617_v25  ;;  %v5952_v23 = vpop.f32.mrb[31].mxu0  ;;  %v2621_v36 = vadd.f32 %v6338_v27, %v2615_v5 }
 0x728   :  { %v5590_v23 = vld [vmem:[%s7795_s16] ss:$0 sm:$0xff] }
 0x729   :  { %2625 = vadd.xlane.f32.xlu1 %v2621_v36  ;;  %v2622_v39 = vadd.f32 %v6339_v51, %v2618_v43 }
 0x72b   :  { %2627 = vadd.xlane.f32.xlu0 %v2622_v39 }
 0x744   :  { %v2920_v38 = vpop.f32.mrb[32].mxu0 }
 0x745   :  { %v2921_v26 = vadd.f32 %v2920_v38, %v2799_v24  ;;  %v2922_v32 = vpop.f32.mrb[33].mxu0 }
 0x746   :  { %v7327_v6 = vadd.f32 %v2922_v32, %v2803_v55  ;;  %v2924_v40 = vpop.f32.mrb[34].mxu0 }
 0x747   :  { %v7331_v28 = vadd.f32 %v2924_v40, %v2799_v24  ;;  %v2926_v31 = vpop.f32.mrb[35].mxu0 }
 0x748   :  { %v7333_v19 = vadd.f32 %v2926_v31, %v2803_v55 }
 0x7b6   :  { %v2626_v1 = vpop.xlane.xlu1 %2625 }
 0x7b7   :  { %v2630_v58 = vmul.f32 0.0078125, %v2626_v1 }
 0x7b8   :  { %v2628_v60 = vpop.xlane.xlu0 %2627 }
 0x7b9   :  { %v2632_v7 = vsub.f32 %v2621_v36, %v2630_v58  ;;  %v2631_v8 = vmul.f32 0.0078125, %v2628_v60 }
 0x7bb   :  { %v2633_v9 = vsub.f32 %v2622_v39, %v2631_v8  ;;  %v2634_v10 = vmul.f32 %v2632_v7, %v2632_v7 }
 0x7bd   :  { %2636 = vadd.xlane.f32.xlu0 %v2634_v10  ;;  %v2635_v34 = vmul.f32 %v2633_v9, %v2633_v9 }
 0x7bf   :  { %2638 = vadd.xlane.f32.xlu1 %v2635_v34 }
 0x7d0   :  { %3237 = vrot.lane.b32.xlu1 %v2921_v26, %s7834_s29 }
 0x7d3   :  { %3231 = vrot.lane.b32.xlu0 %v2921_v26, %s6591_s22 }
 0x7d4   :  { %3243 = vrot.lane.b32.xlu1 %v2921_v26, %s6590_s5 }
 0x84a   :  { %v2637_v54 = vpop.xlane.xlu0 %2636 }
 0x84b   :  { %v2640_v62 = vmul.f32 0.0078125, %v2637_v54 }
 0x84c   :  { %v2639_v63 = vpop.xlane.xlu1 %2638 }
 0x84d   :  { %v2642_v5 = vadd.f32 1e-05, %v2640_v62  ;;  %v2641_v42 = vmul.f32 0.0078125, %v2639_v63 }
 0x84e   :  { %v3232_v3 = vpop.permute.xlu0 %3231 }
 0x84f   :  { %6294 = vrsqrt.f32 %v2642_v5  ;;  %v2643_v25 = vadd.f32 1e-05, %v2641_v42  ;;  %v5592_v5 = vld [vmem:[%s7786_s7] ss:$0 sm:$0xff] }
 0x850   :  { %v3238_v2 = vpop.permute.xlu1 %3237 }
 0x851   :  { %6296 = vrsqrt.f32 %v2643_v25  ;;  %v3249_v13 = vcombine.low %v2921_v26, %v3238_v2  ;;  %v3250_v46 = vcombine.high %v2921_v26, %v3238_v2 }
 0x853   :  { %v3257_v47 = vrot.slane %v3249_v13, %v6927_v52  ;;  %v3264_v48 = vrot.slane %v3250_v46, %v6927_v52 }
 0x854   :  { %v3244_v4 = vpop.permute.xlu1 %3243 }
 0x855   :  { %v3265_v61 = vcombine.low %v3232_v3, %v3244_v4  ;;  %v3266_v37 = vcombine.high %v3232_v3, %v3244_v4 }
 0x857   :  { %v3273_v49 = vrot.slane %v3265_v61, %v6927_v52  ;;  %v3280_v50 = vrot.slane %v3266_v37, %v6927_v52 }
 0x859   :  { %v6295_v43 = vpop.eup %6294  ;;  %v3281_v22 = vcombine.low %v3257_v47, %v3273_v49  ;;  %v3282_v53 = vcombine.high %v3257_v47, %v3273_v49  ;;  %v3297_v12 = vcombine.low %v3264_v48, %v3280_v50  ;;  %v3298_v56 = vcombine.high %v3264_v48, %v3280_v50 }
 0x85a   :  { %v2646_v27 = vmul.f32 %v6295_v43, %v2632_v7 }
 0x85b   :  { %v6297_v36 = vpop.eup %6296  ;;  %v3289_v57 = vrot.slane %v3281_v22, %v6930_v59  ;;  %v3296_v1 = vrot.slane %v3282_v53, %v6930_v59  ;;  %v3305_v58 = vrot.slane %v3297_v12, %v6930_v59  ;;  %v3312_v60 = vrot.slane %v3298_v56, %v6930_v59 }
 0x85c   :  { %v2647_v51 = vmul.f32 %v6297_v36, %v2633_v9  ;;  %v2654_v39 = vmul.f32 %v5590_v23, %v2646_v27 }
 0x85d   :  { %v3385_v7 = vcombine.low %v3289_v57, %v3296_v1  ;;  %v5621_v8 = vcombine.high %v3289_v57, %v3296_v1  ;;  %v3401_v9 = vcombine.low %v3305_v58, %v3312_v60  ;;  %v5622_v10 = vcombine.high %v3305_v58, %v3312_v60 }
 0x85e   :  { %v2655_v29 = vmul.f32 %v5590_v23, %v2647_v51  ;;  %v7342_v41 = vadd.f32 %v5591_v35, %v2654_v39 }
 0x85f   :  { %v3392_v34 = vrot.slane %v3385_v7, %v6927_v52  ;;  %v3400_v11 = vrot.slane %v5621_v8, %v6927_v52  ;;  %v3408_v14 = vrot.slane %v3401_v9, %v6927_v52  ;;  %v3416_v15 = vrot.slane %v5622_v10, %v6927_v52 }
 0x860   :  { %v7344_v44 = vadd.f32 %v5591_v35, %v2655_v29 }
 0x861   :  { %v3417_v17 = vcombine.low %v3392_v34, %v3400_v11  ;;  %v3433_v18 = vcombine.low %v3408_v14, %v3416_v15  ;;  %v3418_v20 = vcombine.high %v3392_v34, %v3400_v11  ;;  %v3434_v16 = vcombine.high %v3408_v14, %v3416_v15 }
 0x862   :  { %v2664_v45 = vpack.c.bf16 %v7344_v44, %v7342_v41 }
 0x863   :  { %v3425_v24 = vrot.slane %v3417_v17, %v6930_v59  ;;  %v3441_v55 = vrot.slane %v3433_v18, %v6930_v59  ;;  %v3432_v38 = vrot.slane %v3418_v20, %v6930_v59  ;;  %v3448_v26 = vrot.slane %v3434_v16, %v6930_v59 }
 0x864   :  { %5970 = vmatmul.mubr.bf16.vlgmr.msra.gmra.mrb[44].mxu1 %v2664_v45 }
 0x865   :  { %5975 = vmatprep.mubr.msk.bf16.mxu1 %vm6589_vm0, %v6588_v21  ;;  %v3449_v32 = vcombine.low %v3425_v24, %v3441_v55  ;;  %v7366_v40 = vcombine.high %v3425_v24, %v3441_v55  ;;  %v7368_v31 = vcombine.low %v3432_v38, %v3448_v26  ;;  %v7370_v62 = vcombine.high %v3432_v38, %v3448_v26 }
 0x867   :  { %v3521_v54 = vpack.c.bf16 %v3449_v32, %v3449_v32 }
 0x869   :  { %v3833_v63 = vsel %vm1361_vm1, %v3521_v54, 0 }
 0x86a   :  { %5974 = vmatpush3.bf16.xpose.msra.mxu1 %v3833_v63 }
 0x86b   :  { %5979 = vmatprep.subr.bf16.mxu1 %v6588_v21 }
 0x937   :  { %v2770_v42 = vpop.f32.mrb[44].mxu1 }
 0x938   :  { %v2771_v25 = vadd.f32 %v5592_v5, %v2770_v42  ;;  %v5971_v43 = vpop.f32.mrb[45].mxu1 }
 0x939   :  { %v2773_v23 = vpop.f32.mrb[46].mxu1 }
 0x93a   :  { %2937 = vrot.lane.b32.xlu1 %v2771_v25, %s7834_s29  ;;  %2931 = vrot.lane.b32.xlu0 %v2771_v25, %s6591_s22  ;;  %v5972_v27 = vpop.f32.mrb[47].mxu1  ;;  %v7386_v36 = vadd.f32 %v5592_v5, %v2773_v23 }
 0x93e   :  { %3233 = vrot.lane.b32.xlu1 %v7331_v28, %s6591_s22  ;;  %2943 = vrot.lane.b32.xlu0 %v2771_v25, %s6590_s5 }
 0x942   :  { %3245 = vrot.lane.b32.xlu1 %v7331_v28, %s6590_s5  ;;  %3239 = vrot.lane.b32.xlu0 %v7331_v28, %s7834_s29 }
 0x946   :  { %2939 = vrot.lane.b32.xlu1 %v7386_v36, %s7834_s29  ;;  %2933 = vrot.lane.b32.xlu0 %v7386_v36, %s6591_s22 }
 0x94a   :  { %2945 = vrot.lane.b32.xlu0 %v7386_v36, %s6590_s5 }
 0x9ac   :  { %v2938_v51 = vpop.permute.xlu1 %2937  ;;  %v2932_v39 = vpop.permute.xlu0 %2931 }
 0x9ad   :  { %v2949_v35 = vcombine.low %v2771_v25, %v2938_v51  ;;  %v2950_v29 = vcombine.high %v2771_v25, %v2938_v51 }
 0x9af   :  { %v2957_v13 = vrot.slane %v2949_v35, %v6927_v52  ;;  %v2964_v46 = vrot.slane %v2950_v29, %v6927_v52 }
 0x9b0   :  { %v3234_v45 = vpop.permute.xlu1 %3233  ;;  %v2944_v2 = vpop.permute.xlu0 %2943 }
 0x9b1   :  { %v2965_v3 = vcombine.low %v2932_v39, %v2944_v2  ;;  %v2966_v4 = vcombine.high %v2932_v39, %v2944_v2  ;;  %v3522_v39 = vpack.c.bf16 %v7366_v40, %v7366_v40 }
 0x9b3   :  { %v2973_v61 = vrot.slane %v2965_v3, %v6927_v52  ;;  %v2980_v37 = vrot.slane %v2966_v4, %v6927_v52 }
 0x9b4   :  { %v3246_v47 = vpop.permute.xlu1 %3245  ;;  %v3240_v48 = vpop.permute.xlu0 %3239 }
 0x9b5   :  { %v2981_v49 = vcombine.low %v2957_v13, %v2973_v61  ;;  %v2982_v50 = vcombine.high %v2957_v13, %v2973_v61  ;;  %v2997_v22 = vcombine.low %v2964_v46, %v2980_v37  ;;  %v2998_v53 = vcombine.high %v2964_v46, %v2980_v37 }
 0x9b6   :  { %v3333_v12 = vcombine.low %v3234_v45, %v3246_v47  ;;  %v3334_v56 = vcombine.high %v3234_v45, %v3246_v47  ;;  %v3317_v57 = vcombine.low %v7331_v28, %v3240_v48  ;;  %v3318_v1 = vcombine.high %v7331_v28, %v3240_v48 }
 0x9b7   :  { %v2989_v58 = vrot.slane %v2981_v49, %v6930_v59  ;;  %v2996_v60 = vrot.slane %v2982_v50, %v6930_v59  ;;  %v3005_v7 = vrot.slane %v2997_v22, %v6930_v59  ;;  %v3012_v8 = vrot.slane %v2998_v53, %v6930_v59 }
 0x9b8   :  { %v3341_v9 = vrot.slane %v3333_v12, %v6927_v52  ;;  %v3348_v10 = vrot.slane %v3334_v56, %v6927_v52  ;;  %v3325_v34 = vrot.slane %v3317_v57, %v6927_v52  ;;  %v3332_v11 = vrot.slane %v3318_v1, %v6927_v52  ;;  %v2934_v14 = vpop.permute.xlu0 %2933  ;;  %v2940_v43 = vpop.permute.xlu1 %2939 }
 0x9b9   :  { %v3085_v15 = vcombine.low %v2989_v58, %v2996_v60  ;;  %v5617_v17 = vcombine.high %v2989_v58, %v2996_v60  ;;  %v3101_v28 = vcombine.low %v3005_v7, %v3012_v8  ;;  %v5618_v18 = vcombine.high %v3005_v7, %v3012_v8 }
 0x9ba   :  { %v3349_v20 = vcombine.low %v3325_v34, %v3341_v9  ;;  %v3350_v16 = vcombine.high %v3325_v34, %v3341_v9  ;;  %v3365_v24 = vcombine.low %v3332_v11, %v3348_v10  ;;  %v3366_v55 = vcombine.high %v3332_v11, %v3348_v10 }
 0x9bb   :  { %v7409_v38 = vrot.slane %v3085_v15, %v6927_v52  ;;  %v7412_v26 = vrot.slane %v5617_v17, %v6927_v52  ;;  %v7415_v32 = vrot.slane %v3101_v28, %v6927_v52  ;;  %v7418_v54 = vrot.slane %v5618_v18, %v6927_v52 }
 0x9bc   :  { %v3357_v63 = vrot.slane %v3349_v20, %v6930_v59  ;;  %v3364_v5 = vrot.slane %v3350_v16, %v6930_v59  ;;  %v3373_v42 = vrot.slane %v3365_v24, %v6930_v59  ;;  %v3380_v25 = vrot.slane %v3366_v55, %v6930_v59  ;;  %v2946_v23 = vpop.permute.xlu0 %2945 }
 0x9bd   :  { %v3117_v27 = vcombine.low %v7409_v38, %v7412_v26  ;;  %v3133_v51 = vcombine.low %v7415_v32, %v7418_v54  ;;  %v3017_v3 = vcombine.low %v7386_v36, %v2940_v43  ;;  %v3018_v4 = vcombine.high %v7386_v36, %v2940_v43 }
 0x9be   :  { %v3453_v35 = vcombine.low %v3357_v63, %v3364_v5  ;;  %v5623_v29 = vcombine.high %v3357_v63, %v3364_v5  ;;  %v3469_v45 = vcombine.low %v3373_v42, %v3380_v25  ;;  %v5624_v2 = vcombine.high %v3373_v42, %v3380_v25 }
 0x9bf   :  { %v3033_v13 = vcombine.low %v2934_v14, %v2946_v23  ;;  %v3034_v46 = vcombine.high %v2934_v14, %v2946_v23  ;;  %v3025_v40 = vrot.slane %v3017_v3, %v6927_v52  ;;  %v3032_v49 = vrot.slane %v3018_v4, %v6927_v52 }
 0x9c0   :  { %v3460_v61 = vrot.slane %v3453_v35, %v6927_v52  ;;  %v3468_v37 = vrot.slane %v5623_v29, %v6927_v52  ;;  %v3476_v47 = vrot.slane %v3469_v45, %v6927_v52  ;;  %v3484_v48 = vrot.slane %v5624_v2, %v6927_v52 }
 0x9c1   :  { %v3041_v50 = vrot.slane %v3033_v13, %v6927_v52  ;;  %v3048_v22 = vrot.slane %v3034_v46, %v6927_v52  ;;  %v3125_v36 = vrot.slane %v3117_v27, %v6930_v59  ;;  %v3141_v53 = vrot.slane %v3133_v51, %v6930_v59 }
 0x9c2   :  { %v3485_v12 = vcombine.low %v3460_v61, %v3468_v37  ;;  %v3501_v56 = vcombine.low %v3476_v47, %v3484_v48  ;;  %v3879_v17 = vsel %vm1361_vm1, %v3522_v39, 0  ;;  %v3486_v18 = vcombine.high %v3460_v61, %v3468_v37 }
 0x9c3   :  { %v3049_v57 = vcombine.low %v3025_v40, %v3041_v50  ;;  %v3050_v1 = vcombine.high %v3025_v40, %v3041_v50  ;;  %v3065_v58 = vcombine.low %v3032_v49, %v3048_v22  ;;  %v3066_v60 = vcombine.high %v3032_v49, %v3048_v22 }
 0x9c4   :  { %v3149_v7 = vcombine.low %v3125_v36, %v3141_v53  ;;  %v7443_v8 = vrot.slane %v3485_v12, %v6930_v59  ;;  %v7446_v9 = vrot.slane %v3501_v56, %v6930_v59  ;;  %v3118_v63 = vcombine.high %v7409_v38, %v7412_v26 }
 0x9c5   :  { %v3057_v10 = vrot.slane %v3049_v57, %v6930_v59  ;;  %v3064_v34 = vrot.slane %v3050_v1, %v6930_v59  ;;  %v3073_v11 = vrot.slane %v3065_v58, %v6930_v59  ;;  %v3080_v14 = vrot.slane %v3066_v60, %v6930_v59 }
 0x9c6   :  { %v3221_v15 = vpack.c.bf16 %v3149_v7, %v3149_v7  ;;  %v3517_v28 = vcombine.low %v7443_v8, %v7446_v9  ;;  %v3500_v42 = vrot.slane %v3486_v18, %v6930_v59  ;;  %v3502_v25 = vcombine.high %v3476_v47, %v3484_v48 }
 0x9c7   :  { %v3153_v20 = vcombine.low %v3057_v10, %v3064_v34  ;;  %v5619_v16 = vcombine.high %v3057_v10, %v3064_v34  ;;  %v3169_v24 = vcombine.low %v3073_v11, %v3080_v14  ;;  %v5620_v55 = vcombine.high %v3073_v11, %v3080_v14 }
 0x9c8   :  { %5976 = vmatmul.mubr.msk.bf16.vlgmr.msra.gmra.mrb[48].mxu1 %vm1361_vm1, %v3221_v15  ;;  %v3525_v5 = vpack.c.bf16 %v3517_v28, %v3517_v28  ;;  %v3134_v39 = vcombine.high %v7415_v32, %v7418_v54  ;;  %v3150_v26 = vcombine.high %v3125_v36, %v3141_v53  ;;  %v3516_v35 = vrot.slane %v3502_v25, %v6930_v59 }
 0x9c9   :  { %v3160_v43 = vrot.slane %v3153_v20, %v6927_v52  ;;  %v3168_v23 = vrot.slane %v5619_v16, %v6927_v52  ;;  %v3176_v27 = vrot.slane %v3169_v24, %v6927_v52  ;;  %v3184_v51 = vrot.slane %v5620_v55, %v6927_v52  ;;  %5980 = vmatpush3.bf16.xpose.msra.mxu1 %v3879_v17 }
 0x9ca   :  { %v4017_v38 = vsel %vm1361_vm1, %v3525_v5, 0  ;;  %5981 = vmatprep.mubr.msk.bf16.mxu1 %vm6589_vm0, %v6588_v21  ;;  %5985 = vmatprep.subr.bf16.mxu1 %v6588_v21  ;;  %v3523_v2 = vpack.c.bf16 %v7368_v31, %v7368_v31  ;;  %v3519_v3 = vcombine.low %v3500_v42, %v3516_v35  ;;  %v3222_v46 = vpack.c.bf16 %v3150_v26, %v3150_v26 }
 0x9cb   :  { %v3185_v29 = vcombine.low %v3160_v43, %v3168_v23  ;;  %v3201_v45 = vcombine.low %v3176_v27, %v3184_v51  ;;  %5998 = vmatpush3.bf16.xpose.msra.mxu0 %v4017_v38  ;;  %v3186_v32 = vcombine.high %v3160_v43, %v3168_v23  ;;  %v3202_v54 = vcombine.high %v3176_v27, %v3184_v51 }
 0x9cc   :  { %6009 = vmatprep.subr.bf16.mxu0 %v6588_v21  ;;  %v3132_v61 = vrot.slane %v3118_v63, %v6930_v59  ;;  %v3148_v37 = vrot.slane %v3134_v39, %v6930_v59  ;;  %v3527_v48 = vpack.c.bf16 %v3519_v3, %v3519_v3  ;;  %v3925_v31 = vsel %vm1361_vm1, %v3523_v2, 0 }
 0x9cd   :  { %v3193_v4 = vrot.slane %v3185_v29, %v6930_v59  ;;  %v3209_v13 = vrot.slane %v3201_v45, %v6930_v59  ;;  %v3200_v49 = vrot.slane %v3186_v32, %v6930_v59  ;;  %v3216_v50 = vrot.slane %v3202_v54, %v6930_v59 }
 0x9ce   :  { %v3151_v22 = vcombine.low %v3132_v61, %v3148_v37  ;;  %v4109_v36 = vsel %vm1361_vm1, %v3527_v48, 0  ;;  %v3524_v53 = vpack.c.bf16 %v7370_v62, %v7370_v62  ;;  %v3518_v1 = vcombine.high %v7443_v8, %v7446_v9 }
 0x9cf   :  { %v3217_v47 = vcombine.low %v3193_v4, %v3209_v13  ;;  %v3219_v12 = vcombine.low %v3200_v49, %v3216_v50  ;;  %v3152_v62 = vcombine.high %v3132_v61, %v3148_v37  ;;  %v3520_v8 = vcombine.high %v3500_v42, %v3516_v35 }
 0x9d0   :  { %5982 = vmatmul.mubr.msk.bf16.vlgmr.msra.gmra.mrb[52].mxu1 %vm1361_vm1, %v3222_v46  ;;  %v3223_v56 = vpack.c.bf16 %v3151_v22, %v3151_v22  ;;  %v3971_v57 = vsel %vm1361_vm1, %v3524_v53, 0  ;;  %v3526_v60 = vpack.c.bf16 %v3518_v1, %v3518_v1  ;;  %v3218_v9 = vcombine.high %v3193_v4, %v3209_v13 }
 0x9d1   :  { %5986 = vmatpush3.bf16.xpose.msra.mxu1 %v3925_v31  ;;  %v3225_v40 = vpack.c.bf16 %v3217_v47, %v3217_v47  ;;  %5987 = vmatprep.mubr.msk.bf16.mxu1 %vm6589_vm0, %v6588_v21  ;;  %v3227_v58 = vpack.c.bf16 %v3219_v12, %v3219_v12  ;;  %v3224_v7 = vpack.c.bf16 %v3152_v62, %v3152_v62 }
 0x9d2   :  { %5991 = vmatprep.subr.bf16.mxu1 %v6588_v21  ;;  %v4063_v10 = vsel %vm1361_vm1, %v3526_v60, 0  ;;  %v3528_v34 = vpack.c.bf16 %v3520_v8, %v3520_v8  ;;  %v3226_v11 = vpack.c.bf16 %v3218_v9, %v3218_v9  ;;  %v3220_v15 = vcombine.high %v3200_v49, %v3216_v50 }
 0x9d3   :  { %6000 = vmatmul.mubr.msk.bf16.vlgmr.msra.gmra.mrb[36].mxu0 %vm1361_vm1, %v3225_v40 }
 0x9d4   :  { %6010 = vmatpush3.bf16.xpose.msra.mxu0 %v4109_v36  ;;  %6011 = vmatprep.mubr.msk.bf16.mxu0 %vm6589_vm0, %v6588_v21  ;;  %v4155_v14 = vsel %vm1361_vm1, %v3528_v34, 0  ;;  %v3228_v17 = vpack.c.bf16 %v3220_v15, %v3220_v15 }
 0x9d5   :  { %6021 = vmatprep.subr.bf16.mxu0 %v6588_v21 }
 0x9d8   :  { %5988 = vmatmul.mubr.msk.bf16.vlgmr.msra.gmra.mrb[56].mxu1 %vm1361_vm1, %v3223_v56 }
 0x9d9   :  { %5992 = vmatpush3.bf16.xpose.msra.mxu1 %v3971_v57  ;;  %5993 = vmatprep.mubr.msk.bf16.mxu1 %vm6589_vm0, %v6588_v21 }
 0x9da   :  { %6003 = vmatprep.subr.bf16.mxu1 %v6588_v21 }
 0x9db   :  { %6012 = vmatmul.mubr.msk.bf16.vlgmr.msra.gmra.mrb[40].mxu0 %vm1361_vm1, %v3227_v58 }
 0x9dc   :  { %6023 = vmatprep.mubr.msk.bf16.mxu0 %vm6589_vm0, %v6588_v21 }
 0x9e0   :  { %5994 = vmatmul.mubr.msk.bf16.vlgmr.msra.gmra.mrb[60].mxu1 %vm1361_vm1, %v3224_v7 }
 0x9e1   :  { %6004 = vmatpush3.bf16.xpose.msra.mxu1 %v4063_v10  ;;  %6005 = vmatprep.mubr.msk.bf16.mxu1 %vm6589_vm0, %v6588_v21 }
 0x9e2   :  { %6015 = vmatprep.subr.bf16.mxu1 %v6588_v21 }
 0x9e8   :  { %6006 = vmatmul.mubr.msk.bf16.vlgmr.msra.gmra.mrb[64].mxu1 %vm1361_vm1, %v3226_v11 }
 0x9e9   :  { %6016 = vmatpush3.bf16.xpose.msra.mxu1 %v4155_v14  ;;  %6017 = vmatprep.mubr.msk.bf16.mxu1 %vm6589_vm0, %v6588_v21 }
 0x9ea   :  { %6027 = vmatprep.subr.bf16.mxu1 %v6588_v21 }
 0x9f0   :  { %6018 = vmatmul.mubr.msk.bf16.vlgmr.msra.gmra.mrb[68].mxu1 %vm1361_vm1, %v3228_v17 }
 0x9f1   :  { %6029 = vmatprep.mubr.msk.bf16.mxu1 %vm6589_vm0, %v6588_v21 }
 0xa9b   :  { %v3869_v28 = vpop.f32.mrb[48].mxu1 }
 0xa9c   :  { %v4197_v18 = vmul.f32 0.17677669, %v3869_v28  ;;  %v5977_v20 = vpop.f32.mrb[49].mxu1 }
 0xa9d   :  { %v3872_v16 = vpop.f32.mrb[50].mxu1 }
 0xa9e   :  { %v5978_v24 = vpop.f32.mrb[51].mxu1  ;;  %v4205_v55 = vsel %vm1738_vm2, %v4197_v18, -inf }
 0xa9f   :  { %4206 = vmax.xlane.f32.xlu1 %v4205_v55 }
 0xaa3   :  { %v3915_v63 = vpop.f32.mrb[52].mxu1 }
 0xaa4   :  { %v5983_v5 = vpop.f32.mrb[53].mxu1  ;;  %v4198_v39 = vmul.f32 0.17677669, %v3915_v63 }
 0xaa5   :  { %v3918_v42 = vpop.f32.mrb[54].mxu1 }
 0xaa6   :  { %v5984_v25 = vpop.f32.mrb[55].mxu1  ;;  %v4053_v43 = vpop.f32.mrb[36].mxu0  ;;  %v4208_v2 = vsel %vm1738_vm2, %v4198_v39, -inf }
 0xaa7   :  { %v4201_v23 = vmul.f32 0.17677669, %v4053_v43  ;;  %v6001_v27 = vpop.f32.mrb[37].mxu0 }
 0xaa8   :  { %v4056_v51 = vpop.f32.mrb[38].mxu0 }
 0xaa9   :  { %v6002_v38 = vpop.f32.mrb[39].mxu0  ;;  %v4217_v26 = vsel %vm1738_vm2, %v4201_v23, -inf }
 0xaaa   :  { %4218 = vmax.xlane.f32.xlu0 %v4217_v26 }
 0xaab   :  { %v3961_v35 = vpop.f32.mrb[56].mxu1 }
 0xaac   :  { %v5989_v29 = vpop.f32.mrb[57].mxu1  ;;  %v4199_v46 = vmul.f32 0.17677669, %v3961_v35 }
 0xaad   :  { %v3964_v45 = vpop.f32.mrb[58].mxu1 }
 0xaae   :  { %v5990_v3 = vpop.f32.mrb[59].mxu1  ;;  %v4145_v32 = vpop.f32.mrb[40].mxu0  ;;  %4209 = vmax.xlane.f32.xlu0 %v4208_v2  ;;  %v4211_v40 = vsel %vm1738_vm2, %v4199_v46, -inf }
 0xaaf   :  { %v7517_v54 = vmul.f32 0.17677669, %v4145_v32  ;;  %v6013_v4 = vpop.f32.mrb[41].mxu0 }
 0xab0   :  { %3537 = vrot.lane.b32.xlu1 %v7327_v6, %s7834_s29  ;;  %v4148_v13 = vpop.f32.mrb[42].mxu0 }
 0xab1   :  { %v6014_v61 = vpop.f32.mrb[43].mxu0  ;;  %v4223_v37 = vsel %vm1738_vm2, %v7517_v54, -inf }
 0xab2   :  { %4224 = vmax.xlane.f32.xlu0 %v4223_v37 }
 0xab3   :  { %v4007_v47 = vpop.f32.mrb[60].mxu1 }
 0xab4   :  { %3543 = vrot.lane.b32.xlu1 %v7327_v6, %s6590_s5  ;;  %v5995_v48 = vpop.f32.mrb[61].mxu1  ;;  %v7528_v58 = vmul.f32 0.17677669, %v4007_v47 }
 0xab5   :  { %v4010_v31 = vpop.f32.mrb[62].mxu1 }
 0xab6   :  { %v5996_v49 = vpop.f32.mrb[63].mxu1  ;;  %4212 = vmax.xlane.f32.xlu0 %v4211_v40  ;;  %v4214_v60 = vsel %vm1738_vm2, %v7528_v58, -inf }
 0xabb   :  { %v4099_v50 = vpop.f32.mrb[64].mxu1 }
 0xabc   :  { %v6007_v22 = vpop.f32.mrb[65].mxu1  ;;  %v7530_v62 = vmul.f32 0.17677669, %v4099_v50 }
 0xabd   :  { %v4102_v36 = vpop.f32.mrb[66].mxu1 }
 0xabe   :  { %v6008_v53 = vpop.f32.mrb[67].mxu1  ;;  %v4220_v10 = vsel %vm1738_vm2, %v7530_v62, -inf }
 0xac3   :  { %v4191_v12 = vpop.f32.mrb[68].mxu1 }
 0xac4   :  { %v6019_v56 = vpop.f32.mrb[69].mxu1  ;;  %v7534_v7 = vmul.f32 0.17677669, %v4191_v12 }
 0xac5   :  { %v4194_v57 = vpop.f32.mrb[70].mxu1 }
 0xac6   :  { %v6020_v1 = vpop.f32.mrb[71].mxu1  ;;  %v4226_v8 = vsel %vm1738_vm2, %v7534_v7, -inf }
 0xacc   :  { %3531 = vrot.lane.b32.xlu0 %v7327_v6, %s6591_s22 }
 0xad8   :  { %4215 = vmax.xlane.f32.xlu1 %v4214_v60 }
 0xadc   :  { %4221 = vmax.xlane.f32.xlu1 %v4220_v10 }
 0xae0   :  { %4227 = vmax.xlane.f32.xlu1 %v4226_v8 }
 0xaf1   :  { %3533 = vrot.lane.b32.xlu1 %v7333_v19, %s6591_s22 }
 0xb2c   :  { %v4207_v9 = vpop.xlane.xlu1 %4206 }
 0xb2d   :  { %v4229_v34 = vsub.f32 %v4197_v18, %v4207_v9 }
 0xb2f   :  { %v4237_v11 = vmul.f32 1.442695, %v4229_v34 }
 0xb30   :  { %v3538_v5 = vpop.permute.xlu1 %3537 }
 0xb31   :  { %6298 = vpow2.f32 %v4237_v11  ;;  %v3549_v43 = vcombine.low %v7327_v6, %v3538_v5 }
 0xb33   :  { %v3557_v45 = vrot.slane %v3549_v43, %v6927_v52 }
 0xb34   :  { %v3544_v51 = vpop.permute.xlu1 %3543 }
 0xb37   :  { %v4219_v14 = vpop.xlane.xlu0 %4218 }
 0xb38   :  { %v4233_v15 = vsub.f32 %v4201_v23, %v4219_v14  ;;  %v3550_v23 = vcombine.high %v7327_v6, %v3538_v5 }
 0xb3a   :  { %v4245_v17 = vmul.f32 1.442695, %v4233_v15  ;;  %v3564_v2 = vrot.slane %v3550_v23, %v6927_v52 }
 0xb3b   :  { %v7542_v28 = vpop.eup %6298  ;;  %v4210_v20 = vpop.xlane.xlu0 %4209 }
 0xb3c   :  { %6300 = vpow2.f32 %v4245_v17  ;;  %v4230_v16 = vsub.f32 %v4198_v39, %v4210_v20  ;;  %v4253_v24 = vsel %vm1738_vm2, %v7542_v28, 0.0 }
 0xb3d   :  { %4254 = vadd.xlane.f32.xlu0 %v4253_v24 }
 0xb3e   :  { %v4239_v55 = vmul.f32 1.442695, %v4230_v16 }
 0xb3f   :  { %v7546_v63 = vpop.xlane.xlu0 %4224 }
 0xb40   :  { %6302 = vpow2.f32 %v4239_v55 }
 0xb43   :  { %v4213_v18 = vpop.xlane.xlu0 %4212 }
 0xb44   :  { %v4231_v42 = vsub.f32 %v4199_v46, %v4213_v18 }
 0xb46   :  { %v7548_v25 = vpop.eup %6300  ;;  %v4241_v27 = vmul.f32 1.442695, %v4231_v42 }
 0xb47   :  { %v3532_v39 = vpop.permute.xlu0 %3531  ;;  %v4265_v38 = vsel %vm1738_vm2, %v7548_v25, 0.0 }
 0xb48   :  { %6304 = vpow2.f32 %v4241_v27  ;;  %v3565_v26 = vcombine.low %v3532_v39, %v3544_v51  ;;  %v3566_v35 = vcombine.high %v3532_v39, %v3544_v51  ;;  %4266 = vadd.xlane.f32.xlu0 %v4265_v38 }
 0xb4a   :  { %v7554_v29 = vpop.eup %6302  ;;  %v3573_v3 = vrot.slane %v3565_v26, %v6927_v52  ;;  %v3580_v6 = vrot.slane %v3566_v35, %v6927_v52 }
 0xb4b   :  { %v4256_v32 = vsel %vm1738_vm2, %v7554_v29, 0.0 }
 0xb4c   :  { %v3581_v4 = vcombine.low %v3557_v45, %v3573_v3  ;;  %v3582_v13 = vcombine.high %v3557_v45, %v3573_v3  ;;  %v3597_v46 = vcombine.low %v3564_v2, %v3580_v6  ;;  %v3598_v61 = vcombine.high %v3564_v2, %v3580_v6  ;;  %4257 = vadd.xlane.f32.xlu1 %v4256_v32 }
 0xb4e   :  { %v3589_v37 = vrot.slane %v3581_v4, %v6930_v59  ;;  %v3596_v47 = vrot.slane %v3582_v13, %v6930_v59  ;;  %v3605_v48 = vrot.slane %v3597_v46, %v6930_v59  ;;  %v3612_v31 = vrot.slane %v3598_v61, %v6930_v59 }
 0xb50   :  { %v3685_v40 = vcombine.low %v3589_v37, %v3596_v47  ;;  %v5625_v49 = vcombine.high %v3589_v37, %v3596_v47  ;;  %v3701_v50 = vcombine.low %v3605_v48, %v3612_v31  ;;  %v5626_v22 = vcombine.high %v3605_v48, %v3612_v31 }
 0xb52   :  { %v7566_v36 = vpop.eup %6304  ;;  %v3692_v53 = vrot.slane %v3685_v40, %v6927_v52  ;;  %v3700_v12 = vrot.slane %v5625_v49, %v6927_v52  ;;  %v3708_v56 = vrot.slane %v3701_v50, %v6927_v52  ;;  %v3716_v57 = vrot.slane %v5626_v22, %v6927_v52 }
 0xb53   :  { %v4259_v1 = vsel %vm1738_vm2, %v7566_v36, 0.0 }
 0xb54   :  { %4260 = vadd.xlane.f32.xlu0 %v4259_v1  ;;  %v3717_v60 = vcombine.low %v3692_v53, %v3700_v12  ;;  %v3733_v10 = vcombine.low %v3708_v56, %v3716_v57  ;;  %v3718_v8 = vcombine.high %v3692_v53, %v3700_v12  ;;  %v3734_v9 = vcombine.high %v3708_v56, %v3716_v57 }
 0xb56   :  { %v3725_v34 = vrot.slane %v3717_v60, %v6930_v59  ;;  %v3741_v11 = vrot.slane %v3733_v10, %v6930_v59  ;;  %v3732_v14 = vrot.slane %v3718_v8, %v6930_v59  ;;  %v3748_v15 = vrot.slane %v3734_v9, %v6930_v59 }
 0xb58   :  { %v3749_v17 = vcombine.low %v3725_v34, %v3741_v11  ;;  %v3750_v20 = vcombine.high %v3725_v34, %v3741_v11  ;;  %v3751_v16 = vcombine.low %v3732_v14, %v3748_v15  ;;  %v3752_v24 = vcombine.high %v3732_v14, %v3748_v15 }
 0xb5a   :  { %v3821_v55 = vpack.c.bf16 %v3749_v17, %v3749_v17  ;;  %v3822_v5 = vpack.c.bf16 %v3750_v20, %v3750_v20  ;;  %v3823_v47 = vpack.c.bf16 %v3751_v16, %v3751_v16  ;;  %v3824_v53 = vpack.c.bf16 %v3752_v24, %v3752_v24 }
 0xb5c   :  { %v4305_v18 = vsel %vm1838_vm3, %v3821_v55, 0  ;;  %v4351_v42 = vsel %vm1838_vm3, %v3822_v5, 0  ;;  %v4397_v40 = vsel %vm1838_vm3, %v3823_v47, 0  ;;  %v4443_v56 = vsel %vm1838_vm3, %v3824_v53, 0 }
 0xb5d   :  { %6022 = vmatpush3.bf16.msra.mxu0 %v4305_v18  ;;  %6028 = vmatpush3.bf16.msra.mxu1 %v4351_v42 }
 0xb5e   :  { %6033 = vmatprep.subr.bf16.mxu0 %v6588_v21  ;;  %6039 = vmatprep.subr.bf16.mxu1 %v6588_v21 }
 0xb65   :  { %v4216_v43 = vpop.xlane.xlu1 %4215 }
 0xb66   :  { %v4232_v23 = vsub.f32 %v7528_v58, %v4216_v43  ;;  %v4235_v58 = vsub.f32 %v7517_v54, %v7546_v63 }
 0xb68   :  { %v4243_v27 = vmul.f32 1.442695, %v4232_v23  ;;  %v4249_v3 = vmul.f32 1.442695, %v4235_v58 }
 0xb69   :  { %v4222_v51 = vpop.xlane.xlu1 %4221 }
 0xb6a   :  { %6306 = vpow2.f32 %v4243_v27  ;;  %v4234_v39 = vsub.f32 %v7530_v62, %v4222_v51 }
 0xb6c   :  { %v4247_v38 = vmul.f32 1.442695, %v4234_v39 }
 0xb6d   :  { %v4228_v62 = vpop.xlane.xlu1 %4227 }
 0xb6e   :  { %6308 = vpow2.f32 %v4247_v38  ;;  %v4236_v6 = vsub.f32 %v7534_v7, %v4228_v62 }
 0xb6f   :  { %6310 = vpow2.f32 %v4249_v3 }
 0xb70   :  { %v4251_v32 = vmul.f32 1.442695, %v4236_v6 }
 0xb71   :  { %v3534_v37 = vpop.permute.xlu1 %3533 }
 0xb72   :  { %6312 = vpow2.f32 %v4251_v32 }
 0xb74   :  { %v7584_v26 = vpop.eup %6306 }
 0xb75   :  { %v4262_v35 = vsel %vm1738_vm2, %v7584_v26, 0.0 }
 0xb76   :  { %4263 = vadd.xlane.f32.xlu1 %v4262_v35 }
 0xb78   :  { %v7588_v45 = vpop.eup %6308 }
 0xb79   :  { %v4268_v2 = vsel %vm1738_vm2, %v7588_v45, 0.0  ;;  %v7599_v4 = vpop.eup %6310 }
 0xb7a   :  { %4269 = vadd.xlane.f32.xlu0 %v4268_v2  ;;  %v4271_v13 = vsel %vm1738_vm2, %v7599_v4, 0.0 }
 0xb7c   :  { %v7603_v46 = vpop.eup %6312 }
 0xb7d   :  { %v4274_v61 = vsel %vm1738_vm2, %v7603_v46, 0.0 }
 0xb87   :  { %3545 = vrot.lane.b32.xlu1 %v7333_v19, %s6590_s5 }
 0xb90   :  { %3539 = vrot.lane.b32.xlu0 %v7333_v19, %s7834_s29 }
 0xbab   :  { %4272 = vadd.xlane.f32.xlu1 %v4271_v13 }
 0xbaf   :  { %4275 = vadd.xlane.f32.xlu0 %v4274_v61 }
 0xbca   :  { %v4255_v54 = vpop.xlane.xlu0 %4254 }
 0xbcb   :  { %6314 = vrcp.f32 %v4255_v54 }
 0xbd5   :  { %v6315_v63 = vpop.eup %6314  ;;  %v4267_v49 = vpop.xlane.xlu0 %4266 }
 0xbd6   :  { %v4285_v7 = vmul.f32 %v6315_v63, %v7542_v28 }
 0xbd8   :  { %v4293_v48 = vpack.c.bf16 %v4285_v7, %v4285_v7 }
 0xbd9   :  { %v4258_v31 = vpop.xlane.xlu1 %4257 }
 0xbda   :  { %6024 = vmatmul.mubr.msk.bf16.vlgmr.msra.gmra.mrb[44].mxu0 %vm1738_vm2, %v4293_v48  ;;  %6316 = vrcp.f32 %v4258_v31 }
 0xbdb   :  { %6034 = vmatpush3.bf16.msra.mxu0 %v4397_v40  ;;  %6035 = vmatprep.mubr.msk.bf16.mxu0 %vm6589_vm0, %v6588_v21 }
 0xbdc   :  { %6045 = vmatprep.subr.bf16.mxu0 %v6588_v21 }
 0xbe1   :  { %v4261_v50 = vpop.xlane.xlu0 %4260 }
 0xbe2   :  { %6318 = vrcp.f32 %v4261_v50 }
 0xbe4   :  { %v6317_v22 = vpop.eup %6316 }
 0xbe5   :  { %v4286_v28 = vmul.f32 %v6317_v22, %v7554_v29 }
 0xbe7   :  { %v4294_v12 = vpack.c.bf16 %v4286_v28, %v4286_v28 }
 0xbe9   :  { %6030 = vmatmul.mubr.msk.bf16.vlgmr.msra.gmra.mrb[72].mxu1 %vm1738_vm2, %v4294_v12 }
 0xbea   :  { %6040 = vmatpush3.bf16.msra.mxu1 %v4443_v56  ;;  %6041 = vmatprep.mubr.msk.bf16.mxu1 %vm6589_vm0, %v6588_v21 }
 0xbeb   :  { %6051 = vmatprep.subr.bf16.mxu1 %v6588_v21 }
 0xbec   :  { %v6319_v57 = vpop.eup %6318 }
 0xbed   :  { %v4287_v1 = vmul.f32 %v6319_v57, %v7566_v36 }
 0xbef   :  { %v4295_v60 = vpack.c.bf16 %v4287_v1, %v4287_v1 }
 0xbf1   :  { %6036 = vmatmul.mubr.msk.bf16.vlgmr.msra.gmra.mrb[48].mxu0 %vm1738_vm2, %v4295_v60 }
 0xbf2   :  { %6047 = vmatprep.mubr.msk.bf16.mxu0 %vm6589_vm0, %v6588_v21 }
 0xc03   :  { %v4264_v29 = vpop.xlane.xlu1 %4263 }
 0xc04   :  { %6320 = vrcp.f32 %v4264_v29 }
 0xc05   :  { %6322 = vrcp.f32 %v4267_v49 }
 0xc07   :  { %v4270_v10 = vpop.xlane.xlu0 %4269  ;;  %v3546_v8 = vpop.permute.xlu1 %3545 }
 0xc08   :  { %v3633_v9 = vcombine.low %v3534_v37, %v3546_v8  ;;  %v3634_v34 = vcombine.high %v3534_v37, %v3546_v8  ;;  %6324 = vrcp.f32 %v4270_v10 }
 0xc0a   :  { %v3641_v36 = vrot.slane %v3633_v9, %v6927_v52  ;;  %v3648_v20 = vrot.slane %v3634_v34, %v6927_v52 }
 0xc0b   :  { %v3540_v11 = vpop.permute.xlu0 %3539 }
 0xc0c   :  { %v3617_v14 = vcombine.low %v7333_v19, %v3540_v11  ;;  %v3618_v15 = vcombine.high %v7333_v19, %v3540_v11 }
 0xc0e   :  { %v6321_v17 = vpop.eup %6320  ;;  %v3625_v16 = vrot.slane %v3617_v14, %v6927_v52  ;;  %v3632_v24 = vrot.slane %v3618_v15, %v6927_v52 }
 0xc0f   :  { %v4288_v55 = vmul.f32 %v6321_v17, %v7584_v26  ;;  %v6323_v63 = vpop.eup %6322 }
 0xc10   :  { %v3649_v5 = vcombine.low %v3625_v16, %v3641_v36  ;;  %v3650_v18 = vcombine.high %v3625_v16, %v3641_v36  ;;  %v3665_v42 = vcombine.low %v3632_v24, %v3648_v20  ;;  %v3666_v43 = vcombine.high %v3632_v24, %v3648_v20 }
 0xc11   :  { %v4296_v23 = vpack.c.bf16 %v4288_v55, %v4288_v55  ;;  %v4289_v28 = vmul.f32 %v6323_v63, %v7548_v25 }
 0xc12   :  { %v3657_v19 = vrot.slane %v3649_v5, %v6930_v59  ;;  %v3664_v27 = vrot.slane %v3650_v18, %v6930_v59  ;;  %v3673_v51 = vrot.slane %v3665_v42, %v6930_v59  ;;  %v3680_v39 = vrot.slane %v3666_v43, %v6930_v59  ;;  %v6325_v31 = vpop.eup %6324  ;;  %v6214_v18 = vld [vmem:[#allocation13] sm:$0xff]  }
 0xc13   :  { %6042 = vmatmul.mubr.msk.bf16.vlgmr.msra.gmra.mrb[76].mxu1 %vm1738_vm2, %v4296_v23  ;;  %v4290_v53 = vmul.f32 %v6325_v31, %v7588_v45  ;;  %v4297_v10 = vpack.c.bf16 %v4289_v28, %v4289_v28  ;;  %v6216_v23 = vld [vmem:[#allocation13 + $0x10] sm:$0xff]  }
 0xc14   :  { %v3753_v38 = vcombine.low %v3657_v19, %v3664_v27  ;;  %v5627_v35 = vcombine.high %v3657_v19, %v3664_v27  ;;  %v3769_v2 = vcombine.low %v3673_v51, %v3680_v39  ;;  %v5628_v26 = vcombine.high %v3673_v51, %v3680_v39  ;;  %6053 = vmatprep.mubr.msk.bf16.mxu1 %vm6589_vm0, %v6588_v21  ;;  %v6217_v27 = vld [vmem:[#allocation13 + $0x18] sm:$0xff]  }
 0xc15   :  { %v4298_v8 = vpack.c.bf16 %v4290_v53, %v4290_v53 }
 0xc16   :  { %v3760_v58 = vrot.slane %v3753_v38, %v6927_v52  ;;  %v3768_v62 = vrot.slane %v5627_v35, %v6927_v52  ;;  %v3776_v3 = vrot.slane %v3769_v2, %v6927_v52  ;;  %v3784_v6 = vrot.slane %v5628_v26, %v6927_v52  ;;  %v6218_v2 = vld [vmem:[#allocation13 + $0x20] sm:$0xff]  }
 0xc18   :  { %v3785_v32 = vcombine.low %v3760_v58, %v3768_v62  ;;  %v3801_v13 = vcombine.low %v3776_v3, %v3784_v6  ;;  %v3786_v61 = vcombine.high %v3760_v58, %v3768_v62  ;;  %v3802_v54 = vcombine.high %v3776_v3, %v3784_v6  ;;  %v6219_v58 = vld [vmem:[#allocation13 + $0x28] sm:$0xff]  }
 0xc1a   :  { %v3793_v37 = vrot.slane %v3785_v32, %v6930_v59  ;;  %v3809_v7 = vrot.slane %v3801_v13, %v6930_v59  ;;  %v3800_v47 = vrot.slane %v3786_v61, %v6930_v59  ;;  %v3816_v48 = vrot.slane %v3802_v54, %v6930_v59 }
 0xc1c   :  { %v3817_v40 = vcombine.low %v3793_v37, %v3809_v7  ;;  %v3818_v49 = vcombine.high %v3793_v37, %v3809_v7  ;;  %v3819_v50 = vcombine.low %v3800_v47, %v3816_v48  ;;  %v3820_v22 = vcombine.high %v3800_v47, %v3816_v48 }
 0xc1e   :  { %v3825_v12 = vpack.c.bf16 %v3817_v40, %v3817_v40  ;;  %v3826_v56 = vpack.c.bf16 %v3818_v49, %v3818_v49  ;;  %v3827_v60 = vpack.c.bf16 %v3819_v50, %v3819_v50  ;;  %v3828_v29 = vpack.c.bf16 %v3820_v22, %v3820_v22 }
 0xc20   :  { %v4489_v57 = vsel %vm1838_vm3, %v3825_v12, 0  ;;  %v4535_v1 = vsel %vm1838_vm3, %v3826_v56, 0  ;;  %v4581_v25 = vsel %vm1838_vm3, %v3827_v60, 0  ;;  %v4627_v45 = vsel %vm1838_vm3, %v3828_v29, 0 }
 0xc21   :  { %6046 = vmatpush3.bf16.msra.mxu0 %v4489_v57  ;;  %6052 = vmatpush3.bf16.msra.mxu1 %v4535_v1 }
 0xc22   :  { %6057 = vmatprep.subr.bf16.mxu0 %v6588_v21  ;;  %6063 = vmatprep.subr.bf16.mxu1 %v6588_v21 }
 0xc24   :  { %6048 = vmatmul.mubr.msk.bf16.vlgmr.msra.gmra.mrb[52].mxu0 %vm1738_vm2, %v4297_v10  ;;  %6054 = vmatmul.mubr.msk.bf16.vlgmr.msra.gmra.mrb[80].mxu1 %vm1738_vm2, %v4298_v8 }
 0xc25   :  { %6058 = vmatpush3.bf16.msra.mxu0 %v4581_v25  ;;  %6064 = vmatpush3.bf16.msra.mxu1 %v4627_v45 }
 0xc26   :  { %6059 = vmatprep.mubr.msk.bf16.mxu0 %vm6589_vm0, %v6588_v21  ;;  %6065 = vmatprep.mubr.msk.bf16.mxu1 %vm6589_vm0, %v6588_v21 }
 0xc27   :  { %6069 = vmatprep.subr.bf16.mxu0 %v6588_v21 }
 0xc38   :  { %v4273_v9 = vpop.xlane.xlu1 %4272 }
 0xc39   :  { %6326 = vrcp.f32 %v4273_v9 }
 0xc3c   :  { %v4276_v34 = vpop.xlane.xlu0 %4275 }
 0xc3d   :  { %6328 = vrcp.f32 %v4276_v34 }
 0xc43   :  { %v6327_v11 = vpop.eup %6326 }
 0xc44   :  { %v4291_v14 = vmul.f32 %v6327_v11, %v7599_v4  ;;  %v6215_v4 = vld [vmem:[#allocation13 + $0x8] sm:$0xff]  }
 0xc46   :  { %v4299_v15 = vpack.c.bf16 %v4291_v14, %v4291_v14 }
 0xc47   :  { %v6329_v17 = vpop.eup %6328 }
 0xc48   :  { %v4292_v36 = vmul.f32 %v6329_v17, %v7603_v46  ;;  %6060 = vmatmul.mubr.msk.bf16.vlgmr.msra.gmra.mrb[56].mxu0 %vm1738_vm2, %v4299_v15 }
 0xc49   :  { %6085 = vmatprep.mubr.msk.bf16.mxu0 %vm6589_vm0, %v6588_v21  ;;  %6070 = vmatpush3.bf16.msra.mxu0 %v6214_v18 }
 0xc4a   :  { %v4300_v20 = vpack.c.bf16 %v4292_v36, %v4292_v36  ;;  %6071 = vmatprep.subr.bf16.mxu0 %v6588_v21 }
 0xc4c   :  { %6066 = vmatmul.mubr.msk.bf16.vlgmr.msra.gmra.mrb[84].mxu1 %vm1738_vm2, %v4300_v20 }
 0xc4d   :  { %5267 = vmatprep.mubr.bf16.mxu1 %v6587_v0  ;;  %6072 = vmatpush3.bf16.msra.mxu0 %v6215_v4 }
 0xc4e   :  { %6073 = vmatprep.subr.bf16.mxu0 %v6588_v21 }
 0xc51   :  { %6074 = vmatpush3.bf16.msra.mxu0 %v6216_v23 }
 0xc52   :  { %6075 = vmatprep.subr.bf16.mxu0 %v6588_v21 }
 0xc55   :  { %6076 = vmatpush3.bf16.msra.mxu0 %v6217_v27 }
 0xc56   :  { %6077 = vmatprep.subr.bf16.mxu0 %v6588_v21 }
 0xc59   :  { %6078 = vmatpush3.bf16.msra.mxu0 %v6218_v2 }
 0xc5a   :  { %6079 = vmatprep.subr.bf16.mxu0 %v6588_v21 }
 0xc5d   :  { %6080 = vmatpush3.bf16.msra.mxu0 %v6219_v58 }
 0xc5e   :  { %6081 = vmatprep.subr.bf16.mxu0 %v6588_v21 }
 0xcad   :  { %v4341_v16 = vpop.f32.mrb[44].mxu0 }
 0xcae   :  { %v6025_v24 = vpop.f32.mrb[45].mxu0 }
 0xcaf   :  { %v4344_v55 = vpop.f32.mrb[46].mxu0 }
 0xcb0   :  { %v6026_v5 = vpop.f32.mrb[47].mxu0 }
 0xcbc   :  { %v4387_v46 = vpop.f32.mrb[72].mxu1 }
 0xcbd   :  { %v6031_v42 = vpop.f32.mrb[73].mxu1 }
 0xcbe   :  { %v4390_v43 = vpop.f32.mrb[74].mxu1 }
 0xcbf   :  { %v6032_v19 = vpop.f32.mrb[75].mxu1 }
 0xcc4   :  { %v4433_v0 = vpop.f32.mrb[48].mxu0 }
 0xcc5   :  { %v4669_v51 = vcombine.low %v4341_v16, %v4433_v0  ;;  %v4670_v39 = vcombine.high %v4341_v16, %v4433_v0  ;;  %v6037_v38 = vpop.f32.mrb[49].mxu0 }
 0xcc6   :  { %v4436_v35 = vpop.f32.mrb[50].mxu0 }
 0xcc7   :  { %v6038_v26 = vpop.f32.mrb[51].mxu0  ;;  %v4677_v61 = vrot.slane %v4669_v51, %v6927_v52  ;;  %v4684_v54 = vrot.slane %v4670_v39, %v6927_v52 }
 0xce6   :  { %v4479_v62 = vpop.f32.mrb[76].mxu1 }
 0xce7   :  { %v4685_v3 = vcombine.low %v4387_v46, %v4479_v62  ;;  %v4686_v6 = vcombine.high %v4387_v46, %v4479_v62  ;;  %v6043_v32 = vpop.f32.mrb[77].mxu1 }
 0xce8   :  { %v4482_v13 = vpop.f32.mrb[78].mxu1 }
 0xce9   :  { %v4693_v63 = vrot.slane %v4685_v3, %v6927_v52  ;;  %v4700_v37 = vrot.slane %v4686_v6, %v6927_v52  ;;  %v6044_v7 = vpop.f32.mrb[79].mxu1 }
 0xceb   :  { %v4701_v47 = vcombine.low %v4677_v61, %v4693_v63  ;;  %v4702_v48 = vcombine.high %v4677_v61, %v4693_v63  ;;  %v4717_v31 = vcombine.low %v4684_v54, %v4700_v37  ;;  %v4718_v40 = vcombine.high %v4684_v54, %v4700_v37 }
 0xced   :  { %v4709_v49 = vrot.slane %v4701_v47, %v6930_v59  ;;  %v4716_v50 = vrot.slane %v4702_v48, %v6930_v59  ;;  %v4725_v22 = vrot.slane %v4717_v31, %v6930_v59  ;;  %v4732_v28 = vrot.slane %v4718_v40, %v6930_v59 }
 0xcef   :  { %v4805_v53 = vcombine.low %v4709_v49, %v4716_v50  ;;  %v5645_v12 = vcombine.high %v4709_v49, %v4716_v50  ;;  %v4821_v56 = vcombine.low %v4725_v22, %v4732_v28  ;;  %v5646_v57 = vcombine.high %v4725_v22, %v4732_v28  ;;  %v6220_v28 = vld [vmem:[#allocation13 + $0x30] sm:$0xff]  }
 0xcf0   :  { %6082 = vmatpush3.bf16.msra.mxu0 %v6220_v28  ;;  %v6236_v28 = vld [vmem:[#allocation14 + $0x44] ss:$8 sps:$4 sm:$0xff]  }
 0xcf1   :  { %v4812_v1 = vrot.slane %v4805_v53, %v6927_v52  ;;  %v4820_v60 = vrot.slane %v5645_v12, %v6927_v52  ;;  %v4828_v29 = vrot.slane %v4821_v56, %v6927_v52  ;;  %v4836_v10 = vrot.slane %v5646_v57, %v6927_v52  ;;  %6083 = vmatprep.subr.bf16.mxu0 %v6588_v21 }
 0xcf3   :  { %v4838_v8 = vcombine.high %v4812_v1, %v4820_v60  ;;  %v4854_v25 = vcombine.high %v4828_v29, %v4836_v10  ;;  %v4837_v45 = vcombine.low %v4812_v1, %v4820_v60  ;;  %v4853_v9 = vcombine.low %v4828_v29, %v4836_v10 }
 0xcf5   :  { %v7686_v34 = vrot.slane %v4838_v8, %v6930_v59  ;;  %v7689_v11 = vrot.slane %v4854_v25, %v6930_v59  ;;  %v7692_v14 = vrot.slane %v4837_v45, %v6930_v59  ;;  %v7695_v15 = vrot.slane %v4853_v9, %v6930_v59 }
 0xcf7   :  { %v4525_v17 = vpop.f32.mrb[52].mxu0  ;;  %v4571_v36 = vpop.f32.mrb[80].mxu1  ;;  %v4871_v20 = vcombine.low %v7686_v34, %v7689_v11  ;;  %v4869_v16 = vcombine.low %v7692_v14, %v7695_v15  ;;  %v4870_v24 = vcombine.high %v7692_v14, %v7695_v15  ;;  %v4872_v55 = vcombine.high %v7686_v34, %v7689_v11  ;;  %v6221_v34 = vld [vmem:[#allocation13 + $0x38] sm:$0xff]   ;;  %v5649_v14 = vld [vmem:[%s7790_s11] ss:$0 sm:$0xff] }
 0xcf8   :  { %v6049_v5 = vpop.f32.mrb[53].mxu0  ;;  %v6055_v18 = vpop.f32.mrb[81].mxu1  ;;  %6084 = vmatpush3.bf16.msra.mxu0 %v6221_v34  ;;  %v6251_v34 = vld [vmem:[#allocation16 + $0x10] sm:$0xff]  }
 0xcf9   :  { %v4528_v4 = vpop.f32.mrb[54].mxu0  ;;  %v4574_v46 = vpop.f32.mrb[82].mxu1 }
 0xcfa   :  { %v6050_v42 = vpop.f32.mrb[55].mxu0  ;;  %v6056_v43 = vpop.f32.mrb[83].mxu1 }
 0xd1b   :  { %v4617_v23 = vpop.f32.mrb[56].mxu0 }
 0xd1c   :  { %v4737_v19 = vcombine.low %v4525_v17, %v4617_v23  ;;  %v4738_v27 = vcombine.high %v4525_v17, %v4617_v23  ;;  %v6061_v0 = vpop.f32.mrb[57].mxu0 }
 0xd1d   :  { %v4620_v51 = vpop.f32.mrb[58].mxu0 }
 0xd1e   :  { %v6062_v39 = vpop.f32.mrb[59].mxu0  ;;  %v4745_v62 = vrot.slane %v4737_v19, %v6927_v52  ;;  %v4752_v3 = vrot.slane %v4738_v27, %v6927_v52 }
 0xd1f   :  { %v4663_v38 = vpop.f32.mrb[84].mxu1 }
 0xd20   :  { %v4753_v35 = vcombine.low %v4571_v36, %v4663_v38  ;;  %v4754_v2 = vcombine.high %v4571_v36, %v4663_v38  ;;  %v6067_v26 = vpop.f32.mrb[85].mxu1 }
 0xd21   :  { %v4666_v58 = vpop.f32.mrb[86].mxu1 }
 0xd22   :  { %v4761_v6 = vrot.slane %v4753_v35, %v6927_v52  ;;  %v4768_v32 = vrot.slane %v4754_v2, %v6927_v52  ;;  %v6068_v13 = vpop.f32.mrb[87].mxu1 }
 0xd23   :  { %v6224_v13 = vld [vmem:[#allocation14 + $0x4] ss:$8 sps:$4 sm:$0xff]  }
 0xd24   :  { %v4769_v61 = vcombine.low %v4745_v62, %v4761_v6  ;;  %v4770_v54 = vcombine.high %v4745_v62, %v4761_v6  ;;  %v4785_v63 = vcombine.low %v4752_v3, %v4768_v32  ;;  %v4786_v37 = vcombine.high %v4752_v3, %v4768_v32  ;;  %v6222_v32 = vld [vmem:[#allocation14] ss:$8 sps:$4 sm:$0xff]   ;;  %5235 = vmatprep.subr.bf16.mxu1 %v6224_v13 }
 0xd25   :  { %5236 = vmatpush1.bf16.msra.mxu1 %v6222_v32 }
 0xd26   :  { %v4777_v7 = vrot.slane %v4769_v61, %v6930_v59  ;;  %v4784_v47 = vrot.slane %v4770_v54, %v6930_v59  ;;  %v4793_v48 = vrot.slane %v4785_v63, %v6930_v59  ;;  %v4800_v31 = vrot.slane %v4786_v37, %v6930_v59  ;;  %v6227_v61 = vld [vmem:[#allocation14 + $0x14] ss:$8 sps:$4 sm:$0xff]   ;;  %v6225_v54 = vld [vmem:[#allocation14 + $0x10] ss:$8 sps:$4 sm:$0xff]  }
 0xd27   :  { %5237 = vmatprep.subr.bf16.mxu1 %v6227_v61 }
 0xd28   :  { %v4873_v40 = vcombine.low %v4777_v7, %v4784_v47  ;;  %v5647_v49 = vcombine.high %v4777_v7, %v4784_v47  ;;  %v4889_v50 = vcombine.low %v4793_v48, %v4800_v31  ;;  %v5648_v22 = vcombine.high %v4793_v48, %v4800_v31 }
 0xd29   :  { %5238 = vmatpush1.bf16.msra.mxu1 %v6225_v54 }
 0xd2a   :  { %v4880_v53 = vrot.slane %v4873_v40, %v6927_v52  ;;  %v4888_v12 = vrot.slane %v5647_v49, %v6927_v52  ;;  %v4896_v56 = vrot.slane %v4889_v50, %v6927_v52  ;;  %v4904_v57 = vrot.slane %v5648_v22, %v6927_v52  ;;  %v6230_v40 = vld [vmem:[#allocation14 + $0x24] ss:$8 sps:$4 sm:$0xff]   ;;  %v6228_v49 = vld [vmem:[#allocation14 + $0x20] ss:$8 sps:$4 sm:$0xff]   ;;  %v6233_v50 = vld [vmem:[#allocation14 + $0x34] ss:$8 sps:$4 sm:$0xff]  }
 0xd2b   :  { %5239 = vmatprep.subr.bf16.mxu1 %v6230_v40  ;;  %v6231_v22 = vld [vmem:[#allocation14 + $0x30] ss:$8 sps:$4 sm:$0xff]  }
 0xd2c   :  { %v4906_v1 = vcombine.high %v4880_v53, %v4888_v12  ;;  %v4922_v60 = vcombine.high %v4896_v56, %v4904_v57  ;;  %v4905_v29 = vcombine.low %v4880_v53, %v4888_v12  ;;  %v4921_v10 = vcombine.low %v4896_v56, %v4904_v57  ;;  %v6234_v53 = vld [vmem:[#allocation14 + $0x40] ss:$8 sps:$4 sm:$0xff]   ;;  %v6239_v12 = vld [vmem:[#allocation14 + $0x54] ss:$8 sps:$4 sm:$0xff]   ;;  %v6237_v56 = vld [vmem:[#allocation14 + $0x50] ss:$8 sps:$4 sm:$0xff]  }
 0xd2d   :  { %5240 = vmatpush1.bf16.msra.mxu1 %v6228_v49  ;;  %v6242_v57 = vld [vmem:[#allocation14 + $0x64] ss:$8 sps:$4 sm:$0xff]  }
 0xd2e   :  { %v4920_v8 = vrot.slane %v4906_v1, %v6930_v59  ;;  %v4936_v25 = vrot.slane %v4922_v60, %v6930_v59  ;;  %v4913_v45 = vrot.slane %v4905_v29, %v6930_v59  ;;  %v4929_v9 = vrot.slane %v4921_v10, %v6930_v59  ;;  %5241 = vmatprep.subr.bf16.mxu1 %v6233_v50  ;;  %v6240_v1 = vld [vmem:[#allocation14 + $0x60] ss:$8 sps:$4 sm:$0xff]   ;;  %v6245_v60 = vld [vmem:[#allocation14 + $0x74] ss:$8 sps:$4 sm:$0xff]  }
 0xd2f   :  { %v6246_v29 = vld [vmem:[#allocation16 + $0x40] sm:$0xff]  }
 0xd30   :  { %v4939_v11 = vcombine.low %v4920_v8, %v4936_v25  ;;  %v4938_v17 = vcombine.high %v4913_v45, %v4929_v9  ;;  %v4937_v36 = vcombine.low %v4913_v45, %v4929_v9  ;;  %v4940_v52 = vcombine.high %v4920_v8, %v4936_v25  ;;  %v6247_v10 = vld [vmem:[#allocation16] sm:$0xff]   ;;  %v6248_v8 = vld [vmem:[#allocation16 + $0x48] sm:$0xff]   ;;  %v6243_v25 = vld [vmem:[#allocation14 + $0x70] ss:$8 sps:$4 sm:$0xff]   ;;  %5795 = vmatprep.subr.bf16.mxu0 %v6246_v29 }
 0xd31   :  { %5242 = vmatpush1.bf16.msra.mxu1 %v6231_v22  ;;  %v6249_v45 = vld [vmem:[#allocation16 + $0x8] sm:$0xff]   ;;  %v6250_v9 = vld [vmem:[#allocation16 + $0x50] sm:$0xff]  }
 0xd32   :  { %v6132_v5 = vpack.i.bf16 %v4939_v11, %v4871_v20  ;;  %v6127_v18 = vpack.i.bf16 %v4938_v17, %v4870_v24  ;;  %v6137_v4 = vpack.i.bf16 %v4940_v52, %v4872_v55  ;;  %5243 = vmatprep.subr.bf16.mxu1 %v6236_v28  ;;  %v6252_v11 = vld [vmem:[#allocation16 + $0x58] sm:$0xff]   ;;  %v6255_v52 = vld [vmem:[#allocation16 + $0x20] sm:$0xff]  }
 0xd33   :  { %v6253_v17 = vld [vmem:[#allocation16 + $0x18] sm:$0xff]  }
 0xd34   :  { %6133 = vrot.lane.b32.xlu1 %v6132_v5, %s7834_s29  ;;  %6128 = vrot.lane.b32.xlu0 %v6127_v18, %s6590_s5  ;;  %v6256_v5 = vld [vmem:[#allocation16 + $0x68] sm:$0xff]   ;;  %s5509_s5 = sshll.u32 %s6594_s4, 4  ;;  %s5510_s5 = int_to_ptr.vmem [resolvable:$true] %s5509_s5 }
 0xd35   :  { %5244 = vmatpush1.bf16.msra.mxu1 %v6234_v53  ;;  %p6543_p3 = scmp.lt.s32.totalorder %s5510_s5, %s5510_s5 }
 0xd36   :  { %5245 = vmatprep.subr.bf16.mxu1 %v6239_v12 }
 0xd38   :  { %6138 = vrot.lane.b32.xlu1 %v6137_v4, %s6591_s22  ;;  %s6538_s22 = scalar_lea.vmem %s5510_s5, 256 }
 0xd39   :  { %5246 = vmatpush1.bf16.msra.mxu1 %v6237_v56  ;;  %p6539_p2 = scmp.ne.s32.totalorder %s5510_s5, %s6538_s22  ;;  %p6544_p4 = scmp.lt.s32.totalorder %s6538_s22, %s6538_s22 }
 0xd3a   :  { %5247 = vmatprep.subr.bf16.mxu1 %v6242_v57 }
 0xd3b   :  { %p6545_p5 = por %p6544_p4, %p6543_p3 }
 0xd3d   :  { %5248 = vmatpush1.bf16.msra.mxu1 %v6240_v1  ;;  %p6546_p6 = pnand %p6545_p5, %p6539_p2 }
 0xd3e   :  { %5249 = vmatprep.subr.bf16.mxu1 %v6245_v60 }
 0xd41   :  { %5250 = vmatpush1.bf16.msra.mxu1 %v6243_v25 }
 0xda6   :  { %v6134_v21 = vpop.permute.xlu1 %6133  ;;  %v6129_v46 = vpop.permute.xlu0 %6128 }
 0xda7   :  { %v6131_v42 = vunpack.i.h.bf16 %v6129_v46  ;;  %v6130_v43 = vunpack.i.l.bf16 %v6129_v46  ;;  %v6136_v59 = vunpack.i.h.bf16 %v6134_v21  ;;  %v6135_v23 = vunpack.i.l.bf16 %v6134_v21 }
 0xda9   :  { %v4965_v19 = vsel %vm1361_vm1, %v4869_v16, %v6130_v43  ;;  %v4966_v20 = vsel %vm1361_vm1, %v4937_v36, %v6131_v42  ;;  %v6254_v36 = vld [vmem:[#allocation16 + $0x60] sm:$0xff]  }
 0xdaa   :  { %v6139_v24 = vpop.permute.xlu1 %6138  ;;  %v4967_v0 = vsel %vm2502_vm4, %v4965_v19, %v6135_v23  ;;  %v4968_v51 = vsel %vm2502_vm4, %v4966_v20, %v6136_v59  ;;  %v5658_v19 = vld [vmem:[%s7797_s18] ss:$0 sm:$0xff] }
 0xdab   :  { %v6141_v55 = vunpack.i.h.bf16 %v6139_v24  ;;  %v6140_v27 = vunpack.i.l.bf16 %v6139_v24 }
 0xdad   :  { %v4969_v39 = vsel %vm2505_vm5, %v4967_v0, %v6140_v27  ;;  %v4970_v38 = vsel %vm2505_vm5, %v4968_v51, %v6141_v55  ;;  %v5659_v27 = vld [vmem:[%s7798_s19] ss:$0 sm:$0xff] }
 0xdae   :  { %v4971_v35 = vpack.c.bf16 %v4970_v38, %v4969_v39 }
 0xdb0   :  { %6086 = vmatmul.mubr.bf16.vlgmr.msra.gmra.mrb[60].mxu0 %v4971_v35  ;;  %v6257_v35 = vld [vmem:[#allocation16 + $0x28] sm:$0xff]  }
 0xdb1   :  { %5796 = vmatpush3.bf16.msra.mxu0 %v6247_v10 }
 0xdb2   :  { %5797 = vmatprep.subr.bf16.mxu0 %v6248_v8 }
 0xdb5   :  { %5798 = vmatpush3.bf16.msra.mxu0 %v6249_v45 }
 0xdb6   :  { %5799 = vmatprep.subr.bf16.mxu0 %v6250_v9 }
 0xdb9   :  { %5800 = vmatpush3.bf16.msra.mxu0 %v6251_v34 }
 0xdba   :  { %5801 = vmatprep.subr.bf16.mxu0 %v6252_v11 }
 0xdbd   :  { %5802 = vmatpush3.bf16.msra.mxu0 %v6253_v17 }
 0xdbe   :  { %5803 = vmatprep.subr.bf16.mxu0 %v6254_v36 }
 0xdc1   :  { %5804 = vmatpush3.bf16.msra.mxu0 %v6255_v52 }
 0xdc2   :  { %5805 = vmatprep.subr.bf16.mxu0 %v6256_v5 }
 0xdc5   :  { %5806 = vmatpush3.bf16.msra.mxu0 %v6257_v35 }
 0xe83   :  { %v5077_v15 = vpop.f32.mrb[60].mxu0 }
 0xe84   :  { %v5078_v16 = vadd.f32 %v5649_v14, %v5077_v15  ;;  %v6087_v2 = vpop.f32.mrb[61].mxu0  ;;  %v6259_v15 = vld [vmem:[#allocation16 + $0x30] sm:$0xff]  }
 0xe85   :  { %v5080_v26 = vpop.f32.mrb[62].mxu0  ;;  %v6261_v2 = vld [vmem:[#allocation16 + $0x38] sm:$0xff]  }
 0xe86   :  { %v5081_v58 = vadd.f32 %v5649_v14, %v5080_v26  ;;  %v6088_v62 = vpop.f32.mrb[63].mxu0  ;;  %v5084_v3 = vadd.f32 %v5078_v16, %v7342_v41  ;;  %v6258_v14 = vld [vmem:[#allocation16 + $0x70] sm:$0xff]   ;;  %v6260_v16 = vld [vmem:[#allocation16 + $0x78] sm:$0xff]   ;;  %v5143_v26 = vld [vmem:[%s7792_s13] sm:$0x3] }
 0xe87   :  { %5807 = vmatprep.subr.bf16.mxu0 %v6258_v14  ;;  %v5152_v62 = vrot.slane %v5143_v26, %v6882_v30  ;;  %v5676_v30 = vld [vmem:[%s7794_s15] ss:$0 sm:$0xff] }
 0xe88   :  { %5088 = vadd.xlane.f32.xlu0 %v5084_v3  ;;  %v5085_v6 = vadd.f32 %v5081_v58, %v7344_v44  ;;  %5808 = vmatpush3.bf16.msra.mxu0 %v6259_v15  ;;  %v5148_v58 = vrot.slane %v5143_v26, %v6891_v33 }
 0xe89   :  { %5809 = vmatprep.subr.bf16.mxu0 %v6260_v16 }
 0xe8a   :  { %5090 = vadd.xlane.f32.xlu1 %v5085_v6 }
 0xe8c   :  { %5810 = vmatpush3.bf16.msra.mxu0 %v6261_v2 }
 0xf15   :  { %v5089_v63 = vpop.xlane.xlu0 %5088 }
 0xf16   :  { %v5092_v37 = vmul.f32 0.0078125, %v5089_v63 }
 0xf17   :  { %v5091_v7 = vpop.xlane.xlu1 %5090 }
 0xf18   :  { %v5094_v47 = vsub.f32 %v5084_v3, %v5092_v37  ;;  %v5093_v48 = vmul.f32 0.0078125, %v5091_v7 }
 0xf1a   :  { %v7739_v31 = vsub.f32 %v5085_v6, %v5093_v48  ;;  %v5096_v41 = vmul.f32 %v5094_v47, %v5094_v47 }
 0xf1c   :  { %5098 = vadd.xlane.f32.xlu0 %v5096_v41  ;;  %v5097_v44 = vmul.f32 %v7739_v31, %v7739_v31 }
 0xf20   :  { %5100 = vadd.xlane.f32.xlu0 %v5097_v44 }
 0xfa9   :  { %v5099_v18 = vpop.xlane.xlu0 %5098 }
 0xfaa   :  { %v5102_v4 = vmul.f32 0.0078125, %v5099_v18 }
 0xfac   :  { %v5104_v21 = vadd.f32 1e-05, %v5102_v4  ;;  %v5693_v4 = vld [vmem:[%s7799_s20] ss:$0 sm:$0xff] }
 0xfad   :  { %v5101_v46 = vpop.xlane.xlu0 %5100 }
 0xfae   :  { %6330 = vrsqrt.f32 %v5104_v21  ;;  %v5103_v42 = vmul.f32 0.0078125, %v5101_v46 }
 0xfb0   :  { %v5105_v43 = vadd.f32 1e-05, %v5103_v42  ;;  %v5694_v42 = vld [vmem:[%s7837_s28] ss:$0 sm:$0xff] }
 0xfb2   :  { %6332 = vrsqrt.f32 %v5105_v43 }
 0xfb8   :  { %v6331_v59 = vpop.eup %6330 }
 0xfb9   :  { %v5108_v23 = vmul.f32 %v6331_v59, %v5094_v47 }
 0xfbb   :  { %v5116_v55 = vmul.f32 %v5658_v19, %v5108_v23 }
 0xfbc   :  { %v6333_v20 = vpop.eup %6332 }
 0xfbd   :  { %v5109_v24 = vmul.f32 %v6333_v20, %v7739_v31  ;;  %v5124_v51 = vadd.f32 %v5659_v27, %v5116_v55 }
 0xfbf   :  { %v5117_v0 = vmul.f32 %v5658_v19, %v5109_v24 }
 0xfc1   :  { %v5125_v39 = vadd.f32 %v5659_v27, %v5117_v0 }
 0xfc3   :  { %v5126_v38 = vpack.c.bf16 %v5125_v39, %v5124_v51 }
 0xfc5   :  { %5268 = vmatmul.mubr.bf16.vlgmr.msra.gmra.mrb[88].mxu1 %v5126_v38 }
0x1098   :  { %v5269_v3 = vpop.f32.mrb[88].mxu1 }
0x1099   :  { %v5270_v6 = vadd.f32 %v5269_v3, %v5148_v58  ;;  %v5271_v32 = vpop.f32.mrb[89].mxu1 }
0x109a   :  { %v5272_v13 = vadd.f32 %v5271_v32, %v5152_v62  ;;  %v5273_v61 = vpop.f32.mrb[90].mxu1 }
0x109b   :  { %v5274_v54 = vadd.f32 %v5273_v61, %v5148_v58  ;;  %v5275_v63 = vpop.f32.mrb[91].mxu1  ;;  %v5278_v7 = vmax.f32 %v5270_v6, 0.0 }
0x109c   :  { %v5276_v37 = vadd.f32 %v5275_v63, %v5152_v62  ;;  %v5279_v48 = vmax.f32 %v5272_v13, 0.0 }
0x109d   :  { %v5280_v47 = vmax.f32 %v5274_v54, 0.0 }
0x109e   :  { %v5281_v31 = vmax.f32 %v5276_v37, 0.0 }
0x109f   :  { %v5282_v41 = vpack.c.bf16 %v5280_v47, %v5278_v7 }
0x10a0   :  { %v5283_v44 = vpack.c.bf16 %v5281_v31, %v5279_v48 }
0x10a2   :  { %5451 = vmatprep.mubr.bf16.mxu0 %v5283_v44 }
0x10a3   :  { %5452 = vmatmul.mubr.bf16.vlgmr.msra.gmra.mrb[64].mxu0 %v5282_v41 }
0x1176   :  { %v5811_v40 = vpop.f32.mrb[64].mxu0 }
0x1177   :  { %v5812_v33 = vpop.f32.mrb[65].mxu0 }
0x1178   :  { %v5813_v49 = vadd.f32 %v5812_v33, %v5811_v40  ;;  %v5814_v50 = vpop.f32.mrb[66].mxu0 }
0x1179   :  { %v5815_v22 = vpop.f32.mrb[67].mxu0 }
0x117a   :  { %v5454_v28 = vadd.f32 %v5813_v49, %v5676_v30  ;;  %v5816_v53 = vadd.f32 %v5815_v22, %v5814_v50 }
0x117c   :  { %v5457_v12 = vadd.f32 %v5816_v53, %v5676_v30  ;;  %v5460_v56 = vadd.f32 %v5454_v28, %v5124_v51 }
0x117e   :  { %5464 = vadd.xlane.f32.xlu1 %v5460_v56  ;;  %v5461_v57 = vadd.f32 %v5457_v12, %v5125_v39 }
0x1180   :  { %5466 = vadd.xlane.f32.xlu0 %v5461_v57 }
0x120b   :  { %v5465_v1 = vpop.xlane.xlu1 %5464 }
0x120c   :  { %v5468_v60 = vmul.f32 0.0078125, %v5465_v1 }
0x120d   :  { %v5467_v29 = vpop.xlane.xlu0 %5466 }
0x120e   :  { %v5470_v10 = vsub.f32 %v5460_v56, %v5468_v60  ;;  %v5469_v8 = vmul.f32 0.0078125, %v5467_v29 }
0x1210   :  { %v5471_v25 = vsub.f32 %v5461_v57, %v5469_v8  ;;  %v5472_v45 = vmul.f32 %v5470_v10, %v5470_v10 }
0x1212   :  { %5474 = vadd.xlane.f32.xlu1 %v5472_v45  ;;  %v5473_v9 = vmul.f32 %v5471_v25, %v5471_v25 }
0x1214   :  { %5476 = vadd.xlane.f32.xlu0 %v5473_v9 }
0x129f   :  { %v5475_v34 = vpop.xlane.xlu1 %5474 }
0x12a0   :  { %v5478_v11 = vmul.f32 0.0078125, %v5475_v34 }
0x12a1   :  { %v5477_v17 = vpop.xlane.xlu0 %5476 }
0x12a2   :  { %v5480_v36 = vadd.f32 1e-05, %v5478_v11  ;;  %v5479_v52 = vmul.f32 0.0078125, %v5477_v17 }
0x12a4   :  { %6334 = vrsqrt.f32 %v5480_v36  ;;  %v5481_v5 = vadd.f32 1e-05, %v5479_v52 }
0x12a6   :  { %6336 = vrsqrt.f32 %v5481_v5 }
0x12ae   :  { %v6335_v18 = vpop.eup %6334 }
0x12af   :  { %v5484_v21 = vmul.f32 %v6335_v18, %v5470_v10 }
0x12b0   :  { %v6337_v46 = vpop.eup %6336 }
0x12b1   :  { %v5485_v43 = vmul.f32 %v6337_v46, %v5471_v25  ;;  %v5492_v59 = vmul.f32 %v5693_v4, %v5484_v21 }
0x12b3   :  { %v5493_v23 = vmul.f32 %v5693_v4, %v5485_v43  ;;  %v5500_v19 = vadd.f32 %v5694_v42, %v5492_v59 }
0x12b5   :  { %v5501_v20 = vadd.f32 %v5694_v42, %v5493_v23  ;;  %5502 = vst [vmem:[#allocation17] sm:$0xff] %v5500_v19 }
0x12b7   :  { %5503 = vst [vmem:[#allocation17 + $0x8] sm:$0xff] %v5501_v20 }
0x12b8   :  { %6549 = shalt.err (!%p6546_p6)
}
0x12b9   :  { %s7838_s21 = sld [smem:[#allocation32_spill]] }
0x12bf   :  { %s6550_s6 = scalar_lea.hbm %s7838_s21, 256 }
0x12c0   :  { %p6551_p7 = scmp.ne.s32.totalorder %s7838_s21, %s6550_s6  ;;  %p6554_p8 = scmp.lt.u32.totalorder %s6550_s6, %s7838_s21 }
0x12c2   :  { %p6556_p9 = pnand %p6554_p8, %p6551_p7 }
0x12c4   :  { %6559 = shalt.err (!%p6556_p9)
}
0x12c5   :  { %s7839_s26 = smov 128  }
0x12c6   :  { %5515 = dma.vmem_to_hbm [thread:$0]  %s5510_s5, 256, %s7838_s21, [#allocation4], %s7839_s26, %s7839_s26, %s7828_s1  }
0x12c7   :  { %6570 = dma.done.wait [#allocation4], 256  }
0x12c8   :  { %6571 = vsyncadd [#allocation4], 4294967040 }
0x12c9   :  { %5519 = vsyncpa [#allocation3], 1 }
0x12ca   :  { %5520 = vsyncpa [#allocation6], 1 }
0x12cb   :  { %5521 = vsyncpa [#allocation9], 1 }
0x12cc   :  { %5522 = vsyncpa [#allocation12], 1 }
0x12cd   :  { %5523 = vsyncpa [#allocation15], 1 }
0x12ce   :  { %5524 = vsyncpa [#allocation4], 1 }

// kernel: tpu_custom_call.1
= control target key start
LH: loop header
LB: loop body
LE: loop exit
PB: predicated region body
PF: predicated region fallthrough
CT: control target
= control target key end

     0   :  { %s7779_s0 = inlined_call_operand.hbm [shape: f32[2,8,128], index: 0, kind: input, shape index: {}]   ;;  %s7780_s1 = inlined_call_operand.hbm [shape: f32[2,8,128], index: 1, kind: input, shape index: {}]   ;;  %s7781_s2 = inlined_call_operand.hbm [shape: bf16[128,384], index: 2, kind: input, shape index: {}]   ;;  %s7782_s3 = inlined_call_operand.vmem [shape: f32[1,384], index: 3, kind: input, shape index: {}]   ;;  %s7783_s4 = inlined_call_operand.hbm [shape: bf16[128,128], index: 4, kind: input, shape index: {}]   ;;  %s7784_s5 = inlined_call_operand.vmem [shape: f32[1,128], index: 5, kind: input, shape index: {}]   ;;  %s7785_s6 = inlined_call_operand.hbm [shape: bf16[128,128], index: 6, kind: input, shape index: {}]   ;;  %s7786_s7 = inlined_call_operand.vmem [shape: f32[1,128], index: 7, kind: input, shape index: {}]   ;;  %s7787_s8 = inlined_call_operand.hbm [shape: bf16[128,256], index: 8, kind: input, shape index: {}]   ;;  %s7788_s9 = inlined_call_operand.vmem [shape: f32[1,256], index: 9, kind: input, shape index: {}]   ;;  %s7789_s10 = inlined_call_operand.hbm [shape: bf16[128,128], index: 10, kind: input, shape index: {}]   ;;  %s7790_s11 = inlined_call_operand.vmem [shape: f32[1,128], index: 11, kind: input, shape index: {}]   ;;  %s7791_s12 = inlined_call_operand.hbm [shape: bf16[128,256], index: 12, kind: input, shape index: {}]   ;;  %s7792_s13 = inlined_call_operand.vmem [shape: f32[1,256], index: 13, kind: input, shape index: {}]   ;;  %s7793_s14 = inlined_call_operand.hbm [shape: bf16[256,128], index: 14, kind: input, shape index: {}]   ;;  %s7794_s15 = inlined_call_operand.vmem [shape: f32[1,128], index: 15, kind: input, shape index: {}]   ;;  %s7795_s16 = inlined_call_operand.vmem [shape: f32[1,128], index: 16, kind: input, shape index: {}]   ;;  %s7796_s17 = inlined_call_operand.vmem [shape: f32[1,128], index: 17, kind: input, shape index: {}]   ;;  %s7797_s18 = inlined_call_operand.vmem [shape: f32[1,128], index: 18, kind: input, shape index: {}]   ;;  %s7798_s19 = inlined_call_operand.vmem [shape: f32[1,128], index: 19, kind: input, shape index: {}]   ;;  %s7799_s20 = inlined_call_operand.vmem [shape: f32[1,128], index: 20, kind: input, shape index: {}]   ;;  %s7800_s21 = inlined_call_operand.vmem [shape: f32[1,128], index: 21, kind: input, shape index: {}]   ;;  %s7801_s22 = inlined_call_operand.hbm [shape: f32[2,8,128], index: 22, kind: output, shape index: {}]  }
   0x1   :  { %7817 = sst [smem:[#allocation24_spill]] %s7779_s0 }
   0x2   :  { %7818 = sst [smem:[#allocation25_spill]] %s7780_s1 }
   0x3   :  { %7819 = sst [smem:[#allocation26_spill]] %s7781_s2 }
   0x4   :  { %7820 = sst [smem:[#allocation27_spill]] %s7782_s3 }
   0x5   :  { %7821 = sst [smem:[#allocation28_spill]] %s7783_s4 }
   0x6   :  { %7822 = sst [smem:[#allocation29_spill]] %s7784_s5 }
   0x7   :  { %7823 = sst [smem:[#allocation30_spill]] %s7785_s6 }
   0x8   :  { %7824 = sst [smem:[#allocation31_spill]] %s7800_s21 }
   0x9   :  { %7825 = sst [smem:[#allocation32_spill]] %s7801_s22 }
   0xa   :  { %27 = vsyncpa [#allocation3], 0 }
   0xb   :  { %28 = vsyncpa [#allocation6], 0 }
   0xc   :  { %29 = vsyncpa [#allocation9], 0 }
   0xd   :  { %30 = vsyncpa [#allocation12], 0 }
   0xe   :  { %31 = vsyncpa [#allocation15], 0 }
   0xf   :  { %32 = vsyncpa [#allocation4], 0  ;;  %s6572_s3 = smov [#allocation5]   ;;  %s6573_s29 = smov [#allocation8]  }
  0x10   :  { %s50_s28 = sshll.u32 %s6572_s3, 4  ;;  %s76_s30 = sshll.u32 %s6573_s29, 4  ;;  %s51_s28 = int_to_ptr.vmem [resolvable:$true] %s50_s28  ;;  %s6710_s30 = int_to_ptr.vmem [resolvable:$true] %s76_s30 }
  0x11   :  { %s7826_s23 = sld [smem:[#allocation25_spill]] }
  0x17   :  { %s6340_s1 = scalar_lea.hbm %s7826_s23, 256 }
  0x18   :  { %p6341_p0 = scmp.ne.s32.totalorder %s7826_s23, %s6340_s1  ;;  %p6344_p1 = scmp.lt.u32.totalorder %s6340_s1, %s7826_s23 }
  0x1a   :  { %p6346_p2 = pnand %p6344_p1, %p6341_p0 }
  0x1c   :  { %6349 = shalt.err (!%p6346_p2)
}
  0x1d   :  { %s6350_s26 = scalar_lea.vmem %s51_s28, 256  ;;  %p6355_p4 = scmp.lt.s32.totalorder %s51_s28, %s51_s28 }
  0x1e   :  { %p6351_p3 = scmp.ne.s32.totalorder %s51_s28, %s6350_s26  ;;  %p6356_p5 = scmp.lt.s32.totalorder %s6350_s26, %s6350_s26 }
  0x20   :  { %p6357_p6 = por %p6356_p5, %p6355_p4 }
  0x22   :  { %p6358_p7 = pnand %p6357_p6, %p6351_p3 }
  0x24   :  { %6361 = shalt.err (!%p6358_p7)
}
  0x25   :  { %s7808_s2 = smov 128   ;;  %s7810_s27 = smov 8  }
  0x26   :  { %56 = dma.hbm_to_vmem [thread:$0]  %s7826_s23, 256, %s51_s28, [#allocation6], %s7808_s2, %s7808_s2, %s7810_s27  }
  0x27   :  { %s7827_s1 = sld [smem:[#allocation28_spill]] }
  0x2d   :  { %s6362_s5 = scalar_lea.hbm %s7827_s1, 1024 }
  0x2e   :  { %p6363_p8 = scmp.ne.s32.totalorder %s7827_s1, %s6362_s5  ;;  %p6366_p9 = scmp.lt.u32.totalorder %s6362_s5, %s7827_s1 }
  0x30   :  { %p6368_p10 = pnand %p6366_p9, %p6363_p8 }
  0x32   :  { %6371 = shalt.err (!%p6368_p10)
}
  0x33   :  { %s6372_s22 = scalar_lea.vmem %s6710_s30, 1024  ;;  %p6377_p12 = scmp.lt.s32.totalorder %s6710_s30, %s6710_s30 }
  0x34   :  { %p6373_p11 = scmp.ne.s32.totalorder %s6710_s30, %s6372_s22  ;;  %p6378_p13 = scmp.lt.s32.totalorder %s6372_s22, %s6372_s22 }
  0x36   :  { %p6379_p0 = por %p6378_p13, %p6377_p12 }
  0x38   :  { %p6380_p1 = pnand %p6379_p0, %p6373_p11 }
  0x3a   :  { %6383 = shalt.err (!%p6380_p1)
}
  0x3b   :  { %s7812_s28 = smov 64   ;;  %s7814_s23 = smov 4  }
  0x3c   :  { %82 = dma.hbm_to_vmem [thread:$0]  %s7827_s1, 1024, %s6710_s30, [#allocation9], %s7812_s28, %s7812_s28, %s7814_s23  }
  0x3d   :  { %s6578_s4 = smov [#allocation11]   ;;  %s6579_s5 = smov [#allocation14]  }
  0x3e   :  { %s104_s0 = sshll.u32 %s6578_s4, 4  ;;  %s132_s24 = sshll.u32 %s6579_s5, 4  ;;  %s105_s0 = int_to_ptr.vmem [resolvable:$true] %s104_s0  ;;  %s6747_s24 = int_to_ptr.vmem [resolvable:$true] %s132_s24 }
  0x3f   :  { %s6384_s25 = scalar_lea.hbm %s7787_s8, 2048 }
  0x40   :  { %p6385_p2 = scmp.ne.s32.totalorder %s7787_s8, %s6384_s25  ;;  %p6388_p3 = scmp.lt.u32.totalorder %s6384_s25, %s7787_s8 }
  0x42   :  { %p6390_p4 = pnand %p6388_p3, %p6385_p2 }
  0x44   :  { %6393 = shalt.err (!%p6390_p4)
}
  0x45   :  { %s6394_s30 = scalar_lea.vmem %s105_s0, 2048  ;;  %p6399_p6 = scmp.lt.s32.totalorder %s105_s0, %s105_s0 }
  0x46   :  { %p6395_p5 = scmp.ne.s32.totalorder %s105_s0, %s6394_s30  ;;  %p6400_p7 = scmp.lt.s32.totalorder %s6394_s30, %s6394_s30 }
  0x48   :  { %p6401_p8 = por %p6400_p7, %p6399_p6 }
  0x4a   :  { %p6402_p9 = pnand %p6401_p8, %p6395_p5 }
  0x4c   :  { %6405 = shalt.err (!%p6402_p9)
}
  0x4d   :  { %s7828_s1 = smov 8   ;;  %s7829_s3 = smov 128  }
  0x4e   :  { %110 = dma.hbm_to_vmem [thread:$0]  %s7787_s8, 2048, %s105_s0, [#allocation12], %s7829_s3, %s7829_s3, %s7828_s1  }
  0x4f   :  { %s6406_s21 = scalar_lea.hbm %s7791_s12, 2048 }
  0x50   :  { %p6407_p10 = scmp.ne.s32.totalorder %s7791_s12, %s6406_s21  ;;  %p6410_p11 = scmp.lt.u32.totalorder %s6406_s21, %s7791_s12 }
  0x52   :  { %p6412_p12 = pnand %p6410_p11, %p6407_p10 }
  0x54   :  { %6415 = shalt.err (!%p6412_p12)
}
  0x55   :  { %s6416_s26 = scalar_lea.vmem %s6747_s24, 2048  ;;  %p6421_p0 = scmp.lt.s32.totalorder %s6747_s24, %s6747_s24 }
  0x56   :  { %p6417_p13 = scmp.ne.s32.totalorder %s6747_s24, %s6416_s26  ;;  %p6422_p1 = scmp.lt.s32.totalorder %s6416_s26, %s6416_s26 }
  0x58   :  { %p6423_p2 = por %p6422_p1, %p6421_p0 }
  0x5a   :  { %p6424_p3 = pnand %p6423_p2, %p6417_p13 }
  0x5c   :  { %6427 = shalt.err (!%p6424_p3)
}
  0x5d   :  { %138 = dma.hbm_to_vmem [thread:$0]  %s7791_s12, 2048, %s6747_s24, [#allocation15], %s7829_s3, %s7829_s3, %s7828_s1  }
  0x5e   :  { %s6580_s30 = smov [#allocation2]   ;;  %s6581_s4 = smov [#allocation7]  }
  0x5f   :  { %s38_s29 = sshll.u32 %s6580_s30, 4  ;;  %s62_s2 = sshll.u32 %s6581_s4, 4  ;;  %s39_s29 = int_to_ptr.vmem [resolvable:$true] %s38_s29  ;;  %s6784_s2 = int_to_ptr.vmem [resolvable:$true] %s62_s2 }
  0x60   :  { %s7830_s27 = sld [smem:[#allocation24_spill]] }
  0x66   :  { %s6428_s22 = scalar_lea.hbm %s7830_s27, 256 }
  0x67   :  { %p6429_p4 = scmp.ne.s32.totalorder %s7830_s27, %s6428_s22  ;;  %p6432_p5 = scmp.lt.u32.totalorder %s6428_s22, %s7830_s27 }
  0x69   :  { %p6434_p6 = pnand %p6432_p5, %p6429_p4 }
  0x6b   :  { %6437 = shalt.err (!%p6434_p6)
}
  0x6c   :  { %s6438_s12 = scalar_lea.vmem %s39_s29, 256  ;;  %p6443_p8 = scmp.lt.s32.totalorder %s39_s29, %s39_s29 }
  0x6d   :  { %p6439_p7 = scmp.ne.s32.totalorder %s39_s29, %s6438_s12  ;;  %p6444_p9 = scmp.lt.s32.totalorder %s6438_s12, %s6438_s12 }
  0x6f   :  { %p6445_p10 = por %p6444_p9, %p6443_p8 }
  0x71   :  { %p6446_p11 = pnand %p6445_p10, %p6439_p7 }
  0x73   :  { %6449 = shalt.err (!%p6446_p11)
}
  0x74   :  { %44 = dma.hbm_to_vmem [thread:$0]  %s7830_s27, 256, %s39_s29, [#allocation3], %s7829_s3, %s7829_s3, %s7828_s1  }
  0x75   :  { %s7831_s28 = sld [smem:[#allocation26_spill]] }
  0x7b   :  { %s6450_s4 = scalar_lea.hbm %s7831_s28, 3072 }
  0x7c   :  { %p6451_p12 = scmp.ne.s32.totalorder %s7831_s28, %s6450_s4  ;;  %p6454_p13 = scmp.lt.u32.totalorder %s6450_s4, %s7831_s28 }
  0x7e   :  { %p6456_p0 = pnand %p6454_p13, %p6451_p12 }
  0x80   :  { %6459 = shalt.err (!%p6456_p0)
}
  0x81   :  { %s6460_s25 = scalar_lea.vmem %s6784_s2, 3072  ;;  %p6465_p2 = scmp.lt.s32.totalorder %s6784_s2, %s6784_s2 }
  0x82   :  { %p6461_p1 = scmp.ne.s32.totalorder %s6784_s2, %s6460_s25  ;;  %p6466_p3 = scmp.lt.s32.totalorder %s6460_s25, %s6460_s25 }
  0x84   :  { %p6467_p4 = por %p6466_p3, %p6465_p2 }
  0x86   :  { %p6468_p5 = pnand %p6467_p4, %p6461_p1 }
  0x88   :  { %6471 = shalt.err (!%p6468_p5)
}
  0x89   :  { %s6582_s29 = smov 192   ;;  %s6583_s27 = smov 12  }
  0x8a   :  { %68 = dma.hbm_to_vmem [thread:$0]  %s7831_s28, 3072, %s6784_s2, [#allocation6], %s6582_s29, %s6582_s29, %s6583_s27  }
  0x8b   :  { %s6584_s24 = smov [#allocation10]   ;;  %s6585_s0 = smov [#allocation13]  }
  0x8c   :  { %s90_s8 = sshll.u32 %s6584_s24, 4  ;;  %s118_s30 = sshll.u32 %s6585_s0, 4  ;;  %s91_s8 = int_to_ptr.vmem [resolvable:$true] %s90_s8  ;;  %s6818_s30 = int_to_ptr.vmem [resolvable:$true] %s118_s30 }
  0x8d   :  { %s7832_s21 = sld [smem:[#allocation30_spill]] }
  0x93   :  { %s6472_s22 = scalar_lea.hbm %s7832_s21, 1024 }
  0x94   :  { %p6473_p6 = scmp.ne.s32.totalorder %s7832_s21, %s6472_s22  ;;  %p6476_p7 = scmp.lt.u32.totalorder %s6472_s22, %s7832_s21 }
  0x96   :  { %p6478_p8 = pnand %p6476_p7, %p6473_p6 }
  0x98   :  { %6481 = shalt.err (!%p6478_p8)
}
  0x99   :  { %s6482_s2 = scalar_lea.vmem %s91_s8, 1024  ;;  %p6487_p10 = scmp.lt.s32.totalorder %s91_s8, %s91_s8 }
  0x9a   :  { %p6483_p9 = scmp.ne.s32.totalorder %s91_s8, %s6482_s2  ;;  %p6488_p11 = scmp.lt.s32.totalorder %s6482_s2, %s6482_s2 }
  0x9c   :  { %p6489_p12 = por %p6488_p11, %p6487_p10 }
  0x9e   :  { %p6490_p13 = pnand %p6489_p12, %p6483_p9 }
  0xa0   :  { %6493 = shalt.err (!%p6490_p13)
}
  0xa1   :  { %s7833_s28 = smov 4   ;;  %s7834_s29 = smov 64  }
  0xa2   :  { %96 = dma.hbm_to_vmem [thread:$0]  %s7832_s21, 1024, %s91_s8, [#allocation9], %s7834_s29, %s7834_s29, %s7833_s28  }
  0xa3   :  { %s6494_s23 = scalar_lea.hbm %s7789_s10, 1024 }
  0xa4   :  { %p6495_p0 = scmp.ne.s32.totalorder %s7789_s10, %s6494_s23  ;;  %p6498_p1 = scmp.lt.u32.totalorder %s6494_s23, %s7789_s10 }
  0xa6   :  { %p6500_p2 = pnand %p6498_p1, %p6495_p0 }
  0xa8   :  { %6503 = shalt.err (!%p6500_p2)
}
  0xa9   :  { %s6504_s22 = scalar_lea.vmem %s6818_s30, 1024  ;;  %p6509_p4 = scmp.lt.s32.totalorder %s6818_s30, %s6818_s30 }
  0xaa   :  { %p6505_p3 = scmp.ne.s32.totalorder %s6818_s30, %s6504_s22  ;;  %p6510_p5 = scmp.lt.s32.totalorder %s6504_s22, %s6504_s22 }
  0xac   :  { %p6511_p6 = por %p6510_p5, %p6509_p4 }
  0xae   :  { %p6512_p7 = pnand %p6511_p6, %p6505_p3 }
  0xb0   :  { %6515 = shalt.err (!%p6512_p7)
}
  0xb1   :  { %124 = dma.hbm_to_vmem [thread:$0]  %s7789_s10, 1024, %s6818_s30, [#allocation12], %s7834_s29, %s7834_s29, %s7833_s28  }
  0xb2   :  { %s6586_s6 = smov [#allocation16]   ;;  %s6516_s26 = scalar_lea.hbm %s7793_s14, 2048 }
  0xb3   :  { %s146_s25 = sshll.u32 %s6586_s6, 4  ;;  %p6517_p8 = scmp.ne.s32.totalorder %s7793_s14, %s6516_s26  ;;  %s147_s25 = int_to_ptr.vmem [resolvable:$true] %s146_s25 }
  0xb4   :  { %p6520_p9 = scmp.lt.u32.totalorder %s6516_s26, %s7793_s14 }
  0xb6   :  { %p6522_p10 = pnand %p6520_p9, %p6517_p8 }
  0xb8   :  { %6525 = shalt.err (!%p6522_p10)
}
  0xb9   :  { %s6526_s0 = scalar_lea.vmem %s147_s25, 2048  ;;  %p6531_p12 = scmp.lt.s32.totalorder %s147_s25, %s147_s25 }
  0xba   :  { %p6527_p11 = scmp.ne.s32.totalorder %s147_s25, %s6526_s0  ;;  %p6532_p13 = scmp.lt.s32.totalorder %s6526_s0, %s6526_s0 }
  0xbc   :  { %p6533_p0 = por %p6532_p13, %p6531_p12 }
  0xbe   :  { %p6534_p1 = pnand %p6533_p0, %p6527_p11 }
  0xc0   :  { %6537 = shalt.err (!%p6534_p1)
}
  0xc1   :  { %152 = dma.hbm_to_vmem [thread:$0]  %s7793_s14, 2048, %s147_s25, [#allocation15], %s7834_s29, %s7834_s29, %s7833_s28  }
  0xc2   :  { %6560 = dma.done.wait [#allocation3], 256  }
  0xc3   :  { %6561 = vsyncadd [#allocation3], 4294967040 }
  0xc4   :  { %6562 = dma.done.wait [#allocation6], 3328  }
  0xc5   :  { %6563 = vsyncadd [#allocation6], 4294963968 }
  0xc6   :  { %6564 = dma.done.wait [#allocation9], 2048  }
  0xc7   :  { %6565 = vsyncadd [#allocation9], 4294965248 }
  0xc8   :  { %6566 = dma.done.wait [#allocation12], 3072  }
  0xc9   :  { %6567 = vsyncadd [#allocation12], 4294964224 }
  0xca   :  { %6568 = dma.done.wait [#allocation15], 4096  }
  0xcb   :  { %6569 = vsyncadd [#allocation15], 4294963200  ;;  %v6587_v0 = vmov 0   ;;  %v6142_v1 = vld [vmem:[#allocation7 + $0x4] ss:$12 sps:$4 sm:$0xff]   ;;  %v196_v18 = vld [vmem:[#allocation2 + $0x8] sm:$0xff]  ;;  %v234_v27 = vlaneseq }
  0xcc   :  { %409 = vmatprep.mubr.bf16.mxu0 %v6587_v0  ;;  %v6144_v2 = vld [vmem:[#allocation7] ss:$12 sps:$4 sm:$0xff]   ;;  %377 = vmatprep.subr.bf16.mxu0 %v6142_v1  ;;  %v6145_v3 = vld [vmem:[#allocation7 + $0x1c] ss:$12 sps:$4 sm:$0xff]   ;;  %v6147_v4 = vld [vmem:[#allocation7 + $0x18] ss:$12 sps:$4 sm:$0xff]  }
  0xcd   :  { %378 = vmatpush1.bf16.msra.mxu0 %v6144_v2  ;;  %v6148_v5 = vld [vmem:[#allocation7 + $0x34] ss:$12 sps:$4 sm:$0xff]   ;;  %v6150_v6 = vld [vmem:[#allocation7 + $0x30] ss:$12 sps:$4 sm:$0xff]   ;;  %v6151_v7 = vld [vmem:[#allocation7 + $0x4c] ss:$12 sps:$4 sm:$0xff]  }
  0xce   :  { %379 = vmatprep.subr.bf16.mxu0 %v6145_v3  ;;  %v6153_v8 = vld [vmem:[#allocation7 + $0x48] ss:$12 sps:$4 sm:$0xff]   ;;  %v6154_v9 = vld [vmem:[#allocation7 + $0x64] ss:$12 sps:$4 sm:$0xff]   ;;  %v6156_v10 = vld [vmem:[#allocation7 + $0x60] ss:$12 sps:$4 sm:$0xff]  }
  0xcf   :  { %v6157_v11 = vld [vmem:[#allocation7 + $0x7c] ss:$12 sps:$4 sm:$0xff]   ;;  %v6159_v12 = vld [vmem:[#allocation7 + $0x78] ss:$12 sps:$4 sm:$0xff]   ;;  %v6160_v13 = vld [vmem:[#allocation7 + $0x94] ss:$12 sps:$4 sm:$0xff]  }
  0xd0   :  { %v6162_v14 = vld [vmem:[#allocation7 + $0x90] ss:$12 sps:$4 sm:$0xff]   ;;  %v6163_v15 = vld [vmem:[#allocation7 + $0xac] ss:$12 sps:$4 sm:$0xff]   ;;  %v6165_v16 = vld [vmem:[#allocation7 + $0xa8] ss:$12 sps:$4 sm:$0xff]  }
  0xd1   :  { %380 = vmatpush1.bf16.msra.mxu0 %v6147_v4  ;;  %v195_v17 = vld [vmem:[#allocation2] sm:$0xff]  ;;  %v6166_v20 = vld [vmem:[#allocation7 + $0x8] ss:$12 sps:$4 sm:$0xff]   ;;  %v6588_v21 = vmov 0.0   ;;  %v6169_v24 = vld [vmem:[#allocation7 + $0x50] ss:$12 sps:$4 sm:$0xff]  }
  0xd2   :  { %381 = vmatprep.subr.bf16.mxu0 %v6148_v5  ;;  %v199_v19 = vpack.c.bf16 %v196_v18, %v195_v17  ;;  %5817 = vmatprep.subr.bf16.mxu1 %v6588_v21  ;;  %v6167_v22 = vld [vmem:[#allocation7 + $0x20] ss:$12 sps:$4 sm:$0xff]   ;;  %v6168_v23 = vld [vmem:[#allocation7 + $0x38] ss:$12 sps:$4 sm:$0xff]   ;;  %v6170_v25 = vld [vmem:[#allocation7 + $0x68] ss:$12 sps:$4 sm:$0xff]  }
  0xd3   :  { %5818 = vmatpush3.bf16.msra.mxu1 %v6166_v20  ;;  %v6171_v26 = vld [vmem:[#allocation7 + $0x80] ss:$12 sps:$4 sm:$0xff]   ;;  %v6879_v28 = vshrl.u32 %v234_v27, 7  ;;  %v6172_v29 = vld [vmem:[#allocation7 + $0x98] ss:$12 sps:$4 sm:$0xff]   ;;  %s7835_s4 = sld [smem:[#allocation27_spill]] }
  0xd4   :  { %5819 = vmatprep.subr.bf16.mxu1 %v6588_v21  ;;  %v6173_v32 = vld [vmem:[#allocation7 + $0xb0] ss:$12 sps:$4 sm:$0xff]   ;;  %vm6589_vm0 = vmmov 0   ;;  %s6590_s5 = smov 32   ;;  %s6591_s22 = smov 96   ;;  %vm1361_vm1 = vcmask 261120  }
  0xd5   :  { %382 = vmatpush1.bf16.msra.mxu0 %v6150_v6  ;;  %v6882_v30 = vsub.s32 1, %v6879_v28  ;;  %v6891_v33 = vsub.s32 0, %v6879_v28  ;;  %5833 = vmatprep.mubr.msk.bf16.mxu1 %vm6589_vm0, %v6588_v21  ;;  %v6592_v44 = vmov 1983009808   ;;  %v6593_v46 = vmov 1934713408  }
  0xd6   :  { %383 = vmatprep.subr.bf16.mxu0 %v6151_v7  ;;  %v484_v45 = vunpack.c.l.s4 %v6592_v44  ;;  %v516_v47 = vunpack.c.l.s4 %v6593_v46  ;;  %vm1738_vm2 = vcmask 64512   ;;  %vm1838_vm3 = vcmask 1043456   ;;  %s7836_s6 = sld [smem:[#allocation29_spill]]  ;;  %s7837_s28 = sld [smem:[#allocation31_spill]] }
  0xd7   :  { %5820 = vmatpush3.bf16.msra.mxu1 %v6167_v22  ;;  %vm2502_vm4 = vcmask 523264   ;;  %vm2505_vm5 = vcmask 785408  }
  0xd8   :  { %5821 = vmatprep.subr.bf16.mxu1 %v6588_v21  ;;  %v485_v48 = vunpack.c.0.s8 %v484_v45  ;;  %v517_v51 = vunpack.c.0.s8 %v516_v47 }
  0xd9   :  { %384 = vmatpush1.bf16.msra.mxu0 %v6153_v8  ;;  %v6888_v31 = vld [vmem:[%s7835_s4] sm:$0x7]  ;;  %s6594_s4 = smov [#allocation17]  }
  0xda   :  { %385 = vmatprep.subr.bf16.mxu0 %v6154_v9  ;;  %v241_v34 = vrot.slane %v6888_v31, %v6882_v30  ;;  %v237_v37 = vrot.slane %v6888_v31, %v6891_v33  ;;  %v6927_v52 = vsub.s32 %v485_v48, %v6879_v28  ;;  %v6930_v59 = vsub.s32 %v517_v51, %v6879_v28 }
  0xdb   :  { %5822 = vmatpush3.bf16.msra.mxu1 %v6168_v23 }
  0xdc   :  { %5823 = vmatprep.subr.bf16.mxu1 %v6588_v21 }
  0xdd   :  { %386 = vmatpush1.bf16.msra.mxu0 %v6156_v10 }
  0xde   :  { %387 = vmatprep.subr.bf16.mxu0 %v6157_v11 }
  0xdf   :  { %5824 = vmatpush3.bf16.msra.mxu1 %v6169_v24 }
  0xe0   :  { %5825 = vmatprep.subr.bf16.mxu1 %v6588_v21 }
  0xe1   :  { %388 = vmatpush1.bf16.msra.mxu0 %v6159_v12 }
  0xe2   :  { %389 = vmatprep.subr.bf16.mxu0 %v6160_v13 }
  0xe3   :  { %5826 = vmatpush3.bf16.msra.mxu1 %v6170_v25 }
  0xe4   :  { %5827 = vmatprep.subr.bf16.mxu1 %v6588_v21 }
  0xe5   :  { %390 = vmatpush1.bf16.msra.mxu0 %v6162_v14 }
  0xe6   :  { %391 = vmatprep.subr.bf16.mxu0 %v6163_v15 }
  0xe7   :  { %5828 = vmatpush3.bf16.msra.mxu1 %v6171_v26 }
  0xe8   :  { %5829 = vmatprep.subr.bf16.mxu1 %v6588_v21 }
  0xe9   :  { %392 = vmatpush1.bf16.msra.mxu0 %v6165_v16 }
  0xea   :  { %5861 = vmatprep.subr.bf16.mxu0 %v6588_v21 }
  0xeb   :  { %5830 = vmatpush3.bf16.msra.mxu1 %v6172_v29 }
  0xec   :  { %410 = vmatmul.mubr.bf16.vlgmr.msra.gmra.mrb[0].mxu0 %v199_v19  ;;  %5831 = vmatprep.subr.bf16.mxu1 %v6588_v21 }
  0xed   :  { %5863 = vmatprep.mubr.msk.bf16.mxu0 %vm6589_vm0, %v6588_v21 }
  0xef   :  { %5832 = vmatpush3.bf16.msra.mxu1 %v6173_v32 }
  0xf0   :  { %5837 = vmatprep.subr.bf16.mxu1 %v6588_v21 }
  0xf2   :  { %5834 = vmatmul.mubr.bf16.vlgmr.msra.gmra.mrb[0].mxu1 %v199_v19 }
  0xf3   :  { %5839 = vmatprep.mubr.msk.bf16.mxu1 %vm6589_vm0, %v6588_v21 }
 0x1bf   :  { %v411_v35 = vpop.f32.mrb[0].mxu0 }
 0x1c0   :  { %v413_v36 = vpop.f32.mrb[1].mxu0  ;;  %v412_v41 = vadd.f32 %v411_v35, %v237_v37 }
 0x1c1   :  { %v414_v38 = vadd.f32 %v413_v36, %v241_v34  ;;  %v415_v39 = vpop.f32.mrb[2].mxu0 }
 0x1c2   :  { %v417_v40 = vpop.f32.mrb[3].mxu0  ;;  %v6916_v43 = vadd.f32 %v415_v39, %v237_v37 }
 0x1c3   :  { %775 = vrot.lane.b32.xlu1 %v414_v38, %s6590_s5  ;;  %763 = vrot.lane.b32.xlu0 %v414_v38, %s6591_s22  ;;  %v6910_v42 = vadd.f32 %v417_v40, %v241_v34 }
 0x1c7   :  { %769 = vrot.lane.b32.xlu0 %v414_v38, %s7834_s29  ;;  %463 = vrot.lane.b32.xlu1 %v412_v41, %s6591_s22 }
 0x1cb   :  { %469 = vrot.lane.b32.xlu0 %v412_v41, %s7834_s29  ;;  %475 = vrot.lane.b32.xlu1 %v412_v41, %s6590_s5 }
 0x1cf   :  { %765 = vrot.lane.b32.xlu0 %v6910_v42, %s6591_s22  ;;  %771 = vrot.lane.b32.xlu1 %v6910_v42, %s7834_s29 }
 0x1d3   :  { %777 = vrot.lane.b32.xlu0 %v6910_v42, %s6590_s5  ;;  %465 = vrot.lane.b32.xlu1 %v6916_v43, %s6591_s22 }
 0x1d7   :  { %471 = vrot.lane.b32.xlu0 %v6916_v43, %s7834_s29  ;;  %477 = vrot.lane.b32.xlu1 %v6916_v43, %s6590_s5 }
 0x235   :  { %v776_v49 = vpop.permute.xlu1 %775  ;;  %v764_v50 = vpop.permute.xlu0 %763 }
 0x236   :  { %v797_v53 = vcombine.low %v764_v50, %v776_v49  ;;  %v798_v54 = vcombine.high %v764_v50, %v776_v49 }
 0x238   :  { %v805_v60 = vrot.slane %v797_v53, %v6927_v52  ;;  %v812_v61 = vrot.slane %v798_v54, %v6927_v52 }
 0x239   :  { %v770_v55 = vpop.permute.xlu0 %769  ;;  %v464_v56 = vpop.permute.xlu1 %463 }
 0x23a   :  { %v781_v57 = vcombine.low %v414_v38, %v770_v55  ;;  %v782_v58 = vcombine.high %v414_v38, %v770_v55 }
 0x23c   :  { %v789_v62 = vrot.slane %v781_v57, %v6927_v52  ;;  %v796_v63 = vrot.slane %v782_v58, %v6927_v52 }
 0x23d   :  { %v470_v1 = vpop.permute.xlu0 %469  ;;  %v476_v2 = vpop.permute.xlu1 %475 }
 0x23e   :  { %v813_v3 = vcombine.low %v789_v62, %v805_v60  ;;  %v814_v4 = vcombine.high %v789_v62, %v805_v60  ;;  %v829_v5 = vcombine.low %v796_v63, %v812_v61  ;;  %v830_v6 = vcombine.high %v796_v63, %v812_v61 }
 0x23f   :  { %v481_v7 = vcombine.low %v412_v41, %v470_v1  ;;  %v482_v8 = vcombine.high %v412_v41, %v470_v1  ;;  %v497_v9 = vcombine.low %v464_v56, %v476_v2  ;;  %v498_v10 = vcombine.high %v464_v56, %v476_v2 }
 0x240   :  { %v821_v11 = vrot.slane %v813_v3, %v6930_v59  ;;  %v828_v12 = vrot.slane %v814_v4, %v6930_v59  ;;  %v837_v13 = vrot.slane %v829_v5, %v6930_v59  ;;  %v844_v14 = vrot.slane %v830_v6, %v6930_v59 }
 0x241   :  { %v489_v15 = vrot.slane %v481_v7, %v6927_v52  ;;  %v496_v16 = vrot.slane %v482_v8, %v6927_v52  ;;  %v505_v17 = vrot.slane %v497_v9, %v6927_v52  ;;  %v512_v18 = vrot.slane %v498_v10, %v6927_v52  ;;  %v766_v19 = vpop.permute.xlu0 %765  ;;  %v772_v20 = vpop.permute.xlu1 %771 }
 0x242   :  { %v917_v26 = vcombine.low %v821_v11, %v828_v12  ;;  %v5553_v27 = vcombine.high %v821_v11, %v828_v12  ;;  %v933_v29 = vcombine.low %v837_v13, %v844_v14  ;;  %v849_v39 = vcombine.low %v6910_v42, %v772_v20 }
 0x243   :  { %v513_v22 = vcombine.low %v489_v15, %v505_v17  ;;  %v514_v23 = vcombine.high %v489_v15, %v505_v17  ;;  %v529_v24 = vcombine.low %v496_v16, %v512_v18  ;;  %v530_v25 = vcombine.high %v496_v16, %v512_v18 }
 0x244   :  { %v850_v40 = vcombine.high %v6910_v42, %v772_v20  ;;  %v5554_v45 = vcombine.high %v837_v13, %v844_v14  ;;  %v857_v49 = vrot.slane %v849_v39, %v6927_v52  ;;  %v6955_v54 = vrot.slane %v917_v26, %v6927_v52 }
 0x245   :  { %v521_v32 = vrot.slane %v513_v22, %v6930_v59  ;;  %v528_v34 = vrot.slane %v514_v23, %v6930_v59  ;;  %v537_v35 = vrot.slane %v529_v24, %v6930_v59  ;;  %v544_v36 = vrot.slane %v530_v25, %v6930_v59  ;;  %v778_v37 = vpop.permute.xlu0 %777  ;;  %v466_v38 = vpop.permute.xlu1 %465 }
 0x246   :  { %v865_v41 = vcombine.low %v766_v19, %v778_v37  ;;  %v866_v44 = vcombine.high %v766_v19, %v778_v37  ;;  %v864_v50 = vrot.slane %v850_v40, %v6927_v52  ;;  %v6958_v55 = vrot.slane %v5553_v27, %v6927_v52 }
 0x247   :  { %v617_v46 = vcombine.low %v521_v32, %v528_v34  ;;  %v5549_v47 = vcombine.high %v521_v32, %v528_v34  ;;  %v633_v48 = vcombine.low %v537_v35, %v544_v36  ;;  %v6961_v42 = vrot.slane %v933_v29, %v6927_v52 }
 0x248   :  { %v873_v51 = vrot.slane %v865_v41, %v6927_v52  ;;  %v880_v53 = vrot.slane %v866_v44, %v6927_v52  ;;  %v5550_v56 = vcombine.high %v537_v35, %v544_v36  ;;  %v6964_v1 = vrot.slane %v5554_v45, %v6927_v52 }
 0x249   :  { %v472_v62 = vpop.permute.xlu0 %471  ;;  %v478_v63 = vpop.permute.xlu1 %477  ;;  %v6967_v2 = vrot.slane %v617_v46, %v6927_v52  ;;  %v6970_v3 = vrot.slane %v5549_v47, %v6927_v52  ;;  %v6973_v4 = vrot.slane %v633_v48, %v6927_v52  ;;  %v949_v35 = vcombine.low %v6955_v54, %v6958_v55 }
 0x24a   :  { %v881_v57 = vcombine.low %v857_v49, %v873_v51  ;;  %v882_v58 = vcombine.high %v857_v49, %v873_v51  ;;  %v897_v60 = vcombine.low %v864_v50, %v880_v53  ;;  %v898_v61 = vcombine.high %v864_v50, %v880_v53 }
 0x24b   :  { %v549_v9 = vcombine.low %v6916_v43, %v472_v62  ;;  %v550_v10 = vcombine.high %v6916_v43, %v472_v62  ;;  %v565_v11 = vcombine.low %v466_v38, %v478_v63  ;;  %v566_v12 = vcombine.high %v466_v38, %v478_v63 }
 0x24c   :  { %v889_v5 = vrot.slane %v881_v57, %v6930_v59  ;;  %v896_v6 = vrot.slane %v882_v58, %v6930_v59  ;;  %v905_v7 = vrot.slane %v897_v60, %v6930_v59  ;;  %v912_v8 = vrot.slane %v898_v61, %v6930_v59 }
 0x24d   :  { %v6982_v13 = vrot.slane %v5550_v56, %v6927_v52  ;;  %v557_v17 = vrot.slane %v549_v9, %v6927_v52  ;;  %v564_v18 = vrot.slane %v550_v10, %v6927_v52  ;;  %v573_v19 = vrot.slane %v565_v11, %v6927_v52 }
 0x24e   :  { %v985_v14 = vcombine.low %v889_v5, %v896_v6  ;;  %v5555_v15 = vcombine.high %v889_v5, %v896_v6  ;;  %v1001_v16 = vcombine.low %v905_v7, %v912_v8  ;;  %v580_v20 = vrot.slane %v566_v12, %v6927_v52 }
 0x24f   :  { %v649_v22 = vcombine.low %v6967_v2, %v6970_v3  ;;  %v5556_v24 = vcombine.high %v905_v7, %v912_v8  ;;  %v581_v25 = vcombine.low %v557_v17, %v573_v19  ;;  %v582_v26 = vcombine.high %v557_v17, %v573_v19 }
 0x250   :  { %v992_v43 = vrot.slane %v985_v14, %v6927_v52  ;;  %v1000_v23 = vrot.slane %v5555_v15, %v6927_v52  ;;  %v597_v27 = vcombine.low %v564_v18, %v580_v20  ;;  %v598_v29 = vcombine.high %v564_v18, %v580_v20 }
 0x251   :  { %v665_v32 = vcombine.low %v6973_v4, %v6982_v13  ;;  %v1008_v34 = vrot.slane %v1001_v16, %v6927_v52  ;;  %v965_v36 = vcombine.low %v6961_v42, %v6964_v1  ;;  %v589_v37 = vrot.slane %v581_v25, %v6930_v59 }
 0x252   :  { %v596_v38 = vrot.slane %v582_v26, %v6930_v59  ;;  %v605_v39 = vrot.slane %v597_v27, %v6930_v59  ;;  %v612_v40 = vrot.slane %v598_v29, %v6930_v59  ;;  %v1016_v41 = vrot.slane %v5556_v24, %v6927_v52 }
 0x253   :  { %v957_v44 = vrot.slane %v949_v35, %v6930_v59  ;;  %v973_v45 = vrot.slane %v965_v36, %v6930_v59  ;;  %v1017_v46 = vcombine.low %v992_v43, %v1000_v23  ;;  %v657_v53 = vrot.slane %v649_v22, %v6930_v59 }
 0x254   :  { %v685_v47 = vcombine.low %v589_v37, %v596_v38  ;;  %v5551_v48 = vcombine.high %v589_v37, %v596_v38  ;;  %v701_v49 = vcombine.low %v605_v39, %v612_v40  ;;  %v5552_v50 = vcombine.high %v605_v39, %v612_v40 }
 0x255   :  { %v981_v51 = vcombine.low %v957_v44, %v973_v45  ;;  %v673_v62 = vrot.slane %v665_v32, %v6930_v59  ;;  %v7013_v63 = vrot.slane %v1017_v46, %v6930_v59  ;;  %v1033_v5 = vcombine.low %v1008_v34, %v1016_v41 }
 0x256   :  { %v692_v56 = vrot.slane %v685_v47, %v6927_v52  ;;  %v700_v57 = vrot.slane %v5551_v48, %v6927_v52  ;;  %v708_v58 = vrot.slane %v701_v49, %v6927_v52  ;;  %v716_v60 = vrot.slane %v5552_v50, %v6927_v52 }
 0x257   :  { %v1053_v61 = vpack.c.bf16 %v981_v51, %v981_v51  ;;  %v982_v8 = vcombine.high %v957_v44, %v973_v45  ;;  %v1041_v10 = vrot.slane %v1033_v5, %v6930_v59  ;;  %v950_v11 = vcombine.high %v6955_v54, %v6958_v55 }
 0x258   :  { %v717_v6 = vcombine.low %v692_v56, %v700_v57  ;;  %v733_v7 = vcombine.low %v708_v58, %v716_v60  ;;  %v966_v12 = vcombine.high %v6961_v42, %v6964_v1  ;;  %v681_v14 = vcombine.low %v657_v53, %v673_v62 }
 0x259   :  { %v1366_v9 = vsel %vm1361_vm1, %v1053_v61, 0  ;;  %v1049_v15 = vcombine.low %v7013_v63, %v1041_v10  ;;  %v1018_v16 = vcombine.high %v992_v43, %v1000_v23  ;;  %v1034_v17 = vcombine.high %v1008_v34, %v1016_v41 }
 0x25a   :  { %5838 = vmatpush3.bf16.xpose.msra.mxu1 %v1366_v9  ;;  %v1054_v18 = vpack.c.bf16 %v982_v8, %v982_v8  ;;  %v964_v19 = vrot.slane %v950_v11, %v6930_v59  ;;  %v7025_v20 = vrot.slane %v717_v6, %v6930_v59  ;;  %v741_v22 = vrot.slane %v733_v7, %v6930_v59  ;;  %v454_v11 = vpop.f32.mrb[0].mxu1 }
 0x25b   :  { %5843 = vmatprep.subr.bf16.mxu1 %v6588_v21  ;;  %v1057_v24 = vpack.c.bf16 %v1049_v15, %v1049_v15  ;;  %v980_v54 = vrot.slane %v966_v12, %v6930_v59  ;;  %v1032_v55 = vrot.slane %v1018_v16, %v6930_v59  ;;  %v1048_v42 = vrot.slane %v1034_v17, %v6930_v59 }
 0x25c   :  { %v753_v1 = vpack.c.bf16 %v681_v14, %v681_v14  ;;  %v718_v23 = vcombine.high %v692_v56, %v700_v57  ;;  %v734_v26 = vcombine.high %v708_v58, %v716_v60  ;;  %v1412_v27 = vsel %vm1361_vm1, %v1054_v18, 0  ;;  %v5835_v14 = vpop.f32.mrb[1].mxu1 }
 0x25d   :  { %v1550_v25 = vsel %vm1361_vm1, %v1057_v24, 0  ;;  %v1051_v43 = vcombine.low %v1032_v55, %v1048_v42  ;;  %v983_v29 = vcombine.low %v964_v19, %v980_v54  ;;  %v749_v32 = vcombine.low %v7025_v20, %v741_v22  ;;  %v457_v15 = vpop.f32.mrb[2].mxu1 }
 0x25e   :  { %5862 = vmatpush3.bf16.xpose.msra.mxu0 %v1550_v25  ;;  %v650_v34 = vcombine.high %v6967_v2, %v6970_v3  ;;  %v666_v35 = vcombine.high %v6973_v4, %v6982_v13  ;;  %v682_v36 = vcombine.high %v657_v53, %v673_v62  ;;  %v732_v40 = vrot.slane %v718_v23, %v6930_v59  ;;  %v5836_v17 = vpop.f32.mrb[3].mxu1 }
 0x25f   :  { %5873 = vmatprep.subr.bf16.mxu0 %v6588_v21  ;;  %v1059_v37 = vpack.c.bf16 %v1051_v43, %v1051_v43  ;;  %v1055_v38 = vpack.c.bf16 %v983_v29, %v983_v29  ;;  %v757_v39 = vpack.c.bf16 %v749_v32, %v749_v32  ;;  %v748_v41 = vrot.slane %v734_v26, %v6930_v59 }
 0x260   :  { %v754_v44 = vpack.c.bf16 %v682_v36, %v682_v36  ;;  %v664_v2 = vrot.slane %v650_v34, %v6930_v59  ;;  %v680_v3 = vrot.slane %v666_v35, %v6930_v59  ;;  %v984_v13 = vcombine.high %v964_v19, %v980_v54 }
 0x261   :  { %5840 = vmatmul.mubr.msk.bf16.vlgmr.msra.gmra.mrb[4].mxu1 %vm1361_vm1, %v753_v1  ;;  %v1642_v45 = vsel %vm1361_vm1, %v1059_v37, 0  ;;  %v1458_v4 = vsel %vm1361_vm1, %v1055_v38, 0  ;;  %v751_v46 = vcombine.low %v732_v40, %v748_v41  ;;  %v1050_v53 = vcombine.high %v7013_v63, %v1041_v10 }
 0x262   :  { %5844 = vmatpush3.bf16.xpose.msra.mxu1 %v1412_v27  ;;  %5845 = vmatprep.mubr.msk.bf16.mxu1 %vm6589_vm0, %v6588_v21  ;;  %v683_v47 = vcombine.low %v664_v2, %v680_v3  ;;  %v1056_v48 = vpack.c.bf16 %v984_v13, %v984_v13  ;;  %v684_v56 = vcombine.high %v664_v2, %v680_v3  ;;  %v244_v9 = vsub.s32 2, %v6879_v28 }
 0x263   :  { %5849 = vmatprep.subr.bf16.mxu1 %v6588_v21  ;;  %v759_v49 = vpack.c.bf16 %v751_v46, %v751_v46  ;;  %v1058_v57 = vpack.c.bf16 %v1050_v53, %v1050_v53  ;;  %v1052_v61 = vcombine.high %v1032_v55, %v1048_v42  ;;  %v750_v62 = vcombine.high %v7025_v20, %v741_v22 }
 0x264   :  { %v755_v50 = vpack.c.bf16 %v683_v47, %v683_v47  ;;  %v1504_v51 = vsel %vm1361_vm1, %v1056_v48, 0  ;;  %v756_v58 = vpack.c.bf16 %v684_v56, %v684_v56  ;;  %v752_v7 = vcombine.high %v732_v40, %v748_v41 }
 0x265   :  { %5864 = vmatmul.mubr.msk.bf16.vlgmr.msra.gmra.mrb[4].mxu0 %vm1361_vm1, %v757_v39  ;;  %v1596_v60 = vsel %vm1361_vm1, %v1058_v57, 0  ;;  %v1060_v63 = vpack.c.bf16 %v1052_v61, %v1052_v61  ;;  %v758_v5 = vpack.c.bf16 %v750_v62, %v750_v62  ;;  %v245_v10 = vrot.slane %v6888_v31, %v244_v9 }
 0x266   :  { %5874 = vmatpush3.bf16.xpose.msra.mxu0 %v1642_v45  ;;  %5875 = vmatprep.mubr.msk.bf16.mxu0 %vm6589_vm0, %v6588_v21  ;;  %v760_v8 = vpack.c.bf16 %v752_v7, %v752_v7 }
 0x267   :  { %5885 = vmatprep.subr.bf16.mxu0 %v6588_v21  ;;  %v1688_v6 = vsel %vm1361_vm1, %v1060_v63, 0  ;;  %v7082_v12 = vadd.f32 %v454_v11, %v245_v10  ;;  %v7086_v16 = vadd.f32 %v457_v15, %v245_v10 }
 0x269   :  { %5846 = vmatmul.mubr.msk.bf16.vlgmr.msra.gmra.mrb[8].mxu1 %vm1361_vm1, %v754_v44  ;;  %1063 = vrot.lane.b32.xlu1 %v7082_v12, %s6591_s22 }
 0x26a   :  { %5850 = vmatpush3.bf16.xpose.msra.mxu1 %v1458_v4  ;;  %5851 = vmatprep.mubr.msk.bf16.mxu1 %vm6589_vm0, %v6588_v21 }
 0x26b   :  { %5855 = vmatprep.subr.bf16.mxu1 %v6588_v21 }
 0x26d   :  { %5876 = vmatmul.mubr.msk.bf16.vlgmr.msra.gmra.mrb[8].mxu0 %vm1361_vm1, %v759_v49 }
 0x26e   :  { %5887 = vmatprep.mubr.msk.bf16.mxu0 %vm6589_vm0, %v6588_v21 }
 0x271   :  { %5852 = vmatmul.mubr.msk.bf16.vlgmr.msra.gmra.mrb[12].mxu1 %vm1361_vm1, %v755_v50 }
 0x272   :  { %5856 = vmatpush3.bf16.xpose.msra.mxu1 %v1504_v51  ;;  %5857 = vmatprep.mubr.msk.bf16.mxu1 %vm6589_vm0, %v6588_v21 }
 0x273   :  { %5867 = vmatprep.subr.bf16.mxu1 %v6588_v21 }
 0x279   :  { %5858 = vmatmul.mubr.msk.bf16.vlgmr.msra.gmra.mrb[16].mxu1 %vm1361_vm1, %v756_v58 }
 0x27a   :  { %5868 = vmatpush3.bf16.xpose.msra.mxu1 %v1596_v60  ;;  %5869 = vmatprep.mubr.msk.bf16.mxu1 %vm6589_vm0, %v6588_v21 }
 0x27b   :  { %5879 = vmatprep.subr.bf16.mxu1 %v6588_v21 }
 0x281   :  { %5870 = vmatmul.mubr.msk.bf16.vlgmr.msra.gmra.mrb[20].mxu1 %vm1361_vm1, %v758_v5 }
 0x282   :  { %5880 = vmatpush3.bf16.xpose.msra.mxu1 %v1688_v6  ;;  %5881 = vmatprep.mubr.msk.bf16.mxu1 %vm6589_vm0, %v6588_v21 }
 0x283   :  { %5891 = vmatprep.subr.bf16.mxu1 %v6588_v21 }
 0x289   :  { %5882 = vmatmul.mubr.msk.bf16.vlgmr.msra.gmra.mrb[24].mxu1 %vm1361_vm1, %v760_v8 }
 0x28a   :  { %5893 = vmatprep.mubr.msk.bf16.mxu1 %vm6589_vm0, %v6588_v21 }
 0x2db   :  { %v1064_v9 = vpop.permute.xlu1 %1063 }
 0x334   :  { %v1402_v18 = vpop.f32.mrb[4].mxu1 }
 0x335   :  { %v1730_v19 = vmul.f32 0.17677669, %v1402_v18  ;;  %v5841_v20 = vpop.f32.mrb[5].mxu1 }
 0x336   :  { %v1405_v22 = vpop.f32.mrb[6].mxu1 }
 0x337   :  { %v5842_v24 = vpop.f32.mrb[7].mxu1  ;;  %v1739_v28 = vsel %vm1738_vm2, %v1730_v19, -inf }
 0x338   :  { %1740 = vmax.xlane.f32.xlu0 %v1739_v28  ;;  %v1586_v31 = vpop.f32.mrb[4].mxu0 }
 0x339   :  { %v1734_v54 = vmul.f32 0.17677669, %v1586_v31  ;;  %v5865_v55 = vpop.f32.mrb[5].mxu0 }
 0x33a   :  { %v1589_v1 = vpop.f32.mrb[6].mxu0 }
 0x33b   :  { %v5866_v23 = vpop.f32.mrb[7].mxu0  ;;  %v1751_v26 = vsel %vm1738_vm2, %v1734_v54, -inf }
 0x33c   :  { %v1448_v42 = vpop.f32.mrb[8].mxu1  ;;  %1752 = vmax.xlane.f32.xlu1 %v1751_v26 }
 0x33d   :  { %v1731_v25 = vmul.f32 0.17677669, %v1448_v42  ;;  %v5847_v43 = vpop.f32.mrb[9].mxu1 }
 0x33e   :  { %v1451_v27 = vpop.f32.mrb[10].mxu1 }
 0x33f   :  { %v5848_v29 = vpop.f32.mrb[11].mxu1  ;;  %v1742_v32 = vsel %vm1738_vm2, %v1731_v25, -inf }
 0x340   :  { %1743 = vmax.xlane.f32.xlu1 %v1742_v32  ;;  %v1678_v34 = vpop.f32.mrb[8].mxu0 }
 0x341   :  { %v7091_v35 = vmul.f32 0.17677669, %v1678_v34  ;;  %v5877_v36 = vpop.f32.mrb[9].mxu0 }
 0x342   :  { %v1681_v38 = vpop.f32.mrb[10].mxu0 }
 0x343   :  { %v5878_v41 = vpop.f32.mrb[11].mxu0  ;;  %v1757_v44 = vsel %vm1738_vm2, %v7091_v35, -inf }
 0x344   :  { %v1494_v37 = vpop.f32.mrb[12].mxu1  ;;  %1758 = vmax.xlane.f32.xlu1 %v1757_v44 }
 0x345   :  { %v1732_v39 = vmul.f32 0.17677669, %v1494_v37  ;;  %v5853_v40 = vpop.f32.mrb[13].mxu1 }
 0x346   :  { %v1497_v45 = vpop.f32.mrb[14].mxu1 }
 0x347   :  { %v5854_v2 = vpop.f32.mrb[15].mxu1  ;;  %v1745_v3 = vsel %vm1738_vm2, %v1732_v39, -inf }
 0x348   :  { %1746 = vmax.xlane.f32.xlu0 %v1745_v3 }
 0x34c   :  { %v1540_v4 = vpop.f32.mrb[16].mxu1 }
 0x34d   :  { %v1733_v13 = vmul.f32 0.17677669, %v1540_v4  ;;  %v5859_v46 = vpop.f32.mrb[17].mxu1 }
 0x34e   :  { %v1543_v47 = vpop.f32.mrb[18].mxu1 }
 0x34f   :  { %v5860_v48 = vpop.f32.mrb[19].mxu1  ;;  %v1748_v49 = vsel %vm1738_vm2, %v1733_v13, -inf }
 0x350   :  { %1749 = vmax.xlane.f32.xlu0 %v1748_v49 }
 0x354   :  { %v1632_v50 = vpop.f32.mrb[20].mxu1 }
 0x355   :  { %v7097_v51 = vmul.f32 0.17677669, %v1632_v50  ;;  %v5871_v53 = vpop.f32.mrb[21].mxu1  ;;  %1075 = vrot.lane.b32.xlu1 %v7082_v12, %s6590_s5 }
 0x356   :  { %v1635_v56 = vpop.f32.mrb[22].mxu1 }
 0x357   :  { %v5872_v57 = vpop.f32.mrb[23].mxu1  ;;  %v1754_v58 = vsel %vm1738_vm2, %v7097_v51, -inf }
 0x358   :  { %1755 = vmax.xlane.f32.xlu0 %v1754_v58 }
 0x35c   :  { %v1724_v60 = vpop.f32.mrb[24].mxu1 }
 0x35d   :  { %v7103_v61 = vmul.f32 0.17677669, %v1724_v60  ;;  %v5883_v62 = vpop.f32.mrb[25].mxu1 }
 0x35e   :  { %v1727_v63 = vpop.f32.mrb[26].mxu1 }
 0x35f   :  { %v5884_v5 = vpop.f32.mrb[27].mxu1  ;;  %v1760_v6 = vsel %vm1738_vm2, %v7103_v61, -inf }
 0x360   :  { %1761 = vmax.xlane.f32.xlu0 %v1760_v6 }
 0x376   :  { %1069 = vrot.lane.b32.xlu0 %v7082_v12, %s7834_s29 }
 0x3c5   :  { %v1741_v7 = vpop.xlane.xlu0 %1740 }
 0x3c6   :  { %v1763_v8 = vsub.f32 %v1730_v19, %v1741_v7 }
 0x3c8   :  { %v1771_v10 = vmul.f32 1.442695, %v1763_v8 }
 0x3c9   :  { %v1753_v11 = vpop.xlane.xlu1 %1752 }
 0x3ca   :  { %6262 = vpow2.f32 %v1771_v10  ;;  %v1767_v14 = vsub.f32 %v1734_v54, %v1753_v11 }
 0x3cc   :  { %v1779_v15 = vmul.f32 1.442695, %v1767_v14 }
 0x3cd   :  { %v1744_v17 = vpop.xlane.xlu1 %1743 }
 0x3ce   :  { %6264 = vpow2.f32 %v1779_v15  ;;  %v1764_v18 = vsub.f32 %v1731_v25, %v1744_v17 }
 0x3d0   :  { %v1773_v20 = vmul.f32 1.442695, %v1764_v18 }
 0x3d1   :  { %v1759_v29 = vpop.xlane.xlu1 %1758 }
 0x3d2   :  { %6266 = vpow2.f32 %v1773_v20 }
 0x3d4   :  { %v7109_v22 = vpop.eup %6262 }
 0x3d5   :  { %v1747_v24 = vpop.xlane.xlu0 %1746  ;;  %v1787_v28 = vsel %vm1738_vm2, %v7109_v22, 0.0  ;;  %v1076_v36 = vpop.permute.xlu1 %1075 }
 0x3d6   :  { %v1765_v31 = vsub.f32 %v1732_v39, %v1747_v24  ;;  %1788 = vadd.xlane.f32.xlu1 %v1787_v28  ;;  %v1097_v39 = vcombine.low %v1064_v9, %v1076_v36  ;;  %v1098_v40 = vcombine.high %v1064_v9, %v1076_v36 }
 0x3d8   :  { %v1775_v19 = vmul.f32 1.442695, %v1765_v31  ;;  %v7113_v55 = vpop.eup %6264  ;;  %v1105_v2 = vrot.slane %v1097_v39, %v6927_v52  ;;  %v1112_v3 = vrot.slane %v1098_v40, %v6927_v52 }
 0x3d9   :  { %v1799_v54 = vsel %vm1738_vm2, %v7113_v55, 0.0 }
 0x3da   :  { %6268 = vpow2.f32 %v1775_v19  ;;  %1800 = vadd.xlane.f32.xlu0 %v1799_v54 }
 0x3dc   :  { %v7117_v1 = vpop.eup %6266 }
 0x3dd   :  { %v1750_v42 = vpop.xlane.xlu0 %1749  ;;  %v1790_v43 = vsel %vm1738_vm2, %v7117_v1, 0.0 }
 0x3de   :  { %v1766_v25 = vsub.f32 %v1733_v13, %v1750_v42  ;;  %1791 = vadd.xlane.f32.xlu0 %v1790_v43 }
 0x3e0   :  { %v1777_v23 = vmul.f32 1.442695, %v1766_v25 }
 0x3e2   :  { %6270 = vpow2.f32 %v1777_v23 }
 0x3e4   :  { %v7121_v26 = vpop.eup %6268 }
 0x3e5   :  { %v1793_v27 = vsel %vm1738_vm2, %v7121_v26, 0.0  ;;  %v1756_v32 = vpop.xlane.xlu0 %1755 }
 0x3e6   :  { %1794 = vadd.xlane.f32.xlu1 %v1793_v27  ;;  %v1768_v42 = vsub.f32 %v7097_v51, %v1756_v32  ;;  %v1769_v27 = vsub.f32 %v7091_v35, %v1759_v29 }
 0x3e8   :  { %v1781_v23 = vmul.f32 1.442695, %v1768_v42  ;;  %v1783_v36 = vmul.f32 1.442695, %v1769_v27 }
 0x3ea   :  { %6272 = vpow2.f32 %v1781_v23 }
 0x3eb   :  { %6274 = vpow2.f32 %v1783_v36 }
 0x3ec   :  { %v7125_v34 = vpop.eup %6270 }
 0x3ed   :  { %v7127_v37 = vpop.xlane.xlu0 %1761  ;;  %v1796_v38 = vsel %vm1738_vm2, %v7125_v34, 0.0 }
 0x3ee   :  { %1797 = vadd.xlane.f32.xlu0 %v1796_v38  ;;  %v1770_v35 = vsub.f32 %v7103_v61, %v7127_v37 }
 0x3f0   :  { %v1785_v29 = vmul.f32 1.442695, %v1770_v35 }
 0x3f1   :  { %v1070_v41 = vpop.permute.xlu0 %1069 }
 0x3f2   :  { %v1081_v44 = vcombine.low %v7082_v12, %v1070_v41  ;;  %v1082_v45 = vcombine.high %v7082_v12, %v1070_v41  ;;  %6276 = vpow2.f32 %v1785_v29 }
 0x3f4   :  { %v1089_v4 = vrot.slane %v1081_v44, %v6927_v52  ;;  %v1096_v13 = vrot.slane %v1082_v45, %v6927_v52  ;;  %v7159_v38 = vpop.eup %6272 }
 0x3f5   :  { %v1802_v51 = vsel %vm1738_vm2, %v7159_v38, 0.0  ;;  %v7163_v32 = vpop.eup %6274 }
 0x3f6   :  { %v1113_v46 = vcombine.low %v1089_v4, %v1105_v2  ;;  %v1114_v47 = vcombine.high %v1089_v4, %v1105_v2  ;;  %v1129_v48 = vcombine.low %v1096_v13, %v1112_v3  ;;  %v1130_v49 = vcombine.high %v1096_v13, %v1112_v3 }
 0x3f7   :  { %1071 = vrot.lane.b32.xlu1 %v7086_v16, %s7834_s29  ;;  %v1805_v39 = vsel %vm1738_vm2, %v7163_v32, 0.0 }
 0x3f8   :  { %v1121_v50 = vrot.slane %v1113_v46, %v6930_v59  ;;  %v1128_v53 = vrot.slane %v1114_v47, %v6930_v59  ;;  %v1137_v12 = vrot.slane %v1129_v48, %v6930_v59  ;;  %v1144_v56 = vrot.slane %v1130_v49, %v6930_v59 }
 0x3fa   :  { %v1217_v57 = vcombine.low %v1121_v50, %v1128_v53  ;;  %v5557_v58 = vcombine.high %v1121_v50, %v1128_v53  ;;  %v1233_v60 = vcombine.low %v1137_v12, %v1144_v56  ;;  %v5558_v62 = vcombine.high %v1137_v12, %v1144_v56 }
 0x3fc   :  { %v1224_v63 = vrot.slane %v1217_v57, %v6927_v52  ;;  %v1232_v5 = vrot.slane %v5557_v58, %v6927_v52  ;;  %v1240_v6 = vrot.slane %v1233_v60, %v6927_v52  ;;  %v1248_v7 = vrot.slane %v5558_v62, %v6927_v52  ;;  %v7171_v40 = vpop.eup %6276 }
 0x3fd   :  { %v1808_v41 = vsel %vm1738_vm2, %v7171_v40, 0.0 }
 0x3fe   :  { %v1249_v8 = vcombine.low %v1224_v63, %v1232_v5  ;;  %v1265_v9 = vcombine.low %v1240_v6, %v1248_v7  ;;  %v1250_v10 = vcombine.high %v1224_v63, %v1232_v5  ;;  %v1266_v11 = vcombine.high %v1240_v6, %v1248_v7 }
 0x400   :  { %v1257_v14 = vrot.slane %v1249_v8, %v6930_v59  ;;  %v1273_v15 = vrot.slane %v1265_v9, %v6930_v59  ;;  %v1264_v17 = vrot.slane %v1250_v10, %v6930_v59  ;;  %v1280_v18 = vrot.slane %v1266_v11, %v6930_v59 }
 0x402   :  { %v1281_v20 = vcombine.low %v1257_v14, %v1273_v15  ;;  %v1282_v24 = vcombine.high %v1257_v14, %v1273_v15  ;;  %v1283_v28 = vcombine.low %v1264_v17, %v1280_v18  ;;  %v1284_v31 = vcombine.high %v1264_v17, %v1280_v18 }
 0x404   :  { %1065 = vrot.lane.b32.xlu0 %v7086_v16, %s6591_s22  ;;  %v1353_v19 = vpack.c.bf16 %v1281_v20, %v1281_v20  ;;  %v1354_v54 = vpack.c.bf16 %v1282_v24, %v1282_v24  ;;  %v1355_v13 = vpack.c.bf16 %v1283_v28, %v1283_v28  ;;  %v1356_v49 = vpack.c.bf16 %v1284_v31, %v1284_v31 }
 0x406   :  { %v1840_v25 = vsel %vm1838_vm3, %v1353_v19, 0  ;;  %v1886_v43 = vsel %vm1838_vm3, %v1354_v54, 0  ;;  %v1932_v61 = vsel %vm1838_vm3, %v1355_v13, 0  ;;  %v1978_v53 = vsel %vm1838_vm3, %v1356_v49, 0 }
 0x407   :  { %5886 = vmatpush3.bf16.msra.mxu0 %v1840_v25  ;;  %5892 = vmatpush3.bf16.msra.mxu1 %v1886_v43 }
 0x408   :  { %5897 = vmatprep.subr.bf16.mxu0 %v6588_v21  ;;  %5903 = vmatprep.subr.bf16.mxu1 %v6588_v21 }
 0x41b   :  { %1803 = vadd.xlane.f32.xlu1 %v1802_v51 }
 0x423   :  { %1806 = vadd.xlane.f32.xlu0 %v1805_v39 }
 0x42c   :  { %1077 = vrot.lane.b32.xlu1 %v7086_v16, %s6590_s5 }
 0x450   :  { %1809 = vadd.xlane.f32.xlu1 %v1808_v41 }
 0x463   :  { %v1789_v44 = vpop.xlane.xlu1 %1788 }
 0x464   :  { %6278 = vrcp.f32 %v1789_v44 }
 0x467   :  { %v1801_v45 = vpop.xlane.xlu0 %1800 }
 0x46b   :  { %v1792_v2 = vpop.xlane.xlu0 %1791 }
 0x46c   :  { %6280 = vrcp.f32 %v1792_v2 }
 0x46e   :  { %v6279_v3 = vpop.eup %6278 }
 0x46f   :  { %v1819_v4 = vmul.f32 %v6279_v3, %v7109_v22 }
 0x471   :  { %v1827_v46 = vpack.c.bf16 %v1819_v4, %v1819_v4 }
 0x473   :  { %5888 = vmatmul.mubr.msk.bf16.vlgmr.msra.gmra.mrb[12].mxu0 %vm1738_vm2, %v1827_v46  ;;  %v1795_v37 = vpop.xlane.xlu1 %1794 }
 0x474   :  { %5898 = vmatpush3.bf16.msra.mxu0 %v1932_v61  ;;  %6282 = vrcp.f32 %v1795_v37  ;;  %5899 = vmatprep.mubr.msk.bf16.mxu0 %vm6589_vm0, %v6588_v21 }
 0x475   :  { %5909 = vmatprep.subr.bf16.mxu0 %v6588_v21 }
 0x476   :  { %v6281_v47 = vpop.eup %6280 }
 0x477   :  { %v1820_v48 = vmul.f32 %v6281_v47, %v7117_v1  ;;  %v1072_v62 = vpop.permute.xlu1 %1071 }
 0x478   :  { %v1150_v5 = vcombine.high %v7086_v16, %v1072_v62 }
 0x479   :  { %v1828_v22 = vpack.c.bf16 %v1820_v48, %v1820_v48 }
 0x47b   :  { %v1798_v50 = vpop.xlane.xlu0 %1797  ;;  %5894 = vmatmul.mubr.msk.bf16.vlgmr.msra.gmra.mrb[28].mxu1 %vm1738_vm2, %v1828_v22 }
 0x47c   :  { %6284 = vrcp.f32 %v1798_v50  ;;  %5904 = vmatpush3.bf16.msra.mxu1 %v1978_v53  ;;  %5905 = vmatprep.mubr.msk.bf16.mxu1 %vm6589_vm0, %v6588_v21 }
 0x47d   :  { %5915 = vmatprep.subr.bf16.mxu1 %v6588_v21  ;;  %6286 = vrcp.f32 %v1801_v45 }
 0x47e   :  { %v6283_v12 = vpop.eup %6282 }
 0x47f   :  { %v1821_v56 = vmul.f32 %v6283_v12, %v7121_v26  ;;  %v1149_v26 = vcombine.low %v7086_v16, %v1072_v62  ;;  %v1066_v6 = vpop.permute.xlu0 %1065 }
 0x481   :  { %v1829_v57 = vpack.c.bf16 %v1821_v56, %v1821_v56  ;;  %v1157_v10 = vrot.slane %v1149_v26, %v6927_v52 }
 0x483   :  { %5900 = vmatmul.mubr.msk.bf16.vlgmr.msra.gmra.mrb[16].mxu0 %vm1738_vm2, %v1829_v57 }
 0x484   :  { %5911 = vmatprep.mubr.msk.bf16.mxu0 %vm6589_vm0, %v6588_v21 }
 0x486   :  { %v6285_v1 = vpop.eup %6284 }
 0x487   :  { %v1822_v58 = vmul.f32 %v6285_v1, %v7125_v34  ;;  %v1164_v34 = vrot.slane %v1150_v5, %v6927_v52  ;;  %v6287_v44 = vpop.eup %6286 }
 0x488   :  { %v1823_v48 = vmul.f32 %v6287_v44, %v7113_v55 }
 0x489   :  { %v1830_v60 = vpack.c.bf16 %v1822_v58, %v1822_v58 }
 0x48a   :  { %v1831_v1 = vpack.c.bf16 %v1823_v48, %v1823_v48 }
 0x48b   :  { %5906 = vmatmul.mubr.msk.bf16.vlgmr.msra.gmra.mrb[32].mxu1 %vm1738_vm2, %v1830_v60 }
 0x48c   :  { %5917 = vmatprep.mubr.msk.bf16.mxu1 %vm6589_vm0, %v6588_v21 }
 0x4a8   :  { %v1804_v63 = vpop.xlane.xlu1 %1803 }
 0x4a9   :  { %6288 = vrcp.f32 %v1804_v63 }
 0x4ac   :  { %v1078_v7 = vpop.permute.xlu1 %1077 }
 0x4ad   :  { %v1165_v8 = vcombine.low %v1066_v6, %v1078_v7  ;;  %v1166_v9 = vcombine.high %v1066_v6, %v1078_v7 }
 0x4af   :  { %v1173_v11 = vrot.slane %v1165_v8, %v6927_v52  ;;  %v1180_v14 = vrot.slane %v1166_v9, %v6927_v52 }
 0x4b0   :  { %v1807_v51 = vpop.xlane.xlu0 %1806 }
 0x4b1   :  { %v1181_v15 = vcombine.low %v1157_v10, %v1173_v11  ;;  %v1182_v17 = vcombine.high %v1157_v10, %v1173_v11  ;;  %v1197_v18 = vcombine.low %v1164_v34, %v1180_v14  ;;  %v1198_v20 = vcombine.high %v1164_v34, %v1180_v14 }
 0x4b2   :  { %6290 = vrcp.f32 %v1807_v51 }
 0x4b3   :  { %v1189_v16 = vrot.slane %v1181_v15, %v6930_v59  ;;  %v1196_v24 = vrot.slane %v1182_v17, %v6930_v59  ;;  %v1205_v28 = vrot.slane %v1197_v18, %v6930_v59  ;;  %v1212_v31 = vrot.slane %v1198_v20, %v6930_v59  ;;  %v6289_v13 = vpop.eup %6288 }
 0x4b4   :  { %v1824_v49 = vmul.f32 %v6289_v13, %v7159_v38 }
 0x4b5   :  { %v1285_v19 = vcombine.low %v1189_v16, %v1196_v24  ;;  %v5559_v54 = vcombine.high %v1189_v16, %v1196_v24  ;;  %v1301_v42 = vcombine.low %v1205_v28, %v1212_v31  ;;  %v5560_v25 = vcombine.high %v1205_v28, %v1212_v31  ;;  %v6174_v28 = vld [vmem:[#allocation8] sm:$0xff]   ;;  %v6175_v31 = vld [vmem:[#allocation8 + $0x8] sm:$0xff]  }
 0x4b6   :  { %v1832_v58 = vpack.c.bf16 %v1824_v49, %v1824_v49  ;;  %v6178_v49 = vld [vmem:[#allocation8 + $0x20] sm:$0xff]  }
 0x4b7   :  { %v1292_v43 = vrot.slane %v1285_v19, %v6927_v52  ;;  %v1300_v23 = vrot.slane %v5559_v54, %v6927_v52  ;;  %v1308_v27 = vrot.slane %v1301_v42, %v6927_v52  ;;  %v1316_v36 = vrot.slane %v5560_v25, %v6927_v52 }
 0x4b9   :  { %v1317_v39 = vcombine.low %v1292_v43, %v1300_v23  ;;  %v1333_v35 = vcombine.low %v1308_v27, %v1316_v36  ;;  %v1318_v29 = vcombine.high %v1292_v43, %v1300_v23  ;;  %v1334_v41 = vcombine.high %v1308_v27, %v1316_v36  ;;  %v6176_v43 = vld [vmem:[#allocation8 + $0x10] sm:$0xff]  }
 0x4bb   :  { %v1325_v45 = vrot.slane %v1317_v39, %v6930_v59  ;;  %v1341_v2 = vrot.slane %v1333_v35, %v6930_v59  ;;  %v1332_v3 = vrot.slane %v1318_v29, %v6930_v59  ;;  %v1348_v4 = vrot.slane %v1334_v41, %v6930_v59 }
 0x4bc   :  { %v6291_v60 = vpop.eup %6290 }
 0x4bd   :  { %v1349_v46 = vcombine.low %v1325_v45, %v1341_v2  ;;  %v1350_v61 = vcombine.high %v1325_v45, %v1341_v2  ;;  %v1351_v37 = vcombine.low %v1332_v3, %v1348_v4  ;;  %v1352_v47 = vcombine.high %v1332_v3, %v1348_v4  ;;  %v6177_v2 = vld [vmem:[#allocation8 + $0x18] sm:$0xff]  }
 0x4be   :  { %v1825_v62 = vmul.f32 %v6291_v60, %v7163_v32  ;;  %v6179_v60 = vld [vmem:[#allocation8 + $0x28] sm:$0xff]  }
 0x4bf   :  { %v1357_v50 = vpack.c.bf16 %v1349_v46, %v1349_v46  ;;  %v1358_v22 = vpack.c.bf16 %v1350_v61, %v1350_v61  ;;  %v1359_v56 = vpack.c.bf16 %v1351_v37, %v1351_v37  ;;  %v1360_v57 = vpack.c.bf16 %v1352_v47, %v1352_v47 }
 0x4c0   :  { %v1833_v63 = vpack.c.bf16 %v1825_v62, %v1825_v62 }
 0x4c1   :  { %v2024_v53 = vsel %vm1838_vm3, %v1357_v50, 0  ;;  %v2070_v12 = vsel %vm1838_vm3, %v1358_v22, 0  ;;  %v2116_v55 = vsel %vm1838_vm3, %v1359_v56, 0  ;;  %v2162_v38 = vsel %vm1838_vm3, %v1360_v57, 0 }
 0x4c2   :  { %5910 = vmatpush3.bf16.msra.mxu0 %v2024_v53  ;;  %5916 = vmatpush3.bf16.msra.mxu1 %v2070_v12 }
 0x4c3   :  { %5921 = vmatprep.subr.bf16.mxu0 %v6588_v21  ;;  %5927 = vmatprep.subr.bf16.mxu1 %v6588_v21 }
 0x4c5   :  { %5912 = vmatmul.mubr.msk.bf16.vlgmr.msra.gmra.mrb[20].mxu0 %vm1738_vm2, %v1831_v1  ;;  %5918 = vmatmul.mubr.msk.bf16.vlgmr.msra.gmra.mrb[36].mxu1 %vm1738_vm2, %v1832_v58 }
 0x4c6   :  { %5922 = vmatpush3.bf16.msra.mxu0 %v2116_v55  ;;  %5928 = vmatpush3.bf16.msra.mxu1 %v2162_v38 }
 0x4c7   :  { %5923 = vmatprep.mubr.msk.bf16.mxu0 %vm6589_vm0, %v6588_v21  ;;  %5929 = vmatprep.mubr.msk.bf16.mxu1 %vm6589_vm0, %v6588_v21 }
 0x4c8   :  { %5933 = vmatprep.subr.bf16.mxu0 %v6588_v21  ;;  %5953 = vmatprep.subr.bf16.mxu1 %v6588_v21 }
 0x4cd   :  { %5924 = vmatmul.mubr.msk.bf16.vlgmr.msra.gmra.mrb[24].mxu0 %vm1738_vm2, %v1833_v63 }
 0x4ce   :  { %5949 = vmatprep.mubr.msk.bf16.mxu0 %vm6589_vm0, %v6588_v21  ;;  %5934 = vmatpush3.bf16.msra.mxu0 %v6174_v28 }
 0x4cf   :  { %5935 = vmatprep.subr.bf16.mxu0 %v6588_v21 }
 0x4d2   :  { %5936 = vmatpush3.bf16.msra.mxu0 %v6175_v31 }
 0x4d3   :  { %5937 = vmatprep.subr.bf16.mxu0 %v6588_v21 }
 0x4d6   :  { %5938 = vmatpush3.bf16.msra.mxu0 %v6176_v43 }
 0x4d7   :  { %5939 = vmatprep.subr.bf16.mxu0 %v6588_v21 }
 0x4da   :  { %5940 = vmatpush3.bf16.msra.mxu0 %v6177_v2 }
 0x4db   :  { %5941 = vmatprep.subr.bf16.mxu0 %v6588_v21 }
 0x4dd   :  { %v1810_v26 = vpop.xlane.xlu1 %1809 }
 0x4de   :  { %6292 = vrcp.f32 %v1810_v26  ;;  %5942 = vmatpush3.bf16.msra.mxu0 %v6178_v49 }
 0x4df   :  { %5943 = vmatprep.subr.bf16.mxu0 %v6588_v21 }
 0x4e2   :  { %5944 = vmatpush3.bf16.msra.mxu0 %v6179_v60  ;;  %v6181_v60 = vld [vmem:[#allocation8 + $0x38] sm:$0xff]  }
 0x4e3   :  { %5945 = vmatprep.subr.bf16.mxu0 %v6588_v21 }
 0x4e8   :  { %v6293_v5 = vpop.eup %6292 }
 0x4e9   :  { %v1826_v32 = vmul.f32 %v6293_v5, %v7171_v40 }
 0x4eb   :  { %v1834_v6 = vpack.c.bf16 %v1826_v32, %v1826_v32 }
 0x4ed   :  { %5930 = vmatmul.mubr.msk.bf16.vlgmr.msra.gmra.mrb[40].mxu1 %vm1738_vm2, %v1834_v6 }
 0x4ee   :  { %5969 = vmatprep.mubr.msk.bf16.mxu1 %vm6589_vm0, %v6588_v21 }
 0x546   :  { %v1876_v7 = vpop.f32.mrb[12].mxu0 }
 0x547   :  { %v5889_v8 = vpop.f32.mrb[13].mxu0 }
 0x548   :  { %v1879_v9 = vpop.f32.mrb[14].mxu0 }
 0x549   :  { %v5890_v10 = vpop.f32.mrb[15].mxu0 }
 0x54e   :  { %v1922_v34 = vpop.f32.mrb[28].mxu1 }
 0x54f   :  { %v5895_v11 = vpop.f32.mrb[29].mxu1 }
 0x550   :  { %v1925_v14 = vpop.f32.mrb[30].mxu1 }
 0x551   :  { %v5896_v15 = vpop.f32.mrb[31].mxu1 }
 0x556   :  { %v1968_v17 = vpop.f32.mrb[16].mxu0 }
 0x557   :  { %v2204_v18 = vcombine.low %v1876_v7, %v1968_v17  ;;  %v2205_v20 = vcombine.high %v1876_v7, %v1968_v17  ;;  %v5901_v16 = vpop.f32.mrb[17].mxu0 }
 0x558   :  { %v1971_v24 = vpop.f32.mrb[18].mxu0 }
 0x559   :  { %v5902_v40 = vpop.f32.mrb[19].mxu0  ;;  %v2212_v27 = vrot.slane %v2204_v18, %v6927_v52  ;;  %v2219_v36 = vrot.slane %v2205_v20, %v6927_v52 }
 0x55e   :  { %v2014_v19 = vpop.f32.mrb[32].mxu1 }
 0x55f   :  { %v2220_v54 = vcombine.low %v1922_v34, %v2014_v19  ;;  %v2221_v42 = vcombine.high %v1922_v34, %v2014_v19  ;;  %v5907_v25 = vpop.f32.mrb[33].mxu1 }
 0x560   :  { %v2017_v23 = vpop.f32.mrb[34].mxu1 }
 0x561   :  { %v2228_v51 = vrot.slane %v2220_v54, %v6927_v52  ;;  %v2235_v39 = vrot.slane %v2221_v42, %v6927_v52  ;;  %v5908_v35 = vpop.f32.mrb[35].mxu1 }
 0x563   :  { %v2236_v29 = vcombine.low %v2212_v27, %v2228_v51  ;;  %v2237_v41 = vcombine.high %v2212_v27, %v2228_v51  ;;  %v2252_v44 = vcombine.low %v2219_v36, %v2235_v39  ;;  %v2253_v45 = vcombine.high %v2219_v36, %v2235_v39 }
 0x565   :  { %v2244_v3 = vrot.slane %v2236_v29, %v6930_v59  ;;  %v2251_v4 = vrot.slane %v2237_v41, %v6930_v59  ;;  %v2260_v13 = vrot.slane %v2252_v44, %v6930_v59  ;;  %v2267_v46 = vrot.slane %v2253_v45, %v6930_v59 }
 0x567   :  { %v2340_v61 = vcombine.low %v2244_v3, %v2251_v4  ;;  %v5577_v37 = vcombine.high %v2244_v3, %v2251_v4  ;;  %v2356_v47 = vcombine.low %v2260_v13, %v2267_v46  ;;  %v5578_v48 = vcombine.high %v2260_v13, %v2267_v46 }
 0x569   :  { %v2347_v50 = vrot.slane %v2340_v61, %v6927_v52  ;;  %v2355_v22 = vrot.slane %v5577_v37, %v6927_v52  ;;  %v2363_v53 = vrot.slane %v2356_v47, %v6927_v52  ;;  %v2371_v12 = vrot.slane %v5578_v48, %v6927_v52  ;;  %v6180_v61 = vld [vmem:[#allocation8 + $0x30] sm:$0xff]  }
 0x56a   :  { %5946 = vmatpush3.bf16.msra.mxu0 %v6180_v61  ;;  %v6196_v61 = vld [vmem:[#allocation11 + $0x44] ss:$8 sps:$4 sm:$0xff]  }
 0x56b   :  { %v2373_v56 = vcombine.high %v2347_v50, %v2355_v22  ;;  %v2389_v57 = vcombine.high %v2363_v53, %v2371_v12  ;;  %v2372_v1 = vcombine.low %v2347_v50, %v2355_v22  ;;  %v2388_v58 = vcombine.low %v2363_v53, %v2371_v12  ;;  %5947 = vmatprep.subr.bf16.mxu0 %v6588_v21 }
 0x56d   :  { %v7255_v55 = vrot.slane %v2373_v56, %v6930_v59  ;;  %v7258_v38 = vrot.slane %v2389_v57, %v6930_v59  ;;  %v7261_v62 = vrot.slane %v2372_v1, %v6930_v59  ;;  %v7264_v63 = vrot.slane %v2388_v58, %v6930_v59 }
 0x56e   :  { %5948 = vmatpush3.bf16.msra.mxu0 %v6181_v60 }
 0x56f   :  { %v2406_v26 = vcombine.low %v7255_v55, %v7258_v38  ;;  %v2404_v5 = vcombine.low %v7261_v62, %v7264_v63  ;;  %v2405_v32 = vcombine.high %v7261_v62, %v7264_v63  ;;  %v2407_v6 = vcombine.high %v7255_v55, %v7258_v38  ;;  %v5581_v62 = vld [vmem:[%s7836_s6] ss:$0 sm:$0xff] }
 0x598   :  { %v2060_v7 = vpop.f32.mrb[20].mxu0  ;;  %v2106_v8 = vpop.f32.mrb[36].mxu1 }
 0x599   :  { %v5913_v9 = vpop.f32.mrb[21].mxu0  ;;  %v5919_v10 = vpop.f32.mrb[37].mxu1 }
 0x59a   :  { %v2063_v34 = vpop.f32.mrb[22].mxu0  ;;  %v2109_v11 = vpop.f32.mrb[38].mxu1 }
 0x59b   :  { %v5914_v14 = vpop.f32.mrb[23].mxu0  ;;  %v5920_v15 = vpop.f32.mrb[39].mxu1 }
 0x5a0   :  { %v2152_v17 = vpop.f32.mrb[24].mxu0 }
 0x5a1   :  { %v2272_v18 = vcombine.low %v2060_v7, %v2152_v17  ;;  %v2273_v20 = vcombine.high %v2060_v7, %v2152_v17  ;;  %v5925_v16 = vpop.f32.mrb[25].mxu0 }
 0x5a2   :  { %v2155_v24 = vpop.f32.mrb[26].mxu0 }
 0x5a3   :  { %v5926_v40 = vpop.f32.mrb[27].mxu0  ;;  %v2280_v25 = vrot.slane %v2272_v18, %v6927_v52  ;;  %v2287_v43 = vrot.slane %v2273_v20, %v6927_v52 }
 0x5c0   :  { %v2198_v28 = vpop.f32.mrb[40].mxu1 }
 0x5c1   :  { %v2288_v31 = vcombine.low %v2106_v8, %v2198_v28  ;;  %v2289_v19 = vcombine.high %v2106_v8, %v2198_v28  ;;  %v5931_v54 = vpop.f32.mrb[41].mxu1 }
 0x5c2   :  { %v2201_v42 = vpop.f32.mrb[42].mxu1 }
 0x5c3   :  { %v2296_v23 = vrot.slane %v2288_v31, %v6927_v52  ;;  %v2303_v27 = vrot.slane %v2289_v19, %v6927_v52  ;;  %v5932_v36 = vpop.f32.mrb[43].mxu1 }
 0x5c5   :  { %v2304_v51 = vcombine.low %v2280_v25, %v2296_v23  ;;  %v2305_v39 = vcombine.high %v2280_v25, %v2296_v23  ;;  %v2320_v35 = vcombine.low %v2287_v43, %v2303_v27  ;;  %v2321_v29 = vcombine.high %v2287_v43, %v2303_v27  ;;  %v6338_v27 = vld [vmem:[#allocation2] sm:$0xff] }
 0x5c7   :  { %v2312_v41 = vrot.slane %v2304_v51, %v6930_v59  ;;  %v2319_v44 = vrot.slane %v2305_v39, %v6930_v59  ;;  %v2328_v45 = vrot.slane %v2320_v35, %v6930_v59  ;;  %v2335_v2 = vrot.slane %v2321_v29, %v6930_v59  ;;  %v6339_v51 = vld [vmem:[#allocation2 + $0x8] sm:$0xff] }
 0x5c8   :  { %v6182_v35 = vld [vmem:[#allocation11] ss:$8 sps:$4 sm:$0xff]   ;;  %v6184_v29 = vld [vmem:[#allocation11 + $0x4] ss:$8 sps:$4 sm:$0xff]  }
 0x5c9   :  { %v2408_v3 = vcombine.low %v2312_v41, %v2319_v44  ;;  %v5579_v4 = vcombine.high %v2312_v41, %v2319_v44  ;;  %v2424_v13 = vcombine.low %v2328_v45, %v2335_v2  ;;  %v5580_v46 = vcombine.high %v2328_v45, %v2335_v2  ;;  %v6187_v41 = vld [vmem:[#allocation11 + $0x14] ss:$8 sps:$4 sm:$0xff]   ;;  %2886 = vmatprep.subr.bf16.mxu0 %v6184_v29  ;;  %v6185_v44 = vld [vmem:[#allocation11 + $0x10] ss:$8 sps:$4 sm:$0xff]   ;;  %v6190_v45 = vld [vmem:[#allocation11 + $0x24] ss:$8 sps:$4 sm:$0xff]  }
 0x5ca   :  { %v6206_v2 = vld [vmem:[#allocation10] sm:$0xff]  }
 0x5cb   :  { %v2415_v37 = vrot.slane %v2408_v3, %v6927_v52  ;;  %v2423_v47 = vrot.slane %v5579_v4, %v6927_v52  ;;  %v2431_v48 = vrot.slane %v2424_v13, %v6927_v52  ;;  %v2439_v49 = vrot.slane %v5580_v46, %v6927_v52  ;;  %v6188_v3 = vld [vmem:[#allocation11 + $0x20] ss:$8 sps:$4 sm:$0xff]   ;;  %v6193_v4 = vld [vmem:[#allocation11 + $0x34] ss:$8 sps:$4 sm:$0xff]   ;;  %5954 = vmatpush3.bf16.msra.mxu1 %v6206_v2  ;;  %v6191_v46 = vld [vmem:[#allocation11 + $0x30] ss:$8 sps:$4 sm:$0xff]  }
 0x5cc   :  { %v6207_v13 = vld [vmem:[#allocation10 + $0x8] sm:$0xff]   ;;  %5955 = vmatprep.subr.bf16.mxu1 %v6588_v21 }
 0x5cd   :  { %v2441_v50 = vcombine.high %v2415_v37, %v2423_v47  ;;  %v2457_v22 = vcombine.high %v2431_v48, %v2439_v49  ;;  %v2440_v53 = vcombine.low %v2415_v37, %v2423_v47  ;;  %v2456_v12 = vcombine.low %v2431_v48, %v2439_v49  ;;  %v6194_v37 = vld [vmem:[#allocation11 + $0x40] ss:$8 sps:$4 sm:$0xff]   ;;  %v6199_v47 = vld [vmem:[#allocation11 + $0x54] ss:$8 sps:$4 sm:$0xff]   ;;  %v6197_v48 = vld [vmem:[#allocation11 + $0x50] ss:$8 sps:$4 sm:$0xff]  }
 0x5ce   :  { %v6202_v49 = vld [vmem:[#allocation11 + $0x64] ss:$8 sps:$4 sm:$0xff]  }
 0x5cf   :  { %v2455_v56 = vrot.slane %v2441_v50, %v6930_v59  ;;  %v2471_v57 = vrot.slane %v2457_v22, %v6930_v59  ;;  %v2448_v1 = vrot.slane %v2440_v53, %v6930_v59  ;;  %v2464_v58 = vrot.slane %v2456_v12, %v6930_v59  ;;  %5956 = vmatpush3.bf16.msra.mxu1 %v6207_v13  ;;  %v6200_v50 = vld [vmem:[#allocation11 + $0x60] ss:$8 sps:$4 sm:$0xff]   ;;  %v6205_v22 = vld [vmem:[#allocation11 + $0x74] ss:$8 sps:$4 sm:$0xff]   ;;  %v6203_v53 = vld [vmem:[#allocation11 + $0x70] ss:$8 sps:$4 sm:$0xff]  }
 0x5d0   :  { %5957 = vmatprep.subr.bf16.mxu1 %v6588_v21  ;;  %v197_v12 = vld [vmem:[#allocation5] sm:$0xff] }
 0x5d1   :  { %v2474_v7 = vcombine.low %v2455_v56, %v2471_v57  ;;  %v2473_v8 = vcombine.high %v2448_v1, %v2464_v58  ;;  %v2472_v9 = vcombine.low %v2448_v1, %v2464_v58  ;;  %v2475_v10 = vcombine.high %v2455_v56, %v2471_v57  ;;  %v198_v56 = vld [vmem:[#allocation5 + $0x8] sm:$0xff] }
 0x5d2   :  { %v2777_v57 = vpack.c.bf16 %v198_v56, %v197_v12 }
 0x5d3   :  { %v6117_v34 = vpack.i.bf16 %v2474_v7, %v2406_v26  ;;  %v6112_v11 = vpack.i.bf16 %v2473_v8, %v2405_v32  ;;  %v6122_v14 = vpack.i.bf16 %v2475_v10, %v2407_v6 }
 0x5d5   :  { %6118 = vrot.lane.b32.xlu1 %v6117_v34, %s7834_s29  ;;  %6113 = vrot.lane.b32.xlu0 %v6112_v11, %s6590_s5  ;;  %v6208_v11 = vld [vmem:[#allocation10 + $0x10] sm:$0xff]  }
 0x5d6   :  { %5958 = vmatpush3.bf16.msra.mxu1 %v6208_v11 }
 0x5d7   :  { %5959 = vmatprep.subr.bf16.mxu1 %v6588_v21 }
 0x5d9   :  { %6123 = vrot.lane.b32.xlu0 %v6122_v14, %s6591_s22  ;;  %v6209_v14 = vld [vmem:[#allocation10 + $0x18] sm:$0xff]  }
 0x5da   :  { %5960 = vmatpush3.bf16.msra.mxu1 %v6209_v14 }
 0x5db   :  { %5961 = vmatprep.subr.bf16.mxu1 %v6588_v21 }
 0x647   :  { %v6119_v15 = vpop.permute.xlu1 %6118  ;;  %v6114_v17 = vpop.permute.xlu0 %6113 }
 0x648   :  { %v6116_v18 = vunpack.i.h.bf16 %v6114_v17  ;;  %v6115_v20 = vunpack.i.l.bf16 %v6114_v17  ;;  %v6121_v16 = vunpack.i.h.bf16 %v6119_v15  ;;  %v6120_v24 = vunpack.i.l.bf16 %v6119_v15  ;;  %v6210_v15 = vld [vmem:[#allocation10 + $0x20] sm:$0xff]   ;;  %v6211_v17 = vld [vmem:[#allocation10 + $0x28] sm:$0xff]  }
 0x649   :  { %5962 = vmatpush3.bf16.msra.mxu1 %v6210_v15 }
 0x64a   :  { %v2500_v55 = vsel %vm1361_vm1, %v2404_v5, %v6115_v20  ;;  %v2501_v38 = vsel %vm1361_vm1, %v2472_v9, %v6116_v18  ;;  %5963 = vmatprep.subr.bf16.mxu1 %v6588_v21  ;;  %v6212_v18 = vld [vmem:[#allocation10 + $0x30] sm:$0xff]   ;;  %v6213_v20 = vld [vmem:[#allocation10 + $0x38] sm:$0xff]  }
 0x64b   :  { %v6124_v26 = vpop.permute.xlu0 %6123  ;;  %v2503_v40 = vsel %vm2502_vm4, %v2500_v55, %v6120_v24  ;;  %v2504_v28 = vsel %vm2502_vm4, %v2501_v38, %v6121_v16  ;;  %v2794_v16 = vld [vmem:[%s7788_s9] sm:$0x3] }
 0x64c   :  { %v6126_v32 = vunpack.i.h.bf16 %v6124_v26  ;;  %v6125_v6 = vunpack.i.l.bf16 %v6124_v26  ;;  %v2799_v24 = vrot.slane %v2794_v16, %v6891_v33  ;;  %v2803_v55 = vrot.slane %v2794_v16, %v6882_v30 }
 0x64d   :  { %5964 = vmatpush3.bf16.msra.mxu1 %v6211_v17 }
 0x64e   :  { %v2506_v31 = vsel %vm2505_vm5, %v2503_v40, %v6125_v6  ;;  %v2507_v19 = vsel %vm2505_vm5, %v2504_v28, %v6126_v32  ;;  %5965 = vmatprep.subr.bf16.mxu1 %v6588_v21 }
 0x64f   :  { %v2508_v54 = vpack.c.bf16 %v2507_v19, %v2506_v31 }
 0x651   :  { %5950 = vmatmul.mubr.bf16.vlgmr.msra.gmra.mrb[28].mxu0 %v2508_v54  ;;  %5966 = vmatpush3.bf16.msra.mxu1 %v6212_v18 }
 0x652   :  { %2918 = vmatprep.mubr.bf16.mxu0 %v6587_v0  ;;  %2887 = vmatpush1.bf16.msra.mxu0 %v6182_v35  ;;  %v5591_v35 = vld [vmem:[%s7796_s17] ss:$0 sm:$0xff] }
 0x653   :  { %2888 = vmatprep.subr.bf16.mxu0 %v6187_v41  ;;  %5967 = vmatprep.subr.bf16.mxu1 %v6588_v21 }
 0x655   :  { %5968 = vmatpush3.bf16.msra.mxu1 %v6213_v20 }
 0x656   :  { %2889 = vmatpush1.bf16.msra.mxu0 %v6185_v44  ;;  %5973 = vmatprep.subr.bf16.mxu1 %v6588_v21 }
 0x657   :  { %2890 = vmatprep.subr.bf16.mxu0 %v6190_v45 }
 0x65a   :  { %2891 = vmatpush1.bf16.msra.mxu0 %v6188_v3 }
 0x65b   :  { %2892 = vmatprep.subr.bf16.mxu0 %v6193_v4 }
 0x65e   :  { %2893 = vmatpush1.bf16.msra.mxu0 %v6191_v46 }
 0x65f   :  { %2894 = vmatprep.subr.bf16.mxu0 %v6196_v61 }
 0x662   :  { %2895 = vmatpush1.bf16.msra.mxu0 %v6194_v37 }
 0x663   :  { %2896 = vmatprep.subr.bf16.mxu0 %v6199_v47 }
 0x666   :  { %2897 = vmatpush1.bf16.msra.mxu0 %v6197_v48 }
 0x667   :  { %2898 = vmatprep.subr.bf16.mxu0 %v6202_v49 }
 0x66a   :  { %2899 = vmatpush1.bf16.msra.mxu0 %v6200_v50 }
 0x66b   :  { %2900 = vmatprep.subr.bf16.mxu0 %v6205_v22 }
 0x66e   :  { %2901 = vmatpush1.bf16.msra.mxu0 %v6203_v53 }
 0x66f   :  { %5997 = vmatprep.subr.bf16.mxu0 %v6588_v21 }
 0x671   :  { %2919 = vmatmul.mubr.bf16.vlgmr.msra.gmra.mrb[32].mxu0 %v2777_v57 }
 0x672   :  { %5999 = vmatprep.mubr.msk.bf16.mxu0 %vm6589_vm0, %v6588_v21 }
 0x724   :  { %v2614_v63 = vpop.f32.mrb[28].mxu0 }
 0x725   :  { %v2615_v5 = vadd.f32 %v5581_v62, %v2614_v63  ;;  %v5951_v42 = vpop.f32.mrb[29].mxu0 }
 0x726   :  { %v2617_v25 = vpop.f32.mrb[30].mxu0 }
 0x727   :  { %v2618_v43 = vadd.f32 %v5581_v62, %v2617_v25  ;;  %v5952_v23 = vpop.f32.mrb[31].mxu0  ;;  %v2621_v36 = vadd.f32 %v6338_v27, %v2615_v5 }
 0x728   :  { %v5590_v23 = vld [vmem:[%s7795_s16] ss:$0 sm:$0xff] }
 0x729   :  { %2625 = vadd.xlane.f32.xlu1 %v2621_v36  ;;  %v2622_v39 = vadd.f32 %v6339_v51, %v2618_v43 }
 0x72b   :  { %2627 = vadd.xlane.f32.xlu0 %v2622_v39 }
 0x744   :  { %v2920_v38 = vpop.f32.mrb[32].mxu0 }
 0x745   :  { %v2921_v26 = vadd.f32 %v2920_v38, %v2799_v24  ;;  %v2922_v32 = vpop.f32.mrb[33].mxu0 }
 0x746   :  { %v7327_v6 = vadd.f32 %v2922_v32, %v2803_v55  ;;  %v2924_v40 = vpop.f32.mrb[34].mxu0 }
 0x747   :  { %v7331_v28 = vadd.f32 %v2924_v40, %v2799_v24  ;;  %v2926_v31 = vpop.f32.mrb[35].mxu0 }
 0x748   :  { %v7333_v19 = vadd.f32 %v2926_v31, %v2803_v55 }
 0x7b6   :  { %v2626_v1 = vpop.xlane.xlu1 %2625 }
 0x7b7   :  { %v2630_v58 = vmul.f32 0.0078125, %v2626_v1 }
 0x7b8   :  { %v2628_v60 = vpop.xlane.xlu0 %2627 }
 0x7b9   :  { %v2632_v7 = vsub.f32 %v2621_v36, %v2630_v58  ;;  %v2631_v8 = vmul.f32 0.0078125, %v2628_v60 }
 0x7bb   :  { %v2633_v9 = vsub.f32 %v2622_v39, %v2631_v8  ;;  %v2634_v10 = vmul.f32 %v2632_v7, %v2632_v7 }
 0x7bd   :  { %2636 = vadd.xlane.f32.xlu0 %v2634_v10  ;;  %v2635_v34 = vmul.f32 %v2633_v9, %v2633_v9 }
 0x7bf   :  { %2638 = vadd.xlane.f32.xlu1 %v2635_v34 }
 0x7d0   :  { %3237 = vrot.lane.b32.xlu1 %v2921_v26, %s7834_s29 }
 0x7d3   :  { %3231 = vrot.lane.b32.xlu0 %v2921_v26, %s6591_s22 }
 0x7d4   :  { %3243 = vrot.lane.b32.xlu1 %v2921_v26, %s6590_s5 }
 0x84a   :  { %v2637_v54 = vpop.xlane.xlu0 %2636 }
 0x84b   :  { %v2640_v62 = vmul.f32 0.0078125, %v2637_v54 }
 0x84c   :  { %v2639_v63 = vpop.xlane.xlu1 %2638 }
 0x84d   :  { %v2642_v5 = vadd.f32 1e-05, %v2640_v62  ;;  %v2641_v42 = vmul.f32 0.0078125, %v2639_v63 }
 0x84e   :  { %v3232_v3 = vpop.permute.xlu0 %3231 }
 0x84f   :  { %6294 = vrsqrt.f32 %v2642_v5  ;;  %v2643_v25 = vadd.f32 1e-05, %v2641_v42  ;;  %v5592_v5 = vld [vmem:[%s7786_s7] ss:$0 sm:$0xff] }
 0x850   :  { %v3238_v2 = vpop.permute.xlu1 %3237 }
 0x851   :  { %6296 = vrsqrt.f32 %v2643_v25  ;;  %v3249_v13 = vcombine.low %v2921_v26, %v3238_v2  ;;  %v3250_v46 = vcombine.high %v2921_v26, %v3238_v2 }
 0x853   :  { %v3257_v47 = vrot.slane %v3249_v13, %v6927_v52  ;;  %v3264_v48 = vrot.slane %v3250_v46, %v6927_v52 }
 0x854   :  { %v3244_v4 = vpop.permute.xlu1 %3243 }
 0x855   :  { %v3265_v61 = vcombine.low %v3232_v3, %v3244_v4  ;;  %v3266_v37 = vcombine.high %v3232_v3, %v3244_v4 }
 0x857   :  { %v3273_v49 = vrot.slane %v3265_v61, %v6927_v52  ;;  %v3280_v50 = vrot.slane %v3266_v37, %v6927_v52 }
 0x859   :  { %v6295_v43 = vpop.eup %6294  ;;  %v3281_v22 = vcombine.low %v3257_v47, %v3273_v49  ;;  %v3282_v53 = vcombine.high %v3257_v47, %v3273_v49  ;;  %v3297_v12 = vcombine.low %v3264_v48, %v3280_v50  ;;  %v3298_v56 = vcombine.high %v3264_v48, %v3280_v50 }
 0x85a   :  { %v2646_v27 = vmul.f32 %v6295_v43, %v2632_v7 }
 0x85b   :  { %v6297_v36 = vpop.eup %6296  ;;  %v3289_v57 = vrot.slane %v3281_v22, %v6930_v59  ;;  %v3296_v1 = vrot.slane %v3282_v53, %v6930_v59  ;;  %v3305_v58 = vrot.slane %v3297_v12, %v6930_v59  ;;  %v3312_v60 = vrot.slane %v3298_v56, %v6930_v59 }
 0x85c   :  { %v2647_v51 = vmul.f32 %v6297_v36, %v2633_v9  ;;  %v2654_v39 = vmul.f32 %v5590_v23, %v2646_v27 }
 0x85d   :  { %v3385_v7 = vcombine.low %v3289_v57, %v3296_v1  ;;  %v5621_v8 = vcombine.high %v3289_v57, %v3296_v1  ;;  %v3401_v9 = vcombine.low %v3305_v58, %v3312_v60  ;;  %v5622_v10 = vcombine.high %v3305_v58, %v3312_v60 }
 0x85e   :  { %v2655_v29 = vmul.f32 %v5590_v23, %v2647_v51  ;;  %v7342_v41 = vadd.f32 %v5591_v35, %v2654_v39 }
 0x85f   :  { %v3392_v34 = vrot.slane %v3385_v7, %v6927_v52  ;;  %v3400_v11 = vrot.slane %v5621_v8, %v6927_v52  ;;  %v3408_v14 = vrot.slane %v3401_v9, %v6927_v52  ;;  %v3416_v15 = vrot.slane %v5622_v10, %v6927_v52 }
 0x860   :  { %v7344_v44 = vadd.f32 %v5591_v35, %v2655_v29 }
 0x861   :  { %v3417_v17 = vcombine.low %v3392_v34, %v3400_v11  ;;  %v3433_v18 = vcombine.low %v3408_v14, %v3416_v15  ;;  %v3418_v20 = vcombine.high %v3392_v34, %v3400_v11  ;;  %v3434_v16 = vcombine.high %v3408_v14, %v3416_v15 }
 0x862   :  { %v2664_v45 = vpack.c.bf16 %v7344_v44, %v7342_v41 }
 0x863   :  { %v3425_v24 = vrot.slane %v3417_v17, %v6930_v59  ;;  %v3441_v55 = vrot.slane %v3433_v18, %v6930_v59  ;;  %v3432_v38 = vrot.slane %v3418_v20, %v6930_v59  ;;  %v3448_v26 = vrot.slane %v3434_v16, %v6930_v59 }
 0x864   :  { %5970 = vmatmul.mubr.bf16.vlgmr.msra.gmra.mrb[44].mxu1 %v2664_v45 }
 0x865   :  { %5975 = vmatprep.mubr.msk.bf16.mxu1 %vm6589_vm0, %v6588_v21  ;;  %v3449_v32 = vcombine.low %v3425_v24, %v3441_v55  ;;  %v7366_v40 = vcombine.high %v3425_v24, %v3441_v55  ;;  %v7368_v31 = vcombine.low %v3432_v38, %v3448_v26  ;;  %v7370_v62 = vcombine.high %v3432_v38, %v3448_v26 }
 0x867   :  { %v3521_v54 = vpack.c.bf16 %v3449_v32, %v3449_v32 }
 0x869   :  { %v3833_v63 = vsel %vm1361_vm1, %v3521_v54, 0 }
 0x86a   :  { %5974 = vmatpush3.bf16.xpose.msra.mxu1 %v3833_v63 }
 0x86b   :  { %5979 = vmatprep.subr.bf16.mxu1 %v6588_v21 }
 0x937   :  { %v2770_v42 = vpop.f32.mrb[44].mxu1 }
 0x938   :  { %v2771_v25 = vadd.f32 %v5592_v5, %v2770_v42  ;;  %v5971_v43 = vpop.f32.mrb[45].mxu1 }
 0x939   :  { %v2773_v23 = vpop.f32.mrb[46].mxu1 }
 0x93a   :  { %2937 = vrot.lane.b32.xlu1 %v2771_v25, %s7834_s29  ;;  %2931 = vrot.lane.b32.xlu0 %v2771_v25, %s6591_s22  ;;  %v5972_v27 = vpop.f32.mrb[47].mxu1  ;;  %v7386_v36 = vadd.f32 %v5592_v5, %v2773_v23 }
 0x93e   :  { %3233 = vrot.lane.b32.xlu1 %v7331_v28, %s6591_s22  ;;  %2943 = vrot.lane.b32.xlu0 %v2771_v25, %s6590_s5 }
 0x942   :  { %3245 = vrot.lane.b32.xlu1 %v7331_v28, %s6590_s5  ;;  %3239 = vrot.lane.b32.xlu0 %v7331_v28, %s7834_s29 }
 0x946   :  { %2939 = vrot.lane.b32.xlu1 %v7386_v36, %s7834_s29  ;;  %2933 = vrot.lane.b32.xlu0 %v7386_v36, %s6591_s22 }
 0x94a   :  { %2945 = vrot.lane.b32.xlu0 %v7386_v36, %s6590_s5 }
 0x9ac   :  { %v2938_v51 = vpop.permute.xlu1 %2937  ;;  %v2932_v39 = vpop.permute.xlu0 %2931 }
 0x9ad   :  { %v2949_v35 = vcombine.low %v2771_v25, %v2938_v51  ;;  %v2950_v29 = vcombine.high %v2771_v25, %v2938_v51 }
 0x9af   :  { %v2957_v13 = vrot.slane %v2949_v35, %v6927_v52  ;;  %v2964_v46 = vrot.slane %v2950_v29, %v6927_v52 }
 0x9b0   :  { %v3234_v45 = vpop.permute.xlu1 %3233  ;;  %v2944_v2 = vpop.permute.xlu0 %2943 }
 0x9b1   :  { %v2965_v3 = vcombine.low %v2932_v39, %v2944_v2  ;;  %v2966_v4 = vcombine.high %v2932_v39, %v2944_v2  ;;  %v3522_v39 = vpack.c.bf16 %v7366_v40, %v7366_v40 }
 0x9b3   :  { %v2973_v61 = vrot.slane %v2965_v3, %v6927_v52  ;;  %v2980_v37 = vrot.slane %v2966_v4, %v6927_v52 }
 0x9b4   :  { %v3246_v47 = vpop.permute.xlu1 %3245  ;;  %v3240_v48 = vpop.permute.xlu0 %3239 }
 0x9b5   :  { %v2981_v49 = vcombine.low %v2957_v13, %v2973_v61  ;;  %v2982_v50 = vcombine.high %v2957_v13, %v2973_v61  ;;  %v2997_v22 = vcombine.low %v2964_v46, %v2980_v37  ;;  %v2998_v53 = vcombine.high %v2964_v46, %v2980_v37 }
 0x9b6   :  { %v3333_v12 = vcombine.low %v3234_v45, %v3246_v47  ;;  %v3334_v56 = vcombine.high %v3234_v45, %v3246_v47  ;;  %v3317_v57 = vcombine.low %v7331_v28, %v3240_v48  ;;  %v3318_v1 = vcombine.high %v7331_v28, %v3240_v48 }
 0x9b7   :  { %v2989_v58 = vrot.slane %v2981_v49, %v6930_v59  ;;  %v2996_v60 = vrot.slane %v2982_v50, %v6930_v59  ;;  %v3005_v7 = vrot.slane %v2997_v22, %v6930_v59  ;;  %v3012_v8 = vrot.slane %v2998_v53, %v6930_v59 }
 0x9b8   :  { %v3341_v9 = vrot.slane %v3333_v12, %v6927_v52  ;;  %v3348_v10 = vrot.slane %v3334_v56, %v6927_v52  ;;  %v3325_v34 = vrot.slane %v3317_v57, %v6927_v52  ;;  %v3332_v11 = vrot.slane %v3318_v1, %v6927_v52  ;;  %v2934_v14 = vpop.permute.xlu0 %2933  ;;  %v2940_v43 = vpop.permute.xlu1 %2939 }
 0x9b9   :  { %v3085_v15 = vcombine.low %v2989_v58, %v2996_v60  ;;  %v5617_v17 = vcombine.high %v2989_v58, %v2996_v60  ;;  %v3101_v28 = vcombine.low %v3005_v7, %v3012_v8  ;;  %v5618_v18 = vcombine.high %v3005_v7, %v3012_v8 }
 0x9ba   :  { %v3349_v20 = vcombine.low %v3325_v34, %v3341_v9  ;;  %v3350_v16 = vcombine.high %v3325_v34, %v3341_v9  ;;  %v3365_v24 = vcombine.low %v3332_v11, %v3348_v10  ;;  %v3366_v55 = vcombine.high %v3332_v11, %v3348_v10 }
 0x9bb   :  { %v7409_v38 = vrot.slane %v3085_v15, %v6927_v52  ;;  %v7412_v26 = vrot.slane %v5617_v17, %v6927_v52  ;;  %v7415_v32 = vrot.slane %v3101_v28, %v6927_v52  ;;  %v7418_v54 = vrot.slane %v5618_v18, %v6927_v52 }
 0x9bc   :  { %v3357_v63 = vrot.slane %v3349_v20, %v6930_v59  ;;  %v3364_v5 = vrot.slane %v3350_v16, %v6930_v59  ;;  %v3373_v42 = vrot.slane %v3365_v24, %v6930_v59  ;;  %v3380_v25 = vrot.slane %v3366_v55, %v6930_v59  ;;  %v2946_v23 = vpop.permute.xlu0 %2945 }
 0x9bd   :  { %v3117_v27 = vcombine.low %v7409_v38, %v7412_v26  ;;  %v3133_v51 = vcombine.low %v7415_v32, %v7418_v54  ;;  %v3017_v3 = vcombine.low %v7386_v36, %v2940_v43  ;;  %v3018_v4 = vcombine.high %v7386_v36, %v2940_v43 }
 0x9be   :  { %v3453_v35 = vcombine.low %v3357_v63, %v3364_v5  ;;  %v5623_v29 = vcombine.high %v3357_v63, %v3364_v5  ;;  %v3469_v45 = vcombine.low %v3373_v42, %v3380_v25  ;;  %v5624_v2 = vcombine.high %v3373_v42, %v3380_v25 }
 0x9bf   :  { %v3033_v13 = vcombine.low %v2934_v14, %v2946_v23  ;;  %v3034_v46 = vcombine.high %v2934_v14, %v2946_v23  ;;  %v3025_v40 = vrot.slane %v3017_v3, %v6927_v52  ;;  %v3032_v49 = vrot.slane %v3018_v4, %v6927_v52 }
 0x9c0   :  { %v3460_v61 = vrot.slane %v3453_v35, %v6927_v52  ;;  %v3468_v37 = vrot.slane %v5623_v29, %v6927_v52  ;;  %v3476_v47 = vrot.slane %v3469_v45, %v6927_v52  ;;  %v3484_v48 = vrot.slane %v5624_v2, %v6927_v52 }
 0x9c1   :  { %v3041_v50 = vrot.slane %v3033_v13, %v6927_v52  ;;  %v3048_v22 = vrot.slane %v3034_v46, %v6927_v52  ;;  %v3125_v36 = vrot.slane %v3117_v27, %v6930_v59  ;;  %v3141_v53 = vrot.slane %v3133_v51, %v6930_v59 }
 0x9c2   :  { %v3485_v12 = vcombine.low %v3460_v61, %v3468_v37  ;;  %v3501_v56 = vcombine.low %v3476_v47, %v3484_v48  ;;  %v3879_v17 = vsel %vm1361_vm1, %v3522_v39, 0  ;;  %v3486_v18 = vcombine.high %v3460_v61, %v3468_v37 }
 0x9c3   :  { %v3049_v57 = vcombine.low %v3025_v40, %v3041_v50  ;;  %v3050_v1 = vcombine.high %v3025_v40, %v3041_v50  ;;  %v3065_v58 = vcombine.low %v3032_v49, %v3048_v22  ;;  %v3066_v60 = vcombine.high %v3032_v49, %v3048_v22 }
 0x9c4   :  { %v3149_v7 = vcombine.low %v3125_v36, %v3141_v53  ;;  %v7443_v8 = vrot.slane %v3485_v12, %v6930_v59  ;;  %v7446_v9 = vrot.slane %v3501_v56, %v6930_v59  ;;  %v3118_v63 = vcombine.high %v7409_v38, %v7412_v26 }
 0x9c5   :  { %v3057_v10 = vrot.slane %v3049_v57, %v6930_v59  ;;  %v3064_v34 = vrot.slane %v3050_v1, %v6930_v59  ;;  %v3073_v11 = vrot.slane %v3065_v58, %v6930_v59  ;;  %v3080_v14 = vrot.slane %v3066_v60, %v6930_v59 }
 0x9c6   :  { %v3221_v15 = vpack.c.bf16 %v3149_v7, %v3149_v7  ;;  %v3517_v28 = vcombine.low %v7443_v8, %v7446_v9  ;;  %v3500_v42 = vrot.slane %v3486_v18, %v6930_v59  ;;  %v3502_v25 = vcombine.high %v3476_v47, %v3484_v48 }
 0x9c7   :  { %v3153_v20 = vcombine.low %v3057_v10, %v3064_v34  ;;  %v5619_v16 = vcombine.high %v3057_v10, %v3064_v34  ;;  %v3169_v24 = vcombine.low %v3073_v11, %v3080_v14  ;;  %v5620_v55 = vcombine.high %v3073_v11, %v3080_v14 }
 0x9c8   :  { %5976 = vmatmul.mubr.msk.bf16.vlgmr.msra.gmra.mrb[48].mxu1 %vm1361_vm1, %v3221_v15  ;;  %v3525_v5 = vpack.c.bf16 %v3517_v28, %v3517_v28  ;;  %v3134_v39 = vcombine.high %v7415_v32, %v7418_v54  ;;  %v3150_v26 = vcombine.high %v3125_v36, %v3141_v53  ;;  %v3516_v35 = vrot.slane %v3502_v25, %v6930_v59 }
 0x9c9   :  { %v3160_v43 = vrot.slane %v3153_v20, %v6927_v52  ;;  %v3168_v23 = vrot.slane %v5619_v16, %v6927_v52  ;;  %v3176_v27 = vrot.slane %v3169_v24, %v6927_v52  ;;  %v3184_v51 = vrot.slane %v5620_v55, %v6927_v52  ;;  %5980 = vmatpush3.bf16.xpose.msra.mxu1 %v3879_v17 }
 0x9ca   :  { %v4017_v38 = vsel %vm1361_vm1, %v3525_v5, 0  ;;  %5981 = vmatprep.mubr.msk.bf16.mxu1 %vm6589_vm0, %v6588_v21  ;;  %5985 = vmatprep.subr.bf16.mxu1 %v6588_v21  ;;  %v3523_v2 = vpack.c.bf16 %v7368_v31, %v7368_v31  ;;  %v3519_v3 = vcombine.low %v3500_v42, %v3516_v35  ;;  %v3222_v46 = vpack.c.bf16 %v3150_v26, %v3150_v26 }
 0x9cb   :  { %v3185_v29 = vcombine.low %v3160_v43, %v3168_v23  ;;  %v3201_v45 = vcombine.low %v3176_v27, %v3184_v51  ;;  %5998 = vmatpush3.bf16.xpose.msra.mxu0 %v4017_v38  ;;  %v3186_v32 = vcombine.high %v3160_v43, %v3168_v23  ;;  %v3202_v54 = vcombine.high %v3176_v27, %v3184_v51 }
 0x9cc   :  { %6009 = vmatprep.subr.bf16.mxu0 %v6588_v21  ;;  %v3132_v61 = vrot.slane %v3118_v63, %v6930_v59  ;;  %v3148_v37 = vrot.slane %v3134_v39, %v6930_v59  ;;  %v3527_v48 = vpack.c.bf16 %v3519_v3, %v3519_v3  ;;  %v3925_v31 = vsel %vm1361_vm1, %v3523_v2, 0 }
 0x9cd   :  { %v3193_v4 = vrot.slane %v3185_v29, %v6930_v59  ;;  %v3209_v13 = vrot.slane %v3201_v45, %v6930_v59  ;;  %v3200_v49 = vrot.slane %v3186_v32, %v6930_v59  ;;  %v3216_v50 = vrot.slane %v3202_v54, %v6930_v59 }
 0x9ce   :  { %v3151_v22 = vcombine.low %v3132_v61, %v3148_v37  ;;  %v4109_v36 = vsel %vm1361_vm1, %v3527_v48, 0  ;;  %v3524_v53 = vpack.c.bf16 %v7370_v62, %v7370_v62  ;;  %v3518_v1 = vcombine.high %v7443_v8, %v7446_v9 }
 0x9cf   :  { %v3217_v47 = vcombine.low %v3193_v4, %v3209_v13  ;;  %v3219_v12 = vcombine.low %v3200_v49, %v3216_v50  ;;  %v3152_v62 = vcombine.high %v3132_v61, %v3148_v37  ;;  %v3520_v8 = vcombine.high %v3500_v42, %v3516_v35 }
 0x9d0   :  { %5982 = vmatmul.mubr.msk.bf16.vlgmr.msra.gmra.mrb[52].mxu1 %vm1361_vm1, %v3222_v46  ;;  %v3223_v56 = vpack.c.bf16 %v3151_v22, %v3151_v22  ;;  %v3971_v57 = vsel %vm1361_vm1, %v3524_v53, 0  ;;  %v3526_v60 = vpack.c.bf16 %v3518_v1, %v3518_v1  ;;  %v3218_v9 = vcombine.high %v3193_v4, %v3209_v13 }
 0x9d1   :  { %5986 = vmatpush3.bf16.xpose.msra.mxu1 %v3925_v31  ;;  %v3225_v40 = vpack.c.bf16 %v3217_v47, %v3217_v47  ;;  %5987 = vmatprep.mubr.msk.bf16.mxu1 %vm6589_vm0, %v6588_v21  ;;  %v3227_v58 = vpack.c.bf16 %v3219_v12, %v3219_v12  ;;  %v3224_v7 = vpack.c.bf16 %v3152_v62, %v3152_v62 }
 0x9d2   :  { %5991 = vmatprep.subr.bf16.mxu1 %v6588_v21  ;;  %v4063_v10 = vsel %vm1361_vm1, %v3526_v60, 0  ;;  %v3528_v34 = vpack.c.bf16 %v3520_v8, %v3520_v8  ;;  %v3226_v11 = vpack.c.bf16 %v3218_v9, %v3218_v9  ;;  %v3220_v15 = vcombine.high %v3200_v49, %v3216_v50 }
 0x9d3   :  { %6000 = vmatmul.mubr.msk.bf16.vlgmr.msra.gmra.mrb[36].mxu0 %vm1361_vm1, %v3225_v40 }
 0x9d4   :  { %6010 = vmatpush3.bf16.xpose.msra.mxu0 %v4109_v36  ;;  %6011 = vmatprep.mubr.msk.bf16.mxu0 %vm6589_vm0, %v6588_v21  ;;  %v4155_v14 = vsel %vm1361_vm1, %v3528_v34, 0  ;;  %v3228_v17 = vpack.c.bf16 %v3220_v15, %v3220_v15 }
 0x9d5   :  { %6021 = vmatprep.subr.bf16.mxu0 %v6588_v21 }
 0x9d8   :  { %5988 = vmatmul.mubr.msk.bf16.vlgmr.msra.gmra.mrb[56].mxu1 %vm1361_vm1, %v3223_v56 }
 0x9d9   :  { %5992 = vmatpush3.bf16.xpose.msra.mxu1 %v3971_v57  ;;  %5993 = vmatprep.mubr.msk.bf16.mxu1 %vm6589_vm0, %v6588_v21 }
 0x9da   :  { %6003 = vmatprep.subr.bf16.mxu1 %v6588_v21 }
 0x9db   :  { %6012 = vmatmul.mubr.msk.bf16.vlgmr.msra.gmra.mrb[40].mxu0 %vm1361_vm1, %v3227_v58 }
 0x9dc   :  { %6023 = vmatprep.mubr.msk.bf16.mxu0 %vm6589_vm0, %v6588_v21 }
 0x9e0   :  { %5994 = vmatmul.mubr.msk.bf16.vlgmr.msra.gmra.mrb[60].mxu1 %vm1361_vm1, %v3224_v7 }
 0x9e1   :  { %6004 = vmatpush3.bf16.xpose.msra.mxu1 %v4063_v10  ;;  %6005 = vmatprep.mubr.msk.bf16.mxu1 %vm6589_vm0, %v6588_v21 }
 0x9e2   :  { %6015 = vmatprep.subr.bf16.mxu1 %v6588_v21 }
 0x9e8   :  { %6006 = vmatmul.mubr.msk.bf16.vlgmr.msra.gmra.mrb[64].mxu1 %vm1361_vm1, %v3226_v11 }
 0x9e9   :  { %6016 = vmatpush3.bf16.xpose.msra.mxu1 %v4155_v14  ;;  %6017 = vmatprep.mubr.msk.bf16.mxu1 %vm6589_vm0, %v6588_v21 }
 0x9ea   :  { %6027 = vmatprep.subr.bf16.mxu1 %v6588_v21 }
 0x9f0   :  { %6018 = vmatmul.mubr.msk.bf16.vlgmr.msra.gmra.mrb[68].mxu1 %vm1361_vm1, %v3228_v17 }
 0x9f1   :  { %6029 = vmatprep.mubr.msk.bf16.mxu1 %vm6589_vm0, %v6588_v21 }
 0xa9b   :  { %v3869_v28 = vpop.f32.mrb[48].mxu1 }
 0xa9c   :  { %v4197_v18 = vmul.f32 0.17677669, %v3869_v28  ;;  %v5977_v20 = vpop.f32.mrb[49].mxu1 }
 0xa9d   :  { %v3872_v16 = vpop.f32.mrb[50].mxu1 }
 0xa9e   :  { %v5978_v24 = vpop.f32.mrb[51].mxu1  ;;  %v4205_v55 = vsel %vm1738_vm2, %v4197_v18, -inf }
 0xa9f   :  { %4206 = vmax.xlane.f32.xlu1 %v4205_v55 }
 0xaa3   :  { %v3915_v63 = vpop.f32.mrb[52].mxu1 }
 0xaa4   :  { %v5983_v5 = vpop.f32.mrb[53].mxu1  ;;  %v4198_v39 = vmul.f32 0.17677669, %v3915_v63 }
 0xaa5   :  { %v3918_v42 = vpop.f32.mrb[54].mxu1 }
 0xaa6   :  { %v5984_v25 = vpop.f32.mrb[55].mxu1  ;;  %v4053_v43 = vpop.f32.mrb[36].mxu0  ;;  %v4208_v2 = vsel %vm1738_vm2, %v4198_v39, -inf }
 0xaa7   :  { %v4201_v23 = vmul.f32 0.17677669, %v4053_v43  ;;  %v6001_v27 = vpop.f32.mrb[37].mxu0 }
 0xaa8   :  { %v4056_v51 = vpop.f32.mrb[38].mxu0 }
 0xaa9   :  { %v6002_v38 = vpop.f32.mrb[39].mxu0  ;;  %v4217_v26 = vsel %vm1738_vm2, %v4201_v23, -inf }
 0xaaa   :  { %4218 = vmax.xlane.f32.xlu0 %v4217_v26 }
 0xaab   :  { %v3961_v35 = vpop.f32.mrb[56].mxu1 }
 0xaac   :  { %v5989_v29 = vpop.f32.mrb[57].mxu1  ;;  %v4199_v46 = vmul.f32 0.17677669, %v3961_v35 }
 0xaad   :  { %v3964_v45 = vpop.f32.mrb[58].mxu1 }
 0xaae   :  { %v5990_v3 = vpop.f32.mrb[59].mxu1  ;;  %v4145_v32 = vpop.f32.mrb[40].mxu0  ;;  %4209 = vmax.xlane.f32.xlu0 %v4208_v2  ;;  %v4211_v40 = vsel %vm1738_vm2, %v4199_v46, -inf }
 0xaaf   :  { %v7517_v54 = vmul.f32 0.17677669, %v4145_v32  ;;  %v6013_v4 = vpop.f32.mrb[41].mxu0 }
 0xab0   :  { %3537 = vrot.lane.b32.xlu1 %v7327_v6, %s7834_s29  ;;  %v4148_v13 = vpop.f32.mrb[42].mxu0 }
 0xab1   :  { %v6014_v61 = vpop.f32.mrb[43].mxu0  ;;  %v4223_v37 = vsel %vm1738_vm2, %v7517_v54, -inf }
 0xab2   :  { %4224 = vmax.xlane.f32.xlu0 %v4223_v37 }
 0xab3   :  { %v4007_v47 = vpop.f32.mrb[60].mxu1 }
 0xab4   :  { %3543 = vrot.lane.b32.xlu1 %v7327_v6, %s6590_s5  ;;  %v5995_v48 = vpop.f32.mrb[61].mxu1  ;;  %v7528_v58 = vmul.f32 0.17677669, %v4007_v47 }
 0xab5   :  { %v4010_v31 = vpop.f32.mrb[62].mxu1 }
 0xab6   :  { %v5996_v49 = vpop.f32.mrb[63].mxu1  ;;  %4212 = vmax.xlane.f32.xlu0 %v4211_v40  ;;  %v4214_v60 = vsel %vm1738_vm2, %v7528_v58, -inf }
 0xabb   :  { %v4099_v50 = vpop.f32.mrb[64].mxu1 }
 0xabc   :  { %v6007_v22 = vpop.f32.mrb[65].mxu1  ;;  %v7530_v62 = vmul.f32 0.17677669, %v4099_v50 }
 0xabd   :  { %v4102_v36 = vpop.f32.mrb[66].mxu1 }
 0xabe   :  { %v6008_v53 = vpop.f32.mrb[67].mxu1  ;;  %v4220_v10 = vsel %vm1738_vm2, %v7530_v62, -inf }
 0xac3   :  { %v4191_v12 = vpop.f32.mrb[68].mxu1 }
 0xac4   :  { %v6019_v56 = vpop.f32.mrb[69].mxu1  ;;  %v7534_v7 = vmul.f32 0.17677669, %v4191_v12 }
 0xac5   :  { %v4194_v57 = vpop.f32.mrb[70].mxu1 }
 0xac6   :  { %v6020_v1 = vpop.f32.mrb[71].mxu1  ;;  %v4226_v8 = vsel %vm1738_vm2, %v7534_v7, -inf }
 0xacc   :  { %3531 = vrot.lane.b32.xlu0 %v7327_v6, %s6591_s22 }
 0xad8   :  { %4215 = vmax.xlane.f32.xlu1 %v4214_v60 }
 0xadc   :  { %4221 = vmax.xlane.f32.xlu1 %v4220_v10 }
 0xae0   :  { %4227 = vmax.xlane.f32.xlu1 %v4226_v8 }
 0xaf1   :  { %3533 = vrot.lane.b32.xlu1 %v7333_v19, %s6591_s22 }
 0xb2c   :  { %v4207_v9 = vpop.xlane.xlu1 %4206 }
 0xb2d   :  { %v4229_v34 = vsub.f32 %v4197_v18, %v4207_v9 }
 0xb2f   :  { %v4237_v11 = vmul.f32 1.442695, %v4229_v34 }
 0xb30   :  { %v3538_v5 = vpop.permute.xlu1 %3537 }
 0xb31   :  { %6298 = vpow2.f32 %v4237_v11  ;;  %v3549_v43 = vcombine.low %v7327_v6, %v3538_v5 }
 0xb33   :  { %v3557_v45 = vrot.slane %v3549_v43, %v6927_v52 }
 0xb34   :  { %v3544_v51 = vpop.permute.xlu1 %3543 }
 0xb37   :  { %v4219_v14 = vpop.xlane.xlu0 %4218 }
 0xb38   :  { %v4233_v15 = vsub.f32 %v4201_v23, %v4219_v14  ;;  %v3550_v23 = vcombine.high %v7327_v6, %v3538_v5 }
 0xb3a   :  { %v4245_v17 = vmul.f32 1.442695, %v4233_v15  ;;  %v3564_v2 = vrot.slane %v3550_v23, %v6927_v52 }
 0xb3b   :  { %v7542_v28 = vpop.eup %6298  ;;  %v4210_v20 = vpop.xlane.xlu0 %4209 }
 0xb3c   :  { %6300 = vpow2.f32 %v4245_v17  ;;  %v4230_v16 = vsub.f32 %v4198_v39, %v4210_v20  ;;  %v4253_v24 = vsel %vm1738_vm2, %v7542_v28, 0.0 }
 0xb3d   :  { %4254 = vadd.xlane.f32.xlu0 %v4253_v24 }
 0xb3e   :  { %v4239_v55 = vmul.f32 1.442695, %v4230_v16 }
 0xb3f   :  { %v7546_v63 = vpop.xlane.xlu0 %4224 }
 0xb40   :  { %6302 = vpow2.f32 %v4239_v55 }
 0xb43   :  { %v4213_v18 = vpop.xlane.xlu0 %4212 }
 0xb44   :  { %v4231_v42 = vsub.f32 %v4199_v46, %v4213_v18 }
 0xb46   :  { %v7548_v25 = vpop.eup %6300  ;;  %v4241_v27 = vmul.f32 1.442695, %v4231_v42 }
 0xb47   :  { %v3532_v39 = vpop.permute.xlu0 %3531  ;;  %v4265_v38 = vsel %vm1738_vm2, %v7548_v25, 0.0 }
 0xb48   :  { %6304 = vpow2.f32 %v4241_v27  ;;  %v3565_v26 = vcombine.low %v3532_v39, %v3544_v51  ;;  %v3566_v35 = vcombine.high %v3532_v39, %v3544_v51  ;;  %4266 = vadd.xlane.f32.xlu0 %v4265_v38 }
 0xb4a   :  { %v7554_v29 = vpop.eup %6302  ;;  %v3573_v3 = vrot.slane %v3565_v26, %v6927_v52  ;;  %v3580_v6 = vrot.slane %v3566_v35, %v6927_v52 }
 0xb4b   :  { %v4256_v32 = vsel %vm1738_vm2, %v7554_v29, 0.0 }
 0xb4c   :  { %v3581_v4 = vcombine.low %v3557_v45, %v3573_v3  ;;  %v3582_v13 = vcombine.high %v3557_v45, %v3573_v3  ;;  %v3597_v46 = vcombine.low %v3564_v2, %v3580_v6  ;;  %v3598_v61 = vcombine.high %v3564_v2, %v3580_v6  ;;  %4257 = vadd.xlane.f32.xlu1 %v4256_v32 }
 0xb4e   :  { %v3589_v37 = vrot.slane %v3581_v4, %v6930_v59  ;;  %v3596_v47 = vrot.slane %v3582_v13, %v6930_v59  ;;  %v3605_v48 = vrot.slane %v3597_v46, %v6930_v59  ;;  %v3612_v31 = vrot.slane %v3598_v61, %v6930_v59 }
 0xb50   :  { %v3685_v40 = vcombine.low %v3589_v37, %v3596_v47  ;;  %v5625_v49 = vcombine.high %v3589_v37, %v3596_v47  ;;  %v3701_v50 = vcombine.low %v3605_v48, %v3612_v31  ;;  %v5626_v22 = vcombine.high %v3605_v48, %v3612_v31 }
 0xb52   :  { %v7566_v36 = vpop.eup %6304  ;;  %v3692_v53 = vrot.slane %v3685_v40, %v6927_v52  ;;  %v3700_v12 = vrot.slane %v5625_v49, %v6927_v52  ;;  %v3708_v56 = vrot.slane %v3701_v50, %v6927_v52  ;;  %v3716_v57 = vrot.slane %v5626_v22, %v6927_v52 }
 0xb53   :  { %v4259_v1 = vsel %vm1738_vm2, %v7566_v36, 0.0 }
 0xb54   :  { %4260 = vadd.xlane.f32.xlu0 %v4259_v1  ;;  %v3717_v60 = vcombine.low %v3692_v53, %v3700_v12  ;;  %v3733_v10 = vcombine.low %v3708_v56, %v3716_v57  ;;  %v3718_v8 = vcombine.high %v3692_v53, %v3700_v12  ;;  %v3734_v9 = vcombine.high %v3708_v56, %v3716_v57 }
 0xb56   :  { %v3725_v34 = vrot.slane %v3717_v60, %v6930_v59  ;;  %v3741_v11 = vrot.slane %v3733_v10, %v6930_v59  ;;  %v3732_v14 = vrot.slane %v3718_v8, %v6930_v59  ;;  %v3748_v15 = vrot.slane %v3734_v9, %v6930_v59 }
 0xb58   :  { %v3749_v17 = vcombine.low %v3725_v34, %v3741_v11  ;;  %v3750_v20 = vcombine.high %v3725_v34, %v3741_v11  ;;  %v3751_v16 = vcombine.low %v3732_v14, %v3748_v15  ;;  %v3752_v24 = vcombine.high %v3732_v14, %v3748_v15 }
 0xb5a   :  { %v3821_v55 = vpack.c.bf16 %v3749_v17, %v3749_v17  ;;  %v3822_v5 = vpack.c.bf16 %v3750_v20, %v3750_v20  ;;  %v3823_v47 = vpack.c.bf16 %v3751_v16, %v3751_v16  ;;  %v3824_v53 = vpack.c.bf16 %v3752_v24, %v3752_v24 }
 0xb5c   :  { %v4305_v18 = vsel %vm1838_vm3, %v3821_v55, 0  ;;  %v4351_v42 = vsel %vm1838_vm3, %v3822_v5, 0  ;;  %v4397_v40 = vsel %vm1838_vm3, %v3823_v47, 0  ;;  %v4443_v56 = vsel %vm1838_vm3, %v3824_v53, 0 }
 0xb5d   :  { %6022 = vmatpush3.bf16.msra.mxu0 %v4305_v18  ;;  %6028 = vmatpush3.bf16.msra.mxu1 %v4351_v42 }
 0xb5e   :  { %6033 = vmatprep.subr.bf16.mxu0 %v6588_v21  ;;  %6039 = vmatprep.subr.bf16.mxu1 %v6588_v21 }
 0xb65   :  { %v4216_v43 = vpop.xlane.xlu1 %4215 }
 0xb66   :  { %v4232_v23 = vsub.f32 %v7528_v58, %v4216_v43  ;;  %v4235_v58 = vsub.f32 %v7517_v54, %v7546_v63 }
 0xb68   :  { %v4243_v27 = vmul.f32 1.442695, %v4232_v23  ;;  %v4249_v3 = vmul.f32 1.442695, %v4235_v58 }
 0xb69   :  { %v4222_v51 = vpop.xlane.xlu1 %4221 }
 0xb6a   :  { %6306 = vpow2.f32 %v4243_v27  ;;  %v4234_v39 = vsub.f32 %v7530_v62, %v4222_v51 }
 0xb6c   :  { %v4247_v38 = vmul.f32 1.442695, %v4234_v39 }
 0xb6d   :  { %v4228_v62 = vpop.xlane.xlu1 %4227 }
 0xb6e   :  { %6308 = vpow2.f32 %v4247_v38  ;;  %v4236_v6 = vsub.f32 %v7534_v7, %v4228_v62 }
 0xb6f   :  { %6310 = vpow2.f32 %v4249_v3 }
 0xb70   :  { %v4251_v32 = vmul.f32 1.442695, %v4236_v6 }
 0xb71   :  { %v3534_v37 = vpop.permute.xlu1 %3533 }
 0xb72   :  { %6312 = vpow2.f32 %v4251_v32 }
 0xb74   :  { %v7584_v26 = vpop.eup %6306 }
 0xb75   :  { %v4262_v35 = vsel %vm1738_vm2, %v7584_v26, 0.0 }
 0xb76   :  { %4263 = vadd.xlane.f32.xlu1 %v4262_v35 }
 0xb78   :  { %v7588_v45 = vpop.eup %6308 }
 0xb79   :  { %v4268_v2 = vsel %vm1738_vm2, %v7588_v45, 0.0  ;;  %v7599_v4 = vpop.eup %6310 }
 0xb7a   :  { %4269 = vadd.xlane.f32.xlu0 %v4268_v2  ;;  %v4271_v13 = vsel %vm1738_vm2, %v7599_v4, 0.0 }
 0xb7c   :  { %v7603_v46 = vpop.eup %6312 }
 0xb7d   :  { %v4274_v61 = vsel %vm1738_vm2, %v7603_v46, 0.0 }
 0xb87   :  { %3545 = vrot.lane.b32.xlu1 %v7333_v19, %s6590_s5 }
 0xb90   :  { %3539 = vrot.lane.b32.xlu0 %v7333_v19, %s7834_s29 }
 0xbab   :  { %4272 = vadd.xlane.f32.xlu1 %v4271_v13 }
 0xbaf   :  { %4275 = vadd.xlane.f32.xlu0 %v4274_v61 }
 0xbca   :  { %v4255_v54 = vpop.xlane.xlu0 %4254 }
 0xbcb   :  { %6314 = vrcp.f32 %v4255_v54 }
 0xbd5   :  { %v6315_v63 = vpop.eup %6314  ;;  %v4267_v49 = vpop.xlane.xlu0 %4266 }
 0xbd6   :  { %v4285_v7 = vmul.f32 %v6315_v63, %v7542_v28 }
 0xbd8   :  { %v4293_v48 = vpack.c.bf16 %v4285_v7, %v4285_v7 }
 0xbd9   :  { %v4258_v31 = vpop.xlane.xlu1 %4257 }
 0xbda   :  { %6024 = vmatmul.mubr.msk.bf16.vlgmr.msra.gmra.mrb[44].mxu0 %vm1738_vm2, %v4293_v48  ;;  %6316 = vrcp.f32 %v4258_v31 }
 0xbdb   :  { %6034 = vmatpush3.bf16.msra.mxu0 %v4397_v40  ;;  %6035 = vmatprep.mubr.msk.bf16.mxu0 %vm6589_vm0, %v6588_v21 }
 0xbdc   :  { %6045 = vmatprep.subr.bf16.mxu0 %v6588_v21 }
 0xbe1   :  { %v4261_v50 = vpop.xlane.xlu0 %4260 }
 0xbe2   :  { %6318 = vrcp.f32 %v4261_v50 }
 0xbe4   :  { %v6317_v22 = vpop.eup %6316 }
 0xbe5   :  { %v4286_v28 = vmul.f32 %v6317_v22, %v7554_v29 }
 0xbe7   :  { %v4294_v12 = vpack.c.bf16 %v4286_v28, %v4286_v28 }
 0xbe9   :  { %6030 = vmatmul.mubr.msk.bf16.vlgmr.msra.gmra.mrb[72].mxu1 %vm1738_vm2, %v4294_v12 }
 0xbea   :  { %6040 = vmatpush3.bf16.msra.mxu1 %v4443_v56  ;;  %6041 = vmatprep.mubr.msk.bf16.mxu1 %vm6589_vm0, %v6588_v21 }
 0xbeb   :  { %6051 = vmatprep.subr.bf16.mxu1 %v6588_v21 }
 0xbec   :  { %v6319_v57 = vpop.eup %6318 }
 0xbed   :  { %v4287_v1 = vmul.f32 %v6319_v57, %v7566_v36 }
 0xbef   :  { %v4295_v60 = vpack.c.bf16 %v4287_v1, %v4287_v1 }
 0xbf1   :  { %6036 = vmatmul.mubr.msk.bf16.vlgmr.msra.gmra.mrb[48].mxu0 %vm1738_vm2, %v4295_v60 }
 0xbf2   :  { %6047 = vmatprep.mubr.msk.bf16.mxu0 %vm6589_vm0, %v6588_v21 }
 0xc03   :  { %v4264_v29 = vpop.xlane.xlu1 %4263 }
 0xc04   :  { %6320 = vrcp.f32 %v4264_v29 }
 0xc05   :  { %6322 = vrcp.f32 %v4267_v49 }
 0xc07   :  { %v4270_v10 = vpop.xlane.xlu0 %4269  ;;  %v3546_v8 = vpop.permute.xlu1 %3545 }
 0xc08   :  { %v3633_v9 = vcombine.low %v3534_v37, %v3546_v8  ;;  %v3634_v34 = vcombine.high %v3534_v37, %v3546_v8  ;;  %6324 = vrcp.f32 %v4270_v10 }
 0xc0a   :  { %v3641_v36 = vrot.slane %v3633_v9, %v6927_v52  ;;  %v3648_v20 = vrot.slane %v3634_v34, %v6927_v52 }
 0xc0b   :  { %v3540_v11 = vpop.permute.xlu0 %3539 }
 0xc0c   :  { %v3617_v14 = vcombine.low %v7333_v19, %v3540_v11  ;;  %v3618_v15 = vcombine.high %v7333_v19, %v3540_v11 }
 0xc0e   :  { %v6321_v17 = vpop.eup %6320  ;;  %v3625_v16 = vrot.slane %v3617_v14, %v6927_v52  ;;  %v3632_v24 = vrot.slane %v3618_v15, %v6927_v52 }
 0xc0f   :  { %v4288_v55 = vmul.f32 %v6321_v17, %v7584_v26  ;;  %v6323_v63 = vpop.eup %6322 }
 0xc10   :  { %v3649_v5 = vcombine.low %v3625_v16, %v3641_v36  ;;  %v3650_v18 = vcombine.high %v3625_v16, %v3641_v36  ;;  %v3665_v42 = vcombine.low %v3632_v24, %v3648_v20  ;;  %v3666_v43 = vcombine.high %v3632_v24, %v3648_v20 }
 0xc11   :  { %v4296_v23 = vpack.c.bf16 %v4288_v55, %v4288_v55  ;;  %v4289_v28 = vmul.f32 %v6323_v63, %v7548_v25 }
 0xc12   :  { %v3657_v19 = vrot.slane %v3649_v5, %v6930_v59  ;;  %v3664_v27 = vrot.slane %v3650_v18, %v6930_v59  ;;  %v3673_v51 = vrot.slane %v3665_v42, %v6930_v59  ;;  %v3680_v39 = vrot.slane %v3666_v43, %v6930_v59  ;;  %v6325_v31 = vpop.eup %6324  ;;  %v6214_v18 = vld [vmem:[#allocation13] sm:$0xff]  }
 0xc13   :  { %6042 = vmatmul.mubr.msk.bf16.vlgmr.msra.gmra.mrb[76].mxu1 %vm1738_vm2, %v4296_v23  ;;  %v4290_v53 = vmul.f32 %v6325_v31, %v7588_v45  ;;  %v4297_v10 = vpack.c.bf16 %v4289_v28, %v4289_v28  ;;  %v6216_v23 = vld [vmem:[#allocation13 + $0x10] sm:$0xff]  }
 0xc14   :  { %v3753_v38 = vcombine.low %v3657_v19, %v3664_v27  ;;  %v5627_v35 = vcombine.high %v3657_v19, %v3664_v27  ;;  %v3769_v2 = vcombine.low %v3673_v51, %v3680_v39  ;;  %v5628_v26 = vcombine.high %v3673_v51, %v3680_v39  ;;  %6053 = vmatprep.mubr.msk.bf16.mxu1 %vm6589_vm0, %v6588_v21  ;;  %v6217_v27 = vld [vmem:[#allocation13 + $0x18] sm:$0xff]  }
 0xc15   :  { %v4298_v8 = vpack.c.bf16 %v4290_v53, %v4290_v53 }
 0xc16   :  { %v3760_v58 = vrot.slane %v3753_v38, %v6927_v52  ;;  %v3768_v62 = vrot.slane %v5627_v35, %v6927_v52  ;;  %v3776_v3 = vrot.slane %v3769_v2, %v6927_v52  ;;  %v3784_v6 = vrot.slane %v5628_v26, %v6927_v52  ;;  %v6218_v2 = vld [vmem:[#allocation13 + $0x20] sm:$0xff]  }
 0xc18   :  { %v3785_v32 = vcombine.low %v3760_v58, %v3768_v62  ;;  %v3801_v13 = vcombine.low %v3776_v3, %v3784_v6  ;;  %v3786_v61 = vcombine.high %v3760_v58, %v3768_v62  ;;  %v3802_v54 = vcombine.high %v3776_v3, %v3784_v6  ;;  %v6219_v58 = vld [vmem:[#allocation13 + $0x28] sm:$0xff]  }
 0xc1a   :  { %v3793_v37 = vrot.slane %v3785_v32, %v6930_v59  ;;  %v3809_v7 = vrot.slane %v3801_v13, %v6930_v59  ;;  %v3800_v47 = vrot.slane %v3786_v61, %v6930_v59  ;;  %v3816_v48 = vrot.slane %v3802_v54, %v6930_v59 }
 0xc1c   :  { %v3817_v40 = vcombine.low %v3793_v37, %v3809_v7  ;;  %v3818_v49 = vcombine.high %v3793_v37, %v3809_v7  ;;  %v3819_v50 = vcombine.low %v3800_v47, %v3816_v48  ;;  %v3820_v22 = vcombine.high %v3800_v47, %v3816_v48 }
 0xc1e   :  { %v3825_v12 = vpack.c.bf16 %v3817_v40, %v3817_v40  ;;  %v3826_v56 = vpack.c.bf16 %v3818_v49, %v3818_v49  ;;  %v3827_v60 = vpack.c.bf16 %v3819_v50, %v3819_v50  ;;  %v3828_v29 = vpack.c.bf16 %v3820_v22, %v3820_v22 }
 0xc20   :  { %v4489_v57 = vsel %vm1838_vm3, %v3825_v12, 0  ;;  %v4535_v1 = vsel %vm1838_vm3, %v3826_v56, 0  ;;  %v4581_v25 = vsel %vm1838_vm3, %v3827_v60, 0  ;;  %v4627_v45 = vsel %vm1838_vm3, %v3828_v29, 0 }
 0xc21   :  { %6046 = vmatpush3.bf16.msra.mxu0 %v4489_v57  ;;  %6052 = vmatpush3.bf16.msra.mxu1 %v4535_v1 }
 0xc22   :  { %6057 = vmatprep.subr.bf16.mxu0 %v6588_v21  ;;  %6063 = vmatprep.subr.bf16.mxu1 %v6588_v21 }
 0xc24   :  { %6048 = vmatmul.mubr.msk.bf16.vlgmr.msra.gmra.mrb[52].mxu0 %vm1738_vm2, %v4297_v10  ;;  %6054 = vmatmul.mubr.msk.bf16.vlgmr.msra.gmra.mrb[80].mxu1 %vm1738_vm2, %v4298_v8 }
 0xc25   :  { %6058 = vmatpush3.bf16.msra.mxu0 %v4581_v25  ;;  %6064 = vmatpush3.bf16.msra.mxu1 %v4627_v45 }
 0xc26   :  { %6059 = vmatprep.mubr.msk.bf16.mxu0 %vm6589_vm0, %v6588_v21  ;;  %6065 = vmatprep.mubr.msk.bf16.mxu1 %vm6589_vm0, %v6588_v21 }
 0xc27   :  { %6069 = vmatprep.subr.bf16.mxu0 %v6588_v21 }
 0xc38   :  { %v4273_v9 = vpop.xlane.xlu1 %4272 }
 0xc39   :  { %6326 = vrcp.f32 %v4273_v9 }
 0xc3c   :  { %v4276_v34 = vpop.xlane.xlu0 %4275 }
 0xc3d   :  { %6328 = vrcp.f32 %v4276_v34 }
 0xc43   :  { %v6327_v11 = vpop.eup %6326 }
 0xc44   :  { %v4291_v14 = vmul.f32 %v6327_v11, %v7599_v4  ;;  %v6215_v4 = vld [vmem:[#allocation13 + $0x8] sm:$0xff]  }
 0xc46   :  { %v4299_v15 = vpack.c.bf16 %v4291_v14, %v4291_v14 }
 0xc47   :  { %v6329_v17 = vpop.eup %6328 }
 0xc48   :  { %v4292_v36 = vmul.f32 %v6329_v17, %v7603_v46  ;;  %6060 = vmatmul.mubr.msk.bf16.vlgmr.msra.gmra.mrb[56].mxu0 %vm1738_vm2, %v4299_v15 }
 0xc49   :  { %6085 = vmatprep.mubr.msk.bf16.mxu0 %vm6589_vm0, %v6588_v21  ;;  %6070 = vmatpush3.bf16.msra.mxu0 %v6214_v18 }
 0xc4a   :  { %v4300_v20 = vpack.c.bf16 %v4292_v36, %v4292_v36  ;;  %6071 = vmatprep.subr.bf16.mxu0 %v6588_v21 }
 0xc4c   :  { %6066 = vmatmul.mubr.msk.bf16.vlgmr.msra.gmra.mrb[84].mxu1 %vm1738_vm2, %v4300_v20 }
 0xc4d   :  { %5267 = vmatprep.mubr.bf16.mxu1 %v6587_v0  ;;  %6072 = vmatpush3.bf16.msra.mxu0 %v6215_v4 }
 0xc4e   :  { %6073 = vmatprep.subr.bf16.mxu0 %v6588_v21 }
 0xc51   :  { %6074 = vmatpush3.bf16.msra.mxu0 %v6216_v23 }
 0xc52   :  { %6075 = vmatprep.subr.bf16.mxu0 %v6588_v21 }
 0xc55   :  { %6076 = vmatpush3.bf16.msra.mxu0 %v6217_v27 }
 0xc56   :  { %6077 = vmatprep.subr.bf16.mxu0 %v6588_v21 }
 0xc59   :  { %6078 = vmatpush3.bf16.msra.mxu0 %v6218_v2 }
 0xc5a   :  { %6079 = vmatprep.subr.bf16.mxu0 %v6588_v21 }
 0xc5d   :  { %6080 = vmatpush3.bf16.msra.mxu0 %v6219_v58 }
 0xc5e   :  { %6081 = vmatprep.subr.bf16.mxu0 %v6588_v21 }
 0xcad   :  { %v4341_v16 = vpop.f32.mrb[44].mxu0 }
 0xcae   :  { %v6025_v24 = vpop.f32.mrb[45].mxu0 }
 0xcaf   :  { %v4344_v55 = vpop.f32.mrb[46].mxu0 }
 0xcb0   :  { %v6026_v5 = vpop.f32.mrb[47].mxu0 }
 0xcbc   :  { %v4387_v46 = vpop.f32.mrb[72].mxu1 }
 0xcbd   :  { %v6031_v42 = vpop.f32.mrb[73].mxu1 }
 0xcbe   :  { %v4390_v43 = vpop.f32.mrb[74].mxu1 }
 0xcbf   :  { %v6032_v19 = vpop.f32.mrb[75].mxu1 }
 0xcc4   :  { %v4433_v0 = vpop.f32.mrb[48].mxu0 }
 0xcc5   :  { %v4669_v51 = vcombine.low %v4341_v16, %v4433_v0  ;;  %v4670_v39 = vcombine.high %v4341_v16, %v4433_v0  ;;  %v6037_v38 = vpop.f32.mrb[49].mxu0 }
 0xcc6   :  { %v4436_v35 = vpop.f32.mrb[50].mxu0 }
 0xcc7   :  { %v6038_v26 = vpop.f32.mrb[51].mxu0  ;;  %v4677_v61 = vrot.slane %v4669_v51, %v6927_v52  ;;  %v4684_v54 = vrot.slane %v4670_v39, %v6927_v52 }
 0xce6   :  { %v4479_v62 = vpop.f32.mrb[76].mxu1 }
 0xce7   :  { %v4685_v3 = vcombine.low %v4387_v46, %v4479_v62  ;;  %v4686_v6 = vcombine.high %v4387_v46, %v4479_v62  ;;  %v6043_v32 = vpop.f32.mrb[77].mxu1 }
 0xce8   :  { %v4482_v13 = vpop.f32.mrb[78].mxu1 }
 0xce9   :  { %v4693_v63 = vrot.slane %v4685_v3, %v6927_v52  ;;  %v4700_v37 = vrot.slane %v4686_v6, %v6927_v52  ;;  %v6044_v7 = vpop.f32.mrb[79].mxu1 }
 0xceb   :  { %v4701_v47 = vcombine.low %v4677_v61, %v4693_v63  ;;  %v4702_v48 = vcombine.high %v4677_v61, %v4693_v63  ;;  %v4717_v31 = vcombine.low %v4684_v54, %v4700_v37  ;;  %v4718_v40 = vcombine.high %v4684_v54, %v4700_v37 }
 0xced   :  { %v4709_v49 = vrot.slane %v4701_v47, %v6930_v59  ;;  %v4716_v50 = vrot.slane %v4702_v48, %v6930_v59  ;;  %v4725_v22 = vrot.slane %v4717_v31, %v6930_v59  ;;  %v4732_v28 = vrot.slane %v4718_v40, %v6930_v59 }
 0xcef   :  { %v4805_v53 = vcombine.low %v4709_v49, %v4716_v50  ;;  %v5645_v12 = vcombine.high %v4709_v49, %v4716_v50  ;;  %v4821_v56 = vcombine.low %v4725_v22, %v4732_v28  ;;  %v5646_v57 = vcombine.high %v4725_v22, %v4732_v28  ;;  %v6220_v28 = vld [vmem:[#allocation13 + $0x30] sm:$0xff]  }
 0xcf0   :  { %6082 = vmatpush3.bf16.msra.mxu0 %v6220_v28  ;;  %v6236_v28 = vld [vmem:[#allocation14 + $0x44] ss:$8 sps:$4 sm:$0xff]  }
 0xcf1   :  { %v4812_v1 = vrot.slane %v4805_v53, %v6927_v52  ;;  %v4820_v60 = vrot.slane %v5645_v12, %v6927_v52  ;;  %v4828_v29 = vrot.slane %v4821_v56, %v6927_v52  ;;  %v4836_v10 = vrot.slane %v5646_v57, %v6927_v52  ;;  %6083 = vmatprep.subr.bf16.mxu0 %v6588_v21 }
 0xcf3   :  { %v4838_v8 = vcombine.high %v4812_v1, %v4820_v60  ;;  %v4854_v25 = vcombine.high %v4828_v29, %v4836_v10  ;;  %v4837_v45 = vcombine.low %v4812_v1, %v4820_v60  ;;  %v4853_v9 = vcombine.low %v4828_v29, %v4836_v10 }
 0xcf5   :  { %v7686_v34 = vrot.slane %v4838_v8, %v6930_v59  ;;  %v7689_v11 = vrot.slane %v4854_v25, %v6930_v59  ;;  %v7692_v14 = vrot.slane %v4837_v45, %v6930_v59  ;;  %v7695_v15 = vrot.slane %v4853_v9, %v6930_v59 }
 0xcf7   :  { %v4525_v17 = vpop.f32.mrb[52].mxu0  ;;  %v4571_v36 = vpop.f32.mrb[80].mxu1  ;;  %v4871_v20 = vcombine.low %v7686_v34, %v7689_v11  ;;  %v4869_v16 = vcombine.low %v7692_v14, %v7695_v15  ;;  %v4870_v24 = vcombine.high %v7692_v14, %v7695_v15  ;;  %v4872_v55 = vcombine.high %v7686_v34, %v7689_v11  ;;  %v6221_v34 = vld [vmem:[#allocation13 + $0x38] sm:$0xff]   ;;  %v5649_v14 = vld [vmem:[%s7790_s11] ss:$0 sm:$0xff] }
 0xcf8   :  { %v6049_v5 = vpop.f32.mrb[53].mxu0  ;;  %v6055_v18 = vpop.f32.mrb[81].mxu1  ;;  %6084 = vmatpush3.bf16.msra.mxu0 %v6221_v34  ;;  %v6251_v34 = vld [vmem:[#allocation16 + $0x10] sm:$0xff]  }
 0xcf9   :  { %v4528_v4 = vpop.f32.mrb[54].mxu0  ;;  %v4574_v46 = vpop.f32.mrb[82].mxu1 }
 0xcfa   :  { %v6050_v42 = vpop.f32.mrb[55].mxu0  ;;  %v6056_v43 = vpop.f32.mrb[83].mxu1 }
 0xd1b   :  { %v4617_v23 = vpop.f32.mrb[56].mxu0 }
 0xd1c   :  { %v4737_v19 = vcombine.low %v4525_v17, %v4617_v23  ;;  %v4738_v27 = vcombine.high %v4525_v17, %v4617_v23  ;;  %v6061_v0 = vpop.f32.mrb[57].mxu0 }
 0xd1d   :  { %v4620_v51 = vpop.f32.mrb[58].mxu0 }
 0xd1e   :  { %v6062_v39 = vpop.f32.mrb[59].mxu0  ;;  %v4745_v62 = vrot.slane %v4737_v19, %v6927_v52  ;;  %v4752_v3 = vrot.slane %v4738_v27, %v6927_v52 }
 0xd1f   :  { %v4663_v38 = vpop.f32.mrb[84].mxu1 }
 0xd20   :  { %v4753_v35 = vcombine.low %v4571_v36, %v4663_v38  ;;  %v4754_v2 = vcombine.high %v4571_v36, %v4663_v38  ;;  %v6067_v26 = vpop.f32.mrb[85].mxu1 }
 0xd21   :  { %v4666_v58 = vpop.f32.mrb[86].mxu1 }
 0xd22   :  { %v4761_v6 = vrot.slane %v4753_v35, %v6927_v52  ;;  %v4768_v32 = vrot.slane %v4754_v2, %v6927_v52  ;;  %v6068_v13 = vpop.f32.mrb[87].mxu1 }
 0xd23   :  { %v6224_v13 = vld [vmem:[#allocation14 + $0x4] ss:$8 sps:$4 sm:$0xff]  }
 0xd24   :  { %v4769_v61 = vcombine.low %v4745_v62, %v4761_v6  ;;  %v4770_v54 = vcombine.high %v4745_v62, %v4761_v6  ;;  %v4785_v63 = vcombine.low %v4752_v3, %v4768_v32  ;;  %v4786_v37 = vcombine.high %v4752_v3, %v4768_v32  ;;  %v6222_v32 = vld [vmem:[#allocation14] ss:$8 sps:$4 sm:$0xff]   ;;  %5235 = vmatprep.subr.bf16.mxu1 %v6224_v13 }
 0xd25   :  { %5236 = vmatpush1.bf16.msra.mxu1 %v6222_v32 }
 0xd26   :  { %v4777_v7 = vrot.slane %v4769_v61, %v6930_v59  ;;  %v4784_v47 = vrot.slane %v4770_v54, %v6930_v59  ;;  %v4793_v48 = vrot.slane %v4785_v63, %v6930_v59  ;;  %v4800_v31 = vrot.slane %v4786_v37, %v6930_v59  ;;  %v6227_v61 = vld [vmem:[#allocation14 + $0x14] ss:$8 sps:$4 sm:$0xff]   ;;  %v6225_v54 = vld [vmem:[#allocation14 + $0x10] ss:$8 sps:$4 sm:$0xff]  }
 0xd27   :  { %5237 = vmatprep.subr.bf16.mxu1 %v6227_v61 }
 0xd28   :  { %v4873_v40 = vcombine.low %v4777_v7, %v4784_v47  ;;  %v5647_v49 = vcombine.high %v4777_v7, %v4784_v47  ;;  %v4889_v50 = vcombine.low %v4793_v48, %v4800_v31  ;;  %v5648_v22 = vcombine.high %v4793_v48, %v4800_v31 }
 0xd29   :  { %5238 = vmatpush1.bf16.msra.mxu1 %v6225_v54 }
 0xd2a   :  { %v4880_v53 = vrot.slane %v4873_v40, %v6927_v52  ;;  %v4888_v12 = vrot.slane %v5647_v49, %v6927_v52  ;;  %v4896_v56 = vrot.slane %v4889_v50, %v6927_v52  ;;  %v4904_v57 = vrot.slane %v5648_v22, %v6927_v52  ;;  %v6230_v40 = vld [vmem:[#allocation14 + $0x24] ss:$8 sps:$4 sm:$0xff]   ;;  %v6228_v49 = vld [vmem:[#allocation14 + $0x20] ss:$8 sps:$4 sm:$0xff]   ;;  %v6233_v50 = vld [vmem:[#allocation14 + $0x34] ss:$8 sps:$4 sm:$0xff]  }
 0xd2b   :  { %5239 = vmatprep.subr.bf16.mxu1 %v6230_v40  ;;  %v6231_v22 = vld [vmem:[#allocation14 + $0x30] ss:$8 sps:$4 sm:$0xff]  }
 0xd2c   :  { %v4906_v1 = vcombine.high %v4880_v53, %v4888_v12  ;;  %v4922_v60 = vcombine.high %v4896_v56, %v4904_v57  ;;  %v4905_v29 = vcombine.low %v4880_v53, %v4888_v12  ;;  %v4921_v10 = vcombine.low %v4896_v56, %v4904_v57  ;;  %v6234_v53 = vld [vmem:[#allocation14 + $0x40] ss:$8 sps:$4 sm:$0xff]   ;;  %v6239_v12 = vld [vmem:[#allocation14 + $0x54] ss:$8 sps:$4 sm:$0xff]   ;;  %v6237_v56 = vld [vmem:[#allocation14 + $0x50] ss:$8 sps:$4 sm:$0xff]  }
 0xd2d   :  { %5240 = vmatpush1.bf16.msra.mxu1 %v6228_v49  ;;  %v6242_v57 = vld [vmem:[#allocation14 + $0x64] ss:$8 sps:$4 sm:$0xff]  }
 0xd2e   :  { %v4920_v8 = vrot.slane %v4906_v1, %v6930_v59  ;;  %v4936_v25 = vrot.slane %v4922_v60, %v6930_v59  ;;  %v4913_v45 = vrot.slane %v4905_v29, %v6930_v59  ;;  %v4929_v9 = vrot.slane %v4921_v10, %v6930_v59  ;;  %5241 = vmatprep.subr.bf16.mxu1 %v6233_v50  ;;  %v6240_v1 = vld [vmem:[#allocation14 + $0x60] ss:$8 sps:$4 sm:$0xff]   ;;  %v6245_v60 = vld [vmem:[#allocation14 + $0x74] ss:$8 sps:$4 sm:$0xff]  }
 0xd2f   :  { %v6246_v29 = vld [vmem:[#allocation16 + $0x40] sm:$0xff]  }
 0xd30   :  { %v4939_v11 = vcombine.low %v4920_v8, %v4936_v25  ;;  %v4938_v17 = vcombine.high %v4913_v45, %v4929_v9  ;;  %v4937_v36 = vcombine.low %v4913_v45, %v4929_v9  ;;  %v4940_v52 = vcombine.high %v4920_v8, %v4936_v25  ;;  %v6247_v10 = vld [vmem:[#allocation16] sm:$0xff]   ;;  %v6248_v8 = vld [vmem:[#allocation16 + $0x48] sm:$0xff]   ;;  %v6243_v25 = vld [vmem:[#allocation14 + $0x70] ss:$8 sps:$4 sm:$0xff]   ;;  %5795 = vmatprep.subr.bf16.mxu0 %v6246_v29 }
 0xd31   :  { %5242 = vmatpush1.bf16.msra.mxu1 %v6231_v22  ;;  %v6249_v45 = vld [vmem:[#allocation16 + $0x8] sm:$0xff]   ;;  %v6250_v9 = vld [vmem:[#allocation16 + $0x50] sm:$0xff]  }
 0xd32   :  { %v6132_v5 = vpack.i.bf16 %v4939_v11, %v4871_v20  ;;  %v6127_v18 = vpack.i.bf16 %v4938_v17, %v4870_v24  ;;  %v6137_v4 = vpack.i.bf16 %v4940_v52, %v4872_v55  ;;  %5243 = vmatprep.subr.bf16.mxu1 %v6236_v28  ;;  %v6252_v11 = vld [vmem:[#allocation16 + $0x58] sm:$0xff]   ;;  %v6255_v52 = vld [vmem:[#allocation16 + $0x20] sm:$0xff]  }
 0xd33   :  { %v6253_v17 = vld [vmem:[#allocation16 + $0x18] sm:$0xff]  }
 0xd34   :  { %6133 = vrot.lane.b32.xlu1 %v6132_v5, %s7834_s29  ;;  %6128 = vrot.lane.b32.xlu0 %v6127_v18, %s6590_s5  ;;  %v6256_v5 = vld [vmem:[#allocation16 + $0x68] sm:$0xff]   ;;  %s5509_s5 = sshll.u32 %s6594_s4, 4  ;;  %s5510_s5 = int_to_ptr.vmem [resolvable:$true] %s5509_s5 }
 0xd35   :  { %5244 = vmatpush1.bf16.msra.mxu1 %v6234_v53  ;;  %p6543_p3 = scmp.lt.s32.totalorder %s5510_s5, %s5510_s5 }
 0xd36   :  { %5245 = vmatprep.subr.bf16.mxu1 %v6239_v12 }
 0xd38   :  { %6138 = vrot.lane.b32.xlu1 %v6137_v4, %s6591_s22  ;;  %s6538_s22 = scalar_lea.vmem %s5510_s5, 256 }
 0xd39   :  { %5246 = vmatpush1.bf16.msra.mxu1 %v6237_v56  ;;  %p6539_p2 = scmp.ne.s32.totalorder %s5510_s5, %s6538_s22  ;;  %p6544_p4 = scmp.lt.s32.totalorder %s6538_s22, %s6538_s22 }
 0xd3a   :  { %5247 = vmatprep.subr.bf16.mxu1 %v6242_v57 }
 0xd3b   :  { %p6545_p5 = por %p6544_p4, %p6543_p3 }
 0xd3d   :  { %5248 = vmatpush1.bf16.msra.mxu1 %v6240_v1  ;;  %p6546_p6 = pnand %p6545_p5, %p6539_p2 }
 0xd3e   :  { %5249 = vmatprep.subr.bf16.mxu1 %v6245_v60 }
 0xd41   :  { %5250 = vmatpush1.bf16.msra.mxu1 %v6243_v25 }
 0xda6   :  { %v6134_v21 = vpop.permute.xlu1 %6133  ;;  %v6129_v46 = vpop.permute.xlu0 %6128 }
 0xda7   :  { %v6131_v42 = vunpack.i.h.bf16 %v6129_v46  ;;  %v6130_v43 = vunpack.i.l.bf16 %v6129_v46  ;;  %v6136_v59 = vunpack.i.h.bf16 %v6134_v21  ;;  %v6135_v23 = vunpack.i.l.bf16 %v6134_v21 }
 0xda9   :  { %v4965_v19 = vsel %vm1361_vm1, %v4869_v16, %v6130_v43  ;;  %v4966_v20 = vsel %vm1361_vm1, %v4937_v36, %v6131_v42  ;;  %v6254_v36 = vld [vmem:[#allocation16 + $0x60] sm:$0xff]  }
 0xdaa   :  { %v6139_v24 = vpop.permute.xlu1 %6138  ;;  %v4967_v0 = vsel %vm2502_vm4, %v4965_v19, %v6135_v23  ;;  %v4968_v51 = vsel %vm2502_vm4, %v4966_v20, %v6136_v59  ;;  %v5658_v19 = vld [vmem:[%s7797_s18] ss:$0 sm:$0xff] }
 0xdab   :  { %v6141_v55 = vunpack.i.h.bf16 %v6139_v24  ;;  %v6140_v27 = vunpack.i.l.bf16 %v6139_v24 }
 0xdad   :  { %v4969_v39 = vsel %vm2505_vm5, %v4967_v0, %v6140_v27  ;;  %v4970_v38 = vsel %vm2505_vm5, %v4968_v51, %v6141_v55  ;;  %v5659_v27 = vld [vmem:[%s7798_s19] ss:$0 sm:$0xff] }
 0xdae   :  { %v4971_v35 = vpack.c.bf16 %v4970_v38, %v4969_v39 }
 0xdb0   :  { %6086 = vmatmul.mubr.bf16.vlgmr.msra.gmra.mrb[60].mxu0 %v4971_v35  ;;  %v6257_v35 = vld [vmem:[#allocation16 + $0x28] sm:$0xff]  }
 0xdb1   :  { %5796 = vmatpush3.bf16.msra.mxu0 %v6247_v10 }
 0xdb2   :  { %5797 = vmatprep.subr.bf16.mxu0 %v6248_v8 }
 0xdb5   :  { %5798 = vmatpush3.bf16.msra.mxu0 %v6249_v45 }
 0xdb6   :  { %5799 = vmatprep.subr.bf16.mxu0 %v6250_v9 }
 0xdb9   :  { %5800 = vmatpush3.bf16.msra.mxu0 %v6251_v34 }
 0xdba   :  { %5801 = vmatprep.subr.bf16.mxu0 %v6252_v11 }
 0xdbd   :  { %5802 = vmatpush3.bf16.msra.mxu0 %v6253_v17 }
 0xdbe   :  { %5803 = vmatprep.subr.bf16.mxu0 %v6254_v36 }
 0xdc1   :  { %5804 = vmatpush3.bf16.msra.mxu0 %v6255_v52 }
 0xdc2   :  { %5805 = vmatprep.subr.bf16.mxu0 %v6256_v5 }
 0xdc5   :  { %5806 = vmatpush3.bf16.msra.mxu0 %v6257_v35 }
 0xe83   :  { %v5077_v15 = vpop.f32.mrb[60].mxu0 }
 0xe84   :  { %v5078_v16 = vadd.f32 %v5649_v14, %v5077_v15  ;;  %v6087_v2 = vpop.f32.mrb[61].mxu0  ;;  %v6259_v15 = vld [vmem:[#allocation16 + $0x30] sm:$0xff]  }
 0xe85   :  { %v5080_v26 = vpop.f32.mrb[62].mxu0  ;;  %v6261_v2 = vld [vmem:[#allocation16 + $0x38] sm:$0xff]  }
 0xe86   :  { %v5081_v58 = vadd.f32 %v5649_v14, %v5080_v26  ;;  %v6088_v62 = vpop.f32.mrb[63].mxu0  ;;  %v5084_v3 = vadd.f32 %v5078_v16, %v7342_v41  ;;  %v6258_v14 = vld [vmem:[#allocation16 + $0x70] sm:$0xff]   ;;  %v6260_v16 = vld [vmem:[#allocation16 + $0x78] sm:$0xff]   ;;  %v5143_v26 = vld [vmem:[%s7792_s13] sm:$0x3] }
 0xe87   :  { %5807 = vmatprep.subr.bf16.mxu0 %v6258_v14  ;;  %v5152_v62 = vrot.slane %v5143_v26, %v6882_v30  ;;  %v5676_v30 = vld [vmem:[%s7794_s15] ss:$0 sm:$0xff] }
 0xe88   :  { %5088 = vadd.xlane.f32.xlu0 %v5084_v3  ;;  %v5085_v6 = vadd.f32 %v5081_v58, %v7344_v44  ;;  %5808 = vmatpush3.bf16.msra.mxu0 %v6259_v15  ;;  %v5148_v58 = vrot.slane %v5143_v26, %v6891_v33 }
 0xe89   :  { %5809 = vmatprep.subr.bf16.mxu0 %v6260_v16 }
 0xe8a   :  { %5090 = vadd.xlane.f32.xlu1 %v5085_v6 }
 0xe8c   :  { %5810 = vmatpush3.bf16.msra.mxu0 %v6261_v2 }
 0xf15   :  { %v5089_v63 = vpop.xlane.xlu0 %5088 }
 0xf16   :  { %v5092_v37 = vmul.f32 0.0078125, %v5089_v63 }
 0xf17   :  { %v5091_v7 = vpop.xlane.xlu1 %5090 }
 0xf18   :  { %v5094_v47 = vsub.f32 %v5084_v3, %v5092_v37  ;;  %v5093_v48 = vmul.f32 0.0078125, %v5091_v7 }
 0xf1a   :  { %v7739_v31 = vsub.f32 %v5085_v6, %v5093_v48  ;;  %v5096_v41 = vmul.f32 %v5094_v47, %v5094_v47 }
 0xf1c   :  { %5098 = vadd.xlane.f32.xlu0 %v5096_v41  ;;  %v5097_v44 = vmul.f32 %v7739_v31, %v7739_v31 }
 0xf20   :  { %5100 = vadd.xlane.f32.xlu0 %v5097_v44 }
 0xfa9   :  { %v5099_v18 = vpop.xlane.xlu0 %5098 }
 0xfaa   :  { %v5102_v4 = vmul.f32 0.0078125, %v5099_v18 }
 0xfac   :  { %v5104_v21 = vadd.f32 1e-05, %v5102_v4  ;;  %v5693_v4 = vld [vmem:[%s7799_s20] ss:$0 sm:$0xff] }
 0xfad   :  { %v5101_v46 = vpop.xlane.xlu0 %5100 }
 0xfae   :  { %6330 = vrsqrt.f32 %v5104_v21  ;;  %v5103_v42 = vmul.f32 0.0078125, %v5101_v46 }
 0xfb0   :  { %v5105_v43 = vadd.f32 1e-05, %v5103_v42  ;;  %v5694_v42 = vld [vmem:[%s7837_s28] ss:$0 sm:$0xff] }
 0xfb2   :  { %6332 = vrsqrt.f32 %v5105_v43 }
 0xfb8   :  { %v6331_v59 = vpop.eup %6330 }
 0xfb9   :  { %v5108_v23 = vmul.f32 %v6331_v59, %v5094_v47 }
 0xfbb   :  { %v5116_v55 = vmul.f32 %v5658_v19, %v5108_v23 }
 0xfbc   :  { %v6333_v20 = vpop.eup %6332 }
 0xfbd   :  { %v5109_v24 = vmul.f32 %v6333_v20, %v7739_v31  ;;  %v5124_v51 = vadd.f32 %v5659_v27, %v5116_v55 }
 0xfbf   :  { %v5117_v0 = vmul.f32 %v5658_v19, %v5109_v24 }
 0xfc1   :  { %v5125_v39 = vadd.f32 %v5659_v27, %v5117_v0 }
 0xfc3   :  { %v5126_v38 = vpack.c.bf16 %v5125_v39, %v5124_v51 }
 0xfc5   :  { %5268 = vmatmul.mubr.bf16.vlgmr.msra.gmra.mrb[88].mxu1 %v5126_v38 }
0x1098   :  { %v5269_v3 = vpop.f32.mrb[88].mxu1 }
0x1099   :  { %v5270_v6 = vadd.f32 %v5269_v3, %v5148_v58  ;;  %v5271_v32 = vpop.f32.mrb[89].mxu1 }
0x109a   :  { %v5272_v13 = vadd.f32 %v5271_v32, %v5152_v62  ;;  %v5273_v61 = vpop.f32.mrb[90].mxu1 }
0x109b   :  { %v5274_v54 = vadd.f32 %v5273_v61, %v5148_v58  ;;  %v5275_v63 = vpop.f32.mrb[91].mxu1  ;;  %v5278_v7 = vmax.f32 %v5270_v6, 0.0 }
0x109c   :  { %v5276_v37 = vadd.f32 %v5275_v63, %v5152_v62  ;;  %v5279_v48 = vmax.f32 %v5272_v13, 0.0 }
0x109d   :  { %v5280_v47 = vmax.f32 %v5274_v54, 0.0 }
0x109e   :  { %v5281_v31 = vmax.f32 %v5276_v37, 0.0 }
0x109f   :  { %v5282_v41 = vpack.c.bf16 %v5280_v47, %v5278_v7 }
0x10a0   :  { %v5283_v44 = vpack.c.bf16 %v5281_v31, %v5279_v48 }
0x10a2   :  { %5451 = vmatprep.mubr.bf16.mxu0 %v5283_v44 }
0x10a3   :  { %5452 = vmatmul.mubr.bf16.vlgmr.msra.gmra.mrb[64].mxu0 %v5282_v41 }
0x1176   :  { %v5811_v40 = vpop.f32.mrb[64].mxu0 }
0x1177   :  { %v5812_v33 = vpop.f32.mrb[65].mxu0 }
0x1178   :  { %v5813_v49 = vadd.f32 %v5812_v33, %v5811_v40  ;;  %v5814_v50 = vpop.f32.mrb[66].mxu0 }
0x1179   :  { %v5815_v22 = vpop.f32.mrb[67].mxu0 }
0x117a   :  { %v5454_v28 = vadd.f32 %v5813_v49, %v5676_v30  ;;  %v5816_v53 = vadd.f32 %v5815_v22, %v5814_v50 }
0x117c   :  { %v5457_v12 = vadd.f32 %v5816_v53, %v5676_v30  ;;  %v5460_v56 = vadd.f32 %v5454_v28, %v5124_v51 }
0x117e   :  { %5464 = vadd.xlane.f32.xlu1 %v5460_v56  ;;  %v5461_v57 = vadd.f32 %v5457_v12, %v5125_v39 }
0x1180   :  { %5466 = vadd.xlane.f32.xlu0 %v5461_v57 }
0x120b   :  { %v5465_v1 = vpop.xlane.xlu1 %5464 }
0x120c   :  { %v5468_v60 = vmul.f32 0.0078125, %v5465_v1 }
0x120d   :  { %v5467_v29 = vpop.xlane.xlu0 %5466 }
0x120e   :  { %v5470_v10 = vsub.f32 %v5460_v56, %v5468_v60  ;;  %v5469_v8 = vmul.f32 0.0078125, %v5467_v29 }
0x1210   :  { %v5471_v25 = vsub.f32 %v5461_v57, %v5469_v8  ;;  %v5472_v45 = vmul.f32 %v5470_v10, %v5470_v10 }
0x1212   :  { %5474 = vadd.xlane.f32.xlu1 %v5472_v45  ;;  %v5473_v9 = vmul.f32 %v5471_v25, %v5471_v25 }
0x1214   :  { %5476 = vadd.xlane.f32.xlu0 %v5473_v9 }
0x129f   :  { %v5475_v34 = vpop.xlane.xlu1 %5474 }
0x12a0   :  { %v5478_v11 = vmul.f32 0.0078125, %v5475_v34 }
0x12a1   :  { %v5477_v17 = vpop.xlane.xlu0 %5476 }
0x12a2   :  { %v5480_v36 = vadd.f32 1e-05, %v5478_v11  ;;  %v5479_v52 = vmul.f32 0.0078125, %v5477_v17 }
0x12a4   :  { %6334 = vrsqrt.f32 %v5480_v36  ;;  %v5481_v5 = vadd.f32 1e-05, %v5479_v52 }
0x12a6   :  { %6336 = vrsqrt.f32 %v5481_v5 }
0x12ae   :  { %v6335_v18 = vpop.eup %6334 }
0x12af   :  { %v5484_v21 = vmul.f32 %v6335_v18, %v5470_v10 }
0x12b0   :  { %v6337_v46 = vpop.eup %6336 }
0x12b1   :  { %v5485_v43 = vmul.f32 %v6337_v46, %v5471_v25  ;;  %v5492_v59 = vmul.f32 %v5693_v4, %v5484_v21 }
0x12b3   :  { %v5493_v23 = vmul.f32 %v5693_v4, %v5485_v43  ;;  %v5500_v19 = vadd.f32 %v5694_v42, %v5492_v59 }
0x12b5   :  { %v5501_v20 = vadd.f32 %v5694_v42, %v5493_v23  ;;  %5502 = vst [vmem:[#allocation17] sm:$0xff] %v5500_v19 }
0x12b7   :  { %5503 = vst [vmem:[#allocation17 + $0x8] sm:$0xff] %v5501_v20 }
0x12b8   :  { %6549 = shalt.err (!%p6546_p6)
}
0x12b9   :  { %s7838_s21 = sld [smem:[#allocation32_spill]] }
0x12bf   :  { %s6550_s6 = scalar_lea.hbm %s7838_s21, 256 }
0x12c0   :  { %p6551_p7 = scmp.ne.s32.totalorder %s7838_s21, %s6550_s6  ;;  %p6554_p8 = scmp.lt.u32.totalorder %s6550_s6, %s7838_s21 }
0x12c2   :  { %p6556_p9 = pnand %p6554_p8, %p6551_p7 }
0x12c4   :  { %6559 = shalt.err (!%p6556_p9)
}
0x12c5   :  { %s7839_s26 = smov 128  }
0x12c6   :  { %5515 = dma.vmem_to_hbm [thread:$0]  %s5510_s5, 256, %s7838_s21, [#allocation4], %s7839_s26, %s7839_s26, %s7828_s1  }
0x12c7   :  { %6570 = dma.done.wait [#allocation4], 256  }
0x12c8   :  { %6571 = vsyncadd [#allocation4], 4294967040 }
0x12c9   :  { %5519 = vsyncpa [#allocation3], 1 }
0x12ca   :  { %5520 = vsyncpa [#allocation6], 1 }
0x12cb   :  { %5521 = vsyncpa [#allocation9], 1 }
0x12cc   :  { %5522 = vsyncpa [#allocation12], 1 }
0x12cd   :  { %5523 = vsyncpa [#allocation15], 1 }
0x12ce   :  { %5524 = vsyncpa [#allocation4], 1 }

</bundles_post_ra>
